<compile_context>
chip_gen: v7x
topology: tpu7x:2x2x1
jax: 0.10.0
libtpu: 0.0.40
codegen_flags: <defaults>
</compile_context>

<pallas_src>
import jax
import jax.numpy as jnp
from jax.experimental import pallas as pl
from jax.experimental.pallas import tpu as pltpu


# ---------------------------------------------------------------------------
# Fused kernel: full SimpleCNN forward for a block of BT images per grid step.
# ---------------------------------------------------------------------------
def simple_cnn_kernel(x_ref, w1_ref, b1_ref, w2_ref, b2_ref,
                      s1_ref, s2_ref, fw1_ref, fb1_ref, fw2_ref, fb2_ref,
                      o_ref):
    f32, bf16 = jnp.float32, jnp.bfloat16

    BT, H, W = x_ref.shape
    Wo1 = W - 2                       # conv1 "valid" width
    Wp1 = Wo1 // 2                    # pool1 width (floor)
    Hp1 = (H - 2) // 2                # pool1 rows  (floor)
    Wo2 = Wp1 - 2                     # conv2 width
    Wp2 = Wo2 // 2                    # pool2 width
    Hp2 = (Hp1 - 2) // 2              # pool2 rows
    C1 = w1_ref.shape[0]
    C2 = w2_ref.shape[0]
    NH = fw1_ref.shape[3]

    w1 = w1_ref[...]                  # (C1, 9)        bf16   k = dj*3 + di
    b1 = b1_ref[...]                  # (C1, 1)        f32
    w2 = w2_ref[...]                  # (C2, 9*C1)     bf16   k = (di*3+dj)*C1 + c
    b2 = b2_ref[...]                  # (C2, 1)        f32
    s1 = s1_ref[...]                  # (Wo1-1, Wp1)   bf16   0/1 "pick even col"
    s2 = s2_ref[...]                  # (Wo2-1, Wp2)   bf16
    fw2 = fw2_ref[...]                # (NH, NO)       bf16

    # Only pool1 rows actually consumed by conv2 rows 0..2*Hp2-1 are needed.
    n_p1 = min(Hp1, 2 * Hp2 + 2)

    def conv1_row(xb, h):
        # im2col (9, Wo1): three 3-row slabs, one per lane shift dj.
        col = jnp.concatenate([xb[h:h + 3, dj:dj + Wo1] for dj in range(3)],
                              axis=0)                                  # bf16
        y = jnp.dot(w1, col, preferred_element_type=f32) + b1          # (C1, Wo1)
        return jnp.maximum(y, 0.0)

    def conv2_row(p1_rows, h):
        # im2col (9*C1, Wo2): nine shifted (C1, Wo2) slices stacked on sublanes.
        col = jnp.concatenate(
            [p1_rows[h + di][:, dj:dj + Wo2]
             for di in range(3) for dj in range(3)], axis=0)           # bf16
        y = jnp.dot(w2, col, preferred_element_type=f32) + b2          # (C2, Wo2)
        return jnp.maximum(y, 0.0)

    def pool_rows(r0, r1, sel):
        # 2x2 / stride-2 max-pool (floor): pair-max then 0/1 selection matmul.
        m = jnp.maximum(r0, r1)
        wm = jnp.maximum(m[:, :-1], m[:, 1:])
        return jnp.dot(wm.astype(bf16), sel, preferred_element_type=f32)

    # ---- conv stack, one image of the block at a time (static unroll) ------
    p2_all = []                        # p2_all[img][hp] : (C2, Wp2) f32
    for img in range(BT):
        xb = x_ref[img]                # (H, W) bf16
        p1_rows = []
        for hp in range(n_p1):         # conv1 + pool1, interleaved
            r0 = conv1_row(xb, 2 * hp)
            r1 = conv1_row(xb, 2 * hp + 1)
            p1_rows.append(pool_rows(r0, r1, s1).astype(bf16))   # (C1, Wp1)
        p2_rows = []
        for hp in range(Hp2):          # conv2 + pool2, interleaved
            r0 = conv2_row(p1_rows, 2 * hp)
            r1 = conv2_row(p1_rows, 2 * hp + 1)
            p2_rows.append(pool_rows(r0, r1, s2))                # (C2, Wp2) f32
        p2_all.append(p2_rows)

    # ---- fc1 + ReLU, batched over the BT images (M = BT) -------------------
    acc = jnp.zeros((BT, NH), f32) + fb1_ref[...]
    for hp in range(Hp2):
        for c in range(C2):
            lhs = jnp.concatenate(
                [p2_all[img][hp][c:c + 1, :] for img in range(BT)], axis=0)
            acc = acc + jnp.dot(lhs.astype(bf16), fw1_ref[c, hp],
                                preferred_element_type=f32)
    h1 = jnp.maximum(acc, 0.0)                                    # (BT, NH)

    # ---- fc2 + log_softmax (dim=1) ------------------------------------------
    logits = jnp.dot(h1.astype(bf16), fw2,
                     preferred_element_type=f32) + fb2_ref[...]   # (BT, NO)
    mx = jnp.max(logits, axis=-1, keepdims=True)
    sh = logits - mx
    lse = jnp.log(jnp.sum(jnp.exp(sh), axis=-1, keepdims=True))
    o_ref[0] = sh - lse


# ---------------------------------------------------------------------------
# Parameter re-layout (one-time, host/XLA) from torch-convention shapes.
# ---------------------------------------------------------------------------
def _pool_select(wo):
    """(wo-1, wo//2) 0/1 matrix: column w picks the pair-max at even index 2w."""
    r = jnp.arange(wo - 1)[:, None]
    c = jnp.arange(wo // 2)[None, :]
    return (r == 2 * c).astype(jnp.float32)


def prepare_params(params, n_input, fixed_length):
    H, W = n_input, fixed_length
    Wo1 = W - 2
    Hp1, Wp1 = (H - 2) // 2, Wo1 // 2
    Wo2 = Wp1 - 2
    Hp2, Wp2 = (Hp1 - 2) // 2, Wo2 // 2
    c1 = params["conv1_w"].shape[0]
    c2 = params["conv2_w"].shape[0]
    nh = params["fc1_w"].shape[0]
    no = params["fc2_w"].shape[0]
    return dict(
        # conv1 (C1,1,3,3) -> (C1, 9) with k = dj*3 + di (matches im2col order)
        w1=jnp.transpose(params["conv1_w"][:, 0], (0, 2, 1))
             .reshape(c1, 9).astype(jnp.bfloat16),
        b1=params["conv1_b"].reshape(c1, 1).astype(jnp.float32),
        # conv2 (C2,C1,3,3) -> (C2, 9*C1) with k = (di*3+dj)*C1 + cin
        w2=jnp.transpose(params["conv2_w"], (0, 2, 3, 1))
             .reshape(c2, 9 * c1).astype(jnp.bfloat16),
        b2=params["conv2_b"].reshape(c2, 1).astype(jnp.float32),
        s1=_pool_select(Wo1).astype(jnp.bfloat16),
        s2=_pool_select(Wo2).astype(jnp.bfloat16),
        # fc1 (NH, C2*Hp2*Wp2) -> (C2, Hp2, Wp2, NH): matches torch NCHW flatten
        fw1=jnp.transpose(params["fc1_w"].reshape(nh, c2, Hp2, Wp2),
                          (1, 2, 3, 0)).astype(jnp.bfloat16),
        fb1=params["fc1_b"].reshape(1, nh).astype(jnp.float32),
        # fc2 (NO, NH) -> (NH, NO)
        fw2=jnp.transpose(params["fc2_w"], (1, 0)).astype(jnp.bfloat16),
        fb2=params["fc2_b"].reshape(1, no).astype(jnp.float32),
    )


# ---------------------------------------------------------------------------
# Wrapper: single fused pallas_call, batch-blocked (parallel) grid.
# ---------------------------------------------------------------------------
def simple_cnn_forward(x_nchw, kp, block_b=8):
    B, cin, H, W = x_nchw.shape
    assert cin == 1
    n_out = kp["fw2"].shape[1]

    BT = min(block_b, B)
    if B >= 2:                         # keep >=2 grid steps for v7x's 2 TCs
        BT = min(BT, max(1, B // 2))
    while B % BT:                      # BT must divide B
        BT -= 1
    G = B // BT

    x = x_nchw[:, 0].astype(jnp.bfloat16)     # (B, H, W) bf16: halves input DMA

    const2 = lambda g: (0, 0)
    const4 = lambda g: (0, 0, 0, 0)

    out = pl.pallas_call(
        simple_cnn_kernel,
        out_shape=jax.ShapeDtypeStruct((G, BT, n_out), jnp.float32),
        grid=(G,),
        in_specs=[
            pl.BlockSpec((BT, H, W), lambda g: (g, 0, 0)),
            pl.BlockSpec(kp["w1"].shape, const2),
            pl.BlockSpec(kp["b1"].shape, const2),
            pl.BlockSpec(kp["w2"].shape, const2),
            pl.BlockSpec(kp["b2"].shape, const2),
            pl.BlockSpec(kp["s1"].shape, const2),
            pl.BlockSpec(kp["s2"].shape, const2),
            pl.BlockSpec(kp["fw1"].shape, const4),
            pl.BlockSpec(kp["fb1"].shape, const2),
            pl.BlockSpec(kp["fw2"].shape, const2),
            pl.BlockSpec(kp["fb2"].shape, const2),
        ],
        out_specs=pl.BlockSpec((1, BT, n_out), lambda g: (g, 0, 0)),
        compiler_params=pltpu.CompilerParams(
            dimension_semantics=("parallel",),
        ),
    )(x, kp["w1"], kp["b1"], kp["w2"], kp["b2"], kp["s1"], kp["s2"],
      kp["fw1"], kp["fb1"], kp["fw2"], kp["fb2"])
    return out.reshape(B, n_out)


# ---------------------------------------------------------------------------
# Deterministic parameters (PyTorch layouts) + pure-JAX reference.
# ---------------------------------------------------------------------------
def init_params(key, n_input=13, fixed_length=215, n_output=4):
    h1, w1 = n_input - 2, fixed_length - 2
    hp1, wp1 = h1 // 2, w1 // 2
    h2, w2 = hp1 - 2, wp1 - 2
    hp2, wp2 = h2 // 2, w2 // 2
    flat = 32 * hp2 * wp2                           # 1664 for the defaults

    ks = jax.random.split(key, 8)
    return dict(
        conv1_w=0.1 * jax.random.normal(ks[0], (16, 1, 3, 3), jnp.float32),
        conv1_b=0.1 * jax.random.normal(ks[1], (16,), jnp.float32),
        conv2_w=0.1 * jax.random.normal(ks[2], (32, 16, 3, 3), jnp.float32),
        conv2_b=0.1 * jax.random.normal(ks[3], (32,), jnp.float32),
        fc1_w=0.05 * jax.random.normal(ks[4], (128, flat), jnp.float32),
        fc1_b=0.05 * jax.random.normal(ks[5], (128,), jnp.float32),
        fc2_w=0.05 * jax.random.normal(ks[6], (n_output, 128), jnp.float32),
        fc2_b=0.05 * jax.random.normal(ks[7], (n_output,), jnp.float32),
    )


def reference_forward(x, params):
    """Plain-XLA f32 reference mirroring the PyTorch module."""
    dn = ("NCHW", "OIHW", "NCHW")
    y = jax.lax.conv_general_dilated(x, params["conv1_w"], (1, 1), "VALID",
                                     dimension_numbers=dn)
    y = jax.nn.relu(y + params["conv1_b"][None, :, None, None])
    y = jax.lax.reduce_window(y, -jnp.inf, jax.lax.max,
                              (1, 1, 2, 2), (1, 1, 2, 2), "VALID")
    y = jax.lax.conv_general_dilated(y, params["conv2_w"], (1, 1), "VALID",
                                     dimension_numbers=dn)
    y = jax.nn.relu(y + params["conv2_b"][None, :, None, None])
    y = jax.lax.reduce_window(y, -jnp.inf, jax.lax.max,
                              (1, 1, 2, 2), (1, 1, 2, 2), "VALID")
    y = y.reshape(y.shape[0], -1)
    y = jax.nn.relu(y @ params["fc1_w"].T + params["fc1_b"])
    y = y @ params["fc2_w"].T + params["fc2_b"]
    return jax.nn.log_softmax(y, axis=1)


if __name__ == "__main__":
    B, n_input, fixed_length, n_output = 8, 13, 215, 4
    key = jax.random.PRNGKey(0)
    pkey, xkey = jax.random.split(key)

    params = init_params(pkey, n_input, fixed_length, n_output)
    kparams = prepare_params(params, n_input, fixed_length)   # one-time re-layout

    x = jax.random.normal(xkey, (B, 1, n_input, fixed_length), jnp.float32)

    out = jax.jit(simple_cnn_forward)(x, kparams)
    out = jax.block_until_ready(out)

    assert out.shape == (B, n_output), out.shape
    # log_softmax rows exponentiate-sum to 1
    assert bool(jnp.allclose(jnp.exp(out).sum(axis=1), 1.0, atol=1e-3))
    # match the f32 XLA reference (bf16 MXU operands -> loose tolerance)
    ref = reference_forward(x, params)
    assert bool(jnp.allclose(out, ref, atol=5e-2)), (out, ref)
    print("KERNEL_OK")
</pallas_src>

<mosaic_0001>
module attributes {stable_mosaic.version = 11 : i64} {
  func.func @simple_cnn_kernel(%arg0: i32, %arg1: memref<4x13x215xbf16, #tpu.memory_space<vmem>>, %arg2: memref<16x9xbf16, #tpu.memory_space<vmem>>, %arg3: memref<16x1xf32, #tpu.memory_space<vmem>>, %arg4: memref<32x144xbf16, #tpu.memory_space<vmem>>, %arg5: memref<32x1xf32, #tpu.memory_space<vmem>>, %arg6: memref<212x106xbf16, #tpu.memory_space<vmem>>, %arg7: memref<103x52xbf16, #tpu.memory_space<vmem>>, %arg8: memref<32x1x52x128xbf16, #tpu.memory_space<vmem>>, %arg9: memref<1x128xf32, #tpu.memory_space<vmem>>, %arg10: memref<128x4xbf16, #tpu.memory_space<vmem>>, %arg11: memref<1x4xf32, #tpu.memory_space<vmem>>, %arg12: memref<1x4x4xf32, #tpu.memory_space<vmem>>) attributes {dimension_semantics = [#tpu.dimension_semantics<parallel>], iteration_bounds = array<i64: 2>, scalar_prefetch = 0 : i64, scratch_operands = 0 : i64, tpu.core_type = #tpu.core_type<tc>, window_params = [{transform_indices = @transform_0, window_bounds = array<i64: 4, 13, 215>}, {pipeline_mode = #tpu.pipeline_mode<synchronous>, transform_indices = @transform_1, window_bounds = array<i64: 16, 9>}, {pipeline_mode = #tpu.pipeline_mode<synchronous>, transform_indices = @transform_2, window_bounds = array<i64: 16, 1>}, {pipeline_mode = #tpu.pipeline_mode<synchronous>, transform_indices = @transform_3, window_bounds = array<i64: 32, 144>}, {pipeline_mode = #tpu.pipeline_mode<synchronous>, transform_indices = @transform_4, window_bounds = array<i64: 32, 1>}, {pipeline_mode = #tpu.pipeline_mode<synchronous>, transform_indices = @transform_5, window_bounds = array<i64: 212, 106>}, {pipeline_mode = #tpu.pipeline_mode<synchronous>, transform_indices = @transform_6, window_bounds = array<i64: 103, 52>}, {pipeline_mode = #tpu.pipeline_mode<synchronous>, transform_indices = @transform_7, window_bounds = array<i64: 32, 1, 52, 128>}, {pipeline_mode = #tpu.pipeline_mode<synchronous>, transform_indices = @transform_8, window_bounds = array<i64: 1, 128>}, {pipeline_mode = #tpu.pipeline_mode<synchronous>, transform_indices = @transform_9, window_bounds = array<i64: 128, 4>}, {pipeline_mode = #tpu.pipeline_mode<synchronous>, transform_indices = @transform_10, window_bounds = array<i64: 1, 4>}, {transform_indices = @transform_11, window_bounds = array<i64: 1, 4, 4>}]} {
    %c0 = arith.constant 0 : index
    %c0_0 = arith.constant 0 : index
    %0 = vector.load %arg2[%c0, %c0_0] : memref<16x9xbf16, #tpu.memory_space<vmem>>, vector<16x9xbf16>
    %c0_1 = arith.constant 0 : index
    %c0_2 = arith.constant 0 : index
    %1 = vector.load %arg3[%c0_1, %c0_2] : memref<16x1xf32, #tpu.memory_space<vmem>>, vector<16x1xf32>
    %c0_3 = arith.constant 0 : index
    %c0_4 = arith.constant 0 : index
    %2 = vector.load %arg4[%c0_3, %c0_4] : memref<32x144xbf16, #tpu.memory_space<vmem>>, vector<32x144xbf16>
    %c0_5 = arith.constant 0 : index
    %c0_6 = arith.constant 0 : index
    %3 = vector.load %arg5[%c0_5, %c0_6] : memref<32x1xf32, #tpu.memory_space<vmem>>, vector<32x1xf32>
    %c0_7 = arith.constant 0 : index
    %c0_8 = arith.constant 0 : index
    %4 = vector.load %arg6[%c0_7, %c0_8] : memref<212x106xbf16, #tpu.memory_space<vmem>>, vector<212x106xbf16>
    %c0_9 = arith.constant 0 : index
    %c0_10 = arith.constant 0 : index
    %5 = vector.load %arg7[%c0_9, %c0_10] : memref<103x52xbf16, #tpu.memory_space<vmem>>, vector<103x52xbf16>
    %c0_11 = arith.constant 0 : index
    %c0_12 = arith.constant 0 : index
    %6 = vector.load %arg10[%c0_11, %c0_12] : memref<128x4xbf16, #tpu.memory_space<vmem>>, vector<128x4xbf16>
    %c0_13 = arith.constant 0 : index
    %c0_14 = arith.constant 0 : index
    %c0_15 = arith.constant 0 : index
    %7 = vector.load %arg1[%c0_13, %c0_14, %c0_15] : memref<4x13x215xbf16, #tpu.memory_space<vmem>>, vector<1x13x215xbf16>
    %8 = vector.shape_cast %7 : vector<1x13x215xbf16> to vector<13x215xbf16>
    %9 = vector.extract_strided_slice %8 {offsets = [0, 0], sizes = [3, 213], strides = [1, 1]} : vector<13x215xbf16> to vector<3x213xbf16>
    %10 = vector.extract_strided_slice %8 {offsets = [0, 1], sizes = [3, 213], strides = [1, 1]} : vector<13x215xbf16> to vector<3x213xbf16>
    %11 = vector.extract_strided_slice %8 {offsets = [0, 2], sizes = [3, 213], strides = [1, 1]} : vector<13x215xbf16> to vector<3x213xbf16>
    %12 = tpu.concatenate %9, %10, %11 in 0 : vector<3x213xbf16>, vector<3x213xbf16>, vector<3x213xbf16> -> vector<9x213xbf16>
    %cst = arith.constant dense<0.000000e+00> : vector<16x213xf32>
    %13 = tpu.matmul %0, %12, %cst {dimension_numbers = #tpu.dot_dimension_numbers<[1], [0], [0], [1], [0, 0, 1, 1], [], []>} : vector<16x9xbf16>, vector<9x213xbf16>, vector<16x213xf32> -> vector<16x213xf32>
    %14 = vector.broadcast %1 : vector<16x1xf32> to vector<16x213xf32>
    %15 = arith.addf %13, %14 : vector<16x213xf32>
    %cst_16 = arith.constant 0.000000e+00 : f32
    %16 = vector.broadcast %cst_16 : f32 to vector<16x213xf32>
    %17 = arith.maximumf %15, %16 : vector<16x213xf32>
    %18 = vector.extract_strided_slice %8 {offsets = [1, 0], sizes = [3, 213], strides = [1, 1]} : vector<13x215xbf16> to vector<3x213xbf16>
    %19 = vector.extract_strided_slice %8 {offsets = [1, 1], sizes = [3, 213], strides = [1, 1]} : vector<13x215xbf16> to vector<3x213xbf16>
    %20 = vector.extract_strided_slice %8 {offsets = [1, 2], sizes = [3, 213], strides = [1, 1]} : vector<13x215xbf16> to vector<3x213xbf16>
    %21 = tpu.concatenate %18, %19, %20 in 0 : vector<3x213xbf16>, vector<3x213xbf16>, vector<3x213xbf16> -> vector<9x213xbf16>
    %cst_17 = arith.constant dense<0.000000e+00> : vector<16x213xf32>
    %22 = tpu.matmul %0, %21, %cst_17 {dimension_numbers = #tpu.dot_dimension_numbers<[1], [0], [0], [1], [0, 0, 1, 1], [], []>} : vector<16x9xbf16>, vector<9x213xbf16>, vector<16x213xf32> -> vector<16x213xf32>
    %23 = vector.broadcast %1 : vector<16x1xf32> to vector<16x213xf32>
    %24 = arith.addf %22, %23 : vector<16x213xf32>
    %cst_18 = arith.constant 0.000000e+00 : f32
    %25 = vector.broadcast %cst_18 : f32 to vector<16x213xf32>
    %26 = arith.maximumf %24, %25 : vector<16x213xf32>
    %27 = arith.maximumf %17, %26 : vector<16x213xf32>
    %28 = vector.extract_strided_slice %27 {offsets = [0, 0], sizes = [16, 212], strides = [1, 1]} : vector<16x213xf32> to vector<16x212xf32>
    %29 = vector.extract_strided_slice %27 {offsets = [0, 1], sizes = [16, 212], strides = [1, 1]} : vector<16x213xf32> to vector<16x212xf32>
    %30 = arith.maximumf %28, %29 : vector<16x212xf32>
    %31 = arith.truncf %30 : vector<16x212xf32> to vector<16x212xbf16>
    %cst_19 = arith.constant dense<0.000000e+00> : vector<16x106xf32>
    %32 = tpu.matmul %31, %4, %cst_19 {dimension_numbers = #tpu.dot_dimension_numbers<[1], [0], [0], [1], [0, 0, 1, 1], [], []>} : vector<16x212xbf16>, vector<212x106xbf16>, vector<16x106xf32> -> vector<16x106xf32>
    %33 = arith.truncf %32 : vector<16x106xf32> to vector<16x106xbf16>
    %34 = vector.extract_strided_slice %8 {offsets = [2, 0], sizes = [3, 213], strides = [1, 1]} : vector<13x215xbf16> to vector<3x213xbf16>
    %35 = vector.extract_strided_slice %8 {offsets = [2, 1], sizes = [3, 213], strides = [1, 1]} : vector<13x215xbf16> to vector<3x213xbf16>
    %36 = vector.extract_strided_slice %8 {offsets = [2, 2], sizes = [3, 213], strides = [1, 1]} : vector<13x215xbf16> to vector<3x213xbf16>
    %37 = tpu.concatenate %34, %35, %36 in 0 : vector<3x213xbf16>, vector<3x213xbf16>, vector<3x213xbf16> -> vector<9x213xbf16>
    %cst_20 = arith.constant dense<0.000000e+00> : vector<16x213xf32>
    %38 = tpu.matmul %0, %37, %cst_20 {dimension_numbers = #tpu.dot_dimension_numbers<[1], [0], [0], [1], [0, 0, 1, 1], [], []>} : vector<16x9xbf16>, vector<9x213xbf16>, vector<16x213xf32> -> vector<16x213xf32>
    %39 = vector.broadcast %1 : vector<16x1xf32> to vector<16x213xf32>
    %40 = arith.addf %38, %39 : vector<16x213xf32>
    %cst_21 = arith.constant 0.000000e+00 : f32
    %41 = vector.broadcast %cst_21 : f32 to vector<16x213xf32>
    %42 = arith.maximumf %40, %41 : vector<16x213xf32>
    %43 = vector.extract_strided_slice %8 {offsets = [3, 0], sizes = [3, 213], strides = [1, 1]} : vector<13x215xbf16> to vector<3x213xbf16>
    %44 = vector.extract_strided_slice %8 {offsets = [3, 1], sizes = [3, 213], strides = [1, 1]} : vector<13x215xbf16> to vector<3x213xbf16>
    %45 = vector.extract_strided_slice %8 {offsets = [3, 2], sizes = [3, 213], strides = [1, 1]} : vector<13x215xbf16> to vector<3x213xbf16>
    %46 = tpu.concatenate %43, %44, %45 in 0 : vector<3x213xbf16>, vector<3x213xbf16>, vector<3x213xbf16> -> vector<9x213xbf16>
    %cst_22 = arith.constant dense<0.000000e+00> : vector<16x213xf32>
    %47 = tpu.matmul %0, %46, %cst_22 {dimension_numbers = #tpu.dot_dimension_numbers<[1], [0], [0], [1], [0, 0, 1, 1], [], []>} : vector<16x9xbf16>, vector<9x213xbf16>, vector<16x213xf32> -> vector<16x213xf32>
    %48 = vector.broadcast %1 : vector<16x1xf32> to vector<16x213xf32>
    %49 = arith.addf %47, %48 : vector<16x213xf32>
    %cst_23 = arith.constant 0.000000e+00 : f32
    %50 = vector.broadcast %cst_23 : f32 to vector<16x213xf32>
    %51 = arith.maximumf %49, %50 : vector<16x213xf32>
    %52 = arith.maximumf %42, %51 : vector<16x213xf32>
    %53 = vector.extract_strided_slice %52 {offsets = [0, 0], sizes = [16, 212], strides = [1, 1]} : vector<16x213xf32> to vector<16x212xf32>
    %54 = vector.extract_strided_slice %52 {offsets = [0, 1], sizes = [16, 212], strides = [1, 1]} : vector<16x213xf32> to vector<16x212xf32>
    %55 = arith.maximumf %53, %54 : vector<16x212xf32>
    %56 = arith.truncf %55 : vector<16x212xf32> to vector<16x212xbf16>
    %cst_24 = arith.constant dense<0.000000e+00> : vector<16x106xf32>
    %57 = tpu.matmul %56, %4, %cst_24 {dimension_numbers = #tpu.dot_dimension_numbers<[1], [0], [0], [1], [0, 0, 1, 1], [], []>} : vector<16x212xbf16>, vector<212x106xbf16>, vector<16x106xf32> -> vector<16x106xf32>
    %58 = arith.truncf %57 : vector<16x106xf32> to vector<16x106xbf16>
    %59 = vector.extract_strided_slice %8 {offsets = [4, 0], sizes = [3, 213], strides = [1, 1]} : vector<13x215xbf16> to vector<3x213xbf16>
    %60 = vector.extract_strided_slice %8 {offsets = [4, 1], sizes = [3, 213], strides = [1, 1]} : vector<13x215xbf16> to vector<3x213xbf16>
    %61 = vector.extract_strided_slice %8 {offsets = [4, 2], sizes = [3, 213], strides = [1, 1]} : vector<13x215xbf16> to vector<3x213xbf16>
    %62 = tpu.concatenate %59, %60, %61 in 0 : vector<3x213xbf16>, vector<3x213xbf16>, vector<3x213xbf16> -> vector<9x213xbf16>
    %cst_25 = arith.constant dense<0.000000e+00> : vector<16x213xf32>
    %63 = tpu.matmul %0, %62, %cst_25 {dimension_numbers = #tpu.dot_dimension_numbers<[1], [0], [0], [1], [0, 0, 1, 1], [], []>} : vector<16x9xbf16>, vector<9x213xbf16>, vector<16x213xf32> -> vector<16x213xf32>
    %64 = vector.broadcast %1 : vector<16x1xf32> to vector<16x213xf32>
    %65 = arith.addf %63, %64 : vector<16x213xf32>
    %cst_26 = arith.constant 0.000000e+00 : f32
    %66 = vector.broadcast %cst_26 : f32 to vector<16x213xf32>
    %67 = arith.maximumf %65, %66 : vector<16x213xf32>
    %68 = vector.extract_strided_slice %8 {offsets = [5, 0], sizes = [3, 213], strides = [1, 1]} : vector<13x215xbf16> to vector<3x213xbf16>
    %69 = vector.extract_strided_slice %8 {offsets = [5, 1], sizes = [3, 213], strides = [1, 1]} : vector<13x215xbf16> to vector<3x213xbf16>
    %70 = vector.extract_strided_slice %8 {offsets = [5, 2], sizes = [3, 213], strides = [1, 1]} : vector<13x215xbf16> to vector<3x213xbf16>
    %71 = tpu.concatenate %68, %69, %70 in 0 : vector<3x213xbf16>, vector<3x213xbf16>, vector<3x213xbf16> -> vector<9x213xbf16>
    %cst_27 = arith.constant dense<0.000000e+00> : vector<16x213xf32>
    %72 = tpu.matmul %0, %71, %cst_27 {dimension_numbers = #tpu.dot_dimension_numbers<[1], [0], [0], [1], [0, 0, 1, 1], [], []>} : vector<16x9xbf16>, vector<9x213xbf16>, vector<16x213xf32> -> vector<16x213xf32>
    %73 = vector.broadcast %1 : vector<16x1xf32> to vector<16x213xf32>
    %74 = arith.addf %72, %73 : vector<16x213xf32>
    %cst_28 = arith.constant 0.000000e+00 : f32
    %75 = vector.broadcast %cst_28 : f32 to vector<16x213xf32>
    %76 = arith.maximumf %74, %75 : vector<16x213xf32>
    %77 = arith.maximumf %67, %76 : vector<16x213xf32>
    %78 = vector.extract_strided_slice %77 {offsets = [0, 0], sizes = [16, 212], strides = [1, 1]} : vector<16x213xf32> to vector<16x212xf32>
    %79 = vector.extract_strided_slice %77 {offsets = [0, 1], sizes = [16, 212], strides = [1, 1]} : vector<16x213xf32> to vector<16x212xf32>
    %80 = arith.maximumf %78, %79 : vector<16x212xf32>
    %81 = arith.truncf %80 : vector<16x212xf32> to vector<16x212xbf16>
    %cst_29 = arith.constant dense<0.000000e+00> : vector<16x106xf32>
    %82 = tpu.matmul %81, %4, %cst_29 {dimension_numbers = #tpu.dot_dimension_numbers<[1], [0], [0], [1], [0, 0, 1, 1], [], []>} : vector<16x212xbf16>, vector<212x106xbf16>, vector<16x106xf32> -> vector<16x106xf32>
    %83 = arith.truncf %82 : vector<16x106xf32> to vector<16x106xbf16>
    %84 = vector.extract_strided_slice %8 {offsets = [6, 0], sizes = [3, 213], strides = [1, 1]} : vector<13x215xbf16> to vector<3x213xbf16>
    %85 = vector.extract_strided_slice %8 {offsets = [6, 1], sizes = [3, 213], strides = [1, 1]} : vector<13x215xbf16> to vector<3x213xbf16>
    %86 = vector.extract_strided_slice %8 {offsets = [6, 2], sizes = [3, 213], strides = [1, 1]} : vector<13x215xbf16> to vector<3x213xbf16>
    %87 = tpu.concatenate %84, %85, %86 in 0 : vector<3x213xbf16>, vector<3x213xbf16>, vector<3x213xbf16> -> vector<9x213xbf16>
    %cst_30 = arith.constant dense<0.000000e+00> : vector<16x213xf32>
    %88 = tpu.matmul %0, %87, %cst_30 {dimension_numbers = #tpu.dot_dimension_numbers<[1], [0], [0], [1], [0, 0, 1, 1], [], []>} : vector<16x9xbf16>, vector<9x213xbf16>, vector<16x213xf32> -> vector<16x213xf32>
    %89 = vector.broadcast %1 : vector<16x1xf32> to vector<16x213xf32>
    %90 = arith.addf %88, %89 : vector<16x213xf32>
    %cst_31 = arith.constant 0.000000e+00 : f32
    %91 = vector.broadcast %cst_31 : f32 to vector<16x213xf32>
    %92 = arith.maximumf %90, %91 : vector<16x213xf32>
    %93 = vector.extract_strided_slice %8 {offsets = [7, 0], sizes = [3, 213], strides = [1, 1]} : vector<13x215xbf16> to vector<3x213xbf16>
    %94 = vector.extract_strided_slice %8 {offsets = [7, 1], sizes = [3, 213], strides = [1, 1]} : vector<13x215xbf16> to vector<3x213xbf16>
    %95 = vector.extract_strided_slice %8 {offsets = [7, 2], sizes = [3, 213], strides = [1, 1]} : vector<13x215xbf16> to vector<3x213xbf16>
    %96 = tpu.concatenate %93, %94, %95 in 0 : vector<3x213xbf16>, vector<3x213xbf16>, vector<3x213xbf16> -> vector<9x213xbf16>
    %cst_32 = arith.constant dense<0.000000e+00> : vector<16x213xf32>
    %97 = tpu.matmul %0, %96, %cst_32 {dimension_numbers = #tpu.dot_dimension_numbers<[1], [0], [0], [1], [0, 0, 1, 1], [], []>} : vector<16x9xbf16>, vector<9x213xbf16>, vector<16x213xf32> -> vector<16x213xf32>
    %98 = vector.broadcast %1 : vector<16x1xf32> to vector<16x213xf32>
    %99 = arith.addf %97, %98 : vector<16x213xf32>
    %cst_33 = arith.constant 0.000000e+00 : f32
    %100 = vector.broadcast %cst_33 : f32 to vector<16x213xf32>
    %101 = arith.maximumf %99, %100 : vector<16x213xf32>
    %102 = arith.maximumf %92, %101 : vector<16x213xf32>
    %103 = vector.extract_strided_slice %102 {offsets = [0, 0], sizes = [16, 212], strides = [1, 1]} : vector<16x213xf32> to vector<16x212xf32>
    %104 = vector.extract_strided_slice %102 {offsets = [0, 1], sizes = [16, 212], strides = [1, 1]} : vector<16x213xf32> to vector<16x212xf32>
    %105 = arith.maximumf %103, %104 : vector<16x212xf32>
    %106 = arith.truncf %105 : vector<16x212xf32> to vector<16x212xbf16>
    %cst_34 = arith.constant dense<0.000000e+00> : vector<16x106xf32>
    %107 = tpu.matmul %106, %4, %cst_34 {dimension_numbers = #tpu.dot_dimension_numbers<[1], [0], [0], [1], [0, 0, 1, 1], [], []>} : vector<16x212xbf16>, vector<212x106xbf16>, vector<16x106xf32> -> vector<16x106xf32>
    %108 = arith.truncf %107 : vector<16x106xf32> to vector<16x106xbf16>
    %109 = vector.extract_strided_slice %33 {offsets = [0, 0], sizes = [16, 104], strides = [1, 1]} : vector<16x106xbf16> to vector<16x104xbf16>
    %110 = vector.extract_strided_slice %33 {offsets = [0, 1], sizes = [16, 104], strides = [1, 1]} : vector<16x106xbf16> to vector<16x104xbf16>
    %111 = vector.extract_strided_slice %33 {offsets = [0, 2], sizes = [16, 104], strides = [1, 1]} : vector<16x106xbf16> to vector<16x104xbf16>
    %112 = vector.extract_strided_slice %58 {offsets = [0, 0], sizes = [16, 104], strides = [1, 1]} : vector<16x106xbf16> to vector<16x104xbf16>
    %113 = vector.extract_strided_slice %58 {offsets = [0, 1], sizes = [16, 104], strides = [1, 1]} : vector<16x106xbf16> to vector<16x104xbf16>
    %114 = vector.extract_strided_slice %58 {offsets = [0, 2], sizes = [16, 104], strides = [1, 1]} : vector<16x106xbf16> to vector<16x104xbf16>
    %115 = vector.extract_strided_slice %83 {offsets = [0, 0], sizes = [16, 104], strides = [1, 1]} : vector<16x106xbf16> to vector<16x104xbf16>
    %116 = vector.extract_strided_slice %83 {offsets = [0, 1], sizes = [16, 104], strides = [1, 1]} : vector<16x106xbf16> to vector<16x104xbf16>
    %117 = vector.extract_strided_slice %83 {offsets = [0, 2], sizes = [16, 104], strides = [1, 1]} : vector<16x106xbf16> to vector<16x104xbf16>
    %118 = tpu.concatenate %109, %110, %111, %112, %113, %114, %115, %116, %117 in 0 : vector<16x104xbf16>, vector<16x104xbf16>, vector<16x104xbf16>, vector<16x104xbf16>, vector<16x104xbf16>, vector<16x104xbf16>, vector<16x104xbf16>, vector<16x104xbf16>, vector<16x104xbf16> -> vector<144x104xbf16>
    %cst_35 = arith.constant dense<0.000000e+00> : vector<32x104xf32>
    %119 = tpu.matmul %2, %118, %cst_35 {dimension_numbers = #tpu.dot_dimension_numbers<[1], [0], [0], [1], [0, 0, 1, 1], [], []>} : vector<32x144xbf16>, vector<144x104xbf16>, vector<32x104xf32> -> vector<32x104xf32>
    %120 = vector.broadcast %3 : vector<32x1xf32> to vector<32x104xf32>
    %121 = arith.addf %119, %120 : vector<32x104xf32>
    %cst_36 = arith.constant 0.000000e+00 : f32
    %122 = vector.broadcast %cst_36 : f32 to vector<32x104xf32>
    %123 = arith.maximumf %121, %122 : vector<32x104xf32>
    %124 = vector.extract_strided_slice %58 {offsets = [0, 0], sizes = [16, 104], strides = [1, 1]} : vector<16x106xbf16> to vector<16x104xbf16>
    %125 = vector.extract_strided_slice %58 {offsets = [0, 1], sizes = [16, 104], strides = [1, 1]} : vector<16x106xbf16> to vector<16x104xbf16>
    %126 = vector.extract_strided_slice %58 {offsets = [0, 2], sizes = [16, 104], strides = [1, 1]} : vector<16x106xbf16> to vector<16x104xbf16>
    %127 = vector.extract_strided_slice %83 {offsets = [0, 0], sizes = [16, 104], strides = [1, 1]} : vector<16x106xbf16> to vector<16x104xbf16>
    %128 = vector.extract_strided_slice %83 {offsets = [0, 1], sizes = [16, 104], strides = [1, 1]} : vector<16x106xbf16> to vector<16x104xbf16>
    %129 = vector.extract_strided_slice %83 {offsets = [0, 2], sizes = [16, 104], strides = [1, 1]} : vector<16x106xbf16> to vector<16x104xbf16>
    %130 = vector.extract_strided_slice %108 {offsets = [0, 0], sizes = [16, 104], strides = [1, 1]} : vector<16x106xbf16> to vector<16x104xbf16>
    %131 = vector.extract_strided_slice %108 {offsets = [0, 1], sizes = [16, 104], strides = [1, 1]} : vector<16x106xbf16> to vector<16x104xbf16>
    %132 = vector.extract_strided_slice %108 {offsets = [0, 2], sizes = [16, 104], strides = [1, 1]} : vector<16x106xbf16> to vector<16x104xbf16>
    %133 = tpu.concatenate %124, %125, %126, %127, %128, %129, %130, %131, %132 in 0 : vector<16x104xbf16>, vector<16x104xbf16>, vector<16x104xbf16>, vector<16x104xbf16>, vector<16x104xbf16>, vector<16x104xbf16>, vector<16x104xbf16>, vector<16x104xbf16>, vector<16x104xbf16> -> vector<144x104xbf16>
    %cst_37 = arith.constant dense<0.000000e+00> : vector<32x104xf32>
    %134 = tpu.matmul %2, %133, %cst_37 {dimension_numbers = #tpu.dot_dimension_numbers<[1], [0], [0], [1], [0, 0, 1, 1], [], []>} : vector<32x144xbf16>, vector<144x104xbf16>, vector<32x104xf32> -> vector<32x104xf32>
    %135 = vector.broadcast %3 : vector<32x1xf32> to vector<32x104xf32>
    %136 = arith.addf %134, %135 : vector<32x104xf32>
    %cst_38 = arith.constant 0.000000e+00 : f32
    %137 = vector.broadcast %cst_38 : f32 to vector<32x104xf32>
    %138 = arith.maximumf %136, %137 : vector<32x104xf32>
    %139 = arith.maximumf %123, %138 : vector<32x104xf32>
    %140 = vector.extract_strided_slice %139 {offsets = [0, 0], sizes = [32, 103], strides = [1, 1]} : vector<32x104xf32> to vector<32x103xf32>
    %141 = vector.extract_strided_slice %139 {offsets = [0, 1], sizes = [32, 103], strides = [1, 1]} : vector<32x104xf32> to vector<32x103xf32>
    %142 = arith.maximumf %140, %141 : vector<32x103xf32>
    %143 = arith.truncf %142 : vector<32x103xf32> to vector<32x103xbf16>
    %cst_39 = arith.constant dense<0.000000e+00> : vector<32x52xf32>
    %144 = tpu.matmul %143, %5, %cst_39 {dimension_numbers = #tpu.dot_dimension_numbers<[1], [0], [0], [1], [0, 0, 1, 1], [], []>} : vector<32x103xbf16>, vector<103x52xbf16>, vector<32x52xf32> -> vector<32x52xf32>
    %c1 = arith.constant 1 : index
    %c0_40 = arith.constant 0 : index
    %c0_41 = arith.constant 0 : index
    %145 = vector.load %arg1[%c1, %c0_40, %c0_41] : memref<4x13x215xbf16, #tpu.memory_space<vmem>>, vector<1x13x215xbf16>
    %146 = vector.shape_cast %145 : vector<1x13x215xbf16> to vector<13x215xbf16>
    %147 = vector.extract_strided_slice %146 {offsets = [0, 0], sizes = [3, 213], strides = [1, 1]} : vector<13x215xbf16> to vector<3x213xbf16>
    %148 = vector.extract_strided_slice %146 {offsets = [0, 1], sizes = [3, 213], strides = [1, 1]} : vector<13x215xbf16> to vector<3x213xbf16>
    %149 = vector.extract_strided_slice %146 {offsets = [0, 2], sizes = [3, 213], strides = [1, 1]} : vector<13x215xbf16> to vector<3x213xbf16>
    %150 = tpu.concatenate %147, %148, %149 in 0 : vector<3x213xbf16>, vector<3x213xbf16>, vector<3x213xbf16> -> vector<9x213xbf16>
    %cst_42 = arith.constant dense<0.000000e+00> : vector<16x213xf32>
    %151 = tpu.matmul %0, %150, %cst_42 {dimension_numbers = #tpu.dot_dimension_numbers<[1], [0], [0], [1], [0, 0, 1, 1], [], []>} : vector<16x9xbf16>, vector<9x213xbf16>, vector<16x213xf32> -> vector<16x213xf32>
    %152 = vector.broadcast %1 : vector<16x1xf32> to vector<16x213xf32>
    %153 = arith.addf %151, %152 : vector<16x213xf32>
    %cst_43 = arith.constant 0.000000e+00 : f32
    %154 = vector.broadcast %cst_43 : f32 to vector<16x213xf32>
    %155 = arith.maximumf %153, %154 : vector<16x213xf32>
    %156 = vector.extract_strided_slice %146 {offsets = [1, 0], sizes = [3, 213], strides = [1, 1]} : vector<13x215xbf16> to vector<3x213xbf16>
    %157 = vector.extract_strided_slice %146 {offsets = [1, 1], sizes = [3, 213], strides = [1, 1]} : vector<13x215xbf16> to vector<3x213xbf16>
    %158 = vector.extract_strided_slice %146 {offsets = [1, 2], sizes = [3, 213], strides = [1, 1]} : vector<13x215xbf16> to vector<3x213xbf16>
    %159 = tpu.concatenate %156, %157, %158 in 0 : vector<3x213xbf16>, vector<3x213xbf16>, vector<3x213xbf16> -> vector<9x213xbf16>
    %cst_44 = arith.constant dense<0.000000e+00> : vector<16x213xf32>
    %160 = tpu.matmul %0, %159, %cst_44 {dimension_numbers = #tpu.dot_dimension_numbers<[1], [0], [0], [1], [0, 0, 1, 1], [], []>} : vector<16x9xbf16>, vector<9x213xbf16>, vector<16x213xf32> -> vector<16x213xf32>
    %161 = vector.broadcast %1 : vector<16x1xf32> to vector<16x213xf32>
    %162 = arith.addf %160, %161 : vector<16x213xf32>
    %cst_45 = arith.constant 0.000000e+00 : f32
    %163 = vector.broadcast %cst_45 : f32 to vector<16x213xf32>
    %164 = arith.maximumf %162, %163 : vector<16x213xf32>
    %165 = arith.maximumf %155, %164 : vector<16x213xf32>
    %166 = vector.extract_strided_slice %165 {offsets = [0, 0], sizes = [16, 212], strides = [1, 1]} : vector<16x213xf32> to vector<16x212xf32>
    %167 = vector.extract_strided_slice %165 {offsets = [0, 1], sizes = [16, 212], strides = [1, 1]} : vector<16x213xf32> to vector<16x212xf32>
    %168 = arith.maximumf %166, %167 : vector<16x212xf32>
    %169 = arith.truncf %168 : vector<16x212xf32> to vector<16x212xbf16>
    %cst_46 = arith.constant dense<0.000000e+00> : vector<16x106xf32>
    %170 = tpu.matmul %169, %4, %cst_46 {dimension_numbers = #tpu.dot_dimension_numbers<[1], [0], [0], [1], [0, 0, 1, 1], [], []>} : vector<16x212xbf16>, vector<212x106xbf16>, vector<16x106xf32> -> vector<16x106xf32>
    %171 = arith.truncf %170 : vector<16x106xf32> to vector<16x106xbf16>
    %172 = vector.extract_strided_slice %146 {offsets = [2, 0], sizes = [3, 213], strides = [1, 1]} : vector<13x215xbf16> to vector<3x213xbf16>
    %173 = vector.extract_strided_slice %146 {offsets = [2, 1], sizes = [3, 213], strides = [1, 1]} : vector<13x215xbf16> to vector<3x213xbf16>
    %174 = vector.extract_strided_slice %146 {offsets = [2, 2], sizes = [3, 213], strides = [1, 1]} : vector<13x215xbf16> to vector<3x213xbf16>
    %175 = tpu.concatenate %172, %173, %174 in 0 : vector<3x213xbf16>, vector<3x213xbf16>, vector<3x213xbf16> -> vector<9x213xbf16>
    %cst_47 = arith.constant dense<0.000000e+00> : vector<16x213xf32>
    %176 = tpu.matmul %0, %175, %cst_47 {dimension_numbers = #tpu.dot_dimension_numbers<[1], [0], [0], [1], [0, 0, 1, 1], [], []>} : vector<16x9xbf16>, vector<9x213xbf16>, vector<16x213xf32> -> vector<16x213xf32>
    %177 = vector.broadcast %1 : vector<16x1xf32> to vector<16x213xf32>
    %178 = arith.addf %176, %177 : vector<16x213xf32>
    %cst_48 = arith.constant 0.000000e+00 : f32
    %179 = vector.broadcast %cst_48 : f32 to vector<16x213xf32>
    %180 = arith.maximumf %178, %179 : vector<16x213xf32>
    %181 = vector.extract_strided_slice %146 {offsets = [3, 0], sizes = [3, 213], strides = [1, 1]} : vector<13x215xbf16> to vector<3x213xbf16>
    %182 = vector.extract_strided_slice %146 {offsets = [3, 1], sizes = [3, 213], strides = [1, 1]} : vector<13x215xbf16> to vector<3x213xbf16>
    %183 = vector.extract_strided_slice %146 {offsets = [3, 2], sizes = [3, 213], strides = [1, 1]} : vector<13x215xbf16> to vector<3x213xbf16>
    %184 = tpu.concatenate %181, %182, %183 in 0 : vector<3x213xbf16>, vector<3x213xbf16>, vector<3x213xbf16> -> vector<9x213xbf16>
    %cst_49 = arith.constant dense<0.000000e+00> : vector<16x213xf32>
    %185 = tpu.matmul %0, %184, %cst_49 {dimension_numbers = #tpu.dot_dimension_numbers<[1], [0], [0], [1], [0, 0, 1, 1], [], []>} : vector<16x9xbf16>, vector<9x213xbf16>, vector<16x213xf32> -> vector<16x213xf32>
    %186 = vector.broadcast %1 : vector<16x1xf32> to vector<16x213xf32>
    %187 = arith.addf %185, %186 : vector<16x213xf32>
    %cst_50 = arith.constant 0.000000e+00 : f32
    %188 = vector.broadcast %cst_50 : f32 to vector<16x213xf32>
    %189 = arith.maximumf %187, %188 : vector<16x213xf32>
    %190 = arith.maximumf %180, %189 : vector<16x213xf32>
    %191 = vector.extract_strided_slice %190 {offsets = [0, 0], sizes = [16, 212], strides = [1, 1]} : vector<16x213xf32> to vector<16x212xf32>
    %192 = vector.extract_strided_slice %190 {offsets = [0, 1], sizes = [16, 212], strides = [1, 1]} : vector<16x213xf32> to vector<16x212xf32>
    %193 = arith.maximumf %191, %192 : vector<16x212xf32>
    %194 = arith.truncf %193 : vector<16x212xf32> to vector<16x212xbf16>
    %cst_51 = arith.constant dense<0.000000e+00> : vector<16x106xf32>
    %195 = tpu.matmul %194, %4, %cst_51 {dimension_numbers = #tpu.dot_dimension_numbers<[1], [0], [0], [1], [0, 0, 1, 1], [], []>} : vector<16x212xbf16>, vector<212x106xbf16>, vector<16x106xf32> -> vector<16x106xf32>
    %196 = arith.truncf %195 : vector<16x106xf32> to vector<16x106xbf16>
    %197 = vector.extract_strided_slice %146 {offsets = [4, 0], sizes = [3, 213], strides = [1, 1]} : vector<13x215xbf16> to vector<3x213xbf16>
    %198 = vector.extract_strided_slice %146 {offsets = [4, 1], sizes = [3, 213], strides = [1, 1]} : vector<13x215xbf16> to vector<3x213xbf16>
    %199 = vector.extract_strided_slice %146 {offsets = [4, 2], sizes = [3, 213], strides = [1, 1]} : vector<13x215xbf16> to vector<3x213xbf16>
    %200 = tpu.concatenate %197, %198, %199 in 0 : vector<3x213xbf16>, vector<3x213xbf16>, vector<3x213xbf16> -> vector<9x213xbf16>
    %cst_52 = arith.constant dense<0.000000e+00> : vector<16x213xf32>
    %201 = tpu.matmul %0, %200, %cst_52 {dimension_numbers = #tpu.dot_dimension_numbers<[1], [0], [0], [1], [0, 0, 1, 1], [], []>} : vector<16x9xbf16>, vector<9x213xbf16>, vector<16x213xf32> -> vector<16x213xf32>
    %202 = vector.broadcast %1 : vector<16x1xf32> to vector<16x213xf32>
    %203 = arith.addf %201, %202 : vector<16x213xf32>
    %cst_53 = arith.constant 0.000000e+00 : f32
    %204 = vector.broadcast %cst_53 : f32 to vector<16x213xf32>
    %205 = arith.maximumf %203, %204 : vector<16x213xf32>
    %206 = vector.extract_strided_slice %146 {offsets = [5, 0], sizes = [3, 213], strides = [1, 1]} : vector<13x215xbf16> to vector<3x213xbf16>
    %207 = vector.extract_strided_slice %146 {offsets = [5, 1], sizes = [3, 213], strides = [1, 1]} : vector<13x215xbf16> to vector<3x213xbf16>
    %208 = vector.extract_strided_slice %146 {offsets = [5, 2], sizes = [3, 213], strides = [1, 1]} : vector<13x215xbf16> to vector<3x213xbf16>
    %209 = tpu.concatenate %206, %207, %208 in 0 : vector<3x213xbf16>, vector<3x213xbf16>, vector<3x213xbf16> -> vector<9x213xbf16>
    %cst_54 = arith.constant dense<0.000000e+00> : vector<16x213xf32>
    %210 = tpu.matmul %0, %209, %cst_54 {dimension_numbers = #tpu.dot_dimension_numbers<[1], [0], [0], [1], [0, 0, 1, 1], [], []>} : vector<16x9xbf16>, vector<9x213xbf16>, vector<16x213xf32> -> vector<16x213xf32>
    %211 = vector.broadcast %1 : vector<16x1xf32> to vector<16x213xf32>
    %212 = arith.addf %210, %211 : vector<16x213xf32>
    %cst_55 = arith.constant 0.000000e+00 : f32
    %213 = vector.broadcast %cst_55 : f32 to vector<16x213xf32>
    %214 = arith.maximumf %212, %213 : vector<16x213xf32>
    %215 = arith.maximumf %205, %214 : vector<16x213xf32>
    %216 = vector.extract_strided_slice %215 {offsets = [0, 0], sizes = [16, 212], strides = [1, 1]} : vector<16x213xf32> to vector<16x212xf32>
    %217 = vector.extract_strided_slice %215 {offsets = [0, 1], sizes = [16, 212], strides = [1, 1]} : vector<16x213xf32> to vector<16x212xf32>
    %218 = arith.maximumf %216, %217 : vector<16x212xf32>
    %219 = arith.truncf %218 : vector<16x212xf32> to vector<16x212xbf16>
    %cst_56 = arith.constant dense<0.000000e+00> : vector<16x106xf32>
    %220 = tpu.matmul %219, %4, %cst_56 {dimension_numbers = #tpu.dot_dimension_numbers<[1], [0], [0], [1], [0, 0, 1, 1], [], []>} : vector<16x212xbf16>, vector<212x106xbf16>, vector<16x106xf32> -> vector<16x106xf32>
    %221 = arith.truncf %220 : vector<16x106xf32> to vector<16x106xbf16>
    %222 = vector.extract_strided_slice %146 {offsets = [6, 0], sizes = [3, 213], strides = [1, 1]} : vector<13x215xbf16> to vector<3x213xbf16>
    %223 = vector.extract_strided_slice %146 {offsets = [6, 1], sizes = [3, 213], strides = [1, 1]} : vector<13x215xbf16> to vector<3x213xbf16>
    %224 = vector.extract_strided_slice %146 {offsets = [6, 2], sizes = [3, 213], strides = [1, 1]} : vector<13x215xbf16> to vector<3x213xbf16>
    %225 = tpu.concatenate %222, %223, %224 in 0 : vector<3x213xbf16>, vector<3x213xbf16>, vector<3x213xbf16> -> vector<9x213xbf16>
    %cst_57 = arith.constant dense<0.000000e+00> : vector<16x213xf32>
    %226 = tpu.matmul %0, %225, %cst_57 {dimension_numbers = #tpu.dot_dimension_numbers<[1], [0], [0], [1], [0, 0, 1, 1], [], []>} : vector<16x9xbf16>, vector<9x213xbf16>, vector<16x213xf32> -> vector<16x213xf32>
    %227 = vector.broadcast %1 : vector<16x1xf32> to vector<16x213xf32>
    %228 = arith.addf %226, %227 : vector<16x213xf32>
    %cst_58 = arith.constant 0.000000e+00 : f32
    %229 = vector.broadcast %cst_58 : f32 to vector<16x213xf32>
    %230 = arith.maximumf %228, %229 : vector<16x213xf32>
    %231 = vector.extract_strided_slice %146 {offsets = [7, 0], sizes = [3, 213], strides = [1, 1]} : vector<13x215xbf16> to vector<3x213xbf16>
    %232 = vector.extract_strided_slice %146 {offsets = [7, 1], sizes = [3, 213], strides = [1, 1]} : vector<13x215xbf16> to vector<3x213xbf16>
    %233 = vector.extract_strided_slice %146 {offsets = [7, 2], sizes = [3, 213], strides = [1, 1]} : vector<13x215xbf16> to vector<3x213xbf16>
    %234 = tpu.concatenate %231, %232, %233 in 0 : vector<3x213xbf16>, vector<3x213xbf16>, vector<3x213xbf16> -> vector<9x213xbf16>
    %cst_59 = arith.constant dense<0.000000e+00> : vector<16x213xf32>
    %235 = tpu.matmul %0, %234, %cst_59 {dimension_numbers = #tpu.dot_dimension_numbers<[1], [0], [0], [1], [0, 0, 1, 1], [], []>} : vector<16x9xbf16>, vector<9x213xbf16>, vector<16x213xf32> -> vector<16x213xf32>
    %236 = vector.broadcast %1 : vector<16x1xf32> to vector<16x213xf32>
    %237 = arith.addf %235, %236 : vector<16x213xf32>
    %cst_60 = arith.constant 0.000000e+00 : f32
    %238 = vector.broadcast %cst_60 : f32 to vector<16x213xf32>
    %239 = arith.maximumf %237, %238 : vector<16x213xf32>
    %240 = arith.maximumf %230, %239 : vector<16x213xf32>
    %241 = vector.extract_strided_slice %240 {offsets = [0, 0], sizes = [16, 212], strides = [1, 1]} : vector<16x213xf32> to vector<16x212xf32>
    %242 = vector.extract_strided_slice %240 {offsets = [0, 1], sizes = [16, 212], strides = [1, 1]} : vector<16x213xf32> to vector<16x212xf32>
    %243 = arith.maximumf %241, %242 : vector<16x212xf32>
    %244 = arith.truncf %243 : vector<16x212xf32> to vector<16x212xbf16>
    %cst_61 = arith.constant dense<0.000000e+00> : vector<16x106xf32>
    %245 = tpu.matmul %244, %4, %cst_61 {dimension_numbers = #tpu.dot_dimension_numbers<[1], [0], [0], [1], [0, 0, 1, 1], [], []>} : vector<16x212xbf16>, vector<212x106xbf16>, vector<16x106xf32> -> vector<16x106xf32>
    %246 = arith.truncf %245 : vector<16x106xf32> to vector<16x106xbf16>
    %247 = vector.extract_strided_slice %171 {offsets = [0, 0], sizes = [16, 104], strides = [1, 1]} : vector<16x106xbf16> to vector<16x104xbf16>
    %248 = vector.extract_strided_slice %171 {offsets = [0, 1], sizes = [16, 104], strides = [1, 1]} : vector<16x106xbf16> to vector<16x104xbf16>
    %249 = vector.extract_strided_slice %171 {offsets = [0, 2], sizes = [16, 104], strides = [1, 1]} : vector<16x106xbf16> to vector<16x104xbf16>
    %250 = vector.extract_strided_slice %196 {offsets = [0, 0], sizes = [16, 104], strides = [1, 1]} : vector<16x106xbf16> to vector<16x104xbf16>
    %251 = vector.extract_strided_slice %196 {offsets = [0, 1], sizes = [16, 104], strides = [1, 1]} : vector<16x106xbf16> to vector<16x104xbf16>
    %252 = vector.extract_strided_slice %196 {offsets = [0, 2], sizes = [16, 104], strides = [1, 1]} : vector<16x106xbf16> to vector<16x104xbf16>
    %253 = vector.extract_strided_slice %221 {offsets = [0, 0], sizes = [16, 104], strides = [1, 1]} : vector<16x106xbf16> to vector<16x104xbf16>
    %254 = vector.extract_strided_slice %221 {offsets = [0, 1], sizes = [16, 104], strides = [1, 1]} : vector<16x106xbf16> to vector<16x104xbf16>
    %255 = vector.extract_strided_slice %221 {offsets = [0, 2], sizes = [16, 104], strides = [1, 1]} : vector<16x106xbf16> to vector<16x104xbf16>
    %256 = tpu.concatenate %247, %248, %249, %250, %251, %252, %253, %254, %255 in 0 : vector<16x104xbf16>, vector<16x104xbf16>, vector<16x104xbf16>, vector<16x104xbf16>, vector<16x104xbf16>, vector<16x104xbf16>, vector<16x104xbf16>, vector<16x104xbf16>, vector<16x104xbf16> -> vector<144x104xbf16>
    %cst_62 = arith.constant dense<0.000000e+00> : vector<32x104xf32>
    %257 = tpu.matmul %2, %256, %cst_62 {dimension_numbers = #tpu.dot_dimension_numbers<[1], [0], [0], [1], [0, 0, 1, 1], [], []>} : vector<32x144xbf16>, vector<144x104xbf16>, vector<32x104xf32> -> vector<32x104xf32>
    %258 = vector.broadcast %3 : vector<32x1xf32> to vector<32x104xf32>
    %259 = arith.addf %257, %258 : vector<32x104xf32>
    %cst_63 = arith.constant 0.000000e+00 : f32
    %260 = vector.broadcast %cst_63 : f32 to vector<32x104xf32>
    %261 = arith.maximumf %259, %260 : vector<32x104xf32>
    %262 = vector.extract_strided_slice %196 {offsets = [0, 0], sizes = [16, 104], strides = [1, 1]} : vector<16x106xbf16> to vector<16x104xbf16>
    %263 = vector.extract_strided_slice %196 {offsets = [0, 1], sizes = [16, 104], strides = [1, 1]} : vector<16x106xbf16> to vector<16x104xbf16>
    %264 = vector.extract_strided_slice %196 {offsets = [0, 2], sizes = [16, 104], strides = [1, 1]} : vector<16x106xbf16> to vector<16x104xbf16>
    %265 = vector.extract_strided_slice %221 {offsets = [0, 0], sizes = [16, 104], strides = [1, 1]} : vector<16x106xbf16> to vector<16x104xbf16>
    %266 = vector.extract_strided_slice %221 {offsets = [0, 1], sizes = [16, 104], strides = [1, 1]} : vector<16x106xbf16> to vector<16x104xbf16>
    %267 = vector.extract_strided_slice %221 {offsets = [0, 2], sizes = [16, 104], strides = [1, 1]} : vector<16x106xbf16> to vector<16x104xbf16>
    %268 = vector.extract_strided_slice %246 {offsets = [0, 0], sizes = [16, 104], strides = [1, 1]} : vector<16x106xbf16> to vector<16x104xbf16>
    %269 = vector.extract_strided_slice %246 {offsets = [0, 1], sizes = [16, 104], strides = [1, 1]} : vector<16x106xbf16> to vector<16x104xbf16>
    %270 = vector.extract_strided_slice %246 {offsets = [0, 2], sizes = [16, 104], strides = [1, 1]} : vector<16x106xbf16> to vector<16x104xbf16>
    %271 = tpu.concatenate %262, %263, %264, %265, %266, %267, %268, %269, %270 in 0 : vector<16x104xbf16>, vector<16x104xbf16>, vector<16x104xbf16>, vector<16x104xbf16>, vector<16x104xbf16>, vector<16x104xbf16>, vector<16x104xbf16>, vector<16x104xbf16>, vector<16x104xbf16> -> vector<144x104xbf16>
    %cst_64 = arith.constant dense<0.000000e+00> : vector<32x104xf32>
    %272 = tpu.matmul %2, %271, %cst_64 {dimension_numbers = #tpu.dot_dimension_numbers<[1], [0], [0], [1], [0, 0, 1, 1], [], []>} : vector<32x144xbf16>, vector<144x104xbf16>, vector<32x104xf32> -> vector<32x104xf32>
    %273 = vector.broadcast %3 : vector<32x1xf32> to vector<32x104xf32>
    %274 = arith.addf %272, %273 : vector<32x104xf32>
    %cst_65 = arith.constant 0.000000e+00 : f32
    %275 = vector.broadcast %cst_65 : f32 to vector<32x104xf32>
    %276 = arith.maximumf %274, %275 : vector<32x104xf32>
    %277 = arith.maximumf %261, %276 : vector<32x104xf32>
    %278 = vector.extract_strided_slice %277 {offsets = [0, 0], sizes = [32, 103], strides = [1, 1]} : vector<32x104xf32> to vector<32x103xf32>
    %279 = vector.extract_strided_slice %277 {offsets = [0, 1], sizes = [32, 103], strides = [1, 1]} : vector<32x104xf32> to vector<32x103xf32>
    %280 = arith.maximumf %278, %279 : vector<32x103xf32>
    %281 = arith.truncf %280 : vector<32x103xf32> to vector<32x103xbf16>
    %cst_66 = arith.constant dense<0.000000e+00> : vector<32x52xf32>
    %282 = tpu.matmul %281, %5, %cst_66 {dimension_numbers = #tpu.dot_dimension_numbers<[1], [0], [0], [1], [0, 0, 1, 1], [], []>} : vector<32x103xbf16>, vector<103x52xbf16>, vector<32x52xf32> -> vector<32x52xf32>
    %c2 = arith.constant 2 : index
    %c0_67 = arith.constant 0 : index
    %c0_68 = arith.constant 0 : index
    %283 = vector.load %arg1[%c2, %c0_67, %c0_68] : memref<4x13x215xbf16, #tpu.memory_space<vmem>>, vector<1x13x215xbf16>
    %284 = vector.shape_cast %283 : vector<1x13x215xbf16> to vector<13x215xbf16>
    %285 = vector.extract_strided_slice %284 {offsets = [0, 0], sizes = [3, 213], strides = [1, 1]} : vector<13x215xbf16> to vector<3x213xbf16>
    %286 = vector.extract_strided_slice %284 {offsets = [0, 1], sizes = [3, 213], strides = [1, 1]} : vector<13x215xbf16> to vector<3x213xbf16>
    %287 = vector.extract_strided_slice %284 {offsets = [0, 2], sizes = [3, 213], strides = [1, 1]} : vector<13x215xbf16> to vector<3x213xbf16>
    %288 = tpu.concatenate %285, %286, %287 in 0 : vector<3x213xbf16>, vector<3x213xbf16>, vector<3x213xbf16> -> vector<9x213xbf16>
    %cst_69 = arith.constant dense<0.000000e+00> : vector<16x213xf32>
    %289 = tpu.matmul %0, %288, %cst_69 {dimension_numbers = #tpu.dot_dimension_numbers<[1], [0], [0], [1], [0, 0, 1, 1], [], []>} : vector<16x9xbf16>, vector<9x213xbf16>, vector<16x213xf32> -> vector<16x213xf32>
    %290 = vector.broadcast %1 : vector<16x1xf32> to vector<16x213xf32>
    %291 = arith.addf %289, %290 : vector<16x213xf32>
    %cst_70 = arith.constant 0.000000e+00 : f32
    %292 = vector.broadcast %cst_70 : f32 to vector<16x213xf32>
    %293 = arith.maximumf %291, %292 : vector<16x213xf32>
    %294 = vector.extract_strided_slice %284 {offsets = [1, 0], sizes = [3, 213], strides = [1, 1]} : vector<13x215xbf16> to vector<3x213xbf16>
    %295 = vector.extract_strided_slice %284 {offsets = [1, 1], sizes = [3, 213], strides = [1, 1]} : vector<13x215xbf16> to vector<3x213xbf16>
    %296 = vector.extract_strided_slice %284 {offsets = [1, 2], sizes = [3, 213], strides = [1, 1]} : vector<13x215xbf16> to vector<3x213xbf16>
    %297 = tpu.concatenate %294, %295, %296 in 0 : vector<3x213xbf16>, vector<3x213xbf16>, vector<3x213xbf16> -> vector<9x213xbf16>
    %cst_71 = arith.constant dense<0.000000e+00> : vector<16x213xf32>
    %298 = tpu.matmul %0, %297, %cst_71 {dimension_numbers = #tpu.dot_dimension_numbers<[1], [0], [0], [1], [0, 0, 1, 1], [], []>} : vector<16x9xbf16>, vector<9x213xbf16>, vector<16x213xf32> -> vector<16x213xf32>
    %299 = vector.broadcast %1 : vector<16x1xf32> to vector<16x213xf32>
    %300 = arith.addf %298, %299 : vector<16x213xf32>
    %cst_72 = arith.constant 0.000000e+00 : f32
    %301 = vector.broadcast %cst_72 : f32 to vector<16x213xf32>
    %302 = arith.maximumf %300, %301 : vector<16x213xf32>
    %303 = arith.maximumf %293, %302 : vector<16x213xf32>
    %304 = vector.extract_strided_slice %303 {offsets = [0, 0], sizes = [16, 212], strides = [1, 1]} : vector<16x213xf32> to vector<16x212xf32>
    %305 = vector.extract_strided_slice %303 {offsets = [0, 1], sizes = [16, 212], strides = [1, 1]} : vector<16x213xf32> to vector<16x212xf32>
    %306 = arith.maximumf %304, %305 : vector<16x212xf32>
    %307 = arith.truncf %306 : vector<16x212xf32> to vector<16x212xbf16>
    %cst_73 = arith.constant dense<0.000000e+00> : vector<16x106xf32>
    %308 = tpu.matmul %307, %4, %cst_73 {dimension_numbers = #tpu.dot_dimension_numbers<[1], [0], [0], [1], [0, 0, 1, 1], [], []>} : vector<16x212xbf16>, vector<212x106xbf16>, vector<16x106xf32> -> vector<16x106xf32>
    %309 = arith.truncf %308 : vector<16x106xf32> to vector<16x106xbf16>
    %310 = vector.extract_strided_slice %284 {offsets = [2, 0], sizes = [3, 213], strides = [1, 1]} : vector<13x215xbf16> to vector<3x213xbf16>
    %311 = vector.extract_strided_slice %284 {offsets = [2, 1], sizes = [3, 213], strides = [1, 1]} : vector<13x215xbf16> to vector<3x213xbf16>
    %312 = vector.extract_strided_slice %284 {offsets = [2, 2], sizes = [3, 213], strides = [1, 1]} : vector<13x215xbf16> to vector<3x213xbf16>
    %313 = tpu.concatenate %310, %311, %312 in 0 : vector<3x213xbf16>, vector<3x213xbf16>, vector<3x213xbf16> -> vector<9x213xbf16>
    %cst_74 = arith.constant dense<0.000000e+00> : vector<16x213xf32>
    %314 = tpu.matmul %0, %313, %cst_74 {dimension_numbers = #tpu.dot_dimension_numbers<[1], [0], [0], [1], [0, 0, 1, 1], [], []>} : vector<16x9xbf16>, vector<9x213xbf16>, vector<16x213xf32> -> vector<16x213xf32>
    %315 = vector.broadcast %1 : vector<16x1xf32> to vector<16x213xf32>
    %316 = arith.addf %314, %315 : vector<16x213xf32>
    %cst_75 = arith.constant 0.000000e+00 : f32
    %317 = vector.broadcast %cst_75 : f32 to vector<16x213xf32>
    %318 = arith.maximumf %316, %317 : vector<16x213xf32>
    %319 = vector.extract_strided_slice %284 {offsets = [3, 0], sizes = [3, 213], strides = [1, 1]} : vector<13x215xbf16> to vector<3x213xbf16>
    %320 = vector.extract_strided_slice %284 {offsets = [3, 1], sizes = [3, 213], strides = [1, 1]} : vector<13x215xbf16> to vector<3x213xbf16>
    %321 = vector.extract_strided_slice %284 {offsets = [3, 2], sizes = [3, 213], strides = [1, 1]} : vector<13x215xbf16> to vector<3x213xbf16>
    %322 = tpu.concatenate %319, %320, %321 in 0 : vector<3x213xbf16>, vector<3x213xbf16>, vector<3x213xbf16> -> vector<9x213xbf16>
    %cst_76 = arith.constant dense<0.000000e+00> : vector<16x213xf32>
    %323 = tpu.matmul %0, %322, %cst_76 {dimension_numbers = #tpu.dot_dimension_numbers<[1], [0], [0], [1], [0, 0, 1, 1], [], []>} : vector<16x9xbf16>, vector<9x213xbf16>, vector<16x213xf32> -> vector<16x213xf32>
    %324 = vector.broadcast %1 : vector<16x1xf32> to vector<16x213xf32>
    %325 = arith.addf %323, %324 : vector<16x213xf32>
    %cst_77 = arith.constant 0.000000e+00 : f32
    %326 = vector.broadcast %cst_77 : f32 to vector<16x213xf32>
    %327 = arith.maximumf %325, %326 : vector<16x213xf32>
    %328 = arith.maximumf %318, %327 : vector<16x213xf32>
    %329 = vector.extract_strided_slice %328 {offsets = [0, 0], sizes = [16, 212], strides = [1, 1]} : vector<16x213xf32> to vector<16x212xf32>
    %330 = vector.extract_strided_slice %328 {offsets = [0, 1], sizes = [16, 212], strides = [1, 1]} : vector<16x213xf32> to vector<16x212xf32>
    %331 = arith.maximumf %329, %330 : vector<16x212xf32>
    %332 = arith.truncf %331 : vector<16x212xf32> to vector<16x212xbf16>
    %cst_78 = arith.constant dense<0.000000e+00> : vector<16x106xf32>
    %333 = tpu.matmul %332, %4, %cst_78 {dimension_numbers = #tpu.dot_dimension_numbers<[1], [0], [0], [1], [0, 0, 1, 1], [], []>} : vector<16x212xbf16>, vector<212x106xbf16>, vector<16x106xf32> -> vector<16x106xf32>
    %334 = arith.truncf %333 : vector<16x106xf32> to vector<16x106xbf16>
    %335 = vector.extract_strided_slice %284 {offsets = [4, 0], sizes = [3, 213], strides = [1, 1]} : vector<13x215xbf16> to vector<3x213xbf16>
    %336 = vector.extract_strided_slice %284 {offsets = [4, 1], sizes = [3, 213], strides = [1, 1]} : vector<13x215xbf16> to vector<3x213xbf16>
    %337 = vector.extract_strided_slice %284 {offsets = [4, 2], sizes = [3, 213], strides = [1, 1]} : vector<13x215xbf16> to vector<3x213xbf16>
    %338 = tpu.concatenate %335, %336, %337 in 0 : vector<3x213xbf16>, vector<3x213xbf16>, vector<3x213xbf16> -> vector<9x213xbf16>
    %cst_79 = arith.constant dense<0.000000e+00> : vector<16x213xf32>
    %339 = tpu.matmul %0, %338, %cst_79 {dimension_numbers = #tpu.dot_dimension_numbers<[1], [0], [0], [1], [0, 0, 1, 1], [], []>} : vector<16x9xbf16>, vector<9x213xbf16>, vector<16x213xf32> -> vector<16x213xf32>
    %340 = vector.broadcast %1 : vector<16x1xf32> to vector<16x213xf32>
    %341 = arith.addf %339, %340 : vector<16x213xf32>
    %cst_80 = arith.constant 0.000000e+00 : f32
    %342 = vector.broadcast %cst_80 : f32 to vector<16x213xf32>
    %343 = arith.maximumf %341, %342 : vector<16x213xf32>
    %344 = vector.extract_strided_slice %284 {offsets = [5, 0], sizes = [3, 213], strides = [1, 1]} : vector<13x215xbf16> to vector<3x213xbf16>
    %345 = vector.extract_strided_slice %284 {offsets = [5, 1], sizes = [3, 213], strides = [1, 1]} : vector<13x215xbf16> to vector<3x213xbf16>
    %346 = vector.extract_strided_slice %284 {offsets = [5, 2], sizes = [3, 213], strides = [1, 1]} : vector<13x215xbf16> to vector<3x213xbf16>
    %347 = tpu.concatenate %344, %345, %346 in 0 : vector<3x213xbf16>, vector<3x213xbf16>, vector<3x213xbf16> -> vector<9x213xbf16>
    %cst_81 = arith.constant dense<0.000000e+00> : vector<16x213xf32>
    %348 = tpu.matmul %0, %347, %cst_81 {dimension_numbers = #tpu.dot_dimension_numbers<[1], [0], [0], [1], [0, 0, 1, 1], [], []>} : vector<16x9xbf16>, vector<9x213xbf16>, vector<16x213xf32> -> vector<16x213xf32>
    %349 = vector.broadcast %1 : vector<16x1xf32> to vector<16x213xf32>
    %350 = arith.addf %348, %349 : vector<16x213xf32>
    %cst_82 = arith.constant 0.000000e+00 : f32
    %351 = vector.broadcast %cst_82 : f32 to vector<16x213xf32>
    %352 = arith.maximumf %350, %351 : vector<16x213xf32>
    %353 = arith.maximumf %343, %352 : vector<16x213xf32>
    %354 = vector.extract_strided_slice %353 {offsets = [0, 0], sizes = [16, 212], strides = [1, 1]} : vector<16x213xf32> to vector<16x212xf32>
    %355 = vector.extract_strided_slice %353 {offsets = [0, 1], sizes = [16, 212], strides = [1, 1]} : vector<16x213xf32> to vector<16x212xf32>
    %356 = arith.maximumf %354, %355 : vector<16x212xf32>
    %357 = arith.truncf %356 : vector<16x212xf32> to vector<16x212xbf16>
    %cst_83 = arith.constant dense<0.000000e+00> : vector<16x106xf32>
    %358 = tpu.matmul %357, %4, %cst_83 {dimension_numbers = #tpu.dot_dimension_numbers<[1], [0], [0], [1], [0, 0, 1, 1], [], []>} : vector<16x212xbf16>, vector<212x106xbf16>, vector<16x106xf32> -> vector<16x106xf32>
    %359 = arith.truncf %358 : vector<16x106xf32> to vector<16x106xbf16>
    %360 = vector.extract_strided_slice %284 {offsets = [6, 0], sizes = [3, 213], strides = [1, 1]} : vector<13x215xbf16> to vector<3x213xbf16>
    %361 = vector.extract_strided_slice %284 {offsets = [6, 1], sizes = [3, 213], strides = [1, 1]} : vector<13x215xbf16> to vector<3x213xbf16>
    %362 = vector.extract_strided_slice %284 {offsets = [6, 2], sizes = [3, 213], strides = [1, 1]} : vector<13x215xbf16> to vector<3x213xbf16>
    %363 = tpu.concatenate %360, %361, %362 in 0 : vector<3x213xbf16>, vector<3x213xbf16>, vector<3x213xbf16> -> vector<9x213xbf16>
    %cst_84 = arith.constant dense<0.000000e+00> : vector<16x213xf32>
    %364 = tpu.matmul %0, %363, %cst_84 {dimension_numbers = #tpu.dot_dimension_numbers<[1], [0], [0], [1], [0, 0, 1, 1], [], []>} : vector<16x9xbf16>, vector<9x213xbf16>, vector<16x213xf32> -> vector<16x213xf32>
    %365 = vector.broadcast %1 : vector<16x1xf32> to vector<16x213xf32>
    %366 = arith.addf %364, %365 : vector<16x213xf32>
    %cst_85 = arith.constant 0.000000e+00 : f32
    %367 = vector.broadcast %cst_85 : f32 to vector<16x213xf32>
    %368 = arith.maximumf %366, %367 : vector<16x213xf32>
    %369 = vector.extract_strided_slice %284 {offsets = [7, 0], sizes = [3, 213], strides = [1, 1]} : vector<13x215xbf16> to vector<3x213xbf16>
    %370 = vector.extract_strided_slice %284 {offsets = [7, 1], sizes = [3, 213], strides = [1, 1]} : vector<13x215xbf16> to vector<3x213xbf16>
    %371 = vector.extract_strided_slice %284 {offsets = [7, 2], sizes = [3, 213], strides = [1, 1]} : vector<13x215xbf16> to vector<3x213xbf16>
    %372 = tpu.concatenate %369, %370, %371 in 0 : vector<3x213xbf16>, vector<3x213xbf16>, vector<3x213xbf16> -> vector<9x213xbf16>
    %cst_86 = arith.constant dense<0.000000e+00> : vector<16x213xf32>
    %373 = tpu.matmul %0, %372, %cst_86 {dimension_numbers = #tpu.dot_dimension_numbers<[1], [0], [0], [1], [0, 0, 1, 1], [], []>} : vector<16x9xbf16>, vector<9x213xbf16>, vector<16x213xf32> -> vector<16x213xf32>
    %374 = vector.broadcast %1 : vector<16x1xf32> to vector<16x213xf32>
    %375 = arith.addf %373, %374 : vector<16x213xf32>
    %cst_87 = arith.constant 0.000000e+00 : f32
    %376 = vector.broadcast %cst_87 : f32 to vector<16x213xf32>
    %377 = arith.maximumf %375, %376 : vector<16x213xf32>
    %378 = arith.maximumf %368, %377 : vector<16x213xf32>
    %379 = vector.extract_strided_slice %378 {offsets = [0, 0], sizes = [16, 212], strides = [1, 1]} : vector<16x213xf32> to vector<16x212xf32>
    %380 = vector.extract_strided_slice %378 {offsets = [0, 1], sizes = [16, 212], strides = [1, 1]} : vector<16x213xf32> to vector<16x212xf32>
    %381 = arith.maximumf %379, %380 : vector<16x212xf32>
    %382 = arith.truncf %381 : vector<16x212xf32> to vector<16x212xbf16>
    %cst_88 = arith.constant dense<0.000000e+00> : vector<16x106xf32>
    %383 = tpu.matmul %382, %4, %cst_88 {dimension_numbers = #tpu.dot_dimension_numbers<[1], [0], [0], [1], [0, 0, 1, 1], [], []>} : vector<16x212xbf16>, vector<212x106xbf16>, vector<16x106xf32> -> vector<16x106xf32>
    %384 = arith.truncf %383 : vector<16x106xf32> to vector<16x106xbf16>
    %385 = vector.extract_strided_slice %309 {offsets = [0, 0], sizes = [16, 104], strides = [1, 1]} : vector<16x106xbf16> to vector<16x104xbf16>
    %386 = vector.extract_strided_slice %309 {offsets = [0, 1], sizes = [16, 104], strides = [1, 1]} : vector<16x106xbf16> to vector<16x104xbf16>
    %387 = vector.extract_strided_slice %309 {offsets = [0, 2], sizes = [16, 104], strides = [1, 1]} : vector<16x106xbf16> to vector<16x104xbf16>
    %388 = vector.extract_strided_slice %334 {offsets = [0, 0], sizes = [16, 104], strides = [1, 1]} : vector<16x106xbf16> to vector<16x104xbf16>
    %389 = vector.extract_strided_slice %334 {offsets = [0, 1], sizes = [16, 104], strides = [1, 1]} : vector<16x106xbf16> to vector<16x104xbf16>
    %390 = vector.extract_strided_slice %334 {offsets = [0, 2], sizes = [16, 104], strides = [1, 1]} : vector<16x106xbf16> to vector<16x104xbf16>
    %391 = vector.extract_strided_slice %359 {offsets = [0, 0], sizes = [16, 104], strides = [1, 1]} : vector<16x106xbf16> to vector<16x104xbf16>
    %392 = vector.extract_strided_slice %359 {offsets = [0, 1], sizes = [16, 104], strides = [1, 1]} : vector<16x106xbf16> to vector<16x104xbf16>
    %393 = vector.extract_strided_slice %359 {offsets = [0, 2], sizes = [16, 104], strides = [1, 1]} : vector<16x106xbf16> to vector<16x104xbf16>
    %394 = tpu.concatenate %385, %386, %387, %388, %389, %390, %391, %392, %393 in 0 : vector<16x104xbf16>, vector<16x104xbf16>, vector<16x104xbf16>, vector<16x104xbf16>, vector<16x104xbf16>, vector<16x104xbf16>, vector<16x104xbf16>, vector<16x104xbf16>, vector<16x104xbf16> -> vector<144x104xbf16>
    %cst_89 = arith.constant dense<0.000000e+00> : vector<32x104xf32>
    %395 = tpu.matmul %2, %394, %cst_89 {dimension_numbers = #tpu.dot_dimension_numbers<[1], [0], [0], [1], [0, 0, 1, 1], [], []>} : vector<32x144xbf16>, vector<144x104xbf16>, vector<32x104xf32> -> vector<32x104xf32>
    %396 = vector.broadcast %3 : vector<32x1xf32> to vector<32x104xf32>
    %397 = arith.addf %395, %396 : vector<32x104xf32>
    %cst_90 = arith.constant 0.000000e+00 : f32
    %398 = vector.broadcast %cst_90 : f32 to vector<32x104xf32>
    %399 = arith.maximumf %397, %398 : vector<32x104xf32>
    %400 = vector.extract_strided_slice %334 {offsets = [0, 0], sizes = [16, 104], strides = [1, 1]} : vector<16x106xbf16> to vector<16x104xbf16>
    %401 = vector.extract_strided_slice %334 {offsets = [0, 1], sizes = [16, 104], strides = [1, 1]} : vector<16x106xbf16> to vector<16x104xbf16>
    %402 = vector.extract_strided_slice %334 {offsets = [0, 2], sizes = [16, 104], strides = [1, 1]} : vector<16x106xbf16> to vector<16x104xbf16>
    %403 = vector.extract_strided_slice %359 {offsets = [0, 0], sizes = [16, 104], strides = [1, 1]} : vector<16x106xbf16> to vector<16x104xbf16>
    %404 = vector.extract_strided_slice %359 {offsets = [0, 1], sizes = [16, 104], strides = [1, 1]} : vector<16x106xbf16> to vector<16x104xbf16>
    %405 = vector.extract_strided_slice %359 {offsets = [0, 2], sizes = [16, 104], strides = [1, 1]} : vector<16x106xbf16> to vector<16x104xbf16>
    %406 = vector.extract_strided_slice %384 {offsets = [0, 0], sizes = [16, 104], strides = [1, 1]} : vector<16x106xbf16> to vector<16x104xbf16>
    %407 = vector.extract_strided_slice %384 {offsets = [0, 1], sizes = [16, 104], strides = [1, 1]} : vector<16x106xbf16> to vector<16x104xbf16>
    %408 = vector.extract_strided_slice %384 {offsets = [0, 2], sizes = [16, 104], strides = [1, 1]} : vector<16x106xbf16> to vector<16x104xbf16>
    %409 = tpu.concatenate %400, %401, %402, %403, %404, %405, %406, %407, %408 in 0 : vector<16x104xbf16>, vector<16x104xbf16>, vector<16x104xbf16>, vector<16x104xbf16>, vector<16x104xbf16>, vector<16x104xbf16>, vector<16x104xbf16>, vector<16x104xbf16>, vector<16x104xbf16> -> vector<144x104xbf16>
    %cst_91 = arith.constant dense<0.000000e+00> : vector<32x104xf32>
    %410 = tpu.matmul %2, %409, %cst_91 {dimension_numbers = #tpu.dot_dimension_numbers<[1], [0], [0], [1], [0, 0, 1, 1], [], []>} : vector<32x144xbf16>, vector<144x104xbf16>, vector<32x104xf32> -> vector<32x104xf32>
    %411 = vector.broadcast %3 : vector<32x1xf32> to vector<32x104xf32>
    %412 = arith.addf %410, %411 : vector<32x104xf32>
    %cst_92 = arith.constant 0.000000e+00 : f32
    %413 = vector.broadcast %cst_92 : f32 to vector<32x104xf32>
    %414 = arith.maximumf %412, %413 : vector<32x104xf32>
    %415 = arith.maximumf %399, %414 : vector<32x104xf32>
    %416 = vector.extract_strided_slice %415 {offsets = [0, 0], sizes = [32, 103], strides = [1, 1]} : vector<32x104xf32> to vector<32x103xf32>
    %417 = vector.extract_strided_slice %415 {offsets = [0, 1], sizes = [32, 103], strides = [1, 1]} : vector<32x104xf32> to vector<32x103xf32>
    %418 = arith.maximumf %416, %417 : vector<32x103xf32>
    %419 = arith.truncf %418 : vector<32x103xf32> to vector<32x103xbf16>
    %cst_93 = arith.constant dense<0.000000e+00> : vector<32x52xf32>
    %420 = tpu.matmul %419, %5, %cst_93 {dimension_numbers = #tpu.dot_dimension_numbers<[1], [0], [0], [1], [0, 0, 1, 1], [], []>} : vector<32x103xbf16>, vector<103x52xbf16>, vector<32x52xf32> -> vector<32x52xf32>
    %c3 = arith.constant 3 : index
    %c0_94 = arith.constant 0 : index
    %c0_95 = arith.constant 0 : index
    %421 = vector.load %arg1[%c3, %c0_94, %c0_95] : memref<4x13x215xbf16, #tpu.memory_space<vmem>>, vector<1x13x215xbf16>
    %422 = vector.shape_cast %421 : vector<1x13x215xbf16> to vector<13x215xbf16>
    %423 = vector.extract_strided_slice %422 {offsets = [0, 0], sizes = [3, 213], strides = [1, 1]} : vector<13x215xbf16> to vector<3x213xbf16>
    %424 = vector.extract_strided_slice %422 {offsets = [0, 1], sizes = [3, 213], strides = [1, 1]} : vector<13x215xbf16> to vector<3x213xbf16>
    %425 = vector.extract_strided_slice %422 {offsets = [0, 2], sizes = [3, 213], strides = [1, 1]} : vector<13x215xbf16> to vector<3x213xbf16>
    %426 = tpu.concatenate %423, %424, %425 in 0 : vector<3x213xbf16>, vector<3x213xbf16>, vector<3x213xbf16> -> vector<9x213xbf16>
    %cst_96 = arith.constant dense<0.000000e+00> : vector<16x213xf32>
    %427 = tpu.matmul %0, %426, %cst_96 {dimension_numbers = #tpu.dot_dimension_numbers<[1], [0], [0], [1], [0, 0, 1, 1], [], []>} : vector<16x9xbf16>, vector<9x213xbf16>, vector<16x213xf32> -> vector<16x213xf32>
    %428 = vector.broadcast %1 : vector<16x1xf32> to vector<16x213xf32>
    %429 = arith.addf %427, %428 : vector<16x213xf32>
    %cst_97 = arith.constant 0.000000e+00 : f32
    %430 = vector.broadcast %cst_97 : f32 to vector<16x213xf32>
    %431 = arith.maximumf %429, %430 : vector<16x213xf32>
    %432 = vector.extract_strided_slice %422 {offsets = [1, 0], sizes = [3, 213], strides = [1, 1]} : vector<13x215xbf16> to vector<3x213xbf16>
    %433 = vector.extract_strided_slice %422 {offsets = [1, 1], sizes = [3, 213], strides = [1, 1]} : vector<13x215xbf16> to vector<3x213xbf16>
    %434 = vector.extract_strided_slice %422 {offsets = [1, 2], sizes = [3, 213], strides = [1, 1]} : vector<13x215xbf16> to vector<3x213xbf16>
    %435 = tpu.concatenate %432, %433, %434 in 0 : vector<3x213xbf16>, vector<3x213xbf16>, vector<3x213xbf16> -> vector<9x213xbf16>
    %cst_98 = arith.constant dense<0.000000e+00> : vector<16x213xf32>
    %436 = tpu.matmul %0, %435, %cst_98 {dimension_numbers = #tpu.dot_dimension_numbers<[1], [0], [0], [1], [0, 0, 1, 1], [], []>} : vector<16x9xbf16>, vector<9x213xbf16>, vector<16x213xf32> -> vector<16x213xf32>
    %437 = vector.broadcast %1 : vector<16x1xf32> to vector<16x213xf32>
    %438 = arith.addf %436, %437 : vector<16x213xf32>
    %cst_99 = arith.constant 0.000000e+00 : f32
    %439 = vector.broadcast %cst_99 : f32 to vector<16x213xf32>
    %440 = arith.maximumf %438, %439 : vector<16x213xf32>
    %441 = arith.maximumf %431, %440 : vector<16x213xf32>
    %442 = vector.extract_strided_slice %441 {offsets = [0, 0], sizes = [16, 212], strides = [1, 1]} : vector<16x213xf32> to vector<16x212xf32>
    %443 = vector.extract_strided_slice %441 {offsets = [0, 1], sizes = [16, 212], strides = [1, 1]} : vector<16x213xf32> to vector<16x212xf32>
    %444 = arith.maximumf %442, %443 : vector<16x212xf32>
    %445 = arith.truncf %444 : vector<16x212xf32> to vector<16x212xbf16>
    %cst_100 = arith.constant dense<0.000000e+00> : vector<16x106xf32>
    %446 = tpu.matmul %445, %4, %cst_100 {dimension_numbers = #tpu.dot_dimension_numbers<[1], [0], [0], [1], [0, 0, 1, 1], [], []>} : vector<16x212xbf16>, vector<212x106xbf16>, vector<16x106xf32> -> vector<16x106xf32>
    %447 = arith.truncf %446 : vector<16x106xf32> to vector<16x106xbf16>
    %448 = vector.extract_strided_slice %422 {offsets = [2, 0], sizes = [3, 213], strides = [1, 1]} : vector<13x215xbf16> to vector<3x213xbf16>
    %449 = vector.extract_strided_slice %422 {offsets = [2, 1], sizes = [3, 213], strides = [1, 1]} : vector<13x215xbf16> to vector<3x213xbf16>
    %450 = vector.extract_strided_slice %422 {offsets = [2, 2], sizes = [3, 213], strides = [1, 1]} : vector<13x215xbf16> to vector<3x213xbf16>
    %451 = tpu.concatenate %448, %449, %450 in 0 : vector<3x213xbf16>, vector<3x213xbf16>, vector<3x213xbf16> -> vector<9x213xbf16>
    %cst_101 = arith.constant dense<0.000000e+00> : vector<16x213xf32>
    %452 = tpu.matmul %0, %451, %cst_101 {dimension_numbers = #tpu.dot_dimension_numbers<[1], [0], [0], [1], [0, 0, 1, 1], [], []>} : vector<16x9xbf16>, vector<9x213xbf16>, vector<16x213xf32> -> vector<16x213xf32>
    %453 = vector.broadcast %1 : vector<16x1xf32> to vector<16x213xf32>
    %454 = arith.addf %452, %453 : vector<16x213xf32>
    %cst_102 = arith.constant 0.000000e+00 : f32
    %455 = vector.broadcast %cst_102 : f32 to vector<16x213xf32>
    %456 = arith.maximumf %454, %455 : vector<16x213xf32>
    %457 = vector.extract_strided_slice %422 {offsets = [3, 0], sizes = [3, 213], strides = [1, 1]} : vector<13x215xbf16> to vector<3x213xbf16>
    %458 = vector.extract_strided_slice %422 {offsets = [3, 1], sizes = [3, 213], strides = [1, 1]} : vector<13x215xbf16> to vector<3x213xbf16>
    %459 = vector.extract_strided_slice %422 {offsets = [3, 2], sizes = [3, 213], strides = [1, 1]} : vector<13x215xbf16> to vector<3x213xbf16>
    %460 = tpu.concatenate %457, %458, %459 in 0 : vector<3x213xbf16>, vector<3x213xbf16>, vector<3x213xbf16> -> vector<9x213xbf16>
    %cst_103 = arith.constant dense<0.000000e+00> : vector<16x213xf32>
    %461 = tpu.matmul %0, %460, %cst_103 {dimension_numbers = #tpu.dot_dimension_numbers<[1], [0], [0], [1], [0, 0, 1, 1], [], []>} : vector<16x9xbf16>, vector<9x213xbf16>, vector<16x213xf32> -> vector<16x213xf32>
    %462 = vector.broadcast %1 : vector<16x1xf32> to vector<16x213xf32>
    %463 = arith.addf %461, %462 : vector<16x213xf32>
    %cst_104 = arith.constant 0.000000e+00 : f32
    %464 = vector.broadcast %cst_104 : f32 to vector<16x213xf32>
    %465 = arith.maximumf %463, %464 : vector<16x213xf32>
    %466 = arith.maximumf %456, %465 : vector<16x213xf32>
    %467 = vector.extract_strided_slice %466 {offsets = [0, 0], sizes = [16, 212], strides = [1, 1]} : vector<16x213xf32> to vector<16x212xf32>
    %468 = vector.extract_strided_slice %466 {offsets = [0, 1], sizes = [16, 212], strides = [1, 1]} : vector<16x213xf32> to vector<16x212xf32>
    %469 = arith.maximumf %467, %468 : vector<16x212xf32>
    %470 = arith.truncf %469 : vector<16x212xf32> to vector<16x212xbf16>
    %cst_105 = arith.constant dense<0.000000e+00> : vector<16x106xf32>
    %471 = tpu.matmul %470, %4, %cst_105 {dimension_numbers = #tpu.dot_dimension_numbers<[1], [0], [0], [1], [0, 0, 1, 1], [], []>} : vector<16x212xbf16>, vector<212x106xbf16>, vector<16x106xf32> -> vector<16x106xf32>
    %472 = arith.truncf %471 : vector<16x106xf32> to vector<16x106xbf16>
    %473 = vector.extract_strided_slice %422 {offsets = [4, 0], sizes = [3, 213], strides = [1, 1]} : vector<13x215xbf16> to vector<3x213xbf16>
    %474 = vector.extract_strided_slice %422 {offsets = [4, 1], sizes = [3, 213], strides = [1, 1]} : vector<13x215xbf16> to vector<3x213xbf16>
    %475 = vector.extract_strided_slice %422 {offsets = [4, 2], sizes = [3, 213], strides = [1, 1]} : vector<13x215xbf16> to vector<3x213xbf16>
    %476 = tpu.concatenate %473, %474, %475 in 0 : vector<3x213xbf16>, vector<3x213xbf16>, vector<3x213xbf16> -> vector<9x213xbf16>
    %cst_106 = arith.constant dense<0.000000e+00> : vector<16x213xf32>
    %477 = tpu.matmul %0, %476, %cst_106 {dimension_numbers = #tpu.dot_dimension_numbers<[1], [0], [0], [1], [0, 0, 1, 1], [], []>} : vector<16x9xbf16>, vector<9x213xbf16>, vector<16x213xf32> -> vector<16x213xf32>
    %478 = vector.broadcast %1 : vector<16x1xf32> to vector<16x213xf32>
    %479 = arith.addf %477, %478 : vector<16x213xf32>
    %cst_107 = arith.constant 0.000000e+00 : f32
    %480 = vector.broadcast %cst_107 : f32 to vector<16x213xf32>
    %481 = arith.maximumf %479, %480 : vector<16x213xf32>
    %482 = vector.extract_strided_slice %422 {offsets = [5, 0], sizes = [3, 213], strides = [1, 1]} : vector<13x215xbf16> to vector<3x213xbf16>
    %483 = vector.extract_strided_slice %422 {offsets = [5, 1], sizes = [3, 213], strides = [1, 1]} : vector<13x215xbf16> to vector<3x213xbf16>
    %484 = vector.extract_strided_slice %422 {offsets = [5, 2], sizes = [3, 213], strides = [1, 1]} : vector<13x215xbf16> to vector<3x213xbf16>
    %485 = tpu.concatenate %482, %483, %484 in 0 : vector<3x213xbf16>, vector<3x213xbf16>, vector<3x213xbf16> -> vector<9x213xbf16>
    %cst_108 = arith.constant dense<0.000000e+00> : vector<16x213xf32>
    %486 = tpu.matmul %0, %485, %cst_108 {dimension_numbers = #tpu.dot_dimension_numbers<[1], [0], [0], [1], [0, 0, 1, 1], [], []>} : vector<16x9xbf16>, vector<9x213xbf16>, vector<16x213xf32> -> vector<16x213xf32>
    %487 = vector.broadcast %1 : vector<16x1xf32> to vector<16x213xf32>
    %488 = arith.addf %486, %487 : vector<16x213xf32>
    %cst_109 = arith.constant 0.000000e+00 : f32
    %489 = vector.broadcast %cst_109 : f32 to vector<16x213xf32>
    %490 = arith.maximumf %488, %489 : vector<16x213xf32>
    %491 = arith.maximumf %481, %490 : vector<16x213xf32>
    %492 = vector.extract_strided_slice %491 {offsets = [0, 0], sizes = [16, 212], strides = [1, 1]} : vector<16x213xf32> to vector<16x212xf32>
    %493 = vector.extract_strided_slice %491 {offsets = [0, 1], sizes = [16, 212], strides = [1, 1]} : vector<16x213xf32> to vector<16x212xf32>
    %494 = arith.maximumf %492, %493 : vector<16x212xf32>
    %495 = arith.truncf %494 : vector<16x212xf32> to vector<16x212xbf16>
    %cst_110 = arith.constant dense<0.000000e+00> : vector<16x106xf32>
    %496 = tpu.matmul %495, %4, %cst_110 {dimension_numbers = #tpu.dot_dimension_numbers<[1], [0], [0], [1], [0, 0, 1, 1], [], []>} : vector<16x212xbf16>, vector<212x106xbf16>, vector<16x106xf32> -> vector<16x106xf32>
    %497 = arith.truncf %496 : vector<16x106xf32> to vector<16x106xbf16>
    %498 = vector.extract_strided_slice %422 {offsets = [6, 0], sizes = [3, 213], strides = [1, 1]} : vector<13x215xbf16> to vector<3x213xbf16>
    %499 = vector.extract_strided_slice %422 {offsets = [6, 1], sizes = [3, 213], strides = [1, 1]} : vector<13x215xbf16> to vector<3x213xbf16>
    %500 = vector.extract_strided_slice %422 {offsets = [6, 2], sizes = [3, 213], strides = [1, 1]} : vector<13x215xbf16> to vector<3x213xbf16>
    %501 = tpu.concatenate %498, %499, %500 in 0 : vector<3x213xbf16>, vector<3x213xbf16>, vector<3x213xbf16> -> vector<9x213xbf16>
    %cst_111 = arith.constant dense<0.000000e+00> : vector<16x213xf32>
    %502 = tpu.matmul %0, %501, %cst_111 {dimension_numbers = #tpu.dot_dimension_numbers<[1], [0], [0], [1], [0, 0, 1, 1], [], []>} : vector<16x9xbf16>, vector<9x213xbf16>, vector<16x213xf32> -> vector<16x213xf32>
    %503 = vector.broadcast %1 : vector<16x1xf32> to vector<16x213xf32>
    %504 = arith.addf %502, %503 : vector<16x213xf32>
    %cst_112 = arith.constant 0.000000e+00 : f32
    %505 = vector.broadcast %cst_112 : f32 to vector<16x213xf32>
    %506 = arith.maximumf %504, %505 : vector<16x213xf32>
    %507 = vector.extract_strided_slice %422 {offsets = [7, 0], sizes = [3, 213], strides = [1, 1]} : vector<13x215xbf16> to vector<3x213xbf16>
    %508 = vector.extract_strided_slice %422 {offsets = [7, 1], sizes = [3, 213], strides = [1, 1]} : vector<13x215xbf16> to vector<3x213xbf16>
    %509 = vector.extract_strided_slice %422 {offsets = [7, 2], sizes = [3, 213], strides = [1, 1]} : vector<13x215xbf16> to vector<3x213xbf16>
    %510 = tpu.concatenate %507, %508, %509 in 0 : vector<3x213xbf16>, vector<3x213xbf16>, vector<3x213xbf16> -> vector<9x213xbf16>
    %cst_113 = arith.constant dense<0.000000e+00> : vector<16x213xf32>
    %511 = tpu.matmul %0, %510, %cst_113 {dimension_numbers = #tpu.dot_dimension_numbers<[1], [0], [0], [1], [0, 0, 1, 1], [], []>} : vector<16x9xbf16>, vector<9x213xbf16>, vector<16x213xf32> -> vector<16x213xf32>
    %512 = vector.broadcast %1 : vector<16x1xf32> to vector<16x213xf32>
    %513 = arith.addf %511, %512 : vector<16x213xf32>
    %cst_114 = arith.constant 0.000000e+00 : f32
    %514 = vector.broadcast %cst_114 : f32 to vector<16x213xf32>
    %515 = arith.maximumf %513, %514 : vector<16x213xf32>
    %516 = arith.maximumf %506, %515 : vector<16x213xf32>
    %517 = vector.extract_strided_slice %516 {offsets = [0, 0], sizes = [16, 212], strides = [1, 1]} : vector<16x213xf32> to vector<16x212xf32>
    %518 = vector.extract_strided_slice %516 {offsets = [0, 1], sizes = [16, 212], strides = [1, 1]} : vector<16x213xf32> to vector<16x212xf32>
    %519 = arith.maximumf %517, %518 : vector<16x212xf32>
    %520 = arith.truncf %519 : vector<16x212xf32> to vector<16x212xbf16>
    %cst_115 = arith.constant dense<0.000000e+00> : vector<16x106xf32>
    %521 = tpu.matmul %520, %4, %cst_115 {dimension_numbers = #tpu.dot_dimension_numbers<[1], [0], [0], [1], [0, 0, 1, 1], [], []>} : vector<16x212xbf16>, vector<212x106xbf16>, vector<16x106xf32> -> vector<16x106xf32>
    %522 = arith.truncf %521 : vector<16x106xf32> to vector<16x106xbf16>
    %523 = vector.extract_strided_slice %447 {offsets = [0, 0], sizes = [16, 104], strides = [1, 1]} : vector<16x106xbf16> to vector<16x104xbf16>
    %524 = vector.extract_strided_slice %447 {offsets = [0, 1], sizes = [16, 104], strides = [1, 1]} : vector<16x106xbf16> to vector<16x104xbf16>
    %525 = vector.extract_strided_slice %447 {offsets = [0, 2], sizes = [16, 104], strides = [1, 1]} : vector<16x106xbf16> to vector<16x104xbf16>
    %526 = vector.extract_strided_slice %472 {offsets = [0, 0], sizes = [16, 104], strides = [1, 1]} : vector<16x106xbf16> to vector<16x104xbf16>
    %527 = vector.extract_strided_slice %472 {offsets = [0, 1], sizes = [16, 104], strides = [1, 1]} : vector<16x106xbf16> to vector<16x104xbf16>
    %528 = vector.extract_strided_slice %472 {offsets = [0, 2], sizes = [16, 104], strides = [1, 1]} : vector<16x106xbf16> to vector<16x104xbf16>
    %529 = vector.extract_strided_slice %497 {offsets = [0, 0], sizes = [16, 104], strides = [1, 1]} : vector<16x106xbf16> to vector<16x104xbf16>
    %530 = vector.extract_strided_slice %497 {offsets = [0, 1], sizes = [16, 104], strides = [1, 1]} : vector<16x106xbf16> to vector<16x104xbf16>
    %531 = vector.extract_strided_slice %497 {offsets = [0, 2], sizes = [16, 104], strides = [1, 1]} : vector<16x106xbf16> to vector<16x104xbf16>
    %532 = tpu.concatenate %523, %524, %525, %526, %527, %528, %529, %530, %531 in 0 : vector<16x104xbf16>, vector<16x104xbf16>, vector<16x104xbf16>, vector<16x104xbf16>, vector<16x104xbf16>, vector<16x104xbf16>, vector<16x104xbf16>, vector<16x104xbf16>, vector<16x104xbf16> -> vector<144x104xbf16>
    %cst_116 = arith.constant dense<0.000000e+00> : vector<32x104xf32>
    %533 = tpu.matmul %2, %532, %cst_116 {dimension_numbers = #tpu.dot_dimension_numbers<[1], [0], [0], [1], [0, 0, 1, 1], [], []>} : vector<32x144xbf16>, vector<144x104xbf16>, vector<32x104xf32> -> vector<32x104xf32>
    %534 = vector.broadcast %3 : vector<32x1xf32> to vector<32x104xf32>
    %535 = arith.addf %533, %534 : vector<32x104xf32>
    %cst_117 = arith.constant 0.000000e+00 : f32
    %536 = vector.broadcast %cst_117 : f32 to vector<32x104xf32>
    %537 = arith.maximumf %535, %536 : vector<32x104xf32>
    %538 = vector.extract_strided_slice %472 {offsets = [0, 0], sizes = [16, 104], strides = [1, 1]} : vector<16x106xbf16> to vector<16x104xbf16>
    %539 = vector.extract_strided_slice %472 {offsets = [0, 1], sizes = [16, 104], strides = [1, 1]} : vector<16x106xbf16> to vector<16x104xbf16>
    %540 = vector.extract_strided_slice %472 {offsets = [0, 2], sizes = [16, 104], strides = [1, 1]} : vector<16x106xbf16> to vector<16x104xbf16>
    %541 = vector.extract_strided_slice %497 {offsets = [0, 0], sizes = [16, 104], strides = [1, 1]} : vector<16x106xbf16> to vector<16x104xbf16>
    %542 = vector.extract_strided_slice %497 {offsets = [0, 1], sizes = [16, 104], strides = [1, 1]} : vector<16x106xbf16> to vector<16x104xbf16>
    %543 = vector.extract_strided_slice %497 {offsets = [0, 2], sizes = [16, 104], strides = [1, 1]} : vector<16x106xbf16> to vector<16x104xbf16>
    %544 = vector.extract_strided_slice %522 {offsets = [0, 0], sizes = [16, 104], strides = [1, 1]} : vector<16x106xbf16> to vector<16x104xbf16>
    %545 = vector.extract_strided_slice %522 {offsets = [0, 1], sizes = [16, 104], strides = [1, 1]} : vector<16x106xbf16> to vector<16x104xbf16>
    %546 = vector.extract_strided_slice %522 {offsets = [0, 2], sizes = [16, 104], strides = [1, 1]} : vector<16x106xbf16> to vector<16x104xbf16>
    %547 = tpu.concatenate %538, %539, %540, %541, %542, %543, %544, %545, %546 in 0 : vector<16x104xbf16>, vector<16x104xbf16>, vector<16x104xbf16>, vector<16x104xbf16>, vector<16x104xbf16>, vector<16x104xbf16>, vector<16x104xbf16>, vector<16x104xbf16>, vector<16x104xbf16> -> vector<144x104xbf16>
    %cst_118 = arith.constant dense<0.000000e+00> : vector<32x104xf32>
    %548 = tpu.matmul %2, %547, %cst_118 {dimension_numbers = #tpu.dot_dimension_numbers<[1], [0], [0], [1], [0, 0, 1, 1], [], []>} : vector<32x144xbf16>, vector<144x104xbf16>, vector<32x104xf32> -> vector<32x104xf32>
    %549 = vector.broadcast %3 : vector<32x1xf32> to vector<32x104xf32>
    %550 = arith.addf %548, %549 : vector<32x104xf32>
    %cst_119 = arith.constant 0.000000e+00 : f32
    %551 = vector.broadcast %cst_119 : f32 to vector<32x104xf32>
    %552 = arith.maximumf %550, %551 : vector<32x104xf32>
    %553 = arith.maximumf %537, %552 : vector<32x104xf32>
    %554 = vector.extract_strided_slice %553 {offsets = [0, 0], sizes = [32, 103], strides = [1, 1]} : vector<32x104xf32> to vector<32x103xf32>
    %555 = vector.extract_strided_slice %553 {offsets = [0, 1], sizes = [32, 103], strides = [1, 1]} : vector<32x104xf32> to vector<32x103xf32>
    %556 = arith.maximumf %554, %555 : vector<32x103xf32>
    %557 = arith.truncf %556 : vector<32x103xf32> to vector<32x103xbf16>
    %cst_120 = arith.constant dense<0.000000e+00> : vector<32x52xf32>
    %558 = tpu.matmul %557, %5, %cst_120 {dimension_numbers = #tpu.dot_dimension_numbers<[1], [0], [0], [1], [0, 0, 1, 1], [], []>} : vector<32x103xbf16>, vector<103x52xbf16>, vector<32x52xf32> -> vector<32x52xf32>
    %cst_121 = arith.constant 0.000000e+00 : f32
    %559 = vector.broadcast %cst_121 : f32 to vector<4x128xf32>
    %c0_122 = arith.constant 0 : index
    %c0_123 = arith.constant 0 : index
    %560 = vector.load %arg9[%c0_122, %c0_123] : memref<1x128xf32, #tpu.memory_space<vmem>>, vector<1x128xf32>
    %561 = vector.broadcast %560 : vector<1x128xf32> to vector<4x128xf32>
    %562 = arith.addf %559, %561 : vector<4x128xf32>
    %563 = vector.extract_strided_slice %144 {offsets = [0, 0], sizes = [1, 52], strides = [1, 1]} : vector<32x52xf32> to vector<1x52xf32>
    %564 = vector.extract_strided_slice %282 {offsets = [0, 0], sizes = [1, 52], strides = [1, 1]} : vector<32x52xf32> to vector<1x52xf32>
    %565 = vector.extract_strided_slice %420 {offsets = [0, 0], sizes = [1, 52], strides = [1, 1]} : vector<32x52xf32> to vector<1x52xf32>
    %566 = vector.extract_strided_slice %558 {offsets = [0, 0], sizes = [1, 52], strides = [1, 1]} : vector<32x52xf32> to vector<1x52xf32>
    %567 = tpu.concatenate %563, %564, %565, %566 in 0 : vector<1x52xf32>, vector<1x52xf32>, vector<1x52xf32>, vector<1x52xf32> -> vector<4x52xf32>
    %568 = arith.truncf %567 : vector<4x52xf32> to vector<4x52xbf16>
    %c0_124 = arith.constant 0 : index
    %c0_125 = arith.constant 0 : index
    %c0_126 = arith.constant 0 : index
    %c0_127 = arith.constant 0 : index
    %569 = vector.load %arg8[%c0_124, %c0_125, %c0_126, %c0_127] : memref<32x1x52x128xbf16, #tpu.memory_space<vmem>>, vector<1x1x52x128xbf16>
    %570 = vector.shape_cast %569 : vector<1x1x52x128xbf16> to vector<52x128xbf16>
    %cst_128 = arith.constant dense<0.000000e+00> : vector<4x128xf32>
    %571 = tpu.matmul %568, %570, %cst_128 {dimension_numbers = #tpu.dot_dimension_numbers<[1], [0], [0], [1], [0, 0, 1, 1], [], []>} : vector<4x52xbf16>, vector<52x128xbf16>, vector<4x128xf32> -> vector<4x128xf32>
    %572 = arith.addf %562, %571 : vector<4x128xf32>
    %573 = vector.extract_strided_slice %144 {offsets = [1, 0], sizes = [1, 52], strides = [1, 1]} : vector<32x52xf32> to vector<1x52xf32>
    %574 = vector.extract_strided_slice %282 {offsets = [1, 0], sizes = [1, 52], strides = [1, 1]} : vector<32x52xf32> to vector<1x52xf32>
    %575 = vector.extract_strided_slice %420 {offsets = [1, 0], sizes = [1, 52], strides = [1, 1]} : vector<32x52xf32> to vector<1x52xf32>
    %576 = vector.extract_strided_slice %558 {offsets = [1, 0], sizes = [1, 52], strides = [1, 1]} : vector<32x52xf32> to vector<1x52xf32>
    %577 = tpu.concatenate %573, %574, %575, %576 in 0 : vector<1x52xf32>, vector<1x52xf32>, vector<1x52xf32>, vector<1x52xf32> -> vector<4x52xf32>
    %578 = arith.truncf %577 : vector<4x52xf32> to vector<4x52xbf16>
    %c1_129 = arith.constant 1 : index
    %c0_130 = arith.constant 0 : index
    %c0_131 = arith.constant 0 : index
    %c0_132 = arith.constant 0 : index
    %579 = vector.load %arg8[%c1_129, %c0_130, %c0_131, %c0_132] : memref<32x1x52x128xbf16, #tpu.memory_space<vmem>>, vector<1x1x52x128xbf16>
    %580 = vector.shape_cast %579 : vector<1x1x52x128xbf16> to vector<52x128xbf16>
    %cst_133 = arith.constant dense<0.000000e+00> : vector<4x128xf32>
    %581 = tpu.matmul %578, %580, %cst_133 {dimension_numbers = #tpu.dot_dimension_numbers<[1], [0], [0], [1], [0, 0, 1, 1], [], []>} : vector<4x52xbf16>, vector<52x128xbf16>, vector<4x128xf32> -> vector<4x128xf32>
    %582 = arith.addf %572, %581 : vector<4x128xf32>
    %583 = vector.extract_strided_slice %144 {offsets = [2, 0], sizes = [1, 52], strides = [1, 1]} : vector<32x52xf32> to vector<1x52xf32>
    %584 = vector.extract_strided_slice %282 {offsets = [2, 0], sizes = [1, 52], strides = [1, 1]} : vector<32x52xf32> to vector<1x52xf32>
    %585 = vector.extract_strided_slice %420 {offsets = [2, 0], sizes = [1, 52], strides = [1, 1]} : vector<32x52xf32> to vector<1x52xf32>
    %586 = vector.extract_strided_slice %558 {offsets = [2, 0], sizes = [1, 52], strides = [1, 1]} : vector<32x52xf32> to vector<1x52xf32>
    %587 = tpu.concatenate %583, %584, %585, %586 in 0 : vector<1x52xf32>, vector<1x52xf32>, vector<1x52xf32>, vector<1x52xf32> -> vector<4x52xf32>
    %588 = arith.truncf %587 : vector<4x52xf32> to vector<4x52xbf16>
    %c2_134 = arith.constant 2 : index
    %c0_135 = arith.constant 0 : index
    %c0_136 = arith.constant 0 : index
    %c0_137 = arith.constant 0 : index
    %589 = vector.load %arg8[%c2_134, %c0_135, %c0_136, %c0_137] : memref<32x1x52x128xbf16, #tpu.memory_space<vmem>>, vector<1x1x52x128xbf16>
    %590 = vector.shape_cast %589 : vector<1x1x52x128xbf16> to vector<52x128xbf16>
    %cst_138 = arith.constant dense<0.000000e+00> : vector<4x128xf32>
    %591 = tpu.matmul %588, %590, %cst_138 {dimension_numbers = #tpu.dot_dimension_numbers<[1], [0], [0], [1], [0, 0, 1, 1], [], []>} : vector<4x52xbf16>, vector<52x128xbf16>, vector<4x128xf32> -> vector<4x128xf32>
    %592 = arith.addf %582, %591 : vector<4x128xf32>
    %593 = vector.extract_strided_slice %144 {offsets = [3, 0], sizes = [1, 52], strides = [1, 1]} : vector<32x52xf32> to vector<1x52xf32>
    %594 = vector.extract_strided_slice %282 {offsets = [3, 0], sizes = [1, 52], strides = [1, 1]} : vector<32x52xf32> to vector<1x52xf32>
    %595 = vector.extract_strided_slice %420 {offsets = [3, 0], sizes = [1, 52], strides = [1, 1]} : vector<32x52xf32> to vector<1x52xf32>
    %596 = vector.extract_strided_slice %558 {offsets = [3, 0], sizes = [1, 52], strides = [1, 1]} : vector<32x52xf32> to vector<1x52xf32>
    %597 = tpu.concatenate %593, %594, %595, %596 in 0 : vector<1x52xf32>, vector<1x52xf32>, vector<1x52xf32>, vector<1x52xf32> -> vector<4x52xf32>
    %598 = arith.truncf %597 : vector<4x52xf32> to vector<4x52xbf16>
    %c3_139 = arith.constant 3 : index
    %c0_140 = arith.constant 0 : index
    %c0_141 = arith.constant 0 : index
    %c0_142 = arith.constant 0 : index
    %599 = vector.load %arg8[%c3_139, %c0_140, %c0_141, %c0_142] : memref<32x1x52x128xbf16, #tpu.memory_space<vmem>>, vector<1x1x52x128xbf16>
    %600 = vector.shape_cast %599 : vector<1x1x52x128xbf16> to vector<52x128xbf16>
    %cst_143 = arith.constant dense<0.000000e+00> : vector<4x128xf32>
    %601 = tpu.matmul %598, %600, %cst_143 {dimension_numbers = #tpu.dot_dimension_numbers<[1], [0], [0], [1], [0, 0, 1, 1], [], []>} : vector<4x52xbf16>, vector<52x128xbf16>, vector<4x128xf32> -> vector<4x128xf32>
    %602 = arith.addf %592, %601 : vector<4x128xf32>
    %603 = vector.extract_strided_slice %144 {offsets = [4, 0], sizes = [1, 52], strides = [1, 1]} : vector<32x52xf32> to vector<1x52xf32>
    %604 = vector.extract_strided_slice %282 {offsets = [4, 0], sizes = [1, 52], strides = [1, 1]} : vector<32x52xf32> to vector<1x52xf32>
    %605 = vector.extract_strided_slice %420 {offsets = [4, 0], sizes = [1, 52], strides = [1, 1]} : vector<32x52xf32> to vector<1x52xf32>
    %606 = vector.extract_strided_slice %558 {offsets = [4, 0], sizes = [1, 52], strides = [1, 1]} : vector<32x52xf32> to vector<1x52xf32>
    %607 = tpu.concatenate %603, %604, %605, %606 in 0 : vector<1x52xf32>, vector<1x52xf32>, vector<1x52xf32>, vector<1x52xf32> -> vector<4x52xf32>
    %608 = arith.truncf %607 : vector<4x52xf32> to vector<4x52xbf16>
    %c4 = arith.constant 4 : index
    %c0_144 = arith.constant 0 : index
    %c0_145 = arith.constant 0 : index
    %c0_146 = arith.constant 0 : index
    %609 = vector.load %arg8[%c4, %c0_144, %c0_145, %c0_146] : memref<32x1x52x128xbf16, #tpu.memory_space<vmem>>, vector<1x1x52x128xbf16>
    %610 = vector.shape_cast %609 : vector<1x1x52x128xbf16> to vector<52x128xbf16>
    %cst_147 = arith.constant dense<0.000000e+00> : vector<4x128xf32>
    %611 = tpu.matmul %608, %610, %cst_147 {dimension_numbers = #tpu.dot_dimension_numbers<[1], [0], [0], [1], [0, 0, 1, 1], [], []>} : vector<4x52xbf16>, vector<52x128xbf16>, vector<4x128xf32> -> vector<4x128xf32>
    %612 = arith.addf %602, %611 : vector<4x128xf32>
    %613 = vector.extract_strided_slice %144 {offsets = [5, 0], sizes = [1, 52], strides = [1, 1]} : vector<32x52xf32> to vector<1x52xf32>
    %614 = vector.extract_strided_slice %282 {offsets = [5, 0], sizes = [1, 52], strides = [1, 1]} : vector<32x52xf32> to vector<1x52xf32>
    %615 = vector.extract_strided_slice %420 {offsets = [5, 0], sizes = [1, 52], strides = [1, 1]} : vector<32x52xf32> to vector<1x52xf32>
    %616 = vector.extract_strided_slice %558 {offsets = [5, 0], sizes = [1, 52], strides = [1, 1]} : vector<32x52xf32> to vector<1x52xf32>
    %617 = tpu.concatenate %613, %614, %615, %616 in 0 : vector<1x52xf32>, vector<1x52xf32>, vector<1x52xf32>, vector<1x52xf32> -> vector<4x52xf32>
    %618 = arith.truncf %617 : vector<4x52xf32> to vector<4x52xbf16>
    %c5 = arith.constant 5 : index
    %c0_148 = arith.constant 0 : index
    %c0_149 = arith.constant 0 : index
    %c0_150 = arith.constant 0 : index
    %619 = vector.load %arg8[%c5, %c0_148, %c0_149, %c0_150] : memref<32x1x52x128xbf16, #tpu.memory_space<vmem>>, vector<1x1x52x128xbf16>
    %620 = vector.shape_cast %619 : vector<1x1x52x128xbf16> to vector<52x128xbf16>
    %cst_151 = arith.constant dense<0.000000e+00> : vector<4x128xf32>
    %621 = tpu.matmul %618, %620, %cst_151 {dimension_numbers = #tpu.dot_dimension_numbers<[1], [0], [0], [1], [0, 0, 1, 1], [], []>} : vector<4x52xbf16>, vector<52x128xbf16>, vector<4x128xf32> -> vector<4x128xf32>
    %622 = arith.addf %612, %621 : vector<4x128xf32>
    %623 = vector.extract_strided_slice %144 {offsets = [6, 0], sizes = [1, 52], strides = [1, 1]} : vector<32x52xf32> to vector<1x52xf32>
    %624 = vector.extract_strided_slice %282 {offsets = [6, 0], sizes = [1, 52], strides = [1, 1]} : vector<32x52xf32> to vector<1x52xf32>
    %625 = vector.extract_strided_slice %420 {offsets = [6, 0], sizes = [1, 52], strides = [1, 1]} : vector<32x52xf32> to vector<1x52xf32>
    %626 = vector.extract_strided_slice %558 {offsets = [6, 0], sizes = [1, 52], strides = [1, 1]} : vector<32x52xf32> to vector<1x52xf32>
    %627 = tpu.concatenate %623, %624, %625, %626 in 0 : vector<1x52xf32>, vector<1x52xf32>, vector<1x52xf32>, vector<1x52xf32> -> vector<4x52xf32>
    %628 = arith.truncf %627 : vector<4x52xf32> to vector<4x52xbf16>
    %c6 = arith.constant 6 : index
    %c0_152 = arith.constant 0 : index
    %c0_153 = arith.constant 0 : index
    %c0_154 = arith.constant 0 : index
    %629 = vector.load %arg8[%c6, %c0_152, %c0_153, %c0_154] : memref<32x1x52x128xbf16, #tpu.memory_space<vmem>>, vector<1x1x52x128xbf16>
    %630 = vector.shape_cast %629 : vector<1x1x52x128xbf16> to vector<52x128xbf16>
    %cst_155 = arith.constant dense<0.000000e+00> : vector<4x128xf32>
    %631 = tpu.matmul %628, %630, %cst_155 {dimension_numbers = #tpu.dot_dimension_numbers<[1], [0], [0], [1], [0, 0, 1, 1], [], []>} : vector<4x52xbf16>, vector<52x128xbf16>, vector<4x128xf32> -> vector<4x128xf32>
    %632 = arith.addf %622, %631 : vector<4x128xf32>
    %633 = vector.extract_strided_slice %144 {offsets = [7, 0], sizes = [1, 52], strides = [1, 1]} : vector<32x52xf32> to vector<1x52xf32>
    %634 = vector.extract_strided_slice %282 {offsets = [7, 0], sizes = [1, 52], strides = [1, 1]} : vector<32x52xf32> to vector<1x52xf32>
    %635 = vector.extract_strided_slice %420 {offsets = [7, 0], sizes = [1, 52], strides = [1, 1]} : vector<32x52xf32> to vector<1x52xf32>
    %636 = vector.extract_strided_slice %558 {offsets = [7, 0], sizes = [1, 52], strides = [1, 1]} : vector<32x52xf32> to vector<1x52xf32>
    %637 = tpu.concatenate %633, %634, %635, %636 in 0 : vector<1x52xf32>, vector<1x52xf32>, vector<1x52xf32>, vector<1x52xf32> -> vector<4x52xf32>
    %638 = arith.truncf %637 : vector<4x52xf32> to vector<4x52xbf16>
    %c7 = arith.constant 7 : index
    %c0_156 = arith.constant 0 : index
    %c0_157 = arith.constant 0 : index
    %c0_158 = arith.constant 0 : index
    %639 = vector.load %arg8[%c7, %c0_156, %c0_157, %c0_158] : memref<32x1x52x128xbf16, #tpu.memory_space<vmem>>, vector<1x1x52x128xbf16>
    %640 = vector.shape_cast %639 : vector<1x1x52x128xbf16> to vector<52x128xbf16>
    %cst_159 = arith.constant dense<0.000000e+00> : vector<4x128xf32>
    %641 = tpu.matmul %638, %640, %cst_159 {dimension_numbers = #tpu.dot_dimension_numbers<[1], [0], [0], [1], [0, 0, 1, 1], [], []>} : vector<4x52xbf16>, vector<52x128xbf16>, vector<4x128xf32> -> vector<4x128xf32>
    %642 = arith.addf %632, %641 : vector<4x128xf32>
    %643 = vector.extract_strided_slice %144 {offsets = [8, 0], sizes = [1, 52], strides = [1, 1]} : vector<32x52xf32> to vector<1x52xf32>
    %644 = vector.extract_strided_slice %282 {offsets = [8, 0], sizes = [1, 52], strides = [1, 1]} : vector<32x52xf32> to vector<1x52xf32>
    %645 = vector.extract_strided_slice %420 {offsets = [8, 0], sizes = [1, 52], strides = [1, 1]} : vector<32x52xf32> to vector<1x52xf32>
    %646 = vector.extract_strided_slice %558 {offsets = [8, 0], sizes = [1, 52], strides = [1, 1]} : vector<32x52xf32> to vector<1x52xf32>
    %647 = tpu.concatenate %643, %644, %645, %646 in 0 : vector<1x52xf32>, vector<1x52xf32>, vector<1x52xf32>, vector<1x52xf32> -> vector<4x52xf32>
    %648 = arith.truncf %647 : vector<4x52xf32> to vector<4x52xbf16>
    %c8 = arith.constant 8 : index
    %c0_160 = arith.constant 0 : index
    %c0_161 = arith.constant 0 : index
    %c0_162 = arith.constant 0 : index
    %649 = vector.load %arg8[%c8, %c0_160, %c0_161, %c0_162] : memref<32x1x52x128xbf16, #tpu.memory_space<vmem>>, vector<1x1x52x128xbf16>
    %650 = vector.shape_cast %649 : vector<1x1x52x128xbf16> to vector<52x128xbf16>
    %cst_163 = arith.constant dense<0.000000e+00> : vector<4x128xf32>
    %651 = tpu.matmul %648, %650, %cst_163 {dimension_numbers = #tpu.dot_dimension_numbers<[1], [0], [0], [1], [0, 0, 1, 1], [], []>} : vector<4x52xbf16>, vector<52x128xbf16>, vector<4x128xf32> -> vector<4x128xf32>
    %652 = arith.addf %642, %651 : vector<4x128xf32>
    %653 = vector.extract_strided_slice %144 {offsets = [9, 0], sizes = [1, 52], strides = [1, 1]} : vector<32x52xf32> to vector<1x52xf32>
    %654 = vector.extract_strided_slice %282 {offsets = [9, 0], sizes = [1, 52], strides = [1, 1]} : vector<32x52xf32> to vector<1x52xf32>
    %655 = vector.extract_strided_slice %420 {offsets = [9, 0], sizes = [1, 52], strides = [1, 1]} : vector<32x52xf32> to vector<1x52xf32>
    %656 = vector.extract_strided_slice %558 {offsets = [9, 0], sizes = [1, 52], strides = [1, 1]} : vector<32x52xf32> to vector<1x52xf32>
    %657 = tpu.concatenate %653, %654, %655, %656 in 0 : vector<1x52xf32>, vector<1x52xf32>, vector<1x52xf32>, vector<1x52xf32> -> vector<4x52xf32>
    %658 = arith.truncf %657 : vector<4x52xf32> to vector<4x52xbf16>
    %c9 = arith.constant 9 : index
    %c0_164 = arith.constant 0 : index
    %c0_165 = arith.constant 0 : index
    %c0_166 = arith.constant 0 : index
    %659 = vector.load %arg8[%c9, %c0_164, %c0_165, %c0_166] : memref<32x1x52x128xbf16, #tpu.memory_space<vmem>>, vector<1x1x52x128xbf16>
    %660 = vector.shape_cast %659 : vector<1x1x52x128xbf16> to vector<52x128xbf16>
    %cst_167 = arith.constant dense<0.000000e+00> : vector<4x128xf32>
    %661 = tpu.matmul %658, %660, %cst_167 {dimension_numbers = #tpu.dot_dimension_numbers<[1], [0], [0], [1], [0, 0, 1, 1], [], []>} : vector<4x52xbf16>, vector<52x128xbf16>, vector<4x128xf32> -> vector<4x128xf32>
    %662 = arith.addf %652, %661 : vector<4x128xf32>
    %663 = vector.extract_strided_slice %144 {offsets = [10, 0], sizes = [1, 52], strides = [1, 1]} : vector<32x52xf32> to vector<1x52xf32>
    %664 = vector.extract_strided_slice %282 {offsets = [10, 0], sizes = [1, 52], strides = [1, 1]} : vector<32x52xf32> to vector<1x52xf32>
    %665 = vector.extract_strided_slice %420 {offsets = [10, 0], sizes = [1, 52], strides = [1, 1]} : vector<32x52xf32> to vector<1x52xf32>
    %666 = vector.extract_strided_slice %558 {offsets = [10, 0], sizes = [1, 52], strides = [1, 1]} : vector<32x52xf32> to vector<1x52xf32>
    %667 = tpu.concatenate %663, %664, %665, %666 in 0 : vector<1x52xf32>, vector<1x52xf32>, vector<1x52xf32>, vector<1x52xf32> -> vector<4x52xf32>
    %668 = arith.truncf %667 : vector<4x52xf32> to vector<4x52xbf16>
    %c10 = arith.constant 10 : index
    %c0_168 = arith.constant 0 : index
    %c0_169 = arith.constant 0 : index
    %c0_170 = arith.constant 0 : index
    %669 = vector.load %arg8[%c10, %c0_168, %c0_169, %c0_170] : memref<32x1x52x128xbf16, #tpu.memory_space<vmem>>, vector<1x1x52x128xbf16>
    %670 = vector.shape_cast %669 : vector<1x1x52x128xbf16> to vector<52x128xbf16>
    %cst_171 = arith.constant dense<0.000000e+00> : vector<4x128xf32>
    %671 = tpu.matmul %668, %670, %cst_171 {dimension_numbers = #tpu.dot_dimension_numbers<[1], [0], [0], [1], [0, 0, 1, 1], [], []>} : vector<4x52xbf16>, vector<52x128xbf16>, vector<4x128xf32> -> vector<4x128xf32>
    %672 = arith.addf %662, %671 : vector<4x128xf32>
    %673 = vector.extract_strided_slice %144 {offsets = [11, 0], sizes = [1, 52], strides = [1, 1]} : vector<32x52xf32> to vector<1x52xf32>
    %674 = vector.extract_strided_slice %282 {offsets = [11, 0], sizes = [1, 52], strides = [1, 1]} : vector<32x52xf32> to vector<1x52xf32>
    %675 = vector.extract_strided_slice %420 {offsets = [11, 0], sizes = [1, 52], strides = [1, 1]} : vector<32x52xf32> to vector<1x52xf32>
    %676 = vector.extract_strided_slice %558 {offsets = [11, 0], sizes = [1, 52], strides = [1, 1]} : vector<32x52xf32> to vector<1x52xf32>
    %677 = tpu.concatenate %673, %674, %675, %676 in 0 : vector<1x52xf32>, vector<1x52xf32>, vector<1x52xf32>, vector<1x52xf32> -> vector<4x52xf32>
    %678 = arith.truncf %677 : vector<4x52xf32> to vector<4x52xbf16>
    %c11 = arith.constant 11 : index
    %c0_172 = arith.constant 0 : index
    %c0_173 = arith.constant 0 : index
    %c0_174 = arith.constant 0 : index
    %679 = vector.load %arg8[%c11, %c0_172, %c0_173, %c0_174] : memref<32x1x52x128xbf16, #tpu.memory_space<vmem>>, vector<1x1x52x128xbf16>
    %680 = vector.shape_cast %679 : vector<1x1x52x128xbf16> to vector<52x128xbf16>
    %cst_175 = arith.constant dense<0.000000e+00> : vector<4x128xf32>
    %681 = tpu.matmul %678, %680, %cst_175 {dimension_numbers = #tpu.dot_dimension_numbers<[1], [0], [0], [1], [0, 0, 1, 1], [], []>} : vector<4x52xbf16>, vector<52x128xbf16>, vector<4x128xf32> -> vector<4x128xf32>
    %682 = arith.addf %672, %681 : vector<4x128xf32>
    %683 = vector.extract_strided_slice %144 {offsets = [12, 0], sizes = [1, 52], strides = [1, 1]} : vector<32x52xf32> to vector<1x52xf32>
    %684 = vector.extract_strided_slice %282 {offsets = [12, 0], sizes = [1, 52], strides = [1, 1]} : vector<32x52xf32> to vector<1x52xf32>
    %685 = vector.extract_strided_slice %420 {offsets = [12, 0], sizes = [1, 52], strides = [1, 1]} : vector<32x52xf32> to vector<1x52xf32>
    %686 = vector.extract_strided_slice %558 {offsets = [12, 0], sizes = [1, 52], strides = [1, 1]} : vector<32x52xf32> to vector<1x52xf32>
    %687 = tpu.concatenate %683, %684, %685, %686 in 0 : vector<1x52xf32>, vector<1x52xf32>, vector<1x52xf32>, vector<1x52xf32> -> vector<4x52xf32>
    %688 = arith.truncf %687 : vector<4x52xf32> to vector<4x52xbf16>
    %c12 = arith.constant 12 : index
    %c0_176 = arith.constant 0 : index
    %c0_177 = arith.constant 0 : index
    %c0_178 = arith.constant 0 : index
    %689 = vector.load %arg8[%c12, %c0_176, %c0_177, %c0_178] : memref<32x1x52x128xbf16, #tpu.memory_space<vmem>>, vector<1x1x52x128xbf16>
    %690 = vector.shape_cast %689 : vector<1x1x52x128xbf16> to vector<52x128xbf16>
    %cst_179 = arith.constant dense<0.000000e+00> : vector<4x128xf32>
    %691 = tpu.matmul %688, %690, %cst_179 {dimension_numbers = #tpu.dot_dimension_numbers<[1], [0], [0], [1], [0, 0, 1, 1], [], []>} : vector<4x52xbf16>, vector<52x128xbf16>, vector<4x128xf32> -> vector<4x128xf32>
    %692 = arith.addf %682, %691 : vector<4x128xf32>
    %693 = vector.extract_strided_slice %144 {offsets = [13, 0], sizes = [1, 52], strides = [1, 1]} : vector<32x52xf32> to vector<1x52xf32>
    %694 = vector.extract_strided_slice %282 {offsets = [13, 0], sizes = [1, 52], strides = [1, 1]} : vector<32x52xf32> to vector<1x52xf32>
    %695 = vector.extract_strided_slice %420 {offsets = [13, 0], sizes = [1, 52], strides = [1, 1]} : vector<32x52xf32> to vector<1x52xf32>
    %696 = vector.extract_strided_slice %558 {offsets = [13, 0], sizes = [1, 52], strides = [1, 1]} : vector<32x52xf32> to vector<1x52xf32>
    %697 = tpu.concatenate %693, %694, %695, %696 in 0 : vector<1x52xf32>, vector<1x52xf32>, vector<1x52xf32>, vector<1x52xf32> -> vector<4x52xf32>
    %698 = arith.truncf %697 : vector<4x52xf32> to vector<4x52xbf16>
    %c13 = arith.constant 13 : index
    %c0_180 = arith.constant 0 : index
    %c0_181 = arith.constant 0 : index
    %c0_182 = arith.constant 0 : index
    %699 = vector.load %arg8[%c13, %c0_180, %c0_181, %c0_182] : memref<32x1x52x128xbf16, #tpu.memory_space<vmem>>, vector<1x1x52x128xbf16>
    %700 = vector.shape_cast %699 : vector<1x1x52x128xbf16> to vector<52x128xbf16>
    %cst_183 = arith.constant dense<0.000000e+00> : vector<4x128xf32>
    %701 = tpu.matmul %698, %700, %cst_183 {dimension_numbers = #tpu.dot_dimension_numbers<[1], [0], [0], [1], [0, 0, 1, 1], [], []>} : vector<4x52xbf16>, vector<52x128xbf16>, vector<4x128xf32> -> vector<4x128xf32>
    %702 = arith.addf %692, %701 : vector<4x128xf32>
    %703 = vector.extract_strided_slice %144 {offsets = [14, 0], sizes = [1, 52], strides = [1, 1]} : vector<32x52xf32> to vector<1x52xf32>
    %704 = vector.extract_strided_slice %282 {offsets = [14, 0], sizes = [1, 52], strides = [1, 1]} : vector<32x52xf32> to vector<1x52xf32>
    %705 = vector.extract_strided_slice %420 {offsets = [14, 0], sizes = [1, 52], strides = [1, 1]} : vector<32x52xf32> to vector<1x52xf32>
    %706 = vector.extract_strided_slice %558 {offsets = [14, 0], sizes = [1, 52], strides = [1, 1]} : vector<32x52xf32> to vector<1x52xf32>
    %707 = tpu.concatenate %703, %704, %705, %706 in 0 : vector<1x52xf32>, vector<1x52xf32>, vector<1x52xf32>, vector<1x52xf32> -> vector<4x52xf32>
    %708 = arith.truncf %707 : vector<4x52xf32> to vector<4x52xbf16>
    %c14 = arith.constant 14 : index
    %c0_184 = arith.constant 0 : index
    %c0_185 = arith.constant 0 : index
    %c0_186 = arith.constant 0 : index
    %709 = vector.load %arg8[%c14, %c0_184, %c0_185, %c0_186] : memref<32x1x52x128xbf16, #tpu.memory_space<vmem>>, vector<1x1x52x128xbf16>
    %710 = vector.shape_cast %709 : vector<1x1x52x128xbf16> to vector<52x128xbf16>
    %cst_187 = arith.constant dense<0.000000e+00> : vector<4x128xf32>
    %711 = tpu.matmul %708, %710, %cst_187 {dimension_numbers = #tpu.dot_dimension_numbers<[1], [0], [0], [1], [0, 0, 1, 1], [], []>} : vector<4x52xbf16>, vector<52x128xbf16>, vector<4x128xf32> -> vector<4x128xf32>
    %712 = arith.addf %702, %711 : vector<4x128xf32>
    %713 = vector.extract_strided_slice %144 {offsets = [15, 0], sizes = [1, 52], strides = [1, 1]} : vector<32x52xf32> to vector<1x52xf32>
    %714 = vector.extract_strided_slice %282 {offsets = [15, 0], sizes = [1, 52], strides = [1, 1]} : vector<32x52xf32> to vector<1x52xf32>
    %715 = vector.extract_strided_slice %420 {offsets = [15, 0], sizes = [1, 52], strides = [1, 1]} : vector<32x52xf32> to vector<1x52xf32>
    %716 = vector.extract_strided_slice %558 {offsets = [15, 0], sizes = [1, 52], strides = [1, 1]} : vector<32x52xf32> to vector<1x52xf32>
    %717 = tpu.concatenate %713, %714, %715, %716 in 0 : vector<1x52xf32>, vector<1x52xf32>, vector<1x52xf32>, vector<1x52xf32> -> vector<4x52xf32>
    %718 = arith.truncf %717 : vector<4x52xf32> to vector<4x52xbf16>
    %c15 = arith.constant 15 : index
    %c0_188 = arith.constant 0 : index
    %c0_189 = arith.constant 0 : index
    %c0_190 = arith.constant 0 : index
    %719 = vector.load %arg8[%c15, %c0_188, %c0_189, %c0_190] : memref<32x1x52x128xbf16, #tpu.memory_space<vmem>>, vector<1x1x52x128xbf16>
    %720 = vector.shape_cast %719 : vector<1x1x52x128xbf16> to vector<52x128xbf16>
    %cst_191 = arith.constant dense<0.000000e+00> : vector<4x128xf32>
    %721 = tpu.matmul %718, %720, %cst_191 {dimension_numbers = #tpu.dot_dimension_numbers<[1], [0], [0], [1], [0, 0, 1, 1], [], []>} : vector<4x52xbf16>, vector<52x128xbf16>, vector<4x128xf32> -> vector<4x128xf32>
    %722 = arith.addf %712, %721 : vector<4x128xf32>
    %723 = vector.extract_strided_slice %144 {offsets = [16, 0], sizes = [1, 52], strides = [1, 1]} : vector<32x52xf32> to vector<1x52xf32>
    %724 = vector.extract_strided_slice %282 {offsets = [16, 0], sizes = [1, 52], strides = [1, 1]} : vector<32x52xf32> to vector<1x52xf32>
    %725 = vector.extract_strided_slice %420 {offsets = [16, 0], sizes = [1, 52], strides = [1, 1]} : vector<32x52xf32> to vector<1x52xf32>
    %726 = vector.extract_strided_slice %558 {offsets = [16, 0], sizes = [1, 52], strides = [1, 1]} : vector<32x52xf32> to vector<1x52xf32>
    %727 = tpu.concatenate %723, %724, %725, %726 in 0 : vector<1x52xf32>, vector<1x52xf32>, vector<1x52xf32>, vector<1x52xf32> -> vector<4x52xf32>
    %728 = arith.truncf %727 : vector<4x52xf32> to vector<4x52xbf16>
    %c16 = arith.constant 16 : index
    %c0_192 = arith.constant 0 : index
    %c0_193 = arith.constant 0 : index
    %c0_194 = arith.constant 0 : index
    %729 = vector.load %arg8[%c16, %c0_192, %c0_193, %c0_194] : memref<32x1x52x128xbf16, #tpu.memory_space<vmem>>, vector<1x1x52x128xbf16>
    %730 = vector.shape_cast %729 : vector<1x1x52x128xbf16> to vector<52x128xbf16>
    %cst_195 = arith.constant dense<0.000000e+00> : vector<4x128xf32>
    %731 = tpu.matmul %728, %730, %cst_195 {dimension_numbers = #tpu.dot_dimension_numbers<[1], [0], [0], [1], [0, 0, 1, 1], [], []>} : vector<4x52xbf16>, vector<52x128xbf16>, vector<4x128xf32> -> vector<4x128xf32>
    %732 = arith.addf %722, %731 : vector<4x128xf32>
    %733 = vector.extract_strided_slice %144 {offsets = [17, 0], sizes = [1, 52], strides = [1, 1]} : vector<32x52xf32> to vector<1x52xf32>
    %734 = vector.extract_strided_slice %282 {offsets = [17, 0], sizes = [1, 52], strides = [1, 1]} : vector<32x52xf32> to vector<1x52xf32>
    %735 = vector.extract_strided_slice %420 {offsets = [17, 0], sizes = [1, 52], strides = [1, 1]} : vector<32x52xf32> to vector<1x52xf32>
    %736 = vector.extract_strided_slice %558 {offsets = [17, 0], sizes = [1, 52], strides = [1, 1]} : vector<32x52xf32> to vector<1x52xf32>
    %737 = tpu.concatenate %733, %734, %735, %736 in 0 : vector<1x52xf32>, vector<1x52xf32>, vector<1x52xf32>, vector<1x52xf32> -> vector<4x52xf32>
    %738 = arith.truncf %737 : vector<4x52xf32> to vector<4x52xbf16>
    %c17 = arith.constant 17 : index
    %c0_196 = arith.constant 0 : index
    %c0_197 = arith.constant 0 : index
    %c0_198 = arith.constant 0 : index
    %739 = vector.load %arg8[%c17, %c0_196, %c0_197, %c0_198] : memref<32x1x52x128xbf16, #tpu.memory_space<vmem>>, vector<1x1x52x128xbf16>
    %740 = vector.shape_cast %739 : vector<1x1x52x128xbf16> to vector<52x128xbf16>
    %cst_199 = arith.constant dense<0.000000e+00> : vector<4x128xf32>
    %741 = tpu.matmul %738, %740, %cst_199 {dimension_numbers = #tpu.dot_dimension_numbers<[1], [0], [0], [1], [0, 0, 1, 1], [], []>} : vector<4x52xbf16>, vector<52x128xbf16>, vector<4x128xf32> -> vector<4x128xf32>
    %742 = arith.addf %732, %741 : vector<4x128xf32>
    %743 = vector.extract_strided_slice %144 {offsets = [18, 0], sizes = [1, 52], strides = [1, 1]} : vector<32x52xf32> to vector<1x52xf32>
    %744 = vector.extract_strided_slice %282 {offsets = [18, 0], sizes = [1, 52], strides = [1, 1]} : vector<32x52xf32> to vector<1x52xf32>
    %745 = vector.extract_strided_slice %420 {offsets = [18, 0], sizes = [1, 52], strides = [1, 1]} : vector<32x52xf32> to vector<1x52xf32>
    %746 = vector.extract_strided_slice %558 {offsets = [18, 0], sizes = [1, 52], strides = [1, 1]} : vector<32x52xf32> to vector<1x52xf32>
    %747 = tpu.concatenate %743, %744, %745, %746 in 0 : vector<1x52xf32>, vector<1x52xf32>, vector<1x52xf32>, vector<1x52xf32> -> vector<4x52xf32>
    %748 = arith.truncf %747 : vector<4x52xf32> to vector<4x52xbf16>
    %c18 = arith.constant 18 : index
    %c0_200 = arith.constant 0 : index
    %c0_201 = arith.constant 0 : index
    %c0_202 = arith.constant 0 : index
    %749 = vector.load %arg8[%c18, %c0_200, %c0_201, %c0_202] : memref<32x1x52x128xbf16, #tpu.memory_space<vmem>>, vector<1x1x52x128xbf16>
    %750 = vector.shape_cast %749 : vector<1x1x52x128xbf16> to vector<52x128xbf16>
    %cst_203 = arith.constant dense<0.000000e+00> : vector<4x128xf32>
    %751 = tpu.matmul %748, %750, %cst_203 {dimension_numbers = #tpu.dot_dimension_numbers<[1], [0], [0], [1], [0, 0, 1, 1], [], []>} : vector<4x52xbf16>, vector<52x128xbf16>, vector<4x128xf32> -> vector<4x128xf32>
    %752 = arith.addf %742, %751 : vector<4x128xf32>
    %753 = vector.extract_strided_slice %144 {offsets = [19, 0], sizes = [1, 52], strides = [1, 1]} : vector<32x52xf32> to vector<1x52xf32>
    %754 = vector.extract_strided_slice %282 {offsets = [19, 0], sizes = [1, 52], strides = [1, 1]} : vector<32x52xf32> to vector<1x52xf32>
    %755 = vector.extract_strided_slice %420 {offsets = [19, 0], sizes = [1, 52], strides = [1, 1]} : vector<32x52xf32> to vector<1x52xf32>
    %756 = vector.extract_strided_slice %558 {offsets = [19, 0], sizes = [1, 52], strides = [1, 1]} : vector<32x52xf32> to vector<1x52xf32>
    %757 = tpu.concatenate %753, %754, %755, %756 in 0 : vector<1x52xf32>, vector<1x52xf32>, vector<1x52xf32>, vector<1x52xf32> -> vector<4x52xf32>
    %758 = arith.truncf %757 : vector<4x52xf32> to vector<4x52xbf16>
    %c19 = arith.constant 19 : index
    %c0_204 = arith.constant 0 : index
    %c0_205 = arith.constant 0 : index
    %c0_206 = arith.constant 0 : index
    %759 = vector.load %arg8[%c19, %c0_204, %c0_205, %c0_206] : memref<32x1x52x128xbf16, #tpu.memory_space<vmem>>, vector<1x1x52x128xbf16>
    %760 = vector.shape_cast %759 : vector<1x1x52x128xbf16> to vector<52x128xbf16>
    %cst_207 = arith.constant dense<0.000000e+00> : vector<4x128xf32>
    %761 = tpu.matmul %758, %760, %cst_207 {dimension_numbers = #tpu.dot_dimension_numbers<[1], [0], [0], [1], [0, 0, 1, 1], [], []>} : vector<4x52xbf16>, vector<52x128xbf16>, vector<4x128xf32> -> vector<4x128xf32>
    %762 = arith.addf %752, %761 : vector<4x128xf32>
    %763 = vector.extract_strided_slice %144 {offsets = [20, 0], sizes = [1, 52], strides = [1, 1]} : vector<32x52xf32> to vector<1x52xf32>
    %764 = vector.extract_strided_slice %282 {offsets = [20, 0], sizes = [1, 52], strides = [1, 1]} : vector<32x52xf32> to vector<1x52xf32>
    %765 = vector.extract_strided_slice %420 {offsets = [20, 0], sizes = [1, 52], strides = [1, 1]} : vector<32x52xf32> to vector<1x52xf32>
    %766 = vector.extract_strided_slice %558 {offsets = [20, 0], sizes = [1, 52], strides = [1, 1]} : vector<32x52xf32> to vector<1x52xf32>
    %767 = tpu.concatenate %763, %764, %765, %766 in 0 : vector<1x52xf32>, vector<1x52xf32>, vector<1x52xf32>, vector<1x52xf32> -> vector<4x52xf32>
    %768 = arith.truncf %767 : vector<4x52xf32> to vector<4x52xbf16>
    %c20 = arith.constant 20 : index
    %c0_208 = arith.constant 0 : index
    %c0_209 = arith.constant 0 : index
    %c0_210 = arith.constant 0 : index
    %769 = vector.load %arg8[%c20, %c0_208, %c0_209, %c0_210] : memref<32x1x52x128xbf16, #tpu.memory_space<vmem>>, vector<1x1x52x128xbf16>
    %770 = vector.shape_cast %769 : vector<1x1x52x128xbf16> to vector<52x128xbf16>
    %cst_211 = arith.constant dense<0.000000e+00> : vector<4x128xf32>
    %771 = tpu.matmul %768, %770, %cst_211 {dimension_numbers = #tpu.dot_dimension_numbers<[1], [0], [0], [1], [0, 0, 1, 1], [], []>} : vector<4x52xbf16>, vector<52x128xbf16>, vector<4x128xf32> -> vector<4x128xf32>
    %772 = arith.addf %762, %771 : vector<4x128xf32>
    %773 = vector.extract_strided_slice %144 {offsets = [21, 0], sizes = [1, 52], strides = [1, 1]} : vector<32x52xf32> to vector<1x52xf32>
    %774 = vector.extract_strided_slice %282 {offsets = [21, 0], sizes = [1, 52], strides = [1, 1]} : vector<32x52xf32> to vector<1x52xf32>
    %775 = vector.extract_strided_slice %420 {offsets = [21, 0], sizes = [1, 52], strides = [1, 1]} : vector<32x52xf32> to vector<1x52xf32>
    %776 = vector.extract_strided_slice %558 {offsets = [21, 0], sizes = [1, 52], strides = [1, 1]} : vector<32x52xf32> to vector<1x52xf32>
    %777 = tpu.concatenate %773, %774, %775, %776 in 0 : vector<1x52xf32>, vector<1x52xf32>, vector<1x52xf32>, vector<1x52xf32> -> vector<4x52xf32>
    %778 = arith.truncf %777 : vector<4x52xf32> to vector<4x52xbf16>
    %c21 = arith.constant 21 : index
    %c0_212 = arith.constant 0 : index
    %c0_213 = arith.constant 0 : index
    %c0_214 = arith.constant 0 : index
    %779 = vector.load %arg8[%c21, %c0_212, %c0_213, %c0_214] : memref<32x1x52x128xbf16, #tpu.memory_space<vmem>>, vector<1x1x52x128xbf16>
    %780 = vector.shape_cast %779 : vector<1x1x52x128xbf16> to vector<52x128xbf16>
    %cst_215 = arith.constant dense<0.000000e+00> : vector<4x128xf32>
    %781 = tpu.matmul %778, %780, %cst_215 {dimension_numbers = #tpu.dot_dimension_numbers<[1], [0], [0], [1], [0, 0, 1, 1], [], []>} : vector<4x52xbf16>, vector<52x128xbf16>, vector<4x128xf32> -> vector<4x128xf32>
    %782 = arith.addf %772, %781 : vector<4x128xf32>
    %783 = vector.extract_strided_slice %144 {offsets = [22, 0], sizes = [1, 52], strides = [1, 1]} : vector<32x52xf32> to vector<1x52xf32>
    %784 = vector.extract_strided_slice %282 {offsets = [22, 0], sizes = [1, 52], strides = [1, 1]} : vector<32x52xf32> to vector<1x52xf32>
    %785 = vector.extract_strided_slice %420 {offsets = [22, 0], sizes = [1, 52], strides = [1, 1]} : vector<32x52xf32> to vector<1x52xf32>
    %786 = vector.extract_strided_slice %558 {offsets = [22, 0], sizes = [1, 52], strides = [1, 1]} : vector<32x52xf32> to vector<1x52xf32>
    %787 = tpu.concatenate %783, %784, %785, %786 in 0 : vector<1x52xf32>, vector<1x52xf32>, vector<1x52xf32>, vector<1x52xf32> -> vector<4x52xf32>
    %788 = arith.truncf %787 : vector<4x52xf32> to vector<4x52xbf16>
    %c22 = arith.constant 22 : index
    %c0_216 = arith.constant 0 : index
    %c0_217 = arith.constant 0 : index
    %c0_218 = arith.constant 0 : index
    %789 = vector.load %arg8[%c22, %c0_216, %c0_217, %c0_218] : memref<32x1x52x128xbf16, #tpu.memory_space<vmem>>, vector<1x1x52x128xbf16>
    %790 = vector.shape_cast %789 : vector<1x1x52x128xbf16> to vector<52x128xbf16>
    %cst_219 = arith.constant dense<0.000000e+00> : vector<4x128xf32>
    %791 = tpu.matmul %788, %790, %cst_219 {dimension_numbers = #tpu.dot_dimension_numbers<[1], [0], [0], [1], [0, 0, 1, 1], [], []>} : vector<4x52xbf16>, vector<52x128xbf16>, vector<4x128xf32> -> vector<4x128xf32>
    %792 = arith.addf %782, %791 : vector<4x128xf32>
    %793 = vector.extract_strided_slice %144 {offsets = [23, 0], sizes = [1, 52], strides = [1, 1]} : vector<32x52xf32> to vector<1x52xf32>
    %794 = vector.extract_strided_slice %282 {offsets = [23, 0], sizes = [1, 52], strides = [1, 1]} : vector<32x52xf32> to vector<1x52xf32>
    %795 = vector.extract_strided_slice %420 {offsets = [23, 0], sizes = [1, 52], strides = [1, 1]} : vector<32x52xf32> to vector<1x52xf32>
    %796 = vector.extract_strided_slice %558 {offsets = [23, 0], sizes = [1, 52], strides = [1, 1]} : vector<32x52xf32> to vector<1x52xf32>
    %797 = tpu.concatenate %793, %794, %795, %796 in 0 : vector<1x52xf32>, vector<1x52xf32>, vector<1x52xf32>, vector<1x52xf32> -> vector<4x52xf32>
    %798 = arith.truncf %797 : vector<4x52xf32> to vector<4x52xbf16>
    %c23 = arith.constant 23 : index
    %c0_220 = arith.constant 0 : index
    %c0_221 = arith.constant 0 : index
    %c0_222 = arith.constant 0 : index
    %799 = vector.load %arg8[%c23, %c0_220, %c0_221, %c0_222] : memref<32x1x52x128xbf16, #tpu.memory_space<vmem>>, vector<1x1x52x128xbf16>
    %800 = vector.shape_cast %799 : vector<1x1x52x128xbf16> to vector<52x128xbf16>
    %cst_223 = arith.constant dense<0.000000e+00> : vector<4x128xf32>
    %801 = tpu.matmul %798, %800, %cst_223 {dimension_numbers = #tpu.dot_dimension_numbers<[1], [0], [0], [1], [0, 0, 1, 1], [], []>} : vector<4x52xbf16>, vector<52x128xbf16>, vector<4x128xf32> -> vector<4x128xf32>
    %802 = arith.addf %792, %801 : vector<4x128xf32>
    %803 = vector.extract_strided_slice %144 {offsets = [24, 0], sizes = [1, 52], strides = [1, 1]} : vector<32x52xf32> to vector<1x52xf32>
    %804 = vector.extract_strided_slice %282 {offsets = [24, 0], sizes = [1, 52], strides = [1, 1]} : vector<32x52xf32> to vector<1x52xf32>
    %805 = vector.extract_strided_slice %420 {offsets = [24, 0], sizes = [1, 52], strides = [1, 1]} : vector<32x52xf32> to vector<1x52xf32>
    %806 = vector.extract_strided_slice %558 {offsets = [24, 0], sizes = [1, 52], strides = [1, 1]} : vector<32x52xf32> to vector<1x52xf32>
    %807 = tpu.concatenate %803, %804, %805, %806 in 0 : vector<1x52xf32>, vector<1x52xf32>, vector<1x52xf32>, vector<1x52xf32> -> vector<4x52xf32>
    %808 = arith.truncf %807 : vector<4x52xf32> to vector<4x52xbf16>
    %c24 = arith.constant 24 : index
    %c0_224 = arith.constant 0 : index
    %c0_225 = arith.constant 0 : index
    %c0_226 = arith.constant 0 : index
    %809 = vector.load %arg8[%c24, %c0_224, %c0_225, %c0_226] : memref<32x1x52x128xbf16, #tpu.memory_space<vmem>>, vector<1x1x52x128xbf16>
    %810 = vector.shape_cast %809 : vector<1x1x52x128xbf16> to vector<52x128xbf16>
    %cst_227 = arith.constant dense<0.000000e+00> : vector<4x128xf32>
    %811 = tpu.matmul %808, %810, %cst_227 {dimension_numbers = #tpu.dot_dimension_numbers<[1], [0], [0], [1], [0, 0, 1, 1], [], []>} : vector<4x52xbf16>, vector<52x128xbf16>, vector<4x128xf32> -> vector<4x128xf32>
    %812 = arith.addf %802, %811 : vector<4x128xf32>
    %813 = vector.extract_strided_slice %144 {offsets = [25, 0], sizes = [1, 52], strides = [1, 1]} : vector<32x52xf32> to vector<1x52xf32>
    %814 = vector.extract_strided_slice %282 {offsets = [25, 0], sizes = [1, 52], strides = [1, 1]} : vector<32x52xf32> to vector<1x52xf32>
    %815 = vector.extract_strided_slice %420 {offsets = [25, 0], sizes = [1, 52], strides = [1, 1]} : vector<32x52xf32> to vector<1x52xf32>
    %816 = vector.extract_strided_slice %558 {offsets = [25, 0], sizes = [1, 52], strides = [1, 1]} : vector<32x52xf32> to vector<1x52xf32>
    %817 = tpu.concatenate %813, %814, %815, %816 in 0 : vector<1x52xf32>, vector<1x52xf32>, vector<1x52xf32>, vector<1x52xf32> -> vector<4x52xf32>
    %818 = arith.truncf %817 : vector<4x52xf32> to vector<4x52xbf16>
    %c25 = arith.constant 25 : index
    %c0_228 = arith.constant 0 : index
    %c0_229 = arith.constant 0 : index
    %c0_230 = arith.constant 0 : index
    %819 = vector.load %arg8[%c25, %c0_228, %c0_229, %c0_230] : memref<32x1x52x128xbf16, #tpu.memory_space<vmem>>, vector<1x1x52x128xbf16>
    %820 = vector.shape_cast %819 : vector<1x1x52x128xbf16> to vector<52x128xbf16>
    %cst_231 = arith.constant dense<0.000000e+00> : vector<4x128xf32>
    %821 = tpu.matmul %818, %820, %cst_231 {dimension_numbers = #tpu.dot_dimension_numbers<[1], [0], [0], [1], [0, 0, 1, 1], [], []>} : vector<4x52xbf16>, vector<52x128xbf16>, vector<4x128xf32> -> vector<4x128xf32>
    %822 = arith.addf %812, %821 : vector<4x128xf32>
    %823 = vector.extract_strided_slice %144 {offsets = [26, 0], sizes = [1, 52], strides = [1, 1]} : vector<32x52xf32> to vector<1x52xf32>
    %824 = vector.extract_strided_slice %282 {offsets = [26, 0], sizes = [1, 52], strides = [1, 1]} : vector<32x52xf32> to vector<1x52xf32>
    %825 = vector.extract_strided_slice %420 {offsets = [26, 0], sizes = [1, 52], strides = [1, 1]} : vector<32x52xf32> to vector<1x52xf32>
    %826 = vector.extract_strided_slice %558 {offsets = [26, 0], sizes = [1, 52], strides = [1, 1]} : vector<32x52xf32> to vector<1x52xf32>
    %827 = tpu.concatenate %823, %824, %825, %826 in 0 : vector<1x52xf32>, vector<1x52xf32>, vector<1x52xf32>, vector<1x52xf32> -> vector<4x52xf32>
    %828 = arith.truncf %827 : vector<4x52xf32> to vector<4x52xbf16>
    %c26 = arith.constant 26 : index
    %c0_232 = arith.constant 0 : index
    %c0_233 = arith.constant 0 : index
    %c0_234 = arith.constant 0 : index
    %829 = vector.load %arg8[%c26, %c0_232, %c0_233, %c0_234] : memref<32x1x52x128xbf16, #tpu.memory_space<vmem>>, vector<1x1x52x128xbf16>
    %830 = vector.shape_cast %829 : vector<1x1x52x128xbf16> to vector<52x128xbf16>
    %cst_235 = arith.constant dense<0.000000e+00> : vector<4x128xf32>
    %831 = tpu.matmul %828, %830, %cst_235 {dimension_numbers = #tpu.dot_dimension_numbers<[1], [0], [0], [1], [0, 0, 1, 1], [], []>} : vector<4x52xbf16>, vector<52x128xbf16>, vector<4x128xf32> -> vector<4x128xf32>
    %832 = arith.addf %822, %831 : vector<4x128xf32>
    %833 = vector.extract_strided_slice %144 {offsets = [27, 0], sizes = [1, 52], strides = [1, 1]} : vector<32x52xf32> to vector<1x52xf32>
    %834 = vector.extract_strided_slice %282 {offsets = [27, 0], sizes = [1, 52], strides = [1, 1]} : vector<32x52xf32> to vector<1x52xf32>
    %835 = vector.extract_strided_slice %420 {offsets = [27, 0], sizes = [1, 52], strides = [1, 1]} : vector<32x52xf32> to vector<1x52xf32>
    %836 = vector.extract_strided_slice %558 {offsets = [27, 0], sizes = [1, 52], strides = [1, 1]} : vector<32x52xf32> to vector<1x52xf32>
    %837 = tpu.concatenate %833, %834, %835, %836 in 0 : vector<1x52xf32>, vector<1x52xf32>, vector<1x52xf32>, vector<1x52xf32> -> vector<4x52xf32>
    %838 = arith.truncf %837 : vector<4x52xf32> to vector<4x52xbf16>
    %c27 = arith.constant 27 : index
    %c0_236 = arith.constant 0 : index
    %c0_237 = arith.constant 0 : index
    %c0_238 = arith.constant 0 : index
    %839 = vector.load %arg8[%c27, %c0_236, %c0_237, %c0_238] : memref<32x1x52x128xbf16, #tpu.memory_space<vmem>>, vector<1x1x52x128xbf16>
    %840 = vector.shape_cast %839 : vector<1x1x52x128xbf16> to vector<52x128xbf16>
    %cst_239 = arith.constant dense<0.000000e+00> : vector<4x128xf32>
    %841 = tpu.matmul %838, %840, %cst_239 {dimension_numbers = #tpu.dot_dimension_numbers<[1], [0], [0], [1], [0, 0, 1, 1], [], []>} : vector<4x52xbf16>, vector<52x128xbf16>, vector<4x128xf32> -> vector<4x128xf32>
    %842 = arith.addf %832, %841 : vector<4x128xf32>
    %843 = vector.extract_strided_slice %144 {offsets = [28, 0], sizes = [1, 52], strides = [1, 1]} : vector<32x52xf32> to vector<1x52xf32>
    %844 = vector.extract_strided_slice %282 {offsets = [28, 0], sizes = [1, 52], strides = [1, 1]} : vector<32x52xf32> to vector<1x52xf32>
    %845 = vector.extract_strided_slice %420 {offsets = [28, 0], sizes = [1, 52], strides = [1, 1]} : vector<32x52xf32> to vector<1x52xf32>
    %846 = vector.extract_strided_slice %558 {offsets = [28, 0], sizes = [1, 52], strides = [1, 1]} : vector<32x52xf32> to vector<1x52xf32>
    %847 = tpu.concatenate %843, %844, %845, %846 in 0 : vector<1x52xf32>, vector<1x52xf32>, vector<1x52xf32>, vector<1x52xf32> -> vector<4x52xf32>
    %848 = arith.truncf %847 : vector<4x52xf32> to vector<4x52xbf16>
    %c28 = arith.constant 28 : index
    %c0_240 = arith.constant 0 : index
    %c0_241 = arith.constant 0 : index
    %c0_242 = arith.constant 0 : index
    %849 = vector.load %arg8[%c28, %c0_240, %c0_241, %c0_242] : memref<32x1x52x128xbf16, #tpu.memory_space<vmem>>, vector<1x1x52x128xbf16>
    %850 = vector.shape_cast %849 : vector<1x1x52x128xbf16> to vector<52x128xbf16>
    %cst_243 = arith.constant dense<0.000000e+00> : vector<4x128xf32>
    %851 = tpu.matmul %848, %850, %cst_243 {dimension_numbers = #tpu.dot_dimension_numbers<[1], [0], [0], [1], [0, 0, 1, 1], [], []>} : vector<4x52xbf16>, vector<52x128xbf16>, vector<4x128xf32> -> vector<4x128xf32>
    %852 = arith.addf %842, %851 : vector<4x128xf32>
    %853 = vector.extract_strided_slice %144 {offsets = [29, 0], sizes = [1, 52], strides = [1, 1]} : vector<32x52xf32> to vector<1x52xf32>
    %854 = vector.extract_strided_slice %282 {offsets = [29, 0], sizes = [1, 52], strides = [1, 1]} : vector<32x52xf32> to vector<1x52xf32>
    %855 = vector.extract_strided_slice %420 {offsets = [29, 0], sizes = [1, 52], strides = [1, 1]} : vector<32x52xf32> to vector<1x52xf32>
    %856 = vector.extract_strided_slice %558 {offsets = [29, 0], sizes = [1, 52], strides = [1, 1]} : vector<32x52xf32> to vector<1x52xf32>
    %857 = tpu.concatenate %853, %854, %855, %856 in 0 : vector<1x52xf32>, vector<1x52xf32>, vector<1x52xf32>, vector<1x52xf32> -> vector<4x52xf32>
    %858 = arith.truncf %857 : vector<4x52xf32> to vector<4x52xbf16>
    %c29 = arith.constant 29 : index
    %c0_244 = arith.constant 0 : index
    %c0_245 = arith.constant 0 : index
    %c0_246 = arith.constant 0 : index
    %859 = vector.load %arg8[%c29, %c0_244, %c0_245, %c0_246] : memref<32x1x52x128xbf16, #tpu.memory_space<vmem>>, vector<1x1x52x128xbf16>
    %860 = vector.shape_cast %859 : vector<1x1x52x128xbf16> to vector<52x128xbf16>
    %cst_247 = arith.constant dense<0.000000e+00> : vector<4x128xf32>
    %861 = tpu.matmul %858, %860, %cst_247 {dimension_numbers = #tpu.dot_dimension_numbers<[1], [0], [0], [1], [0, 0, 1, 1], [], []>} : vector<4x52xbf16>, vector<52x128xbf16>, vector<4x128xf32> -> vector<4x128xf32>
    %862 = arith.addf %852, %861 : vector<4x128xf32>
    %863 = vector.extract_strided_slice %144 {offsets = [30, 0], sizes = [1, 52], strides = [1, 1]} : vector<32x52xf32> to vector<1x52xf32>
    %864 = vector.extract_strided_slice %282 {offsets = [30, 0], sizes = [1, 52], strides = [1, 1]} : vector<32x52xf32> to vector<1x52xf32>
    %865 = vector.extract_strided_slice %420 {offsets = [30, 0], sizes = [1, 52], strides = [1, 1]} : vector<32x52xf32> to vector<1x52xf32>
    %866 = vector.extract_strided_slice %558 {offsets = [30, 0], sizes = [1, 52], strides = [1, 1]} : vector<32x52xf32> to vector<1x52xf32>
    %867 = tpu.concatenate %863, %864, %865, %866 in 0 : vector<1x52xf32>, vector<1x52xf32>, vector<1x52xf32>, vector<1x52xf32> -> vector<4x52xf32>
    %868 = arith.truncf %867 : vector<4x52xf32> to vector<4x52xbf16>
    %c30 = arith.constant 30 : index
    %c0_248 = arith.constant 0 : index
    %c0_249 = arith.constant 0 : index
    %c0_250 = arith.constant 0 : index
    %869 = vector.load %arg8[%c30, %c0_248, %c0_249, %c0_250] : memref<32x1x52x128xbf16, #tpu.memory_space<vmem>>, vector<1x1x52x128xbf16>
    %870 = vector.shape_cast %869 : vector<1x1x52x128xbf16> to vector<52x128xbf16>
    %cst_251 = arith.constant dense<0.000000e+00> : vector<4x128xf32>
    %871 = tpu.matmul %868, %870, %cst_251 {dimension_numbers = #tpu.dot_dimension_numbers<[1], [0], [0], [1], [0, 0, 1, 1], [], []>} : vector<4x52xbf16>, vector<52x128xbf16>, vector<4x128xf32> -> vector<4x128xf32>
    %872 = arith.addf %862, %871 : vector<4x128xf32>
    %873 = vector.extract_strided_slice %144 {offsets = [31, 0], sizes = [1, 52], strides = [1, 1]} : vector<32x52xf32> to vector<1x52xf32>
    %874 = vector.extract_strided_slice %282 {offsets = [31, 0], sizes = [1, 52], strides = [1, 1]} : vector<32x52xf32> to vector<1x52xf32>
    %875 = vector.extract_strided_slice %420 {offsets = [31, 0], sizes = [1, 52], strides = [1, 1]} : vector<32x52xf32> to vector<1x52xf32>
    %876 = vector.extract_strided_slice %558 {offsets = [31, 0], sizes = [1, 52], strides = [1, 1]} : vector<32x52xf32> to vector<1x52xf32>
    %877 = tpu.concatenate %873, %874, %875, %876 in 0 : vector<1x52xf32>, vector<1x52xf32>, vector<1x52xf32>, vector<1x52xf32> -> vector<4x52xf32>
    %878 = arith.truncf %877 : vector<4x52xf32> to vector<4x52xbf16>
    %c31 = arith.constant 31 : index
    %c0_252 = arith.constant 0 : index
    %c0_253 = arith.constant 0 : index
    %c0_254 = arith.constant 0 : index
    %879 = vector.load %arg8[%c31, %c0_252, %c0_253, %c0_254] : memref<32x1x52x128xbf16, #tpu.memory_space<vmem>>, vector<1x1x52x128xbf16>
    %880 = vector.shape_cast %879 : vector<1x1x52x128xbf16> to vector<52x128xbf16>
    %cst_255 = arith.constant dense<0.000000e+00> : vector<4x128xf32>
    %881 = tpu.matmul %878, %880, %cst_255 {dimension_numbers = #tpu.dot_dimension_numbers<[1], [0], [0], [1], [0, 0, 1, 1], [], []>} : vector<4x52xbf16>, vector<52x128xbf16>, vector<4x128xf32> -> vector<4x128xf32>
    %882 = arith.addf %872, %881 : vector<4x128xf32>
    %cst_256 = arith.constant 0.000000e+00 : f32
    %883 = vector.broadcast %cst_256 : f32 to vector<4x128xf32>
    %884 = arith.maximumf %882, %883 : vector<4x128xf32>
    %885 = arith.truncf %884 : vector<4x128xf32> to vector<4x128xbf16>
    %cst_257 = arith.constant dense<0.000000e+00> : vector<4x4xf32>
    %886 = tpu.matmul %885, %6, %cst_257 {dimension_numbers = #tpu.dot_dimension_numbers<[1], [0], [0], [1], [0, 0, 1, 1], [], []>} : vector<4x128xbf16>, vector<128x4xbf16>, vector<4x4xf32> -> vector<4x4xf32>
    %c0_258 = arith.constant 0 : index
    %c0_259 = arith.constant 0 : index
    %887 = vector.load %arg11[%c0_258, %c0_259] : memref<1x4xf32, #tpu.memory_space<vmem>>, vector<1x4xf32>
    %888 = vector.broadcast %887 : vector<1x4xf32> to vector<4x4xf32>
    %889 = arith.addf %886, %888 : vector<4x4xf32>
    %cst_260 = arith.constant dense<0xFF800000> : vector<4xf32>
    %890 = vector.multi_reduction <maximumf>, %889, %cst_260 [1] : vector<4x4xf32> to vector<4xf32>
    %891 = vector.shape_cast %890 : vector<4xf32> to vector<4x1xf32>
    %892 = vector.broadcast %891 : vector<4x1xf32> to vector<4x4xf32>
    %893 = arith.subf %889, %892 : vector<4x4xf32>
    %894 = math.exp %893 : vector<4x4xf32>
    %cst_261 = arith.constant dense<0.000000e+00> : vector<4xf32>
    %895 = vector.multi_reduction <add>, %894, %cst_261 [1] : vector<4x4xf32> to vector<4xf32>
    %896 = vector.shape_cast %895 : vector<4xf32> to vector<4x1xf32>
    %897 = math.log %896 : vector<4x1xf32>
    %898 = vector.broadcast %897 : vector<4x1xf32> to vector<4x4xf32>
    %899 = arith.subf %893, %898 : vector<4x4xf32>
    %c0_262 = arith.constant 0 : index
    %c0_263 = arith.constant 0 : index
    %c0_264 = arith.constant 0 : index
    %900 = vector.load %arg12[%c0_262, %c0_263, %c0_264] : memref<1x4x4xf32, #tpu.memory_space<vmem>>, vector<1x4x4xf32>
    %901 = vector.shape_cast %900 : vector<1x4x4xf32> to vector<4x4xf32>
    %902 = vector.shape_cast %899 : vector<4x4xf32> to vector<1x4x4xf32>
    tpu.vector_store %arg12[%c0_262, %c0_263, %c0_264], %902 {strides = array<i32>} : memref<1x4x4xf32, #tpu.memory_space<vmem>>, vector<1x4x4xf32>,
    return
  }
  func.func @transform_0(%arg0: i32) -> (i32, i32, i32) {
    %c0_i32 = arith.constant 0 : i32
    %c0_i32_0 = arith.constant 0 : i32
    %c0_i32_1 = arith.constant 0 : i32
    return %arg0, %c0_i32, %c0_i32_0 : i32, i32, i32
  }
  func.func @transform_1(%arg0: i32) -> (i32, i32) {
    %c0_i32 = arith.constant 0 : i32
    %c0_i32_0 = arith.constant 0 : i32
    %c0_i32_1 = arith.constant 0 : i32
    return %c0_i32, %c0_i32_0 : i32, i32
  }
  func.func @transform_2(%arg0: i32) -> (i32, i32) {
    %c0_i32 = arith.constant 0 : i32
    %c0_i32_0 = arith.constant 0 : i32
    %c0_i32_1 = arith.constant 0 : i32
    return %c0_i32, %c0_i32_0 : i32, i32
  }
  func.func @transform_3(%arg0: i32) -> (i32, i32) {
    %c0_i32 = arith.constant 0 : i32
    %c0_i32_0 = arith.constant 0 : i32
    %c0_i32_1 = arith.constant 0 : i32
    return %c0_i32, %c0_i32_0 : i32, i32
  }
  func.func @transform_4(%arg0: i32) -> (i32, i32) {
    %c0_i32 = arith.constant 0 : i32
    %c0_i32_0 = arith.constant 0 : i32
    %c0_i32_1 = arith.constant 0 : i32
    return %c0_i32, %c0_i32_0 : i32, i32
  }
  func.func @transform_5(%arg0: i32) -> (i32, i32) {
    %c0_i32 = arith.constant 0 : i32
    %c0_i32_0 = arith.constant 0 : i32
    %c0_i32_1 = arith.constant 0 : i32
    return %c0_i32, %c0_i32_0 : i32, i32
  }
  func.func @transform_6(%arg0: i32) -> (i32, i32) {
    %c0_i32 = arith.constant 0 : i32
    %c0_i32_0 = arith.constant 0 : i32
    %c0_i32_1 = arith.constant 0 : i32
    return %c0_i32, %c0_i32_0 : i32, i32
  }
  func.func @transform_7(%arg0: i32) -> (i32, i32, i32, i32) {
    %c0_i32 = arith.constant 0 : i32
    %c0_i32_0 = arith.constant 0 : i32
    %c0_i32_1 = arith.constant 0 : i32
    %c0_i32_2 = arith.constant 0 : i32
    %c0_i32_3 = arith.constant 0 : i32
    return %c0_i32, %c0_i32_0, %c0_i32_1, %c0_i32_2 : i32, i32, i32, i32
  }
  func.func @transform_8(%arg0: i32) -> (i32, i32) {
    %c0_i32 = arith.constant 0 : i32
    %c0_i32_0 = arith.constant 0 : i32
    %c0_i32_1 = arith.constant 0 : i32
    return %c0_i32, %c0_i32_0 : i32, i32
  }
  func.func @transform_9(%arg0: i32) -> (i32, i32) {
    %c0_i32 = arith.constant 0 : i32
    %c0_i32_0 = arith.constant 0 : i32
    %c0_i32_1 = arith.constant 0 : i32
    return %c0_i32, %c0_i32_0 : i32, i32
  }
  func.func @transform_10(%arg0: i32) -> (i32, i32) {
    %c0_i32 = arith.constant 0 : i32
    %c0_i32_0 = arith.constant 0 : i32
    %c0_i32_1 = arith.constant 0 : i32
    return %c0_i32, %c0_i32_0 : i32, i32
  }
  func.func @transform_11(%arg0: i32) -> (i32, i32, i32) {
    %c0_i32 = arith.constant 0 : i32
    %c0_i32_0 = arith.constant 0 : i32
    %c0_i32_1 = arith.constant 0 : i32
    return %arg0, %c0_i32, %c0_i32_0 : i32, i32, i32
  }
}

</mosaic_0001>

<bundles_post_ra>
// kernel: simple_cnn_forward.1
= control target key start
LH: loop header
LB: loop body
LE: loop exit
PB: predicated region body
PF: predicated region fallthrough
CT: control target
= control target key end

     0   :  { %s10266_s17 = smov 0   ;;  %s14134_s0 = inlined_call_operand.vmem [shape: bf16[8,13,215], index: 0, kind: input, shape index: {}]   ;;  %s14135_s1 = inlined_call_operand.vmem [shape: bf16[16,9], index: 1, kind: input, shape index: {}]   ;;  %s14136_s2 = inlined_call_operand.vmem [shape: f32[16,1], index: 2, kind: input, shape index: {}]   ;;  %s14137_s3 = inlined_call_operand.vmem [shape: bf16[32,144], index: 3, kind: input, shape index: {}]   ;;  %s14138_s4 = inlined_call_operand.vmem [shape: f32[32,1], index: 4, kind: input, shape index: {}]   ;;  %s14139_s5 = inlined_call_operand.vmem [shape: bf16[212,106], index: 5, kind: input, shape index: {}]   ;;  %s14140_s6 = inlined_call_operand.vmem [shape: bf16[103,52], index: 6, kind: input, shape index: {}]   ;;  %s14141_s7 = inlined_call_operand.vmem [shape: bf16[32,1,52,128], index: 7, kind: input, shape index: {}]   ;;  %s14142_s8 = inlined_call_operand.vmem [shape: f32[1,128], index: 8, kind: input, shape index: {}]   ;;  %s14143_s9 = inlined_call_operand.vmem [shape: bf16[128,4], index: 9, kind: input, shape index: {}]   ;;  %s14144_s10 = inlined_call_operand.vmem [shape: f32[1,4], index: 10, kind: input, shape index: {}]   ;;  %s14145_s11 = inlined_call_operand.vmem [shape: f32[2,4,4], index: 11, kind: output, shape index: {}]  }
   0x1 LB: > { %s10272_s18 = sadd.s32 4294967295, %s10198_s17   ;;  %p8385_p0 = scmp.ge.s32.totalorder %s10198_s17, 1  ;;  %s10198_s17 = sphi %s10266_s17, %s21_s17  }
   0x2   : > { %p339_p1 = scmp.lt.s32.totalorder %s10198_s17, 3 }
   0x4   : > { %p340_p2 = pnand %p8385_p0, %p339_p1 }
   0x6   : > { %343 = sbr.rel (%p340_p2) target bundleno = 7797 (0x1e75), region = 64 }
   0xd   : > { %s8386_s19 = sshll.u32 %s10272_s18, 2  ;;  %s10200_s24 = smov 127   ;;  %v14146_v20 = vmov 0   ;;  %v394_v24 = vld [vmem:[%s14136_s2 + $0x8] sm:$0xff]  ;;  %v393_v25 = vld [vmem:[%s14136_s2] sm:$0xff]  ;;  %vm531_vm0 = vcmask 1043456  }
   0xe   : > { %p380_p3 = scmp.lt.s32.totalorder %s8386_s19, 7  ;;  %s10201_s25 = smov 126   ;;  %571 = vmatprep.mubr.bf16.mxu0 %v14146_v20  ;;  %656 = vmatprep.mubr.bf16.mxu1 %v14146_v20  ;;  %vm500_vm1 = vcmask 1041408   ;;  %vm501_vm2 = vsmask.f32 1280  ;;  %vm498_vm3 = vcmask 1031168  }
   0xf   : > { %9720 = vset.pattern.permute.xlu0 %v14146_v20  ;;  %9721 = vset.pattern.permute.xlu1 %v14146_v20  ;;  %vm532_vm4 = vcmask 1044480   ;;  %v10203_v31 = vmov 65535   ;;  %vm488_vm5 = vcmask 1039360   ;;  %vm505_vm6 = vcmask 1042432   ;;  %vm10348_vm7 = vmand %vm500_vm1, %vm501_vm2  ;;  %v10378_v55 = vld [vmem:[%s14135_s1] sm:$0xff]   ;;  %v10400_v60 = vld [vmem:[%s14139_s5 + $0x8] sm:$0xff]  }
  0x10   : > { %s14318_s19 = smov (!%p380_p3, %s8386_s19), 7  ;;  %v533_v32 = vsel %vm531_vm0, 4294967295, %v10203_v31  ;;  %vm527_vm8 = vcmask 72704   ;;  %v10394_v59 = vld [vmem:[%s14139_s5] sm:$0xff]   ;;  %v10407_v61 = vld [vmem:[%s14139_s5 + $0x10] sm:$0xff]   ;;  %v10414_v62 = vld [vmem:[%s14139_s5 + $0x18] sm:$0xff]  }
  0x11   : > { %s8899_s20 = sshll.u32 %s14318_s19, 4  ;;  %v10352_v39 = vsel %vm532_vm4, %v533_v32, 0  ;;  %v10421_v63 = vld [vmem:[%s14139_s5 + $0x20] sm:$0xff]   ;;  %vm781_vm9 = vcmask 687104   ;;  %vm1604_vm10 = vcmask 130048   ;;  %vm1789_vm11 = vcmask 842752  }
  0x12   : > { %s10280_s23 = scalar_lea.vmem %s14134_s0, %s8899_s20  ;;  %14191 = vst [vmem:[#allocation2_spill] sm:$0xff] %v10352_v39  ;;  %vm5425_vm12 = vcmask 1040384   ;;  %vm10205_vm13 = vmmov 0   ;;  %vm5458_vm14 = vcmask 424960   ;;  %vm8314_vm15 = vcmask 27648   ;;  %p386_p4 = scmp.lt.s32.totalorder %s10272_s18, 1 }
  0x13   : > { %v459_v0 = vld [vmem:[%s10280_s23] sm:$0xff] }
  0x14   : > { %v10283_v1 = vcombine.low %v459_v0, %v459_v0  ;;  %v10285_v2 = vcombine.high %v459_v0, %v459_v0  ;;  %v10428_v0 = vld [vmem:[%s14139_s5 + $0x28] sm:$0xff]   ;;  %s14320_s18 = smov (!%p386_p4, %s10272_s18), 1 }
  0x15   : > { %s8389_s15 = sshll.u32 %s14320_s18, 2 }
  0x16   : > { %v592_v3 = vrot.slane %v10283_v1, 7  ;;  %v492_v4 = vrot.slane %v10283_v1, 5  ;;  %v10290_v5 = vshrl.u32 %v10283_v1, 16  ;;  %v10293_v6 = vshll.u32 %v10283_v1, 16  ;;  %s389_s19 = scalar_lea.vmem %s14145_s11, %s8389_s15 }
  0x17   : > { %v10296_v7 = vshrl.u32 %v10285_v2, 16  ;;  %v10299_v8 = vshll.u32 %v10285_v2, 16  ;;  %v593_v9 = vrot.slane %v10285_v2, 7  ;;  %v493_v14 = vrot.slane %v10285_v2, 5 }
  0x18   : > { %594 = vrot.lane.b32.xlu1 %v592_v3, %s10200_s24  ;;  %494 = vrot.lane.b32.xlu0 %v492_v4, %s10201_s25  ;;  %v471_v10 = vrot.slane %v10290_v5, 6  ;;  %v474_v11 = vrot.slane %v10293_v6, 7  ;;  %v601_v16 = vrot.slane %v10290_v5, 5  ;;  %v602_v19 = vrot.slane %v10293_v6, 6  ;;  %v10435_v4 = vld [vmem:[%s14139_s5 + $0x30] sm:$0xff]  }
  0x19   : > { %v479_v12 = vrot.slane %v10296_v7, 6  ;;  %v482_v13 = vrot.slane %v10299_v8, 7  ;;  %v604_v15 = vrot.slane %v10296_v7, 5  ;;  %v605_v18 = vrot.slane %v10299_v8, 6 }
  0x1a   : > { %v10313_v17 = vor.u32 %v474_v11, %v471_v10  ;;  %v603_v23 = vor.u32 %v602_v19, %v601_v16  ;;  %v588_v29 = vrot.slane %v10299_v8, 1  ;;  %v586_v33 = vrot.slane %v10293_v6, 1  ;;  %v10442_v10 = vld [vmem:[%s14139_s5 + $0x38] sm:$0xff]   ;;  %v10449_v11 = vld [vmem:[%s14139_s5 + $0x40] sm:$0xff]  }
  0x1b   : > { %v10325_v21 = vor.u32 %v482_v13, %v479_v12  ;;  %v606_v22 = vor.u32 %v605_v18, %v604_v15  ;;  %v10456_v12 = vld [vmem:[%s14139_s5 + $0x48] sm:$0xff]   ;;  %v10463_v13 = vld [vmem:[%s14139_s5 + $0x50] sm:$0xff]   ;;  %v10480_v18 = vld [vmem:[%s14139_s5 + $0x60] sm:$0xff]  }
  0x1c   : > { %596 = vrot.lane.b32.xlu1 %v593_v9, %s10200_s24  ;;  %484 = vrot.lane.b32.xlu0 %v10313_v17, %s10200_s24  ;;  %v10344_v35 = vor.u32 %v588_v29, %v10296_v7  ;;  %v10359_v42 = vor.u32 %v586_v33, %v10290_v5 }
  0x20   : > { %496 = vrot.lane.b32.xlu1 %v493_v14, %s10201_s25  ;;  %486 = vrot.lane.b32.xlu0 %v10325_v21, %s10200_s24  ;;  %v10470_v14 = vld [vmem:[%s14139_s5 + $0x58] sm:$0xff]  }
  0x24   : > { %609 = vrot.lane.b32.xlu1 %v606_v22, %s10201_s25  ;;  %607 = vrot.lane.b32.xlu0 %v603_v23, %s10201_s25 }
  0x28   : > { %519 = vperm.xlu1 %9721, %v394_v24   ;;  %514 = vperm.xlu0 %9720, %v393_v25  }
  0x8a   : > { %v595_v26 = vpop.permute.xlu1 %594  ;;  %v495_v27 = vpop.permute.xlu0 %494 }
  0x8e   : > { %v597_v28 = vpop.permute.xlu1 %596  ;;  %v485_v30 = vpop.permute.xlu0 %484 }
  0x8f   : > { %v598_v43 = vsel %vm488_vm5, %v595_v26, %v597_v28  ;;  %v613_v49 = vsel %vm10348_vm7, %v10344_v35, %v597_v28  ;;  %v9938_v28 = vld [vmem:[%s14139_s5 + $0x68] ss:$0 sps:$4 sm:$0x33]  }
  0x90   : > { %v612_v56 = vsel %vm10348_vm7, %v10359_v42, %v598_v43 }
  0x92   : > { %v497_v34 = vpop.permute.xlu1 %496  ;;  %v487_v37 = vpop.permute.xlu0 %486 }
  0x93   : > { %v499_v36 = vsel %vm498_vm3, %v495_v27, %v497_v34  ;;  %v489_v40 = vsel %vm488_vm5, %v485_v30, %v487_v37  ;;  %v504_v41 = vsel %vm10348_vm7, %v10285_v2, %v487_v37 }
  0x94   : > { %v511_v44 = vsel %vm505_vm6, %v504_v41, %v497_v34  ;;  %v503_v45 = vsel %vm10348_vm7, %v10283_v1, %v489_v40  ;;  %v10496_v41 = vsel %vm500_vm1, %v9938_v28, 0 }
  0x95   : > { %v537_v47 = vand.u32 %v10352_v39, %v511_v44  ;;  %v508_v48 = vsel %vm505_vm6, %v503_v45, %v499_v36  ;;  %14194 = vst [vmem:[#allocation5_spill] sm:$0xff] %v10496_v41 }
  0x96   : > { %v610_v46 = vpop.permute.xlu1 %609  ;;  %v608_v50 = vpop.permute.xlu0 %607  ;;  %v535_v51 = vand.u32 %v10352_v39, %v508_v48 }
  0x97   : > { %v619_v52 = vsel %vm505_vm6, %v613_v49, %v610_v46  ;;  %v611_v53 = vsel %vm498_vm3, %v608_v50, %v610_v46  ;;  %539 = vmatprep.subr.bf16.mxu0 %v537_v47 }
  0x98   : > { %v622_v54 = vand.u32 %v619_v52, %v10352_v39  ;;  %540 = vmatpush1.bf16.msra.mxu0 %v535_v51  ;;  %v616_v57 = vsel %vm505_vm6, %v612_v56, %v611_v53 }
  0x99   : > { %v620_v58 = vand.u32 %v616_v57, %v10352_v39 }
  0x9a   : > { %624 = vmatprep.subr.bf16.mxu1 %v622_v54  ;;  %v835_v54 = vrot.slane %v10290_v5, 7 }
  0x9b   : > { %8393 = vmatmul.mubr.msk.bf16.vlgmr.msra.gmra.mrb[0].mxu0 %vm527_vm8, %v10378_v55  ;;  %625 = vmatpush1.bf16.msra.mxu1 %v620_v58 }
  0x9c   : > { %789 = vmatprep.subr.bf16.mxu1 %v14146_v20  ;;  %1124 = vmatprep.mubr.bf16.mxu0 %v14146_v20 }
  0x9e   : > { %8394 = vmatmul.mubr.msk.bf16.vlgmr.msra.gmra.mrb[0].mxu1 %vm527_vm8, %v10378_v55 }
  0x9f   : > { %790 = vmatpush1.bf16.msra.mxu1 %v10394_v59 }
  0xa0   : > { %791 = vmatprep.subr.bf16.mxu1 %v14146_v20 }
  0xa3   : > { %792 = vmatpush1.bf16.msra.mxu1 %v10400_v60 }
  0xa4   : > { %793 = vmatprep.subr.bf16.mxu1 %v14146_v20 }
  0xa7   : > { %794 = vmatpush1.bf16.msra.mxu1 %v10407_v61  ;;  %v10475_v15 = vpop.permute.xlu0 %514  ;;  %v10482_v22 = vpop.permute.xlu1 %519 }
  0xa8   : > { %795 = vmatprep.subr.bf16.mxu1 %v14146_v20  ;;  %14192 = vst [vmem:[#allocation3_spill] sm:$0xff] %v10475_v15  ;;  %14193 = vst [vmem:[#allocation4_spill] sm:$0xff] %v10482_v22 }
  0xab   : > { %796 = vmatpush1.bf16.msra.mxu1 %v10414_v62 }
  0xac   : > { %797 = vmatprep.subr.bf16.mxu1 %v14146_v20 }
  0xaf   : > { %798 = vmatpush1.bf16.msra.mxu1 %v10421_v63 }
  0xb0   : > { %799 = vmatprep.subr.bf16.mxu1 %v14146_v20 }
  0xb3   : > { %800 = vmatpush1.bf16.msra.mxu1 %v10428_v0 }
  0xb4   : > { %801 = vmatprep.subr.bf16.mxu1 %v14146_v20 }
  0xb7   : > { %802 = vmatpush1.bf16.msra.mxu1 %v10435_v4 }
  0xb8   : > { %803 = vmatprep.subr.bf16.mxu1 %v14146_v20 }
  0xbb   : > { %804 = vmatpush1.bf16.msra.mxu1 %v10442_v10 }
  0xbc   : > { %805 = vmatprep.subr.bf16.mxu1 %v14146_v20 }
  0xbf   : > { %806 = vmatpush1.bf16.msra.mxu1 %v10449_v11 }
  0xc0   : > { %807 = vmatprep.subr.bf16.mxu1 %v14146_v20 }
  0xc3   : > { %808 = vmatpush1.bf16.msra.mxu1 %v10456_v12 }
  0xc4   : > { %809 = vmatprep.subr.bf16.mxu1 %v14146_v20 }
  0xc7   : > { %810 = vmatpush1.bf16.msra.mxu1 %v10463_v13 }
  0xc8   : > { %811 = vmatprep.subr.bf16.mxu1 %v14146_v20 }
  0xcb   : > { %812 = vmatpush1.bf16.msra.mxu1 %v10470_v14 }
  0xcc   : > { %813 = vmatprep.subr.bf16.mxu1 %v14146_v20 }
  0xcf   : > { %814 = vmatpush1.bf16.msra.mxu1 %v10480_v18 }
  0xd0   : > { %815 = vmatprep.subr.bf16.mxu1 %v14146_v20 }
  0xd3   : > { %816 = vmatpush1.bf16.msra.mxu1 %v10496_v41 }
 0x16e   : > { %v573_v16 = vpop.f32.mrb[0].mxu0 }
 0x16f   : > { %v575_v19 = vpop.f32.mrb[1].mxu0  ;;  %v574_v23 = vadd.f32 %v573_v16, %v10475_v15  ;;  %v837_v16 = vrot.slane %v10296_v7, 7 }
 0x170   : > { %v577_v24 = vpop.f32.mrb[2].mxu0  ;;  %v576_v25 = vadd.f32 %v575_v19, %v10475_v15 }
 0x171   : > { %v579_v26 = vpop.f32.mrb[3].mxu0  ;;  %v658_v27 = vpop.f32.mrb[0].mxu1  ;;  %v578_v30 = vadd.f32 %v577_v24, %v10482_v22  ;;  %v582_v32 = vmax.f32 %v574_v23, 0.0  ;;  %v836_v23 = vor.u32 %v835_v54, %v10293_v6  ;;  %v838_v24 = vor.u32 %v837_v16, %v10299_v8 }
 0x172   : > { %v660_v29 = vpop.f32.mrb[1].mxu1  ;;  %v659_v33 = vadd.f32 %v658_v27, %v10475_v15  ;;  %v580_v34 = vadd.f32 %v579_v26, %v10482_v22  ;;  %v583_v36 = vmax.f32 %v576_v25, 0.0  ;;  %v846_v25 = vrot.slane %v10283_v1, 6 }
 0x173   : > { %v661_v37 = vadd.f32 %v660_v29, %v10475_v15  ;;  %v662_v40 = vpop.f32.mrb[2].mxu1  ;;  %v584_v48 = vmax.f32 %v578_v30, 0.0  ;;  %v847_v26 = vrot.slane %v10285_v2, 6  ;;  %v831_v27 = vrot.slane %v10283_v1, 1 }
 0x174   : > { %v663_v43 = vadd.f32 %v662_v40, %v10482_v22  ;;  %v664_v44 = vpop.f32.mrb[3].mxu1  ;;  %v667_v45 = vmax.f32 %v659_v33, 0.0  ;;  %v585_v51 = vmax.f32 %v580_v34, 0.0 }
 0x175   : > { %v668_v46 = vmax.f32 %v661_v37, 0.0  ;;  %v665_v47 = vadd.f32 %v664_v44, %v10482_v22 }
 0x176   : > { %v669_v49 = vmax.f32 %v663_v43, 0.0  ;;  %v671_v50 = vmax.f32 %v582_v32, %v667_v45 }
 0x177   : > { %v672_v52 = vmax.f32 %v583_v36, %v668_v46  ;;  %v670_v53 = vmax.f32 %v665_v47, 0.0 }
 0x178   : > { %v673_v56 = vmax.f32 %v584_v48, %v669_v49  ;;  %v912_v49 = vrot.slane %v10290_v5, 1 }
 0x179   : > { %v674_v57 = vmax.f32 %v585_v51, %v670_v53  ;;  %v9722_v58 = vpack.i.bf16 %v672_v52, %v671_v50  ;;  %v915_v51 = vrot.slane %v10296_v7, 1 }
 0x17b   : > { %9723 = vrot.lane.b32.xlu1 %v9722_v58, %s10200_s24  ;;  %v9727_v19 = vpack.i.bf16 %v674_v57, %v673_v56 }
 0x17d   : > { %9728 = vrot.lane.b32.xlu0 %v9727_v19, %s10200_s24 }
 0x17f   : > { %839 = vrot.lane.b32.xlu1 %v836_v23, %s10200_s24 }
 0x181   : > { %841 = vrot.lane.b32.xlu0 %v838_v24, %s10200_s24 }
 0x183   : > { %848 = vrot.lane.b32.xlu1 %v846_v25, %s10201_s25 }
 0x185   : > { %850 = vrot.lane.b32.xlu0 %v847_v26, %s10201_s25 }
 0x187   : > { %920 = vrot.lane.b32.xlu1 %v10283_v1, %s10200_s24 }
 0x189   : > { %922 = vrot.lane.b32.xlu0 %v10285_v2, %s10200_s24 }
 0x18b   : > { %927 = vrot.lane.b32.xlu1 %v10313_v17, %s10201_s25  ;;  %v832_v17 = vrot.slane %v10285_v2, 1 }
 0x18d   : > { %929 = vrot.lane.b32.xlu0 %v10325_v21, %s10201_s25 }
 0x18f   : > { %1068 = vrot.lane.b32.xlu1 %v10359_v42, %s10200_s24 }
 0x191   : > { %1070 = vrot.lane.b32.xlu0 %v10344_v35, %s10200_s24 }
 0x193   : > { %1075 = vrot.lane.b32.xlu1 %v592_v3, %s10201_s25 }
 0x195   : > { %1077 = vrot.lane.b32.xlu0 %v593_v9, %s10201_s25 }
 0x197   : > { %1147 = vrot.lane.b32.xlu1 %v831_v27, %s10200_s24 }
 0x199   : > { %1149 = vrot.lane.b32.xlu0 %v832_v17, %s10200_s24 }
 0x19b   : > { %1154 = vrot.lane.b32.xlu1 %v836_v23, %s10201_s25 }
 0x19d   : > { %1156 = vrot.lane.b32.xlu0 %v838_v24, %s10201_s25 }
 0x1ed   : > { %v9724_v21 = vpop.permute.xlu1 %9723 }
 0x1ee   : > { %v9726_v35 = vunpack.i.h.bf16 %v9724_v21  ;;  %v9725_v42 = vunpack.i.l.bf16 %v9724_v21 }
 0x1ef   : > { %v9729_v3 = vpop.permute.xlu0 %9728 }
 0x1f0   : > { %v688_v28 = vsel %vm488_vm5, %v9725_v42, %v9726_v35  ;;  %v9731_v29 = vunpack.i.h.bf16 %v9729_v3  ;;  %v9730_v30 = vunpack.i.l.bf16 %v9729_v3  ;;  %v695_v9 = vmax.f32 %v672_v52, %v9726_v35 }
 0x1f1   : > { %v840_v32 = vpop.permute.xlu1 %839  ;;  %v694_v36 = vmax.f32 %v671_v50, %v688_v28  ;;  %v916_v50 = vrot.slane %v10299_v8, 2 }
 0x1f2   : > { %v697_v33 = vmax.f32 %v674_v57, %v9731_v29  ;;  %v689_v34 = vsel %vm488_vm5, %v9730_v30, %v9731_v29  ;;  %v1065_v30 = vrot.slane %v10285_v2, 2 }
 0x1f3   : > { %v696_v37 = vmax.f32 %v673_v56, %v689_v34  ;;  %v842_v40 = vpop.permute.xlu0 %841  ;;  %v913_v56 = vrot.slane %v10293_v6, 2  ;;  %v917_v23 = vor.u32 %v916_v50, %v915_v51 }
 0x1f4   : > { %v699_v43 = vpack.c.bf16 %v697_v33, %v695_v9  ;;  %v843_v44 = vsel %vm488_vm5, %v840_v32, %v842_v40  ;;  %v854_v47 = vsel %vm10348_vm7, %v832_v17, %v842_v40  ;;  %v1064_v33 = vrot.slane %v10283_v1, 2 }
 0x1f5   : > { %v849_v45 = vpop.permute.xlu1 %848  ;;  %v698_v46 = vpack.c.bf16 %v696_v37, %v694_v36  ;;  %v853_v52 = vsel %vm10348_vm7, %v831_v27, %v843_v44  ;;  %v914_v25 = vor.u32 %v913_v56, %v912_v49  ;;  %v1143_v44 = vrot.slane %v10299_v8, 3 }
 0x1f6   : > { %8409 = vmatprep.mubr.msk.bf16.mxu1 %vm781_vm9, %v699_v43  ;;  %v1142_v43 = vrot.slane %v10296_v7, 2  ;;  %v1139_v1 = vrot.slane %v10290_v5, 2 }
 0x1f7   : > { %v851_v48 = vpop.permute.xlu0 %850  ;;  %822 = vmatmul.mubr.bf16.vlgmr.msra.gmra.mrb[4].mxu1 %v698_v46 }
 0x1f8   : > { %v852_v53 = vsel %vm498_vm3, %v849_v45, %v851_v48  ;;  %v860_v54 = vsel %vm505_vm6, %v854_v47, %v851_v48  ;;  %897 = vmatprep.mubr.bf16.mxu1 %v14146_v20  ;;  %v1140_v45 = vrot.slane %v10293_v6, 3  ;;  %v1144_v51 = vor.u32 %v1143_v44, %v1142_v43 }
 0x1f9   : > { %v857_v57 = vsel %vm505_vm6, %v853_v52, %v852_v53  ;;  %v921_v58 = vpop.permute.xlu1 %920  ;;  %v863_v16 = vand.u32 %v860_v54, %v10352_v39 }
 0x1fa   : > { %v861_v19 = vand.u32 %v857_v57, %v10352_v39  ;;  %v1141_v6 = vor.u32 %v1140_v45, %v1139_v1 }
 0x1fb   : > { %865 = vmatprep.subr.bf16.mxu1 %v863_v16  ;;  %v923_v24 = vpop.permute.xlu0 %922 }
 0x1fc   : > { %866 = vmatpush1.bf16.msra.mxu1 %v861_v19  ;;  %v924_v26 = vsel %vm488_vm5, %v921_v58, %v923_v24  ;;  %v933_v17 = vsel %vm10348_vm7, %v917_v23, %v923_v24 }
 0x1fd   : > { %v928_v27 = vpop.permute.xlu1 %927  ;;  %v932_v35 = vsel %vm10348_vm7, %v914_v25, %v924_v26 }
 0x1ff   : > { %v930_v21 = vpop.permute.xlu0 %929  ;;  %8410 = vmatmul.mubr.msk.bf16.vlgmr.msra.gmra.mrb[8].mxu1 %vm527_vm8, %v10378_v55 }
 0x200   : > { %v931_v42 = vsel %vm498_vm3, %v928_v27, %v930_v21  ;;  %v939_v3 = vsel %vm505_vm6, %v933_v17, %v930_v21  ;;  %976 = vmatprep.mubr.bf16.mxu1 %v14146_v20 }
 0x201   : > { %v936_v28 = vsel %vm505_vm6, %v932_v35, %v931_v42  ;;  %v1069_v29 = vpop.permute.xlu1 %1068  ;;  %v942_v32 = vand.u32 %v939_v3, %v10352_v39 }
 0x202   : > { %v940_v9 = vand.u32 %v936_v28, %v10352_v39 }
 0x203   : > { %v1071_v34 = vpop.permute.xlu0 %1070  ;;  %944 = vmatprep.subr.bf16.mxu1 %v942_v32 }
 0x204   : > { %v1072_v36 = vsel %vm488_vm5, %v1069_v29, %v1071_v34  ;;  %945 = vmatpush1.bf16.msra.mxu1 %v940_v9  ;;  %v1081_v37 = vsel %vm10348_vm7, %v1065_v30, %v1071_v34 }
 0x205   : > { %v1076_v40 = vpop.permute.xlu1 %1075  ;;  %1022 = vmatprep.subr.bf16.mxu1 %v14146_v20  ;;  %v1080_v2 = vsel %vm10348_vm7, %v1064_v33, %v1072_v36 }
 0x207   : > { %v1078_v46 = vpop.permute.xlu0 %1077  ;;  %8411 = vmatmul.mubr.msk.bf16.vlgmr.msra.gmra.mrb[12].mxu1 %vm527_vm8, %v10378_v55 }
 0x208   : > { %v1079_v47 = vsel %vm498_vm3, %v1076_v40, %v1078_v46  ;;  %v1087_v48 = vsel %vm505_vm6, %v1081_v37, %v1078_v46  ;;  %1023 = vmatpush1.bf16.msra.mxu1 %v10394_v59 }
 0x209   : > { %v1084_v7 = vsel %vm505_vm6, %v1080_v2, %v1079_v47  ;;  %v1148_v8 = vpop.permute.xlu1 %1147  ;;  %v1090_v49 = vand.u32 %v1087_v48, %v10352_v39  ;;  %1024 = vmatprep.subr.bf16.mxu1 %v14146_v20 }
 0x20a   : > { %v1088_v5 = vand.u32 %v1084_v7, %v10352_v39 }
 0x20b   : > { %1092 = vmatprep.subr.bf16.mxu0 %v1090_v49  ;;  %v1150_v50 = vpop.permute.xlu0 %1149 }
 0x20c   : > { %v1151_v52 = vsel %vm488_vm5, %v1148_v8, %v1150_v50  ;;  %1093 = vmatpush1.bf16.msra.mxu0 %v1088_v5  ;;  %1025 = vmatpush1.bf16.msra.mxu1 %v10400_v60  ;;  %v1160_v53 = vsel %vm10348_vm7, %v1144_v51, %v1150_v50 }
 0x20d   : > { %v1155_v54 = vpop.permute.xlu1 %1154  ;;  %1026 = vmatprep.subr.bf16.mxu1 %v14146_v20  ;;  %v1159_v56 = vsel %vm10348_vm7, %v1141_v6, %v1151_v52 }
 0x20f   : > { %8413 = vmatmul.mubr.msk.bf16.vlgmr.msra.gmra.mrb[4].mxu0 %vm527_vm8, %v10378_v55  ;;  %v1157_v57 = vpop.permute.xlu0 %1156 }
 0x210   : > { %v1158_v58 = vsel %vm498_vm3, %v1155_v54, %v1157_v57  ;;  %v1166_v16 = vsel %vm505_vm6, %v1160_v53, %v1157_v57  ;;  %1203 = vmatprep.mubr.bf16.mxu0 %v14146_v20  ;;  %1027 = vmatpush1.bf16.msra.mxu1 %v10407_v61 }
 0x211   : > { %v1163_v19 = vsel %vm505_vm6, %v1159_v56, %v1158_v58  ;;  %v1169_v23 = vand.u32 %v1166_v16, %v10352_v39  ;;  %1028 = vmatprep.subr.bf16.mxu1 %v14146_v20  ;;  %v460_v58 = vld [vmem:[%s10280_s23 + $0x8] sm:$0x77] }
 0x212   : > { %v1167_v24 = vand.u32 %v1163_v19, %v10352_v39  ;;  %v10106_v19 = vld [vmem:[%s10280_s23] sm:$0xff] }
 0x213   : > { %1171 = vmatprep.subr.bf16.mxu0 %v1169_v23  ;;  %v10659_v23 = vcombine.low %v10106_v19, %v460_v58 }
 0x214   : > { %1172 = vmatpush1.bf16.msra.mxu0 %v1167_v24  ;;  %1029 = vmatpush1.bf16.msra.mxu1 %v10414_v62 }
 0x215   : > { %1611 = vmatprep.subr.bf16.mxu0 %v14146_v20  ;;  %1030 = vmatprep.subr.bf16.mxu1 %v14146_v20 }
 0x217   : > { %8414 = vmatmul.mubr.msk.bf16.vlgmr.msra.gmra.mrb[8].mxu0 %vm527_vm8, %v10378_v55 }
 0x218   : > { %1031 = vmatpush1.bf16.msra.mxu1 %v10421_v63 }
 0x219   : > { %1032 = vmatprep.subr.bf16.mxu1 %v14146_v20 }
 0x21c   : > { %1033 = vmatpush1.bf16.msra.mxu1 %v10428_v0 }
 0x21d   : > { %1034 = vmatprep.subr.bf16.mxu1 %v14146_v20 }
 0x220   : > { %1035 = vmatpush1.bf16.msra.mxu1 %v10435_v4 }
 0x221   : > { %1036 = vmatprep.subr.bf16.mxu1 %v14146_v20 }
 0x224   : > { %1037 = vmatpush1.bf16.msra.mxu1 %v10442_v10 }
 0x225   : > { %1038 = vmatprep.subr.bf16.mxu1 %v14146_v20 }
 0x228   : > { %1039 = vmatpush1.bf16.msra.mxu1 %v10449_v11 }
 0x229   : > { %1040 = vmatprep.subr.bf16.mxu1 %v14146_v20 }
 0x22c   : > { %1041 = vmatpush1.bf16.msra.mxu1 %v10456_v12 }
 0x22d   : > { %1042 = vmatprep.subr.bf16.mxu1 %v14146_v20 }
 0x230   : > { %1043 = vmatpush1.bf16.msra.mxu1 %v10463_v13 }
 0x231   : > { %1044 = vmatprep.subr.bf16.mxu1 %v14146_v20 }
 0x234   : > { %1045 = vmatpush1.bf16.msra.mxu1 %v10470_v14 }
 0x235   : > { %1046 = vmatprep.subr.bf16.mxu1 %v14146_v20 }
 0x238   : > { %1047 = vmatpush1.bf16.msra.mxu1 %v10480_v18 }
 0x239   : > { %1048 = vmatprep.subr.bf16.mxu1 %v14146_v20 }
 0x23c   : > { %1049 = vmatpush1.bf16.msra.mxu1 %v10496_v41 }
 0x23d   : > { %1249 = vmatprep.subr.bf16.mxu1 %v14146_v20 }
 0x2ca   : > { %v823_v25 = vpop.f32.mrb[4].mxu1 }
 0x2cb   : > { %v825_v26 = vpop.f32.mrb[5].mxu1 }
 0x2cc   : > { %v826_v27 = vpop.f32.mrb[6].mxu1 }
 0x2cd   : > { %v10631_v17 = vpack.c.bf16 %v826_v27, %v823_v25  ;;  %v828_v21 = vpop.f32.mrb[7].mxu1  ;;  %v10662_v25 = vcombine.high %v10106_v19, %v460_v58 }
 0x2cf   : > { %1612 = vmatpush1.bf16.msra.mxu0 %v10631_v17 }
 0x2d0   : > { %1613 = vmatprep.subr.bf16.mxu0 %v14146_v20 }
 0x2d2   : > { %v899_v35 = vpop.f32.mrb[8].mxu1 }
 0x2d3   : > { %v901_v42 = vpop.f32.mrb[9].mxu1  ;;  %v900_v29 = vadd.f32 %v899_v35, %v10475_v15 }
 0x2d4   : > { %v903_v3 = vpop.f32.mrb[10].mxu1  ;;  %v902_v30 = vadd.f32 %v901_v42, %v10475_v15 }
 0x2d5   : > { %v905_v28 = vpop.f32.mrb[11].mxu1  ;;  %v904_v9 = vadd.f32 %v903_v3, %v10482_v22  ;;  %v908_v43 = vmax.f32 %v900_v29, 0.0  ;;  %v10668_v3 = vshrl.u32 %v10659_v23, 16 }
 0x2d6   : > { %v906_v36 = vadd.f32 %v905_v28, %v10482_v22  ;;  %v909_v45 = vmax.f32 %v902_v30, 0.0 }
 0x2d7   : > { %v910_v48 = vmax.f32 %v904_v9, 0.0 }
 0x2d8   : > { %v911_v49 = vmax.f32 %v906_v36, 0.0 }
 0x2da   : > { %v978_v32 = vpop.f32.mrb[12].mxu1 }
 0x2db   : > { %v979_v33 = vadd.f32 %v978_v32, %v10475_v15  ;;  %v980_v34 = vpop.f32.mrb[13].mxu1  ;;  %v10673_v32 = vshll.u32 %v10659_v23, 16 }
 0x2dc   : > { %v981_v37 = vadd.f32 %v980_v34, %v10475_v15  ;;  %v982_v40 = vpop.f32.mrb[14].mxu1 }
 0x2dd   : > { %v987_v44 = vmax.f32 %v979_v33, 0.0  ;;  %v983_v2 = vadd.f32 %v982_v40, %v10482_v22  ;;  %v984_v1 = vpop.f32.mrb[15].mxu1 }
 0x2de   : > { %v988_v46 = vmax.f32 %v981_v37, 0.0  ;;  %v985_v47 = vadd.f32 %v984_v1, %v10482_v22  ;;  %v10677_v37 = vshrl.u32 %v10662_v25, 16 }
 0x2df   : > { %v10643_v7 = vmax.f32 %v908_v43, %v987_v44  ;;  %v989_v8 = vmax.f32 %v983_v2, 0.0  ;;  %v10681_v2 = vshll.u32 %v10662_v25, 16 }
 0x2e0   : > { %v10645_v51 = vmax.f32 %v909_v45, %v988_v46  ;;  %v990_v5 = vmax.f32 %v985_v47, 0.0  ;;  %v1303_v47 = vrot.slane %v10668_v3, 1 }
 0x2e1   : > { %v10647_v6 = vmax.f32 %v910_v48, %v989_v8 }
 0x2e2   : > { %v10649_v50 = vmax.f32 %v911_v49, %v990_v5  ;;  %v1126_v52 = vpop.f32.mrb[4].mxu0  ;;  %v9732_v53 = vpack.i.bf16 %v10645_v51, %v10643_v7  ;;  %v1306_v5 = vrot.slane %v10673_v32, 2 }
 0x2e3   : > { %v1128_v54 = vpop.f32.mrb[5].mxu0  ;;  %v1127_v24 = vadd.f32 %v1126_v52, %v10475_v15 }
 0x2e4   : > { %v1130_v56 = vpop.f32.mrb[6].mxu0  ;;  %9733 = vrot.lane.b32.xlu1 %v9732_v53, %s10200_s24  ;;  %v9737_v57 = vpack.i.bf16 %v10649_v50, %v10647_v6  ;;  %v1129_v26 = vadd.f32 %v1128_v54, %v10475_v15 }
 0x2e5   : > { %v1132_v16 = vpop.f32.mrb[7].mxu0  ;;  %v1131_v21 = vadd.f32 %v1130_v56, %v10482_v22  ;;  %v1135_v9 = vmax.f32 %v1127_v24, 0.0  ;;  %v1311_v56 = vrot.slane %v10677_v37, 1  ;;  %v1395_v24 = vrot.slane %v10659_v23, 2 }
 0x2e6   : > { %9738 = vrot.lane.b32.xlu0 %v9737_v57, %s10200_s24  ;;  %v1133_v28 = vadd.f32 %v1132_v16, %v10482_v22  ;;  %v1136_v40 = vmax.f32 %v1129_v26, 0.0  ;;  %v1314_v57 = vrot.slane %v10681_v2, 2  ;;  %v1307_v16 = vor.u32 %v1306_v5, %v1303_v47 }
 0x2e7   : > { %v1137_v1 = vmax.f32 %v1131_v21, 0.0  ;;  %v1404_v26 = vrot.slane %v10673_v32, 1  ;;  %v1406_v21 = vrot.slane %v10681_v2, 1 }
 0x2e8   : > { %v1138_v48 = vmax.f32 %v1133_v28, 0.0  ;;  %v1315_v19 = vor.u32 %v1314_v57, %v1311_v56  ;;  %v1297_v57 = vrot.slane %v10662_v25, 3 }
 0x2ea   : > { %v1205_v27 = vpop.f32.mrb[8].mxu0 }
 0x2eb   : > { %v1206_v35 = vadd.f32 %v1205_v27, %v10475_v15  ;;  %v1207_v42 = vpop.f32.mrb[9].mxu0  ;;  %v1396_v27 = vrot.slane %v10662_v25, 2 }
 0x2ec   : > { %v1208_v29 = vadd.f32 %v1207_v42, %v10475_v15  ;;  %v1209_v30 = vpop.f32.mrb[10].mxu0  ;;  %v1407_v42 = vor.u32 %v1406_v21, %v10677_v37 }
 0x2ed   : > { %v1214_v33 = vmax.f32 %v1206_v35, 0.0  ;;  %v1210_v34 = vadd.f32 %v1209_v30, %v10482_v22  ;;  %v1211_v36 = vpop.f32.mrb[11].mxu0  ;;  %v1405_v35 = vor.u32 %v1404_v26, %v10668_v3 }
 0x2ee   : > { %v1215_v43 = vmax.f32 %v1208_v29, 0.0  ;;  %v1212_v44 = vadd.f32 %v1211_v36, %v10482_v22 }
 0x2ef   : > { %v10683_v45 = vmax.f32 %v1135_v9, %v1214_v33  ;;  %v1216_v46 = vmax.f32 %v1210_v34, 0.0 }
 0x2f0   : > { %v1219_v8 = vmax.f32 %v1136_v40, %v1215_v43  ;;  %v1217_v49 = vmax.f32 %v1212_v44, 0.0 }
 0x2f1   : > { %v10687_v52 = vmax.f32 %v1137_v1, %v1216_v46 }
 0x2f2   : > { %v1221_v53 = vmax.f32 %v1138_v48, %v1217_v49  ;;  %v9742_v54 = vpack.i.bf16 %v1219_v8, %v10683_v45 }
 0x2f4   : > { %9743 = vrot.lane.b32.xlu1 %v9742_v54, %s10200_s24  ;;  %v9747_v58 = vpack.i.bf16 %v1221_v53, %v10687_v52 }
 0x2f6   : > { %9748 = vrot.lane.b32.xlu0 %v9747_v58, %s10200_s24 }
 0x2f8   : > { %1316 = vrot.lane.b32.xlu1 %v1307_v16, %s10200_s24  ;;  %v1390_v16 = vrot.slane %v10677_v37, 3  ;;  %v1387_v37 = vrot.slane %v10668_v3, 3 }
 0x2fa   : > { %1318 = vrot.lane.b32.xlu0 %v1315_v19, %s10200_s24  ;;  %v1391_v19 = vrot.slane %v10681_v2, 4  ;;  %v1388_v2 = vrot.slane %v10673_v32, 4 }
 0x2fc   : > { %1323 = vrot.lane.b32.xlu1 %v10659_v23, %s10201_s25 }
 0x2fe   : > { %1325 = vrot.lane.b32.xlu0 %v10662_v25, %s10201_s25 }
 0x300   : > { %1397 = vrot.lane.b32.xlu1 %v1395_v24, %s10200_s24 }
 0x302   : > { %1399 = vrot.lane.b32.xlu0 %v1396_v27, %s10200_s24  ;;  %v1296_v27 = vrot.slane %v10659_v23, 3 }
 0x304   : > { %1408 = vrot.lane.b32.xlu1 %v1405_v35, %s10201_s25 }
 0x306   : > { %1410 = vrot.lane.b32.xlu0 %v1407_v42, %s10201_s25  ;;  %v1392_v42 = vor.u32 %v1391_v19, %v1390_v16 }
 0x356   : > { %v9734_v28 = vpop.permute.xlu1 %9733 }
 0x357   : > { %v9736_v29 = vunpack.i.h.bf16 %v9734_v28  ;;  %v9735_v30 = vunpack.i.l.bf16 %v9734_v28 }
 0x358   : > { %v9739_v9 = vpop.permute.xlu0 %9738 }
 0x359   : > { %v1007_v33 = vsel %vm488_vm5, %v9735_v30, %v9736_v29  ;;  %v9741_v34 = vunpack.i.h.bf16 %v9739_v9  ;;  %v9740_v36 = vunpack.i.l.bf16 %v9739_v9  ;;  %v1014_v40 = vmax.f32 %v10645_v51, %v9736_v29 }
 0x35a   : > { %v1013_v1 = vmax.f32 %v10643_v7, %v1007_v33 }
 0x35b   : > { %v1016_v43 = vmax.f32 %v10649_v50, %v9741_v34  ;;  %v1008_v44 = vsel %vm488_vm5, %v9740_v36, %v9741_v34 }
 0x35c   : > { %v1015_v46 = vmax.f32 %v10647_v6, %v1008_v44 }
 0x35d   : > { %v1018_v47 = vpack.c.bf16 %v1016_v43, %v1014_v40  ;;  %v1389_v43 = vor.u32 %v1388_v2, %v1387_v37 }
 0x35e   : > { %v1017_v48 = vpack.c.bf16 %v1015_v46, %v1013_v1 }
 0x35f   : > { %8412 = vmatprep.mubr.msk.bf16.mxu1 %vm781_vm9, %v1018_v47 }
 0x360   : > { %1055 = vmatmul.mubr.bf16.vlgmr.msra.gmra.mrb[16].mxu1 %v1017_v48 }
 0x361   : > { %1250 = vmatpush1.bf16.msra.mxu1 %v10394_v59 }
 0x362   : > { %1251 = vmatprep.subr.bf16.mxu1 %v14146_v20 }
 0x365   : > { %1252 = vmatpush1.bf16.msra.mxu1 %v10400_v60 }
 0x366   : > { %v9744_v51 = vpop.permute.xlu1 %9743  ;;  %1253 = vmatprep.subr.bf16.mxu1 %v14146_v20 }
 0x367   : > { %v9746_v50 = vunpack.i.h.bf16 %v9744_v51  ;;  %v9745_v25 = vunpack.i.l.bf16 %v9744_v51 }
 0x368   : > { %v9749_v49 = vpop.permute.xlu0 %9748 }
 0x369   : > { %v9751_v5 = vunpack.i.h.bf16 %v9749_v49  ;;  %1254 = vmatpush1.bf16.msra.mxu1 %v10407_v61  ;;  %v1241_v7 = vmax.f32 %v1219_v8, %v9746_v50  ;;  %v9750_v26 = vunpack.i.l.bf16 %v9749_v49  ;;  %v1234_v36 = vsel %vm488_vm5, %v9745_v25, %v9746_v50 }
 0x36a   : > { %1255 = vmatprep.subr.bf16.mxu1 %v14146_v20  ;;  %v1240_v1 = vmax.f32 %v10683_v45, %v1234_v36  ;;  %v9941_v36 = vld [vmem:[%s14137_s3 + $0x4] ss:$8 sps:$4 sm:$0xff]  }
 0x36b   : > { %v1243_v6 = vmax.f32 %v1221_v53, %v9751_v5  ;;  %v1317_v53 = vpop.permute.xlu1 %1316  ;;  %v1235_v29 = vsel %vm488_vm5, %v9750_v26, %v9751_v5  ;;  %8425 = vmatprep.mubr.msk.bf16.mxu0 %vm1604_vm10, %v9941_v36 }
 0x36c   : > { %v1319_v8 = vpop.permute.xlu0 %1318  ;;  %v1242_v3 = vmax.f32 %v10687_v52, %v1235_v29 }
 0x36d   : > { %1256 = vmatpush1.bf16.msra.mxu1 %v10414_v62  ;;  %v1245_v54 = vpack.c.bf16 %v1243_v6, %v1241_v7  ;;  %v1329_v21 = vsel %vm10348_vm7, %v1297_v57, %v1319_v8  ;;  %v1320_v35 = vsel %vm488_vm5, %v1317_v53, %v1319_v8 }
 0x36e   : > { %1257 = vmatprep.subr.bf16.mxu1 %v14146_v20  ;;  %v1328_v23 = vsel %vm10348_vm7, %v1296_v27, %v1320_v35  ;;  %v1244_v51 = vpack.c.bf16 %v1242_v3, %v1240_v1 }
 0x36f   : > { %8415 = vmatprep.mubr.msk.bf16.mxu1 %vm781_vm9, %v1245_v54  ;;  %v1324_v58 = vpop.permute.xlu1 %1323 }
 0x370   : > { %v1326_v56 = vpop.permute.xlu0 %1325 }
 0x371   : > { %1258 = vmatpush1.bf16.msra.mxu1 %v10421_v63  ;;  %v1335_v30 = vsel %vm505_vm6, %v1329_v21, %v1326_v56  ;;  %v1327_v9 = vsel %vm498_vm3, %v1324_v58, %v1326_v56 }
 0x372   : > { %1259 = vmatprep.subr.bf16.mxu1 %v14146_v20  ;;  %v1332_v32 = vsel %vm505_vm6, %v1328_v23, %v1327_v9  ;;  %v1338_v40 = vand.u32 %v1335_v30, %v10352_v39 }
 0x373   : > { %v1398_v28 = vpop.permute.xlu1 %1397  ;;  %v1336_v48 = vand.u32 %v1332_v32, %v10352_v39 }
 0x374   : > { %v1400_v24 = vpop.permute.xlu0 %1399 }
 0x375   : > { %1260 = vmatpush1.bf16.msra.mxu1 %v10428_v0  ;;  %v1414_v33 = vsel %vm10348_vm7, %v1392_v42, %v1400_v24  ;;  %v1401_v46 = vsel %vm488_vm5, %v1398_v28, %v1400_v24 }
 0x376   : > { %1261 = vmatprep.subr.bf16.mxu1 %v14146_v20  ;;  %v1413_v50 = vsel %vm10348_vm7, %v1389_v43, %v1401_v46 }
 0x377   : > { %v1409_v47 = vpop.permute.xlu1 %1408 }
 0x378   : > { %v1411_v34 = vpop.permute.xlu0 %1410 }
 0x379   : > { %1262 = vmatpush1.bf16.msra.mxu1 %v10435_v4  ;;  %v1420_v44 = vsel %vm505_vm6, %v1414_v33, %v1411_v34  ;;  %v1412_v49 = vsel %vm498_vm3, %v1409_v47, %v1411_v34 }
 0x37a   : > { %1263 = vmatprep.subr.bf16.mxu1 %v14146_v20  ;;  %v1423_v52 = vand.u32 %v1420_v44, %v10352_v39  ;;  %v1417_v45 = vsel %vm505_vm6, %v1413_v50, %v1412_v49 }
 0x37b   : > { %v1421_v5 = vand.u32 %v1417_v45, %v10352_v39 }
 0x37d   : > { %1264 = vmatpush1.bf16.msra.mxu1 %v10442_v10 }
 0x37e   : > { %1265 = vmatprep.subr.bf16.mxu1 %v14146_v20 }
 0x381   : > { %1266 = vmatpush1.bf16.msra.mxu1 %v10449_v11 }
 0x382   : > { %1267 = vmatprep.subr.bf16.mxu1 %v14146_v20 }
 0x385   : > { %1268 = vmatpush1.bf16.msra.mxu1 %v10456_v12 }
 0x386   : > { %1269 = vmatprep.subr.bf16.mxu1 %v14146_v20 }
 0x389   : > { %1270 = vmatpush1.bf16.msra.mxu1 %v10463_v13 }
 0x38a   : > { %1271 = vmatprep.subr.bf16.mxu1 %v14146_v20 }
 0x38d   : > { %1272 = vmatpush1.bf16.msra.mxu1 %v10470_v14 }
 0x38e   : > { %1273 = vmatprep.subr.bf16.mxu1 %v14146_v20 }
 0x391   : > { %1274 = vmatpush1.bf16.msra.mxu1 %v10480_v18 }
 0x392   : > { %1275 = vmatprep.subr.bf16.mxu1 %v14146_v20 }
 0x395   : > { %1276 = vmatpush1.bf16.msra.mxu1 %v10496_v41 }
 0x396   : > { %1340 = vmatprep.subr.bf16.mxu1 %v1338_v40 }
 0x398   : > { %1282 = vmatmul.mubr.bf16.vlgmr.msra.gmra.mrb[20].mxu1 %v1244_v51 }
 0x399   : > { %1341 = vmatpush1.bf16.msra.mxu1 %v1336_v48  ;;  %1372 = vmatprep.mubr.bf16.mxu1 %v14146_v20 }
 0x39a   : > { %1425 = vmatprep.subr.bf16.mxu1 %v1423_v52 }
 0x3a0   : > { %8418 = vmatmul.mubr.msk.bf16.vlgmr.msra.gmra.mrb[24].mxu1 %vm527_vm8, %v10378_v55 }
 0x3a1   : > { %1426 = vmatpush1.bf16.msra.mxu1 %v1421_v5  ;;  %1457 = vmatprep.mubr.bf16.mxu1 %v14146_v20 }
 0x3a2   : > { %1503 = vmatprep.subr.bf16.mxu1 %v14146_v20 }
 0x3a8   : > { %8419 = vmatmul.mubr.msk.bf16.vlgmr.msra.gmra.mrb[28].mxu1 %vm527_vm8, %v10378_v55 }
 0x3a9   : > { %1504 = vmatpush1.bf16.msra.mxu1 %v10394_v59 }
 0x3aa   : > { %1505 = vmatprep.subr.bf16.mxu1 %v14146_v20 }
 0x3ad   : > { %1506 = vmatpush1.bf16.msra.mxu1 %v10400_v60 }
 0x3ae   : > { %1507 = vmatprep.subr.bf16.mxu1 %v14146_v20 }
 0x3b1   : > { %1508 = vmatpush1.bf16.msra.mxu1 %v10407_v61 }
 0x3b2   : > { %1509 = vmatprep.subr.bf16.mxu1 %v14146_v20 }
 0x3b5   : > { %1510 = vmatpush1.bf16.msra.mxu1 %v10414_v62 }
 0x3b6   : > { %1511 = vmatprep.subr.bf16.mxu1 %v14146_v20 }
 0x3b9   : > { %1512 = vmatpush1.bf16.msra.mxu1 %v10421_v63 }
 0x3ba   : > { %1513 = vmatprep.subr.bf16.mxu1 %v14146_v20 }
 0x3bd   : > { %1514 = vmatpush1.bf16.msra.mxu1 %v10428_v0 }
 0x3be   : > { %1515 = vmatprep.subr.bf16.mxu1 %v14146_v20 }
 0x3c1   : > { %1516 = vmatpush1.bf16.msra.mxu1 %v10435_v4 }
 0x3c2   : > { %1517 = vmatprep.subr.bf16.mxu1 %v14146_v20 }
 0x3c5   : > { %1518 = vmatpush1.bf16.msra.mxu1 %v10442_v10 }
 0x3c6   : > { %1519 = vmatprep.subr.bf16.mxu1 %v14146_v20 }
 0x3c9   : > { %1520 = vmatpush1.bf16.msra.mxu1 %v10449_v11 }
 0x3ca   : > { %1521 = vmatprep.subr.bf16.mxu1 %v14146_v20 }
 0x3cd   : > { %1522 = vmatpush1.bf16.msra.mxu1 %v10456_v12 }
 0x3ce   : > { %1523 = vmatprep.subr.bf16.mxu1 %v14146_v20 }
 0x3d1   : > { %1524 = vmatpush1.bf16.msra.mxu1 %v10463_v13 }
 0x3d2   : > { %1525 = vmatprep.subr.bf16.mxu1 %v14146_v20 }
 0x3d5   : > { %1526 = vmatpush1.bf16.msra.mxu1 %v10470_v14 }
 0x3d6   : > { %1527 = vmatprep.subr.bf16.mxu1 %v14146_v20 }
 0x3d9   : > { %1528 = vmatpush1.bf16.msra.mxu1 %v10480_v18 }
 0x3da   : > { %1529 = vmatprep.subr.bf16.mxu1 %v14146_v20 }
 0x3dd   : > { %1530 = vmatpush1.bf16.msra.mxu1 %v10496_v41 }
 0x3de   : > { %1671 = vmatprep.subr.bf16.mxu1 %v14146_v20 }
 0x433   : > { %v1056_v55 = vpop.f32.mrb[16].mxu1 }
 0x434   : > { %v1058_v59 = vpop.f32.mrb[17].mxu1 }
 0x435   : > { %v1059_v60 = vpop.f32.mrb[18].mxu1 }
 0x436   : > { %v10811_v61 = vpack.c.bf16 %v1059_v60, %v1056_v55  ;;  %v1061_v62 = vpop.f32.mrb[19].mxu1 }
 0x437   : > { %v9943_v62 = vld [vmem:[%s14137_s3] ss:$8 sps:$4 sm:$0xff]  }
 0x46b   : > { %v1283_v63 = vpop.f32.mrb[20].mxu1 }
 0x46c   : > { %v1285_v0 = vpop.f32.mrb[21].mxu1 }
 0x46d   : > { %v1286_v4 = vpop.f32.mrb[22].mxu1  ;;  %v9946_v0 = vld [vmem:[%s14137_s3 + $0x10] ss:$8 sps:$4 sm:$0xff]  }
 0x46e   : > { %v10813_v10 = vpack.c.bf16 %v1286_v4, %v1283_v63  ;;  %v1288_v11 = vpop.f32.mrb[23].mxu1  ;;  %v9944_v63 = vld [vmem:[%s14137_s3 + $0x14] ss:$8 sps:$4 sm:$0xff]  }
 0x473   : > { %v1374_v12 = vpop.f32.mrb[24].mxu1 }
 0x474   : > { %v1376_v13 = vpop.f32.mrb[25].mxu1  ;;  %v1375_v7 = vadd.f32 %v1374_v12, %v10475_v15 }
 0x475   : > { %v1378_v14 = vpop.f32.mrb[26].mxu1  ;;  %v1377_v6 = vadd.f32 %v1376_v13, %v10475_v15 }
 0x476   : > { %v1380_v18 = vpop.f32.mrb[27].mxu1  ;;  %v1379_v8 = vadd.f32 %v1378_v14, %v10482_v22  ;;  %v1383_v19 = vmax.f32 %v1375_v7, 0.0  ;;  %v400_v14 = vld [vmem:[%s14138_s4 + $0x8] sm:$0xff]  ;;  %v402_v7 = vld [vmem:[%s14138_s4 + $0x18] sm:$0xff] }
 0x477   : > { %v1381_v57 = vadd.f32 %v1380_v18, %v10482_v22  ;;  %v1384_v21 = vmax.f32 %v1377_v6, 0.0  ;;  %v399_v18 = vld [vmem:[%s14138_s4] sm:$0xff]  ;;  %v401_v6 = vld [vmem:[%s14138_s4 + $0x10] sm:$0xff] }
 0x478   : > { %v1385_v25 = vmax.f32 %v1379_v8, 0.0 }
 0x479   : > { %v1386_v28 = vmax.f32 %v1381_v57, 0.0 }
 0x47b   : > { %v1459_v54 = vpop.f32.mrb[28].mxu1 }
 0x47c   : > { %v1460_v53 = vadd.f32 %v1459_v54, %v10475_v15  ;;  %v1461_v56 = vpop.f32.mrb[29].mxu1 }
 0x47d   : > { %v1462_v58 = vadd.f32 %v1461_v56, %v10475_v15  ;;  %v1463_v16 = vpop.f32.mrb[30].mxu1 }
 0x47e   : > { %v1468_v24 = vmax.f32 %v1460_v53, 0.0  ;;  %v1464_v26 = vadd.f32 %v1463_v16, %v10482_v22  ;;  %v1465_v27 = vpop.f32.mrb[31].mxu1 }
 0x47f   : > { %v1469_v35 = vmax.f32 %v1462_v58, 0.0  ;;  %v1466_v42 = vadd.f32 %v1465_v27, %v10482_v22  ;;  %v10895_v27 = vld [vmem:[%s10280_s23 + $0x10] sm:$0xff] }
 0x480   : > { %v1472_v37 = vmax.f32 %v1383_v19, %v1468_v24  ;;  %v1470_v2 = vmax.f32 %v1464_v26, 0.0 }
 0x481   : > { %v1473_v29 = vmax.f32 %v1384_v21, %v1469_v35  ;;  %v1471_v23 = vmax.f32 %v1466_v42, 0.0  ;;  %v10899_v21 = vcombine.low %v10895_v27, %v10895_v27 }
 0x482   : > { %v1474_v30 = vmax.f32 %v1385_v25, %v1470_v2 }
 0x483   : > { %v1475_v9 = vmax.f32 %v1386_v28, %v1471_v23  ;;  %v9752_v33 = vpack.i.bf16 %v1473_v29, %v1472_v37  ;;  %v10902_v35 = vshrl.u32 %v10899_v21, 16  ;;  %v10905_v42 = vshll.u32 %v10899_v21, 16 }
 0x484   : > { %v10915_v28 = vcombine.high %v10895_v27, %v10895_v27 }
 0x485   : > { %9753 = vrot.lane.b32.xlu1 %v9752_v33, %s10200_s24  ;;  %v9757_v34 = vpack.i.bf16 %v1475_v9, %v1474_v30  ;;  %v1863_v25 = vrot.slane %v10902_v35, 6 }
 0x486   : > { %v10919_v23 = vshrl.u32 %v10915_v28, 16 }
 0x487   : > { %9758 = vrot.lane.b32.xlu0 %v9757_v34, %s10200_s24 }
 0x489   : > { %1546 = vrot.lane.b32.xlu1 %v10631_v17, %s10200_s24 }
 0x48b   : > { %1553 = vrot.lane.b32.xlu0 %v10811_v61, %s10200_s24 }
 0x48d   : > { %1549 = vrot.lane.b32.xlu1 %v10631_v17, %s10201_s25 }
 0x48f   : > { %1556 = vrot.lane.b32.xlu0 %v10811_v61, %s10201_s25 }
 0x491   : > { %1560 = vrot.lane.b32.xlu1 %v10813_v10, %s10200_s24 }
 0x493   : > { %1563 = vrot.lane.b32.xlu0 %v10813_v10, %s10201_s25 }
 0x4f7   : > { %v9754_v3 = vpop.permute.xlu1 %9753 }
 0x4f8   : > { %v9756_v32 = vunpack.i.h.bf16 %v9754_v3  ;;  %v9755_v40 = vunpack.i.l.bf16 %v9754_v3  ;;  %v9949_v3 = vld [vmem:[%s14140_s6] sm:$0xff]  }
 0x4f9   : > { %v9759_v17 = vpop.permute.xlu0 %9758 }
 0x4fa   : > { %v1488_v43 = vsel %vm488_vm5, %v9755_v40, %v9756_v32  ;;  %v9761_v44 = vunpack.i.h.bf16 %v9759_v17  ;;  %v9760_v1 = vunpack.i.l.bf16 %v9759_v17  ;;  %v1495_v47 = vmax.f32 %v1473_v29, %v9756_v32  ;;  %v9950_v32 = vld [vmem:[%s14140_s6 + $0x8] sm:$0xff]   ;;  %v9951_v40 = vld [vmem:[%s14140_s6 + $0x10] sm:$0xff]   ;;  %v9952_v17 = vld [vmem:[%s14140_s6 + $0x18] sm:$0xff]  }
 0x4fb   : > { %v1547_v46 = vpop.permute.xlu1 %1546  ;;  %v1494_v52 = vmax.f32 %v1472_v37, %v1488_v43  ;;  %v1866_v37 = vrot.slane %v10905_v42, 7  ;;  %v14151_v29 = vrot.slane %v10899_v21, 7 }
 0x4fc   : > { %v1497_v48 = vmax.f32 %v1475_v9, %v9761_v44  ;;  %v1489_v51 = vsel %vm488_vm5, %v9760_v1, %v9761_v44  ;;  %1614 = vmatpush1.bf16.msra.mxu0 %v1547_v46  ;;  %v1871_v9 = vrot.slane %v10919_v23, 6  ;;  %v9953_v46 = vld [vmem:[%s14140_s6 + $0x20] sm:$0xff]  }
 0x4fd   : > { %v1496_v50 = vmax.f32 %v1474_v30, %v1489_v51  ;;  %1615 = vmatprep.subr.bf16.mxu0 %v14146_v20  ;;  %v1554_v55 = vpop.permute.xlu0 %1553  ;;  %v10909_v2 = vor.u32 %v1866_v37, %v1863_v25  ;;  %v10922_v30 = vshll.u32 %v10915_v28, 16 }
 0x4fe   : > { %v1499_v49 = vpack.c.bf16 %v1497_v48, %v1495_v47  ;;  %v9954_v48 = vld [vmem:[%s14140_s6 + $0x28] sm:$0xff]  }
 0x4ff   : > { %v1550_v45 = vpop.permute.xlu1 %1549  ;;  %v1498_v5 = vpack.c.bf16 %v1496_v50, %v1494_v52  ;;  %v1874_v33 = vrot.slane %v10922_v30, 7 }
 0x500   : > { %8420 = vmatprep.mubr.msk.bf16.mxu1 %vm781_vm9, %v1499_v49  ;;  %1616 = vmatpush1.bf16.msra.mxu0 %v1550_v45 }
 0x501   : > { %1536 = vmatmul.mubr.bf16.vlgmr.msra.gmra.mrb[32].mxu1 %v1498_v5  ;;  %1617 = vmatprep.subr.bf16.mxu0 %v14146_v20  ;;  %v1557_v59 = vpop.permute.xlu0 %1556  ;;  %v10929_v34 = vor.u32 %v1874_v33, %v1871_v9 }
 0x502   : > { %1672 = vmatpush1.bf16.msra.mxu1 %v10811_v61  ;;  %8427 = vmatprep.mubr.msk.bf16.mxu1 %vm1604_vm10, %v9941_v36  ;;  %v14150_v36 = vrot.slane %v10915_v28, 7 }
 0x503   : > { %1673 = vmatprep.subr.bf16.mxu1 %v14146_v20  ;;  %v1561_v60 = vpop.permute.xlu1 %1560 }
 0x504   : > { %1618 = vmatpush1.bf16.msra.mxu0 %v10811_v61 }
 0x505   : > { %1619 = vmatprep.subr.bf16.mxu0 %v14146_v20  ;;  %v1564_v61 = vpop.permute.xlu0 %1563 }
 0x506   : > { %1674 = vmatpush1.bf16.msra.mxu1 %v1554_v55 }
 0x507   : > { %1675 = vmatprep.subr.bf16.mxu1 %v14146_v20 }
 0x508   : > { %1620 = vmatpush1.bf16.msra.mxu0 %v1554_v55 }
 0x509   : > { %1621 = vmatprep.subr.bf16.mxu0 %v14146_v20 }
 0x50a   : > { %1676 = vmatpush1.bf16.msra.mxu1 %v1557_v59 }
 0x50b   : > { %1677 = vmatprep.subr.bf16.mxu1 %v14146_v20 }
 0x50c   : > { %1622 = vmatpush1.bf16.msra.mxu0 %v1557_v59 }
 0x50d   : > { %1623 = vmatprep.subr.bf16.mxu0 %v14146_v20 }
 0x50e   : > { %1678 = vmatpush1.bf16.msra.mxu1 %v10813_v10 }
 0x50f   : > { %1679 = vmatprep.subr.bf16.mxu1 %v14146_v20 }
 0x510   : > { %1624 = vmatpush1.bf16.msra.mxu0 %v10813_v10 }
 0x511   : > { %1625 = vmatprep.subr.bf16.mxu0 %v14146_v20 }
 0x512   : > { %1680 = vmatpush1.bf16.msra.mxu1 %v1561_v60 }
 0x513   : > { %1681 = vmatprep.subr.bf16.mxu1 %v14146_v20 }
 0x514   : > { %1626 = vmatpush1.bf16.msra.mxu0 %v1561_v60 }
 0x515   : > { %1627 = vmatprep.subr.bf16.mxu0 %v14146_v20 }
 0x516   : > { %1682 = vmatpush1.bf16.msra.mxu1 %v1564_v61 }
 0x517   : > { %1683 = vmatprep.subr.bf16.mxu1 %v14146_v20 }
 0x518   : > { %1628 = vmatpush1.bf16.msra.mxu0 %v1564_v61 }
 0x519   : > { %9105 = vmatprep.subr.bf16.mxu0 %v9949_v3 }
 0x51b   : > { %1644 = vmatmul.mubr.bf16.vlgmr.msra.gmra.mrb[12].mxu0 %v9943_v62 }
 0x51c   : > { %8426 = vmatprep.mubr.msk.bf16.mxu0 %vm1604_vm10, %v9944_v63  ;;  %9106 = vmatpush3.bf16.msra.mxu0 %v9949_v3  ;;  %v2111_v3 = vrot.slane %v10902_v35, 7 }
 0x51d   : > { %9107 = vmatprep.subr.bf16.mxu0 %v9950_v32 }
 0x520   : > { %9108 = vmatpush3.bf16.msra.mxu0 %v9950_v32 }
 0x521   : > { %9109 = vmatprep.subr.bf16.mxu0 %v9951_v40 }
 0x523   : > { %1652 = vmatmul.mubr.bf16.gmra.mrb[16].mxu0 %v9946_v0 }
 0x524   : > { %9110 = vmatpush3.bf16.msra.mxu0 %v9951_v40  ;;  %v1884_v40 = vrot.slane %v10915_v28, 5 }
 0x525   : > { %9111 = vmatprep.subr.bf16.mxu0 %v9952_v17 }
 0x528   : > { %9112 = vmatpush3.bf16.msra.mxu0 %v9952_v17  ;;  %v1967_v17 = vrot.slane %v10919_v23, 5 }
 0x529   : > { %9113 = vmatprep.subr.bf16.mxu0 %v9953_v46 }
 0x52c   : > { %9114 = vmatpush3.bf16.msra.mxu0 %v9953_v46  ;;  %v10998_v46 = vor.u32 %v2111_v3, %v10905_v42 }
 0x52d   : > { %9115 = vmatprep.subr.bf16.mxu0 %v9954_v48 }
 0x530   : > { %9116 = vmatpush3.bf16.msra.mxu0 %v9954_v48  ;;  %v2113_v48 = vrot.slane %v10919_v23, 7 }
 0x5d4   : > { %v1537_v4 = vpop.f32.mrb[32].mxu1 }
 0x5d5   : > { %v1539_v10 = vpop.f32.mrb[33].mxu1 }
 0x5d6   : > { %v1540_v11 = vpop.f32.mrb[34].mxu1 }
 0x5d7   : > { %v1544_v12 = vpack.c.bf16 %v1540_v11, %v1537_v4  ;;  %v1542_v13 = vpop.f32.mrb[35].mxu1  ;;  %v1796_v4 = vsel %vm505_vm6, 4294967295, %v10203_v31 }
 0x5d9   : > { %1668 = vrot.lane.b32.xlu0 %v1544_v12, %s10201_s25  ;;  %1665 = vrot.lane.b32.xlu1 %v1544_v12, %s10200_s24 }
 0x5da   : > { %1684 = vmatpush1.bf16.msra.mxu1 %v1544_v12  ;;  %v1797_v12 = vsel %vm531_vm0, %v1796_v4, 0 }
 0x5db   : > { %1685 = vmatprep.subr.bf16.mxu1 %v14146_v20 }
 0x5dd   : > { %1573 = vperm.xlu0 %9720, %v400_v14   ;;  %1568 = vperm.xlu1 %9721, %v399_v18  }
 0x5e1   : > { %1583 = vperm.xlu0 %9720, %v402_v7   ;;  %1578 = vperm.xlu1 %9721, %v401_v6  }
 0x5e5   : > { %1876 = vrot.lane.b32.xlu1 %v10909_v2, %s10200_s24  ;;  %1878 = vrot.lane.b32.xlu0 %v10929_v34, %s10200_s24 }
 0x5e9   : > { %1957 = vrot.lane.b32.xlu1 %v14151_v29, %s10200_s24  ;;  %1959 = vrot.lane.b32.xlu0 %v14150_v36, %s10200_s24 }
 0x5ee   : > { %v1645_v54 = vpop.f32.mrb[12].mxu0 }
 0x5ef   : > { %v1647_v8 = vpop.f32.mrb[13].mxu0 }
 0x5f0   : > { %v1648_v53 = vpop.f32.mrb[14].mxu0 }
 0x5f1   : > { %v1650_v56 = vpop.f32.mrb[15].mxu0 }
 0x5f2   : > { %v1883_v56 = vrot.slane %v10899_v21, 5 }
 0x5f6   : > { %v10887_v57 = vpop.f32.mrb[16].mxu0 }
 0x5f7   : > { %v1655_v58 = vpop.f32.mrb[17].mxu0 }
 0x5f8   : > { %v10889_v16 = vpop.f32.mrb[18].mxu0 }
 0x5f9   : > { %v1658_v19 = vpop.f32.mrb[19].mxu0 }
 0x64b   : > { %v1666_v24 = vpop.permute.xlu1 %1665  ;;  %v1669_v26 = vpop.permute.xlu0 %1668 }
 0x64c   : > { %1686 = vmatpush1.bf16.msra.mxu1 %v1666_v24  ;;  %v1964_v24 = vrot.slane %v10902_v35, 5 }
 0x64d   : > { %1687 = vmatprep.subr.bf16.mxu1 %v14146_v20 }
 0x650   : > { %1688 = vmatpush1.bf16.msra.mxu1 %v1669_v26 }
 0x653   : > { %1704 = vmatmul.mubr.bf16.vlgmr.msra.gmra.mrb[36].mxu1 %v9943_v62 }
 0x654   : > { %8428 = vmatprep.mubr.msk.bf16.mxu1 %vm1604_vm10, %v9944_v63 }
 0x65b   : > { %1712 = vmatmul.mubr.bf16.gmra.mrb[40].mxu1 %v9946_v0  ;;  %v9955_v0 = vld [vmem:[%s14140_s6 + $0x30] ss:$0 sps:$4 sm:$0xff]  }
 0x65c   : > { %1934 = vmatprep.mubr.bf16.mxu1 %v14146_v20  ;;  %v10949_v43 = vpop.permute.xlu1 %1568  ;;  %v10951_v44 = vpop.permute.xlu0 %1573  ;;  %v10977_v14 = vand.u32 %v9955_v0, %v1797_v12 }
 0x65d   : > { %14195 = vst [vmem:[#allocation6_spill] sm:$0xff] %v10949_v43  ;;  %14196 = vst [vmem:[#allocation7_spill] sm:$0xff] %v10951_v44  ;;  %v1646_v1 = vadd.f32 %v1645_v54, %v10949_v43  ;;  %v1649_v50 = vadd.f32 %v1648_v53, %v10951_v44 }
 0x65e   : > { %14199 = vst [vmem:[#allocation10_spill] sm:$0xff] %v10977_v14  ;;  %9117 = vmatprep.subr.bf16.mxu0 %v10977_v14 }
 0x65f   : > { %v1660_v5 = vmax.f32 %v1646_v1, 0.0  ;;  %v1661_v62 = vmax.f32 %v1649_v50, 0.0  ;;  %9118 = vmatpush3.bf16.msra.mxu0 %v10977_v14  ;;  %v1968_v1 = vrot.slane %v10922_v30, 6  ;;  %v2123_v50 = vrot.slane %v10915_v28, 6 }
 0x660   : > { %v10962_v45 = vpop.permute.xlu1 %1578  ;;  %v10972_v10 = vpop.permute.xlu0 %1583 }
 0x661   : > { %14197 = vst [vmem:[#allocation8_spill] sm:$0xff] %v10962_v45  ;;  %14198 = vst [vmem:[#allocation9_spill] sm:$0xff] %v10972_v10  ;;  %v1654_v11 = vadd.f32 %v10887_v57, %v10962_v45  ;;  %v1657_v54 = vadd.f32 %v10889_v16, %v10972_v10  ;;  %v1965_v16 = vrot.slane %v10905_v42, 6 }
 0x663   : > { %v1662_v8 = vmax.f32 %v1654_v11, 0.0  ;;  %v1663_v25 = vmax.f32 %v1657_v54, 0.0  ;;  %v1966_v33 = vor.u32 %v1965_v16, %v1964_v24 }
 0x726   : > { %v1705_v47 = vpop.f32.mrb[36].mxu1 }
 0x727   : > { %v1706_v51 = vadd.f32 %v1705_v47, %v10949_v43  ;;  %v1707_v52 = vpop.f32.mrb[37].mxu1  ;;  %v1969_v47 = vor.u32 %v1968_v1, %v1967_v17 }
 0x728   : > { %v1708_v49 = vpop.f32.mrb[38].mxu1  ;;  %v11007_v52 = vor.u32 %v2113_v48, %v10922_v30 }
 0x729   : > { %v1720_v55 = vmax.f32 %v1706_v51, 0.0  ;;  %v1709_v59 = vadd.f32 %v1708_v49, %v10951_v44  ;;  %v1710_v60 = vpop.f32.mrb[39].mxu1  ;;  %v2122_v51 = vrot.slane %v10899_v21, 6  ;;  %v1877_v49 = vpop.permute.xlu1 %1876 }
 0x72b   : > { %v10965_v61 = vmax.f32 %v1660_v5, %v1720_v55  ;;  %v1721_v63 = vmax.f32 %v1709_v59, 0.0  ;;  %v1879_v55 = vpop.permute.xlu0 %1878 }
 0x72d   : > { %v1725_v13 = vmax.f32 %v1661_v62, %v1721_v63  ;;  %v1958_v5 = vpop.permute.xlu1 %1957 }
 0x72e   : > { %v1713_v18 = vpop.f32.mrb[40].mxu1 }
 0x72f   : > { %v1714_v7 = vadd.f32 %v1713_v18, %v10962_v45  ;;  %v1715_v6 = vpop.f32.mrb[41].mxu1  ;;  %v9762_v31 = vpack.i.bf16 %v1725_v13, %v10965_v61  ;;  %v1960_v63 = vpop.permute.xlu0 %1959 }
 0x730   : > { %v1716_v53 = vpop.f32.mrb[42].mxu1  ;;  %v1949_v6 = vrot.slane %v10905_v42, 1 }
 0x731   : > { %v1722_v57 = vmax.f32 %v1714_v7, 0.0  ;;  %v1717_v58 = vadd.f32 %v1716_v53, %v10972_v10  ;;  %v1718_v19 = vpop.f32.mrb[43].mxu1  ;;  %9763 = vrot.lane.b32.xlu1 %v9762_v31, %s10200_s24 }
 0x732   : > { %v11037_v19 = vor.u32 %v1949_v6, %v10902_v35 }
 0x733   : > { %v1726_v26 = vmax.f32 %v1662_v8, %v1722_v57  ;;  %v1723_v37 = vmax.f32 %v1717_v58, 0.0 }
 0x735   : > { %v1727_v9 = vmax.f32 %v1663_v25, %v1723_v37  ;;  %1885 = vrot.lane.b32.xlu1 %v1883_v56, %s10201_s25  ;;  %v1961_v25 = vsel %vm488_vm5, %v1958_v5, %v1960_v63  ;;  %v14149_v5 = vrot.slane %v10899_v21, 1 }
 0x737   : > { %v9767_v32 = vpack.i.bf16 %v1727_v9, %v1726_v26 }
 0x739   : > { %9768 = vrot.lane.b32.xlu0 %v9767_v32, %s10200_s24  ;;  %1970 = vrot.lane.b32.xlu1 %v1966_v33, %s10201_s25 }
 0x73d   : > { %1887 = vrot.lane.b32.xlu0 %v1884_v40, %s10201_s25  ;;  %2115 = vrot.lane.b32.xlu1 %v10998_v46, %s10200_s24  ;;  %v1975_v40 = vsel %vm10348_vm7, %v11037_v19, %v1961_v25 }
 0x741   : > { %1972 = vrot.lane.b32.xlu0 %v1969_v47, %s10201_s25  ;;  %2124 = vrot.lane.b32.xlu1 %v2122_v51, %s10201_s25  ;;  %v14148_v51 = vrot.slane %v10915_v28, 1 }
 0x745   : > { %2117 = vrot.lane.b32.xlu0 %v11007_v52, %s10200_s24  ;;  %2196 = vrot.lane.b32.xlu1 %v10899_v21, %s10200_s24 }
 0x749   : > { %2126 = vrot.lane.b32.xlu0 %v2123_v50, %s10201_s25  ;;  %2203 = vrot.lane.b32.xlu1 %v10909_v2, %s10201_s25  ;;  %v1951_v2 = vrot.slane %v10922_v30, 1 }
 0x74b   : > { %v11034_v56 = vor.u32 %v1951_v2, %v10919_v23  ;;  %v2189_v2 = vrot.slane %v10905_v42, 2 }
 0x74d   : > { %2198 = vrot.lane.b32.xlu0 %v10915_v28, %s10200_s24  ;;  %v1976_v3 = vsel %vm10348_vm7, %v11034_v56, %v1960_v63 }
 0x751   : > { %2205 = vrot.lane.b32.xlu0 %v10929_v34, %s10201_s25  ;;  %v1880_v34 = vsel %vm488_vm5, %v1877_v49, %v1879_v55 }
 0x7a3   : > { %v9764_v59 = vpop.permute.xlu1 %9763 }
 0x7a4   : > { %v9766_v60 = vunpack.i.h.bf16 %v9764_v59  ;;  %v9765_v62 = vunpack.i.l.bf16 %v9764_v59  ;;  %v11064_v59 = vld [vmem:[%s14135_s1] sm:$0xff]  }
 0x7a6   : > { %v1745_v0 = vmax.f32 %v1725_v13, %v9766_v60  ;;  %v1744_v4 = vmax.f32 %v10965_v61, %v9765_v62  ;;  %v1890_v61 = vsel %vm10348_vm7, %v10899_v21, %v1880_v34  ;;  %v1891_v13 = vsel %vm10348_vm7, %v10915_v28, %v1879_v55  ;;  %v11072_v62 = vld [vmem:[%s14139_s5] sm:$0xff]  }
 0x7a7   : > { %v1886_v11 = vpop.permute.xlu1 %1885 }
 0x7a8   : > { %v1748_v12 = vpack.c.bf16 %v1745_v0, %v1744_v4  ;;  %v2191_v0 = vrot.slane %v10919_v23, 1  ;;  %v2192_v4 = vrot.slane %v10922_v30, 2 }
 0x7aa   : > { %9119 = vmatprep.mubr.msk.bf16.mxu0 %vm1789_vm11, %v1748_v12  ;;  %v2188_v12 = vrot.slane %v10902_v35, 1 }
 0x7ab   : > { %v9769_v18 = vpop.permute.xlu0 %9768  ;;  %v1971_v7 = vpop.permute.xlu1 %1970 }
 0x7ac   : > { %v9771_v54 = vunpack.i.h.bf16 %v9769_v18  ;;  %v9770_v31 = vunpack.i.l.bf16 %v9769_v18 }
 0x7ae   : > { %v1747_v8 = vmax.f32 %v1727_v9, %v9771_v54  ;;  %v1746_v53 = vmax.f32 %v1726_v26, %v9770_v31  ;;  %v11096_v54 = vld [vmem:[%s14139_s5 + $0x8] sm:$0xff]  }
 0x7af   : > { %v1888_v57 = vpop.permute.xlu0 %1887  ;;  %v2116_v58 = vpop.permute.xlu1 %2115 }
 0x7b0   : > { %v1749_v24 = vpack.c.bf16 %v1747_v8, %v1746_v53  ;;  %v1897_v16 = vsel %vm505_vm6, %v1891_v13, %v1888_v57  ;;  %v1889_v26 = vsel %vm498_vm3, %v1886_v11, %v1888_v57  ;;  %v2193_v8 = vor.u32 %v2192_v4, %v2191_v0  ;;  %v11192_v0 = vld [vmem:[%s14139_s5 + $0x60] sm:$0xff]  }
 0x7b1   : > { %v1894_v37 = vsel %vm505_vm6, %v1890_v61, %v1889_v26  ;;  %v1900_v9 = vand.u32 %v1897_v16, %v10352_v39  ;;  %v2190_v13 = vor.u32 %v2189_v2, %v2188_v12 }
 0x7b2   : > { %v1898_v33 = vand.u32 %v1894_v37, %v10352_v39  ;;  %9120 = vmatmul.mubr.msk.bf16.vlgmr.msra.gmra.mrb[20].mxu0 %vm1789_vm11, %v1749_v24  ;;  %v11107_v24 = vld [vmem:[%s14139_s5 + $0x10] sm:$0xff]  }
 0x7b3   : > { %1902 = vmatprep.subr.bf16.mxu1 %v1900_v9  ;;  %v1973_v32 = vpop.permute.xlu0 %1972  ;;  %2019 = vmatprep.mubr.bf16.mxu0 %v14146_v20  ;;  %v2125_v50 = vpop.permute.xlu1 %2124 }
 0x7b4   : > { %v1982_v17 = vsel %vm505_vm6, %v1976_v3, %v1973_v32  ;;  %v1974_v1 = vsel %vm498_vm3, %v1971_v7, %v1973_v32  ;;  %1903 = vmatpush1.bf16.msra.mxu1 %v1898_v33  ;;  %v11123_v3 = vld [vmem:[%s14139_s5 + $0x18] sm:$0xff]  }
 0x7b5   : > { %v1979_v47 = vsel %vm505_vm6, %v1975_v40, %v1974_v1  ;;  %v1985_v48 = vand.u32 %v1982_v17, %v10352_v39  ;;  %2065 = vmatprep.subr.bf16.mxu1 %v14146_v20  ;;  %v11133_v1 = vld [vmem:[%s14139_s5 + $0x20] sm:$0xff]  }
 0x7b6   : > { %v1983_v49 = vand.u32 %v1979_v47, %v10352_v39  ;;  %v11142_v47 = vld [vmem:[%s14139_s5 + $0x28] sm:$0xff]  }
 0x7b7   : > { %1987 = vmatprep.subr.bf16.mxu0 %v1985_v48  ;;  %v2118_v55 = vpop.permute.xlu0 %2117  ;;  %8442 = vmatmul.mubr.msk.bf16.vlgmr.msra.gmra.mrb[44].mxu1 %vm527_vm8, %v11064_v59  ;;  %v2197_v7 = vpop.permute.xlu1 %2196  ;;  %v11150_v48 = vld [vmem:[%s14139_s5 + $0x30] sm:$0xff]  }
 0x7b8   : > { %v2119_v60 = vsel %vm488_vm5, %v2116_v58, %v2118_v55  ;;  %1988 = vmatpush1.bf16.msra.mxu0 %v1983_v49  ;;  %2066 = vmatpush1.bf16.msra.mxu1 %v11072_v62  ;;  %v2130_v63 = vsel %vm10348_vm7, %v14148_v51, %v2118_v55  ;;  %v11164_v49 = vld [vmem:[%s14139_s5 + $0x40] sm:$0xff]   ;;  %v11171_v55 = vld [vmem:[%s14139_s5 + $0x48] sm:$0xff]  }
 0x7b9   : > { %2067 = vmatprep.subr.bf16.mxu1 %v14146_v20  ;;  %v2129_v11 = vsel %vm10348_vm7, %v14149_v5, %v2119_v60  ;;  %v11178_v60 = vld [vmem:[%s14139_s5 + $0x50] sm:$0xff]  }
 0x7bb   : > { %v2127_v18 = vpop.permute.xlu0 %2126  ;;  %8443 = vmatmul.mubr.msk.bf16.vlgmr.msra.gmra.mrb[24].mxu0 %vm527_vm8, %v11064_v59  ;;  %v2204_v26 = vpop.permute.xlu1 %2203 }
 0x7bc   : > { %v2136_v34 = vsel %vm505_vm6, %v2130_v63, %v2127_v18  ;;  %v2128_v6 = vsel %vm498_vm3, %v2125_v50, %v2127_v18  ;;  %2173 = vmatprep.mubr.bf16.mxu0 %v14146_v20  ;;  %2068 = vmatpush1.bf16.msra.mxu1 %v11096_v54  ;;  %v11157_v50 = vld [vmem:[%s14139_s5 + $0x38] sm:$0xff]  }
 0x7bd   : > { %v2133_v31 = vsel %vm505_vm6, %v2129_v11, %v2128_v6  ;;  %v2139_v53 = vand.u32 %v2136_v34, %v10352_v39  ;;  %2069 = vmatprep.subr.bf16.mxu1 %v14146_v20  ;;  %v11185_v63 = vld [vmem:[%s14139_s5 + $0x58] sm:$0xff]  }
 0x7be   : > { %v2137_v61 = vand.u32 %v2133_v31, %v10352_v39 }
 0x7bf   : > { %v2199_v57 = vpop.permute.xlu0 %2198  ;;  %2141 = vmatprep.subr.bf16.mxu0 %v2139_v53 }
 0x7c0   : > { %v2200_v58 = vsel %vm488_vm5, %v2197_v7, %v2199_v57  ;;  %2142 = vmatpush1.bf16.msra.mxu0 %v2137_v61  ;;  %2070 = vmatpush1.bf16.msra.mxu1 %v11107_v24  ;;  %v2209_v16 = vsel %vm10348_vm7, %v2193_v8, %v2199_v57 }
 0x7c1   : > { %2071 = vmatprep.subr.bf16.mxu1 %v14146_v20  ;;  %v2208_v25 = vsel %vm10348_vm7, %v2190_v13, %v2200_v58 }
 0x7c3   : > { %v2206_v37 = vpop.permute.xlu0 %2205  ;;  %8445 = vmatmul.mubr.msk.bf16.vlgmr.msra.gmra.mrb[28].mxu0 %vm527_vm8, %v11064_v59 }
 0x7c4   : > { %v2215_v9 = vsel %vm505_vm6, %v2209_v16, %v2206_v37  ;;  %v2207_v33 = vsel %vm498_vm3, %v2204_v26, %v2206_v37  ;;  %2252 = vmatprep.mubr.bf16.mxu0 %v14146_v20  ;;  %2072 = vmatpush1.bf16.msra.mxu1 %v11123_v3 }
 0x7c5   : > { %v2212_v32 = vsel %vm505_vm6, %v2208_v25, %v2207_v33  ;;  %v2218_v40 = vand.u32 %v2215_v9, %v10352_v39  ;;  %2073 = vmatprep.subr.bf16.mxu1 %v14146_v20 }
 0x7c6   : > { %v2216_v17 = vand.u32 %v2212_v32, %v10352_v39 }
 0x7c7   : > { %2220 = vmatprep.subr.bf16.mxu0 %v2218_v40 }
 0x7c8   : > { %2221 = vmatpush1.bf16.msra.mxu0 %v2216_v17  ;;  %2074 = vmatpush1.bf16.msra.mxu1 %v11133_v1 }
 0x7c9   : > { %2075 = vmatprep.subr.bf16.mxu1 %v14146_v20 }
 0x7cb   : > { %8446 = vmatmul.mubr.msk.bf16.vlgmr.msra.gmra.mrb[32].mxu0 %vm527_vm8, %v11064_v59 }
 0x7cc   : > { %2076 = vmatpush1.bf16.msra.mxu1 %v11142_v47  ;;  %2648 = vmatprep.mubr.bf16.mxu0 %v14146_v20 }
 0x7cd   : > { %2077 = vmatprep.subr.bf16.mxu1 %v14146_v20 }
 0x7d0   : > { %2078 = vmatpush1.bf16.msra.mxu1 %v11150_v48 }
 0x7d1   : > { %2079 = vmatprep.subr.bf16.mxu1 %v14146_v20 }
 0x7d4   : > { %2080 = vmatpush1.bf16.msra.mxu1 %v11157_v50 }
 0x7d5   : > { %2081 = vmatprep.subr.bf16.mxu1 %v14146_v20 }
 0x7d8   : > { %2082 = vmatpush1.bf16.msra.mxu1 %v11164_v49 }
 0x7d9   : > { %2083 = vmatprep.subr.bf16.mxu1 %v14146_v20 }
 0x7dc   : > { %2084 = vmatpush1.bf16.msra.mxu1 %v11171_v55 }
 0x7dd   : > { %2085 = vmatprep.subr.bf16.mxu1 %v14146_v20 }
 0x7e0   : > { %2086 = vmatpush1.bf16.msra.mxu1 %v11178_v60 }
 0x7e1   : > { %2087 = vmatprep.subr.bf16.mxu1 %v14146_v20 }
 0x7e4   : > { %2088 = vmatpush1.bf16.msra.mxu1 %v11185_v63 }
 0x7e5   : > { %2089 = vmatprep.subr.bf16.mxu1 %v14146_v20 }
 0x7e8   : > { %2090 = vmatpush1.bf16.msra.mxu1 %v11192_v0 }
 0x7e9   : > { %2091 = vmatprep.subr.bf16.mxu1 %v14146_v20 }
 0x7ec   : > { %2092 = vmatpush1.bf16.msra.mxu1 %v10496_v41 }
 0x7ed   : > { %2298 = vmatprep.subr.bf16.mxu1 %v14146_v20 }
 0x885   : > { %v11198_v4 = vpop.f32.mrb[20].mxu0 }
 0x886   : > { %v11200_v11 = vpop.f32.mrb[21].mxu0 }
 0x887   : > { %v11202_v12 = vpop.f32.mrb[22].mxu0 }
 0x888   : > { %v11204_v2 = vpop.f32.mrb[23].mxu0 }
 0x889   : > { %14200 = vst [vmem:[#allocation11_spill] sm:$0xff] %v11204_v2 }
 0x88a   : > { %v1936_v18 = vpop.f32.mrb[44].mxu1 }
 0x88b   : > { %v1938_v7 = vpop.f32.mrb[45].mxu1  ;;  %v1937_v6 = vadd.f32 %v1936_v18, %v10475_v15 }
 0x88c   : > { %v1940_v34 = vpop.f32.mrb[46].mxu1  ;;  %v1939_v8 = vadd.f32 %v1938_v7, %v10475_v15 }
 0x88d   : > { %v1942_v31 = vpop.f32.mrb[47].mxu1  ;;  %v1941_v61 = vadd.f32 %v1940_v34, %v10482_v22  ;;  %v1945_v25 = vmax.f32 %v1937_v6, 0.0 }
 0x88e   : > { %v2021_v53 = vpop.f32.mrb[24].mxu0  ;;  %v1943_v58 = vadd.f32 %v1942_v31, %v10482_v22  ;;  %v1946_v32 = vmax.f32 %v1939_v8, 0.0 }
 0x88f   : > { %v2022_v13 = vadd.f32 %v2021_v53, %v10475_v15  ;;  %v2023_v57 = vpop.f32.mrb[25].mxu0  ;;  %v1947_v18 = vmax.f32 %v1941_v61, 0.0 }
 0x890   : > { %v2024_v16 = vadd.f32 %v2023_v57, %v10475_v15  ;;  %v2025_v26 = vpop.f32.mrb[26].mxu0  ;;  %v1948_v53 = vmax.f32 %v1943_v58, 0.0 }
 0x891   : > { %v2030_v37 = vmax.f32 %v2022_v13, 0.0  ;;  %v2026_v9 = vadd.f32 %v2025_v26, %v10482_v22  ;;  %v2027_v33 = vpop.f32.mrb[27].mxu0 }
 0x892   : > { %v2031_v40 = vmax.f32 %v2024_v16, 0.0  ;;  %v2028_v17 = vadd.f32 %v2027_v33, %v10482_v22 }
 0x893   : > { %v11214_v7 = vmax.f32 %v1945_v25, %v2030_v37  ;;  %v2032_v34 = vmax.f32 %v2026_v9, 0.0 }
 0x894   : > { %v11216_v20 = vmax.f32 %v1946_v32, %v2031_v40  ;;  %v2033_v31 = vmax.f32 %v2028_v17, 0.0 }
 0x895   : > { %v11218_v51 = vmax.f32 %v1947_v18, %v2032_v34 }
 0x896   : > { %v11220_v57 = vmax.f32 %v1948_v53, %v2033_v31  ;;  %v2175_v6 = vpop.f32.mrb[28].mxu0  ;;  %v9772_v13 = vpack.i.bf16 %v11216_v20, %v11214_v7 }
 0x897   : > { %v2177_v8 = vpop.f32.mrb[29].mxu0  ;;  %v2176_v58 = vadd.f32 %v2175_v6, %v10475_v15 }
 0x898   : > { %v2179_v16 = vpop.f32.mrb[30].mxu0  ;;  %9773 = vrot.lane.b32.xlu1 %v9772_v13, %s10200_s24  ;;  %v9777_v61 = vpack.i.bf16 %v11220_v57, %v11218_v51  ;;  %v2178_v25 = vadd.f32 %v2177_v8, %v10475_v15 }
 0x899   : > { %v2181_v26 = vpop.f32.mrb[31].mxu0  ;;  %v2180_v9 = vadd.f32 %v2179_v16, %v10482_v22  ;;  %v2184_v34 = vmax.f32 %v2176_v58, 0.0 }
 0x89a   : > { %9778 = vrot.lane.b32.xlu0 %v9777_v61, %s10200_s24  ;;  %v2182_v40 = vadd.f32 %v2181_v26, %v10482_v22  ;;  %v2185_v6 = vmax.f32 %v2178_v25, 0.0 }
 0x89b   : > { %v2186_v5 = vmax.f32 %v2180_v9, 0.0  ;;  %v8439_v9 = vld [vmem:[%s10280_s23 + $0x18] sm:$0x77] }
 0x89c   : > { %v2187_v36 = vmax.f32 %v2182_v40, 0.0  ;;  %v11254_v40 = vcombine.low %v10895_v27, %v8439_v9 }
 0x89e   : > { %v2254_v37 = vpop.f32.mrb[32].mxu0 }
 0x89f   : > { %v2255_v33 = vadd.f32 %v2254_v37, %v10475_v15  ;;  %v2256_v32 = vpop.f32.mrb[33].mxu0 }
 0x8a0   : > { %v2257_v17 = vadd.f32 %v2256_v32, %v10475_v15  ;;  %v2258_v18 = vpop.f32.mrb[34].mxu0 }
 0x8a1   : > { %v2263_v53 = vmax.f32 %v2255_v33, 0.0  ;;  %v2259_v31 = vadd.f32 %v2258_v18, %v10482_v22  ;;  %v2260_v13 = vpop.f32.mrb[35].mxu0  ;;  %v11268_v18 = vshll.u32 %v11254_v40, 16 }
 0x8a2   : > { %v2264_v61 = vmax.f32 %v2257_v17, 0.0  ;;  %v2261_v8 = vadd.f32 %v2260_v13, %v10482_v22  ;;  %v11265_v17 = vshrl.u32 %v11254_v40, 16  ;;  %v14204_v13 = vrot.slane %v10915_v28, 1 }
 0x8a3   : > { %v11236_v16 = vmax.f32 %v2184_v34, %v2263_v53  ;;  %v2265_v37 = vmax.f32 %v2259_v31, 0.0  ;;  %v2582_v31 = vrot.slane %v11268_v18, 2 }
 0x8a4   : > { %v11238_v29 = vmax.f32 %v2185_v6, %v2264_v61  ;;  %v2266_v26 = vmax.f32 %v2261_v8, 0.0  ;;  %v2579_v53 = vrot.slane %v11265_v17, 1 }
 0x8a5   : > { %v11240_v32 = vmax.f32 %v2186_v5, %v2265_v37  ;;  %v14201_v5 = vrot.slane %v10899_v21, 7 }
 0x8a6   : > { %v11242_v58 = vmax.f32 %v2187_v36, %v2266_v26  ;;  %v9782_v33 = vpack.i.bf16 %v11238_v29, %v11236_v16  ;;  %v11259_v36 = vcombine.high %v10895_v27, %v8439_v9  ;;  %v2583_v8 = vor.u32 %v2582_v31, %v2579_v53 }
 0x8a7   : > { %v2671_v26 = vrot.slane %v11254_v40, 2 }
 0x8a8   : > { %9783 = vrot.lane.b32.xlu1 %v9782_v33, %s10200_s24  ;;  %v9787_v25 = vpack.i.bf16 %v11242_v58, %v11240_v32  ;;  %v11274_v34 = vshrl.u32 %v11259_v36, 16  ;;  %v11277_v27 = vshll.u32 %v11259_v36, 16  ;;  %v2680_v33 = vrot.slane %v11268_v18, 1 }
 0x8aa   : > { %9788 = vrot.lane.b32.xlu0 %v9787_v25, %s10200_s24  ;;  %v2587_v6 = vrot.slane %v11274_v34, 1  ;;  %v2590_v61 = vrot.slane %v11277_v27, 2  ;;  %v2682_v25 = vrot.slane %v11277_v27, 1 }
 0x8ac   : > { %2344 = vrot.lane.b32.xlu1 %v11037_v19, %s10200_s24  ;;  %v14202_v19 = vrot.slane %v10915_v28, 7  ;;  %v2591_v37 = vor.u32 %v2590_v61, %v2587_v6  ;;  %v2683_v9 = vor.u32 %v2682_v25, %v11274_v34 }
 0x8ae   : > { %2346 = vrot.lane.b32.xlu0 %v11034_v56, %s10200_s24  ;;  %v14203_v56 = vrot.slane %v10899_v21, 1 }
 0x8b0   : > { %2351 = vrot.lane.b32.xlu1 %v14201_v5, %s10201_s25 }
 0x8b2   : > { %2353 = vrot.lane.b32.xlu0 %v14202_v19, %s10201_s25 }
 0x8b4   : > { %2423 = vrot.lane.b32.xlu1 %v14203_v56, %s10200_s24 }
 0x8b6   : > { %2425 = vrot.lane.b32.xlu0 %v14204_v13, %s10200_s24 }
 0x8b8   : > { %2430 = vrot.lane.b32.xlu1 %v10998_v46, %s10201_s25  ;;  %v2672_v46 = vrot.slane %v11259_v36, 2 }
 0x8ba   : > { %2432 = vrot.lane.b32.xlu0 %v11007_v52, %s10201_s25  ;;  %v2681_v52 = vor.u32 %v2680_v33, %v11265_v17 }
 0x8bc   : > { %2592 = vrot.lane.b32.xlu1 %v2583_v8, %s10200_s24 }
 0x8be   : > { %2594 = vrot.lane.b32.xlu0 %v2591_v37, %s10200_s24 }
 0x8c0   : > { %2599 = vrot.lane.b32.xlu1 %v11254_v40, %s10201_s25 }
 0x8c2   : > { %2601 = vrot.lane.b32.xlu0 %v11259_v36, %s10201_s25 }
 0x8c4   : > { %2673 = vrot.lane.b32.xlu1 %v2671_v26, %s10200_s24 }
 0x8c6   : > { %2675 = vrot.lane.b32.xlu0 %v2672_v46, %s10200_s24 }
 0x8c8   : > { %2684 = vrot.lane.b32.xlu1 %v2681_v52, %s10201_s25  ;;  %v14205_v52 = vmov 0  }
 0x8ca   : > { %2686 = vrot.lane.b32.xlu0 %v2683_v9, %s10201_s25 }
 0x90a   : > { %v9774_v5 = vpop.permute.xlu1 %9773 }
 0x90b   : > { %v9776_v19 = vunpack.i.h.bf16 %v9774_v5  ;;  %v9775_v56 = vunpack.i.l.bf16 %v9774_v5 }
 0x90c   : > { %v9779_v53 = vpop.permute.xlu0 %9778 }
 0x90d   : > { %v2050_v31 = vsel %vm488_vm5, %v9775_v56, %v9776_v19  ;;  %v9781_v13 = vunpack.i.h.bf16 %v9779_v53  ;;  %v9780_v6 = vunpack.i.l.bf16 %v9779_v53  ;;  %v2057_v61 = vmax.f32 %v11216_v20, %v9776_v19 }
 0x90e   : > { %v2056_v26 = vmax.f32 %v11214_v7, %v2050_v31 }
 0x90f   : > { %v2059_v8 = vmax.f32 %v11220_v57, %v9781_v13  ;;  %v2051_v37 = vsel %vm488_vm5, %v9780_v6, %v9781_v13 }
 0x910   : > { %v2058_v33 = vmax.f32 %v11218_v51, %v2051_v37 }
 0x911   : > { %v2061_v46 = vpack.c.bf16 %v2059_v8, %v2057_v61  ;;  %v2573_v8 = vrot.slane %v11259_v36, 3 }
 0x912   : > { %v2060_v25 = vpack.c.bf16 %v2058_v33, %v2056_v26  ;;  %v2572_v26 = vrot.slane %v11254_v40, 3  ;;  %v2663_v40 = vrot.slane %v11265_v17, 3 }
 0x913   : > { %8444 = vmatprep.mubr.msk.bf16.mxu1 %vm781_vm9, %v2061_v46 }
 0x914   : > { %2098 = vmatmul.mubr.bf16.vlgmr.msra.gmra.mrb[48].mxu1 %v2060_v25 }
 0x915   : > { %2299 = vmatpush1.bf16.msra.mxu1 %v11072_v62 }
 0x916   : > { %2300 = vmatprep.subr.bf16.mxu1 %v14205_v52 }
 0x919   : > { %2301 = vmatpush1.bf16.msra.mxu1 %v11096_v54 }
 0x91a   : > { %v11319_v20 = vpop.permute.xlu1 %9783  ;;  %2302 = vmatprep.subr.bf16.mxu1 %v14205_v52 }
 0x91b   : > { %v14152_v57 = vunpack.i.h.bf16 %v11319_v20 }
 0x91c   : > { %v11323_v7 = vpop.permute.xlu0 %9788 }
 0x91d   : > { %v14153_v51 = vunpack.i.h.bf16 %v11323_v7  ;;  %2303 = vmatpush1.bf16.msra.mxu1 %v11107_v24  ;;  %v2290_v5 = vmax.f32 %v11238_v29, %v14152_v57  ;;  %v2664_v57 = vrot.slane %v11268_v18, 4 }
 0x91e   : > { %2304 = vmatprep.subr.bf16.mxu1 %v14205_v52  ;;  %v11328_v9 = vpop.permute.xlu1 %2344 }
 0x91f   : > { %v2292_v19 = vmax.f32 %v11242_v58, %v14153_v51  ;;  %v2665_v17 = vor.u32 %v2664_v57, %v2663_v40  ;;  %v2418_v57 = vrot.slane %v10919_v23, 2  ;;  %v9790_v23 = vunpack.i.l.bf16 %v11323_v7 }
 0x920   : > { %v11336_v56 = vpop.permute.xlu0 %2346 }
 0x921   : > { %2305 = vmatpush1.bf16.msra.mxu1 %v11123_v3  ;;  %v2294_v53 = vpack.c.bf16 %v2292_v19, %v2290_v5  ;;  %v2666_v19 = vrot.slane %v11274_v34, 3 }
 0x922   : > { %2306 = vmatprep.subr.bf16.mxu1 %v14205_v52  ;;  %v11340_v31 = vpop.permute.xlu1 %2351 }
 0x923   : > { %8447 = vmatprep.mubr.msk.bf16.mxu1 %vm781_vm9, %v2294_v53  ;;  %v2667_v53 = vrot.slane %v11277_v27, 4 }
 0x924   : > { %v11343_v13 = vpop.permute.xlu0 %2353 }
 0x925   : > { %2307 = vmatpush1.bf16.msra.mxu1 %v11133_v1  ;;  %v2668_v27 = vor.u32 %v2667_v53, %v2666_v19  ;;  %v2419_v19 = vrot.slane %v10922_v30, 3  ;;  %v2340_v30 = vrot.slane %v10899_v21, 2  ;;  %v2416_v21 = vrot.slane %v10905_v42, 3 }
 0x926   : > { %2308 = vmatprep.subr.bf16.mxu1 %v14205_v52  ;;  %v11347_v29 = vpop.permute.xlu1 %2423 }
 0x928   : > { %v11349_v58 = vpop.permute.xlu0 %2425 }
 0x929   : > { %2309 = vmatpush1.bf16.msra.mxu1 %v11142_v47 }
 0x92a   : > { %2310 = vmatprep.subr.bf16.mxu1 %v14205_v52  ;;  %v11353_v6 = vpop.permute.xlu1 %2430 }
 0x92c   : > { %v11355_v61 = vpop.permute.xlu0 %2432 }
 0x92d   : > { %2311 = vmatpush1.bf16.msra.mxu1 %v11150_v48 }
 0x92e   : > { %2312 = vmatprep.subr.bf16.mxu1 %v14205_v52  ;;  %v2593_v37 = vpop.permute.xlu1 %2592 }
 0x930   : > { %v2595_v33 = vpop.permute.xlu0 %2594 }
 0x931   : > { %v2596_v46 = vsel %vm488_vm5, %v2593_v37, %v2595_v33  ;;  %2313 = vmatpush1.bf16.msra.mxu1 %v11157_v50  ;;  %v2605_v25 = vsel %vm10348_vm7, %v2573_v8, %v2595_v33 }
 0x932   : > { %2314 = vmatprep.subr.bf16.mxu1 %v14205_v52  ;;  %v2600_v5 = vpop.permute.xlu1 %2599  ;;  %v2604_v36 = vsel %vm10348_vm7, %v2572_v26, %v2596_v46 }
 0x934   : > { %v2602_v37 = vpop.permute.xlu0 %2601 }
 0x935   : > { %v2611_v51 = vsel %vm505_vm6, %v2605_v25, %v2602_v37  ;;  %v2603_v2 = vsel %vm498_vm3, %v2600_v5, %v2602_v37  ;;  %2315 = vmatpush1.bf16.msra.mxu1 %v11164_v49  ;;  %v2341_v5 = vrot.slane %v10915_v28, 2 }
 0x936   : > { %v2608_v8 = vsel %vm505_vm6, %v2604_v36, %v2603_v2  ;;  %2316 = vmatprep.subr.bf16.mxu1 %v14205_v52  ;;  %v2614_v34 = vand.u32 %v2611_v51, %v10352_v39  ;;  %v2674_v33 = vpop.permute.xlu1 %2673 }
 0x937   : > { %v2612_v26 = vand.u32 %v2608_v8, %v10352_v39 }
 0x938   : > { %2616 = vmatprep.subr.bf16.mxu0 %v2614_v34  ;;  %v2676_v18 = vpop.permute.xlu0 %2675  ;;  %v2357_v34 = vsel %vm10348_vm7, %v2341_v5, %v11336_v56 }
 0x939   : > { %v2677_v46 = vsel %vm488_vm5, %v2674_v33, %v2676_v18  ;;  %2317 = vmatpush1.bf16.msra.mxu1 %v11171_v55  ;;  %2617 = vmatpush1.bf16.msra.mxu0 %v2612_v26  ;;  %v2690_v25 = vsel %vm10348_vm7, %v2668_v27, %v2676_v18  ;;  %v2348_v27 = vsel %vm488_vm5, %v11328_v9, %v11336_v56  ;;  %v9785_v26 = vunpack.i.l.bf16 %v11319_v20 }
 0x93a   : > { %2318 = vmatprep.subr.bf16.mxu1 %v14205_v52  ;;  %v2685_v2 = vpop.permute.xlu1 %2684  ;;  %v2689_v51 = vsel %vm10348_vm7, %v2665_v17, %v2677_v46  ;;  %v2420_v33 = vor.u32 %v2419_v19, %v2418_v57  ;;  %v2415_v17 = vrot.slane %v10902_v35, 2  ;;  %v14206_v18 = vunpack.i.h.bf16 %v11323_v7 }
 0x93b   : > { %v2356_v9 = vsel %vm10348_vm7, %v2340_v30, %v2348_v27  ;;  %v2363_v56 = vsel %vm505_vm6, %v2357_v34, %v11343_v13  ;;  %v2355_v35 = vsel %vm498_vm3, %v11340_v31, %v11343_v13  ;;  %v14207_v7 = vunpack.i.h.bf16 %v11319_v20 }
 0x93c   : > { %v2687_v53 = vpop.permute.xlu0 %2686  ;;  %8453 = vmatmul.mubr.msk.bf16.vlgmr.msra.gmra.mrb[36].mxu0 %vm527_vm8, %v11064_v59  ;;  %v2284_v46 = vsel %vm488_vm5, %v9790_v23, %v14206_v18  ;;  %v2436_v42 = vsel %vm10348_vm7, %v2420_v33, %v11349_v58  ;;  %v2360_v13 = vsel %vm505_vm6, %v2356_v9, %v2355_v35  ;;  %v2366_v20 = vand.u32 %v2363_v56, %v10352_v39 }
 0x93d   : > { %v2696_v36 = vsel %vm505_vm6, %v2690_v25, %v2687_v53  ;;  %v2688_v40 = vsel %vm498_vm3, %v2685_v2, %v2687_v53  ;;  %2319 = vmatpush1.bf16.msra.mxu1 %v11178_v60  ;;  %2733 = vmatprep.mubr.bf16.mxu0 %v14205_v52  ;;  %v2283_v25 = vsel %vm488_vm5, %v9785_v26, %v14207_v7  ;;  %v11435_v2 = vld [vmem:[%s14137_s3 + $0x4] ss:$8 sps:$4 sm:$0xff]  }
 0x93e   : > { %v2693_v37 = vsel %vm505_vm6, %v2689_v51, %v2688_v40  ;;  %2320 = vmatprep.subr.bf16.mxu1 %v14205_v52  ;;  %v2699_v28 = vand.u32 %v2696_v36, %v10352_v39  ;;  %v2291_v31 = vmax.f32 %v11240_v32, %v2284_v46  ;;  %v2417_v51 = vor.u32 %v2416_v21, %v2415_v17 }
 0x93f   : > { %v2697_v8 = vand.u32 %v2693_v37, %v10352_v39  ;;  %v2442_v5 = vsel %vm505_vm6, %v2436_v42, %v11355_v61  ;;  %v2289_v57 = vmax.f32 %v11236_v16, %v2283_v25  ;;  %v2427_v19 = vsel %vm488_vm5, %v11347_v29, %v11349_v58 }
 0x940   : > { %2701 = vmatprep.subr.bf16.mxu0 %v2699_v28  ;;  %v2364_v53 = vand.u32 %v2360_v13, %v10352_v39  ;;  %v2445_v36 = vand.u32 %v2442_v5, %v10352_v39  ;;  %v2435_v40 = vsel %vm10348_vm7, %v2417_v51, %v2427_v19  ;;  %v2434_v37 = vsel %vm498_vm3, %v11353_v6, %v11355_v61 }
 0x941   : > { %2321 = vmatpush1.bf16.msra.mxu1 %v11185_v63  ;;  %2702 = vmatpush1.bf16.msra.mxu0 %v2697_v8  ;;  %v2293_v32 = vpack.c.bf16 %v2291_v31, %v2289_v57  ;;  %v2439_v16 = vsel %vm505_vm6, %v2435_v40, %v2434_v37 }
 0x942   : > { %2322 = vmatprep.subr.bf16.mxu1 %v14205_v52  ;;  %2902 = vmatprep.subr.bf16.mxu0 %v14205_v52  ;;  %v2443_v29 = vand.u32 %v2439_v16, %v10352_v39 }
 0x944   : > { %8454 = vmatmul.mubr.msk.bf16.vlgmr.msra.gmra.mrb[40].mxu0 %vm527_vm8, %v11064_v59 }
 0x945   : > { %2323 = vmatpush1.bf16.msra.mxu1 %v11192_v0  ;;  %8458 = vmatprep.mubr.msk.bf16.mxu0 %vm1604_vm10, %v11435_v2 }
 0x946   : > { %2324 = vmatprep.subr.bf16.mxu1 %v14205_v52 }
 0x949   : > { %2325 = vmatpush1.bf16.msra.mxu1 %v10496_v41 }
 0x94a   : > { %2368 = vmatprep.subr.bf16.mxu1 %v2366_v20 }
 0x94c   : > { %2331 = vmatmul.mubr.bf16.vlgmr.msra.gmra.mrb[52].mxu1 %v2293_v32 }
 0x94d   : > { %2369 = vmatpush1.bf16.msra.mxu1 %v2364_v53  ;;  %2400 = vmatprep.mubr.bf16.mxu1 %v14205_v52 }
 0x94e   : > { %2447 = vmatprep.subr.bf16.mxu1 %v2445_v36 }
 0x954   : > { %8448 = vmatmul.mubr.msk.bf16.vlgmr.msra.gmra.mrb[56].mxu1 %vm527_vm8, %v11064_v59 }
 0x955   : > { %2448 = vmatpush1.bf16.msra.mxu1 %v2443_v29  ;;  %2479 = vmatprep.mubr.bf16.mxu1 %v14205_v52 }
 0x956   : > { %2525 = vmatprep.subr.bf16.mxu1 %v14205_v52 }
 0x95c   : > { %8449 = vmatmul.mubr.msk.bf16.vlgmr.msra.gmra.mrb[60].mxu1 %vm527_vm8, %v11064_v59 }
 0x95d   : > { %2526 = vmatpush1.bf16.msra.mxu1 %v11072_v62 }
 0x95e   : > { %2527 = vmatprep.subr.bf16.mxu1 %v14205_v52 }
 0x961   : > { %2528 = vmatpush1.bf16.msra.mxu1 %v11096_v54 }
 0x962   : > { %2529 = vmatprep.subr.bf16.mxu1 %v14205_v52 }
 0x965   : > { %2530 = vmatpush1.bf16.msra.mxu1 %v11107_v24 }
 0x966   : > { %2531 = vmatprep.subr.bf16.mxu1 %v14205_v52 }
 0x969   : > { %2532 = vmatpush1.bf16.msra.mxu1 %v11123_v3 }
 0x96a   : > { %2533 = vmatprep.subr.bf16.mxu1 %v14205_v52 }
 0x96d   : > { %2534 = vmatpush1.bf16.msra.mxu1 %v11133_v1 }
 0x96e   : > { %2535 = vmatprep.subr.bf16.mxu1 %v14205_v52 }
 0x971   : > { %2536 = vmatpush1.bf16.msra.mxu1 %v11142_v47 }
 0x972   : > { %2537 = vmatprep.subr.bf16.mxu1 %v14205_v52 }
 0x975   : > { %2538 = vmatpush1.bf16.msra.mxu1 %v11150_v48 }
 0x976   : > { %2539 = vmatprep.subr.bf16.mxu1 %v14205_v52 }
 0x979   : > { %2540 = vmatpush1.bf16.msra.mxu1 %v11157_v50 }
 0x97a   : > { %2541 = vmatprep.subr.bf16.mxu1 %v14205_v52 }
 0x97d   : > { %2542 = vmatpush1.bf16.msra.mxu1 %v11164_v49 }
 0x97e   : > { %2543 = vmatprep.subr.bf16.mxu1 %v14205_v52 }
 0x981   : > { %2544 = vmatpush1.bf16.msra.mxu1 %v11171_v55 }
 0x982   : > { %2545 = vmatprep.subr.bf16.mxu1 %v14205_v52 }
 0x985   : > { %2546 = vmatpush1.bf16.msra.mxu1 %v11178_v60 }
 0x986   : > { %2547 = vmatprep.subr.bf16.mxu1 %v14205_v52 }
 0x989   : > { %2548 = vmatpush1.bf16.msra.mxu1 %v11185_v63 }
 0x98a   : > { %2549 = vmatprep.subr.bf16.mxu1 %v14205_v52 }
 0x98d   : > { %2550 = vmatpush1.bf16.msra.mxu1 %v11192_v0 }
 0x98e   : > { %2551 = vmatprep.subr.bf16.mxu1 %v14205_v52 }
 0x991   : > { %2552 = vmatpush1.bf16.msra.mxu1 %v10496_v41 }
 0x992   : > { %2779 = vmatprep.subr.bf16.mxu1 %v14205_v52 }
 0x9e7   : > { %v2099_v59 = vpop.f32.mrb[48].mxu1 }
 0x9e8   : > { %v2101_v58 = vpop.f32.mrb[49].mxu1 }
 0x9e9   : > { %v2102_v6 = vpop.f32.mrb[50].mxu1 }
 0x9ea   : > { %v11494_v61 = vpack.c.bf16 %v2102_v6, %v2099_v59  ;;  %v2104_v28 = vpop.f32.mrb[51].mxu1 }
 0xa0f   : > { %v2650_v23 = vpop.f32.mrb[36].mxu0 }
 0xa10   : > { %v2652_v30 = vpop.f32.mrb[37].mxu0  ;;  %v2651_v27 = vadd.f32 %v2650_v23, %v10475_v15 }
 0xa11   : > { %v2654_v8 = vpop.f32.mrb[38].mxu0  ;;  %v2653_v33 = vadd.f32 %v2652_v30, %v10475_v15 }
 0xa12   : > { %v2656_v34 = vpop.f32.mrb[39].mxu0  ;;  %v2655_v17 = vadd.f32 %v2654_v8, %v10482_v22  ;;  %v2659_v35 = vmax.f32 %v2651_v27, 0.0 }
 0xa13   : > { %v2657_v46 = vadd.f32 %v2656_v34, %v10482_v22  ;;  %v2660_v31 = vmax.f32 %v2653_v33, 0.0 }
 0xa14   : > { %v2661_v51 = vmax.f32 %v2655_v17, 0.0 }
 0xa15   : > { %v2662_v19 = vmax.f32 %v2657_v46, 0.0 }
 0xa17   : > { %v2735_v26 = vpop.f32.mrb[40].mxu0 }
 0xa18   : > { %v2736_v21 = vadd.f32 %v2735_v26, %v10475_v15  ;;  %v2737_v18 = vpop.f32.mrb[41].mxu0 }
 0xa19   : > { %v2738_v9 = vadd.f32 %v2737_v18, %v10475_v15  ;;  %v2739_v56 = vpop.f32.mrb[42].mxu0 }
 0xa1a   : > { %v2744_v42 = vmax.f32 %v2736_v21, 0.0  ;;  %v2740_v7 = vadd.f32 %v2739_v56, %v10482_v22  ;;  %v2741_v25 = vpop.f32.mrb[43].mxu0 }
 0xa1b   : > { %v2745_v13 = vmax.f32 %v2738_v9, 0.0  ;;  %v2742_v20 = vadd.f32 %v2741_v25, %v10482_v22 }
 0xa1c   : > { %v11504_v5 = vmax.f32 %v2659_v35, %v2744_v42  ;;  %v2746_v57 = vmax.f32 %v2740_v7, 0.0 }
 0xa1d   : > { %v11506_v53 = vmax.f32 %v2660_v31, %v2745_v13  ;;  %v2747_v32 = vmax.f32 %v2742_v20, 0.0 }
 0xa1e   : > { %v11508_v36 = vmax.f32 %v2661_v51, %v2746_v57 }
 0xa1f   : > { %v11510_v40 = vmax.f32 %v2662_v19, %v2747_v32  ;;  %v2332_v37 = vpop.f32.mrb[52].mxu1 }
 0xa20   : > { %v2334_v16 = vpop.f32.mrb[53].mxu1 }
 0xa21   : > { %v2335_v29 = vpop.f32.mrb[54].mxu1 }
 0xa22   : > { %v11512_v59 = vpack.c.bf16 %v2335_v29, %v2332_v37  ;;  %v2337_v58 = vpop.f32.mrb[55].mxu1 }
 0xa24   : > { %2903 = vmatpush1.bf16.msra.mxu0 %v11512_v59 }
 0xa25   : > { %2904 = vmatprep.subr.bf16.mxu0 %v14205_v52 }
 0xa27   : > { %v2402_v6 = vpop.f32.mrb[56].mxu1 }
 0xa28   : > { %v2404_v28 = vpop.f32.mrb[57].mxu1  ;;  %v2403_v8 = vadd.f32 %v2402_v6, %v10475_v15  ;;  %v9802_v6 = vpack.i.bf16 %v11506_v53, %v11504_v5 }
 0xa29   : > { %v2406_v23 = vpop.f32.mrb[58].mxu1  ;;  %v2405_v34 = vadd.f32 %v2404_v28, %v10475_v15  ;;  %v9807_v28 = vpack.i.bf16 %v11510_v40, %v11508_v36 }
 0xa2a   : > { %v2408_v30 = vpop.f32.mrb[59].mxu1  ;;  %v2407_v33 = vadd.f32 %v2406_v23, %v10482_v22  ;;  %v2411_v9 = vmax.f32 %v2403_v8, 0.0 }
 0xa2b   : > { %v2409_v21 = vadd.f32 %v2408_v30, %v10482_v22  ;;  %v2412_v7 = vmax.f32 %v2405_v34, 0.0 }
 0xa2c   : > { %v2413_v13 = vmax.f32 %v2407_v33, 0.0 }
 0xa2d   : > { %v2414_v57 = vmax.f32 %v2409_v21, 0.0 }
 0xa2f   : > { %v2481_v27 = vpop.f32.mrb[60].mxu1 }
 0xa30   : > { %v2482_v26 = vadd.f32 %v2481_v27, %v10475_v15  ;;  %v2483_v17 = vpop.f32.mrb[61].mxu1 }
 0xa31   : > { %v2484_v18 = vadd.f32 %v2483_v17, %v10475_v15  ;;  %v2485_v46 = vpop.f32.mrb[62].mxu1 }
 0xa32   : > { %v2490_v56 = vmax.f32 %v2482_v26, 0.0  ;;  %v2486_v35 = vadd.f32 %v2485_v46, %v10482_v22  ;;  %v2487_v42 = vpop.f32.mrb[63].mxu1 }
 0xa33   : > { %v2491_v25 = vmax.f32 %v2484_v18, 0.0  ;;  %v2488_v31 = vadd.f32 %v2487_v42, %v10482_v22 }
 0xa34   : > { %v2494_v20 = vmax.f32 %v2411_v9, %v2490_v56  ;;  %v2492_v51 = vmax.f32 %v2486_v35, 0.0 }
 0xa35   : > { %v2495_v19 = vmax.f32 %v2412_v7, %v2491_v25  ;;  %v2493_v32 = vmax.f32 %v2488_v31, 0.0 }
 0xa36   : > { %v2496_v37 = vmax.f32 %v2413_v13, %v2492_v51 }
 0xa37   : > { %v2497_v16 = vmax.f32 %v2414_v57, %v2493_v32  ;;  %v9792_v29 = vpack.i.bf16 %v2495_v19, %v2494_v20 }
 0xa39   : > { %9793 = vrot.lane.b32.xlu1 %v9792_v29, %s10200_s24  ;;  %v9797_v58 = vpack.i.bf16 %v2497_v16, %v2496_v37  ;;  %v10124_v29 = vld [vmem:[%s14137_s3 + $0x14] ss:$8 sps:$4 sm:$0xff]  }
 0xa3b   : > { %9798 = vrot.lane.b32.xlu0 %v9797_v58, %s10200_s24  ;;  %v10125_v58 = vld [vmem:[%s14140_s6 + $0x8] sm:$0xff]  }
 0xa3d   : > { %9803 = vrot.lane.b32.xlu1 %v9802_v6, %s10200_s24  ;;  %v10126_v6 = vld [vmem:[%s14140_s6 + $0x10] sm:$0xff]  }
 0xa3f   : > { %9808 = vrot.lane.b32.xlu0 %v9807_v28, %s10200_s24  ;;  %v10127_v28 = vld [vmem:[%s14137_s3 + $0x10] ss:$8 sps:$4 sm:$0xff]  }
 0xa41   : > { %2822 = vrot.lane.b32.xlu1 %v11494_v61, %s10200_s24 }
 0xa43   : > { %2829 = vrot.lane.b32.xlu0 %v11512_v59, %s10200_s24 }
 0xa45   : > { %2825 = vrot.lane.b32.xlu1 %v11494_v61, %s10201_s25 }
 0xa47   : > { %2832 = vrot.lane.b32.xlu0 %v11512_v59, %s10201_s25 }
 0xaab   : > { %v9794_v23 = vpop.permute.xlu1 %9793 }
 0xaac   : > { %v9796_v30 = vunpack.i.h.bf16 %v9794_v23  ;;  %v9795_v8 = vunpack.i.l.bf16 %v9794_v23  ;;  %v10128_v23 = vld [vmem:[%s14140_s6 + $0x18] sm:$0xff]  }
 0xaad   : > { %v9799_v34 = vpop.permute.xlu0 %9798 }
 0xaae   : > { %v2510_v27 = vsel %vm488_vm5, %v9795_v8, %v9796_v30  ;;  %v9801_v33 = vunpack.i.h.bf16 %v9799_v34  ;;  %v9800_v26 = vunpack.i.l.bf16 %v9799_v34  ;;  %v2517_v9 = vmax.f32 %v2495_v19, %v9796_v30  ;;  %v10129_v30 = vld [vmem:[%s14140_s6 + $0x20] sm:$0xff]   ;;  %v10130_v8 = vld [vmem:[%s14140_s6 + $0x28] sm:$0xff]  }
 0xaaf   : > { %v9804_v17 = vpop.permute.xlu1 %9803  ;;  %v2516_v56 = vmax.f32 %v2494_v20, %v2510_v27 }
 0xab0   : > { %v2519_v21 = vmax.f32 %v2497_v16, %v9801_v33  ;;  %v2511_v18 = vsel %vm488_vm5, %v9800_v26, %v9801_v33  ;;  %v9806_v46 = vunpack.i.h.bf16 %v9804_v17  ;;  %v10123_v16 = vld [vmem:[%s14137_s3] ss:$8 sps:$4 sm:$0xff]  }
 0xab1   : > { %v2518_v35 = vmax.f32 %v2496_v37, %v2511_v18  ;;  %v9809_v42 = vpop.permute.xlu0 %9808  ;;  %v10122_v37 = vld [vmem:[%s14140_s6] sm:$0xff]   ;;  %v11643_v26 = vld [vmem:[%s14139_s5 + $0x8] sm:$0xff]  }
 0xab2   : > { %v9811_v7 = vunpack.i.h.bf16 %v9809_v42  ;;  %v2521_v25 = vpack.c.bf16 %v2519_v21, %v2517_v9  ;;  %v2771_v13 = vmax.f32 %v11506_v53, %v9806_v46  ;;  %v11636_v33 = vld [vmem:[%s14139_s5] sm:$0xff]   ;;  %v11657_v21 = vld [vmem:[%s14139_s5 + $0x18] sm:$0xff]   ;;  %v11678_v9 = vld [vmem:[%s14139_s5 + $0x30] sm:$0xff]  }
 0xab3   : > { %v2520_v31 = vpack.c.bf16 %v2518_v35, %v2516_v56  ;;  %v11664_v18 = vld [vmem:[%s14139_s5 + $0x20] sm:$0xff]   ;;  %v11685_v56 = vld [vmem:[%s14139_s5 + $0x38] sm:$0xff]  }
 0xab4   : > { %v2773_v51 = vmax.f32 %v11510_v40, %v9811_v7  ;;  %8450 = vmatprep.mubr.msk.bf16.mxu1 %vm781_vm9, %v2521_v25  ;;  %v11692_v35 = vld [vmem:[%s14139_s5 + $0x40] sm:$0xff]   ;;  %v11713_v25 = vld [vmem:[%s14139_s5 + $0x58] sm:$0xff]  }
 0xab5   : > { %v2830_v57 = vpop.permute.xlu0 %2829  ;;  %2558 = vmatmul.mubr.bf16.vlgmr.msra.gmra.mrb[64].mxu1 %v2520_v31  ;;  %v11720_v31 = vld [vmem:[%s14139_s5 + $0x60] sm:$0xff]  }
 0xab6   : > { %2905 = vmatpush1.bf16.msra.mxu0 %v2830_v57  ;;  %v2775_v32 = vpack.c.bf16 %v2773_v51, %v2771_v13  ;;  %2780 = vmatpush1.bf16.msra.mxu1 %v11072_v62  ;;  %v9810_v62 = vunpack.i.l.bf16 %v9809_v42  ;;  %v11699_v42 = vld [vmem:[%s14139_s5 + $0x48] sm:$0xff]  }
 0xab7   : > { %2906 = vmatprep.subr.bf16.mxu0 %v14205_v52  ;;  %2781 = vmatprep.subr.bf16.mxu1 %v14205_v52 }
 0xab8   : > { %8455 = vmatprep.mubr.msk.bf16.mxu1 %vm781_vm9, %v2775_v32 }
 0xab9   : > { %v2833_v20 = vpop.permute.xlu0 %2832 }
 0xaba   : > { %2907 = vmatpush1.bf16.msra.mxu0 %v2833_v20  ;;  %2782 = vmatpush1.bf16.msra.mxu1 %v11096_v54  ;;  %v9805_v54 = vunpack.i.l.bf16 %v9804_v17  ;;  %v11650_v17 = vld [vmem:[%s14139_s5 + $0x10] sm:$0xff]  }
 0xabb   : > { %2908 = vmatprep.subr.bf16.mxu0 %v14205_v52  ;;  %2783 = vmatprep.subr.bf16.mxu1 %v14205_v52 }
 0xabe   : > { %2784 = vmatpush1.bf16.msra.mxu1 %v11107_v24  ;;  %v2765_v24 = vsel %vm488_vm5, %v9810_v62, %v9811_v7  ;;  %v11706_v7 = vld [vmem:[%s14139_s5 + $0x50] sm:$0xff]  }
 0xabf   : > { %2785 = vmatprep.subr.bf16.mxu1 %v14205_v52 }
 0xac2   : > { %2786 = vmatpush1.bf16.msra.mxu1 %v11123_v3  ;;  %v2764_v3 = vsel %vm488_vm5, %v9805_v54, %v9806_v46  ;;  %v11671_v46 = vld [vmem:[%s14139_s5 + $0x28] sm:$0xff]  }
 0xac3   : > { %2787 = vmatprep.subr.bf16.mxu1 %v14205_v52 }
 0xac6   : > { %2788 = vmatpush1.bf16.msra.mxu1 %v11133_v1  ;;  %v2772_v1 = vmax.f32 %v11508_v36, %v2765_v24 }
 0xac7   : > { %2789 = vmatprep.subr.bf16.mxu1 %v14205_v52 }
 0xaca   : > { %2790 = vmatpush1.bf16.msra.mxu1 %v11142_v47  ;;  %v2770_v47 = vmax.f32 %v11504_v5, %v2764_v3  ;;  %v11726_v3 = vld [vmem:[%s10280_s23 + $0x20] sm:$0xff] }
 0xacb   : > { %2791 = vmatprep.subr.bf16.mxu1 %v14205_v52 }
 0xace   : > { %2792 = vmatpush1.bf16.msra.mxu1 %v11150_v48  ;;  %v2774_v48 = vpack.c.bf16 %v2772_v1, %v2770_v47  ;;  %v11730_v1 = vcombine.low %v11726_v3, %v11726_v3 }
 0xacf   : > { %2793 = vmatprep.subr.bf16.mxu1 %v14205_v52 }
 0xad2   : > { %2794 = vmatpush1.bf16.msra.mxu1 %v11157_v50  ;;  %v2823_v50 = vpop.permute.xlu1 %2822 }
 0xad3   : > { %2795 = vmatprep.subr.bf16.mxu1 %v14205_v52 }
 0xad6   : > { %2796 = vmatpush1.bf16.msra.mxu1 %v11164_v49  ;;  %v2826_v49 = vpop.permute.xlu1 %2825 }
 0xad7   : > { %2797 = vmatprep.subr.bf16.mxu1 %v14205_v52 }
 0xada   : > { %2798 = vmatpush1.bf16.msra.mxu1 %v11171_v55 }
 0xadb   : > { %2799 = vmatprep.subr.bf16.mxu1 %v14205_v52 }
 0xade   : > { %2800 = vmatpush1.bf16.msra.mxu1 %v11178_v60 }
 0xadf   : > { %2801 = vmatprep.subr.bf16.mxu1 %v14205_v52 }
 0xae2   : > { %2802 = vmatpush1.bf16.msra.mxu1 %v11185_v63 }
 0xae3   : > { %2803 = vmatprep.subr.bf16.mxu1 %v14205_v52 }
 0xae6   : > { %2804 = vmatpush1.bf16.msra.mxu1 %v11192_v0 }
 0xae7   : > { %2805 = vmatprep.subr.bf16.mxu1 %v14205_v52 }
 0xaea   : > { %2806 = vmatpush1.bf16.msra.mxu1 %v10496_v41 }
 0xaeb   : > { %2842 = vmatprep.subr.bf16.mxu1 %v14205_v52 }
 0xaed   : > { %2812 = vmatmul.mubr.bf16.vlgmr.msra.gmra.mrb[68].mxu1 %v2774_v48 }
 0xaee   : > { %2843 = vmatpush1.bf16.msra.mxu1 %v11494_v61  ;;  %8456 = vmatprep.mubr.msk.bf16.mxu1 %vm1604_vm10, %v11435_v2 }
 0xaef   : > { %2844 = vmatprep.subr.bf16.mxu1 %v14205_v52 }
 0xaf2   : > { %2845 = vmatpush1.bf16.msra.mxu1 %v2823_v50 }
 0xaf3   : > { %2846 = vmatprep.subr.bf16.mxu1 %v14205_v52 }
 0xaf6   : > { %2847 = vmatpush1.bf16.msra.mxu1 %v2826_v49 }
 0xaf7   : > { %2848 = vmatprep.subr.bf16.mxu1 %v14205_v52 }
 0xafa   : > { %2849 = vmatpush1.bf16.msra.mxu1 %v11512_v59 }
 0xafb   : > { %2850 = vmatprep.subr.bf16.mxu1 %v14205_v52 }
 0xafe   : > { %2851 = vmatpush1.bf16.msra.mxu1 %v2830_v57 }
 0xaff   : > { %2852 = vmatprep.subr.bf16.mxu1 %v14205_v52 }
 0xb02   : > { %2853 = vmatpush1.bf16.msra.mxu1 %v2833_v20 }
 0xb03   : > { %2854 = vmatprep.subr.bf16.mxu1 %v14205_v52 }
 0xb88   : > { %v2559_v55 = vpop.f32.mrb[64].mxu1 }
 0xb89   : > { %v2561_v60 = vpop.f32.mrb[65].mxu1 }
 0xb8a   : > { %v2562_v63 = vpop.f32.mrb[66].mxu1 }
 0xb8b   : > { %v2566_v0 = vpack.c.bf16 %v2562_v63, %v2559_v55  ;;  %v2564_v2 = vpop.f32.mrb[67].mxu1  ;;  %v11736_v63 = vshrl.u32 %v11730_v1, 16 }
 0xb8d   : > { %2839 = vrot.lane.b32.xlu0 %v2566_v0, %s10201_s25  ;;  %2836 = vrot.lane.b32.xlu1 %v2566_v0, %s10200_s24  ;;  %14208 = vst [vmem:[#allocation12_spill] sm:$0xff] %v11736_v63 }
 0xb8e   : > { %2855 = vmatpush1.bf16.msra.mxu1 %v2566_v0  ;;  %2909 = vmatpush1.bf16.msra.mxu0 %v2566_v0 }
 0xb8f   : > { %2856 = vmatprep.subr.bf16.mxu1 %v14205_v52  ;;  %2910 = vmatprep.subr.bf16.mxu0 %v14205_v52 }
 0xbc0   : > { %v2813_v61 = vpop.f32.mrb[68].mxu1 }
 0xbc1   : > { %v2815_v5 = vpop.f32.mrb[69].mxu1 }
 0xbc2   : > { %v2816_v53 = vpop.f32.mrb[70].mxu1 }
 0xbc3   : > { %v2820_v36 = vpack.c.bf16 %v2816_v53, %v2813_v61  ;;  %v2818_v40 = vpop.f32.mrb[71].mxu1  ;;  %v11740_v53 = vshll.u32 %v11730_v1, 16 }
 0xbc5   : > { %2899 = vrot.lane.b32.xlu0 %v2820_v36, %s10201_s25  ;;  %2896 = vrot.lane.b32.xlu1 %v2820_v36, %s10200_s24  ;;  %14209 = vst [vmem:[#allocation13_spill] sm:$0xff] %v11740_v53 }
 0xbff   : > { %v2837_v59 = vpop.permute.xlu1 %2836  ;;  %v2840_v19 = vpop.permute.xlu0 %2839 }
 0xc00   : > { %2857 = vmatpush1.bf16.msra.mxu1 %v2837_v59  ;;  %2911 = vmatpush1.bf16.msra.mxu0 %v2837_v59 }
 0xc01   : > { %2858 = vmatprep.subr.bf16.mxu1 %v14205_v52  ;;  %2912 = vmatprep.subr.bf16.mxu0 %v14205_v52 }
 0xc04   : > { %2859 = vmatpush1.bf16.msra.mxu1 %v2840_v19  ;;  %2913 = vmatpush1.bf16.msra.mxu0 %v2840_v19  ;;  %v11746_v19 = vcombine.high %v11726_v3, %v11726_v3 }
 0xc05   : > { %2914 = vmatprep.subr.bf16.mxu0 %v14205_v52  ;;  %9123 = vmatprep.subr.bf16.mxu1 %v10122_v37 }
 0xc07   : > { %2875 = vmatmul.mubr.bf16.vlgmr.msra.gmra.mrb[72].mxu1 %v10123_v16 }
 0xc08   : > { %2915 = vmatpush1.bf16.msra.mxu0 %v2820_v36  ;;  %8457 = vmatprep.mubr.msk.bf16.mxu1 %vm1604_vm10, %v10124_v29 }
 0xc09   : > { %2916 = vmatprep.subr.bf16.mxu0 %v14205_v52  ;;  %9124 = vmatpush3.bf16.msra.mxu1 %v10122_v37 }
 0xc0a   : > { %9125 = vmatprep.subr.bf16.mxu1 %v10125_v58 }
 0xc0d   : > { %9126 = vmatpush3.bf16.msra.mxu1 %v10125_v58  ;;  %v3052_v58 = vrot.slane %v11740_v53, 7 }
 0xc0e   : > { %9127 = vmatprep.subr.bf16.mxu1 %v10126_v6 }
 0xc0f   : > { %2883 = vmatmul.mubr.bf16.gmra.mrb[76].mxu1 %v10127_v28 }
 0xc11   : > { %9128 = vmatpush3.bf16.msra.mxu1 %v10126_v6 }
 0xc12   : > { %9129 = vmatprep.subr.bf16.mxu1 %v10128_v23 }
 0xc15   : > { %9130 = vmatpush3.bf16.msra.mxu1 %v10128_v23 }
 0xc16   : > { %9131 = vmatprep.subr.bf16.mxu1 %v10129_v30 }
 0xc19   : > { %9132 = vmatpush3.bf16.msra.mxu1 %v10129_v30 }
 0xc1a   : > { %9133 = vmatprep.subr.bf16.mxu1 %v10130_v8 }
 0xc1d   : > { %9134 = vmatpush3.bf16.msra.mxu1 %v10130_v8 }
 0xc1e   : > { %9135 = vmatprep.subr.bf16.mxu1 %v10977_v14 }
 0xc21   : > { %9136 = vmatpush3.bf16.msra.mxu1 %v10977_v14 }
 0xc37   : > { %v2897_v34 = vpop.permute.xlu1 %2896  ;;  %v2900_v27 = vpop.permute.xlu0 %2899 }
 0xc38   : > { %2917 = vmatpush1.bf16.msra.mxu0 %v2897_v34 }
 0xc39   : > { %2918 = vmatprep.subr.bf16.mxu0 %v14205_v52 }
 0xc3c   : > { %2919 = vmatpush1.bf16.msra.mxu0 %v2900_v27  ;;  %v11758_v27 = vshrl.u32 %v11746_v19, 16 }
 0xc3d   : > { %3251 = vmatprep.subr.bf16.mxu0 %v14205_v52 }
 0xc3f   : > { %2935 = vmatmul.mubr.bf16.vlgmr.msra.gmra.mrb[44].mxu0 %v10123_v16 }
 0xc40   : > { %8459 = vmatprep.mubr.msk.bf16.mxu0 %vm1604_vm10, %v10124_v29  ;;  %3252 = vmatpush1.bf16.msra.mxu0 %v11636_v33  ;;  %v3049_v29 = vrot.slane %v11736_v63, 6 }
 0xc41   : > { %3253 = vmatprep.subr.bf16.mxu0 %v14205_v52 }
 0xc44   : > { %3254 = vmatpush1.bf16.msra.mxu0 %v11643_v26 }
 0xc45   : > { %3255 = vmatprep.subr.bf16.mxu0 %v14205_v52 }
 0xc47   : > { %2943 = vmatmul.mubr.bf16.gmra.mrb[48].mxu0 %v10127_v28 }
 0xc48   : > { %3256 = vmatpush1.bf16.msra.mxu0 %v11650_v17 }
 0xc49   : > { %3257 = vmatprep.subr.bf16.mxu0 %v14205_v52 }
 0xc4c   : > { %3258 = vmatpush1.bf16.msra.mxu0 %v11657_v21 }
 0xc4d   : > { %3259 = vmatprep.subr.bf16.mxu0 %v14205_v52 }
 0xc50   : > { %3260 = vmatpush1.bf16.msra.mxu0 %v11664_v18 }
 0xc51   : > { %3261 = vmatprep.subr.bf16.mxu0 %v14205_v52 }
 0xc54   : > { %3262 = vmatpush1.bf16.msra.mxu0 %v11671_v46 }
 0xc55   : > { %3263 = vmatprep.subr.bf16.mxu0 %v14205_v52 }
 0xc58   : > { %3264 = vmatpush1.bf16.msra.mxu0 %v11678_v9 }
 0xc59   : > { %3265 = vmatprep.subr.bf16.mxu0 %v14205_v52 }
 0xc5c   : > { %3266 = vmatpush1.bf16.msra.mxu0 %v11685_v56 }
 0xc5d   : > { %3267 = vmatprep.subr.bf16.mxu0 %v14205_v52 }
 0xc60   : > { %3268 = vmatpush1.bf16.msra.mxu0 %v11692_v35 }
 0xc61   : > { %3269 = vmatprep.subr.bf16.mxu0 %v14205_v52 }
 0xc64   : > { %3270 = vmatpush1.bf16.msra.mxu0 %v11699_v42 }
 0xc65   : > { %3271 = vmatprep.subr.bf16.mxu0 %v14205_v52 }
 0xc68   : > { %3272 = vmatpush1.bf16.msra.mxu0 %v11706_v7 }
 0xc69   : > { %3273 = vmatprep.subr.bf16.mxu0 %v14205_v52 }
 0xc6c   : > { %3274 = vmatpush1.bf16.msra.mxu0 %v11713_v25 }
 0xc6d   : > { %3275 = vmatprep.subr.bf16.mxu0 %v14205_v52 }
 0xc70   : > { %3276 = vmatpush1.bf16.msra.mxu0 %v11720_v31 }
 0xc71   : > { %3277 = vmatprep.subr.bf16.mxu0 %v14205_v52 }
 0xc74   : > { %3278 = vmatpush1.bf16.msra.mxu0 %v10496_v41 }
 0xcda   : > { %v2876_v13 = vpop.f32.mrb[72].mxu1 }
 0xcdb   : > { %v2878_v51 = vpop.f32.mrb[73].mxu1  ;;  %v2877_v47 = vadd.f32 %v2876_v13, %v10949_v43  ;;  %v11761_v13 = vshll.u32 %v11746_v19, 16 }
 0xcdc   : > { %v2879_v57 = vpop.f32.mrb[74].mxu1 }
 0xcdd   : > { %v2881_v32 = vpop.f32.mrb[75].mxu1  ;;  %v2880_v50 = vadd.f32 %v2879_v57, %v10951_v44  ;;  %v2891_v0 = vmax.f32 %v2877_v47, 0.0 }
 0xcdf   : > { %v2892_v36 = vmax.f32 %v2880_v50, 0.0  ;;  %v3057_v50 = vrot.slane %v11758_v27, 6 }
 0xce2   : > { %v2884_v20 = vpop.f32.mrb[76].mxu1 }
 0xce3   : > { %v2886_v62 = vpop.f32.mrb[77].mxu1  ;;  %v2885_v37 = vadd.f32 %v2884_v20, %v10962_v45 }
 0xce4   : > { %v2887_v54 = vpop.f32.mrb[78].mxu1  ;;  %v3053_v62 = vor.u32 %v3052_v58, %v3049_v29  ;;  %v3142_v29 = vrot.slane %v11746_v19, 7  ;;  %v3153_v58 = vrot.slane %v11758_v27, 5 }
 0xce5   : > { %v2889_v24 = vpop.f32.mrb[79].mxu1  ;;  %v2888_v28 = vadd.f32 %v2887_v54, %v10972_v10  ;;  %v2893_v51 = vmax.f32 %v2885_v37, 0.0  ;;  %v3297_v37 = vrot.slane %v11736_v63, 7 }
 0xce7   : > { %v2894_v54 = vmax.f32 %v2888_v28, 0.0  ;;  %v11784_v28 = vor.u32 %v3297_v37, %v11740_v53 }
 0xd12   : > { %v2936_v48 = vpop.f32.mrb[44].mxu0 }
 0xd13   : > { %v2937_v49 = vadd.f32 %v2936_v48, %v10949_v43  ;;  %v2938_v55 = vpop.f32.mrb[45].mxu0 }
 0xd14   : > { %v2939_v60 = vpop.f32.mrb[46].mxu0  ;;  %v3069_v55 = vrot.slane %v11730_v1, 5 }
 0xd15   : > { %v2951_v2 = vmax.f32 %v2937_v49, 0.0  ;;  %v2940_v61 = vadd.f32 %v2939_v60, %v10951_v44  ;;  %v2941_v5 = vpop.f32.mrb[47].mxu0  ;;  %v3060_v49 = vrot.slane %v11761_v13, 7 }
 0xd16   : > { %v3151_v5 = vrot.slane %v11740_v53, 6 }
 0xd17   : > { %v11742_v40 = vmax.f32 %v2891_v0, %v2951_v2  ;;  %v2952_v59 = vmax.f32 %v2940_v61, 0.0  ;;  %v3061_v0 = vor.u32 %v3060_v49, %v3057_v50  ;;  %v3141_v2 = vrot.slane %v11730_v1, 7 }
 0xd18   : > { %v3150_v61 = vrot.slane %v11736_v63, 5 }
 0xd19   : > { %v11749_v16 = vmax.f32 %v2892_v36, %v2952_v59  ;;  %v3070_v36 = vrot.slane %v11746_v19, 5 }
 0xd1a   : > { %v2944_v6 = vpop.f32.mrb[48].mxu0  ;;  %v3152_v59 = vor.u32 %v3151_v5, %v3150_v61 }
 0xd1b   : > { %v9812_v23 = vpack.i.bf16 %v11749_v16, %v11742_v40  ;;  %v2945_v30 = vadd.f32 %v2944_v6, %v10962_v45  ;;  %v2946_v8 = vpop.f32.mrb[49].mxu0  ;;  %v3154_v6 = vrot.slane %v11761_v13, 6 }
 0xd1c   : > { %v2947_v34 = vpop.f32.mrb[50].mxu0  ;;  %v3308_v8 = vrot.slane %v11730_v1, 6 }
 0xd1d   : > { %v2953_v57 = vmax.f32 %v2945_v30, 0.0  ;;  %v2948_v32 = vadd.f32 %v2947_v34, %v10972_v10  ;;  %v2949_v20 = vpop.f32.mrb[51].mxu0  ;;  %9813 = vrot.lane.b32.xlu1 %v9812_v23, %s10200_s24  ;;  %v3155_v23 = vor.u32 %v3154_v6, %v3153_v58  ;;  %v3299_v30 = vrot.slane %v11758_v27, 7 }
 0xd1e   : > { %v3137_v20 = vrot.slane %v11761_v13, 1 }
 0xd1f   : > { %v2957_v24 = vmax.f32 %v2893_v51, %v2953_v57  ;;  %v2954_v47 = vmax.f32 %v2948_v32, 0.0  ;;  %v11793_v34 = vor.u32 %v3299_v30, %v11761_v13  ;;  %v3309_v51 = vrot.slane %v11746_v19, 6 }
 0xd20   : > { %v3135_v57 = vrot.slane %v11740_v53, 1 }
 0xd21   : > { %v2958_v48 = vmax.f32 %v2894_v54, %v2954_v47  ;;  %3062 = vrot.lane.b32.xlu1 %v3053_v62, %s10200_s24  ;;  %v3138_v54 = vor.u32 %v3137_v20, %v11758_v27 }
 0xd22   : > { %v3136_v32 = vor.u32 %v3135_v57, %v11736_v63 }
 0xd23   : > { %v9817_v60 = vpack.i.bf16 %v2958_v48, %v2957_v24 }
 0xd25   : > { %9818 = vrot.lane.b32.xlu0 %v9817_v60, %s10200_s24  ;;  %3071 = vrot.lane.b32.xlu1 %v3069_v55, %s10201_s25 }
 0xd29   : > { %3064 = vrot.lane.b32.xlu0 %v3061_v0, %s10200_s24  ;;  %3143 = vrot.lane.b32.xlu1 %v3141_v2, %s10200_s24 }
 0xd2d   : > { %3073 = vrot.lane.b32.xlu0 %v3070_v36, %s10201_s25  ;;  %3156 = vrot.lane.b32.xlu1 %v3152_v59, %s10201_s25 }
 0xd31   : > { %3145 = vrot.lane.b32.xlu0 %v3142_v29, %s10200_s24  ;;  %3301 = vrot.lane.b32.xlu1 %v11784_v28, %s10200_s24 }
 0xd35   : > { %3158 = vrot.lane.b32.xlu0 %v3155_v23, %s10201_s25  ;;  %3310 = vrot.lane.b32.xlu1 %v3308_v8, %s10201_s25 }
 0xd39   : > { %3303 = vrot.lane.b32.xlu0 %v11793_v34, %s10200_s24  ;;  %3382 = vrot.lane.b32.xlu1 %v11730_v1, %s10200_s24 }
 0xd3d   : > { %3312 = vrot.lane.b32.xlu0 %v3309_v51, %s10201_s25  ;;  %3389 = vrot.lane.b32.xlu1 %v3053_v62, %s10201_s25 }
 0xd41   : > { %3384 = vrot.lane.b32.xlu0 %v11746_v19, %s10200_s24  ;;  %3530 = vrot.lane.b32.xlu1 %v3136_v32, %s10200_s24 }
 0xd45   : > { %3391 = vrot.lane.b32.xlu0 %v3061_v0, %s10201_s25  ;;  %3537 = vrot.lane.b32.xlu1 %v3141_v2, %s10201_s25 }
 0xd49   : > { %3532 = vrot.lane.b32.xlu0 %v3138_v54, %s10200_s24 }
 0xd4d   : > { %3539 = vrot.lane.b32.xlu0 %v3142_v29, %s10201_s25 }
 0xd8f   : > { %v9814_v62 = vpop.permute.xlu1 %9813 }
 0xd90   : > { %v9816_v47 = vunpack.i.h.bf16 %v9814_v62  ;;  %v9815_v50 = vunpack.i.l.bf16 %v9814_v62 }
 0xd92   : > { %v2976_v49 = vmax.f32 %v11749_v16, %v9816_v47  ;;  %v2975_v55 = vmax.f32 %v11742_v40, %v9815_v50 }
 0xd93   : > { %v3063_v60 = vpop.permute.xlu1 %3062 }
 0xd94   : > { %v2979_v61 = vpack.c.bf16 %v2976_v49, %v2975_v55 }
 0xd96   : > { %9137 = vmatprep.mubr.msk.bf16.mxu1 %vm1789_vm11, %v2979_v61 }
 0xd97   : > { %v9819_v0 = vpop.permute.xlu0 %9818  ;;  %v3072_v5 = vpop.permute.xlu1 %3071 }
 0xd98   : > { %v9821_v2 = vunpack.i.h.bf16 %v9819_v0  ;;  %v9820_v36 = vunpack.i.l.bf16 %v9819_v0 }
 0xd9a   : > { %v2978_v59 = vmax.f32 %v2958_v48, %v9821_v2  ;;  %v2977_v37 = vmax.f32 %v2957_v24, %v9820_v36 }
 0xd9b   : > { %v3065_v58 = vpop.permute.xlu0 %3064  ;;  %v3144_v6 = vpop.permute.xlu1 %3143 }
 0xd9c   : > { %v2980_v29 = vpack.c.bf16 %v2978_v59, %v2977_v37  ;;  %v3066_v23 = vsel %vm488_vm5, %v3063_v60, %v3065_v58  ;;  %v3077_v40 = vsel %vm10348_vm7, %v11746_v19, %v3065_v58  ;;  %v11837_v60 = vld [vmem:[%s14135_s1] sm:$0xff]   ;;  %v14155_v37 = vrot.slane %v11746_v19, 1 }
 0xd9d   : > { %v3076_v48 = vsel %vm10348_vm7, %v11730_v1, %v3066_v23  ;;  %14210 = vst [vmem:[#allocation14_spill] sm:$0xff] %v11837_v60 }
 0xd9e   : > { %9138 = vmatmul.mubr.msk.bf16.vlgmr.msra.gmra.mrb[80].mxu1 %vm1789_vm11, %v2980_v29 }
 0xd9f   : > { %v3074_v16 = vpop.permute.xlu0 %3073  ;;  %3120 = vmatprep.mubr.bf16.mxu1 %v14205_v52  ;;  %v3157_v30 = vpop.permute.xlu1 %3156 }
 0xda0   : > { %v3083_v24 = vsel %vm505_vm6, %v3077_v40, %v3074_v16  ;;  %v3075_v8 = vsel %vm498_vm3, %v3072_v5, %v3074_v16  ;;  %v3377_v40 = vrot.slane %v11758_v27, 1  ;;  %v3378_v16 = vrot.slane %v11761_v13, 2 }
 0xda1   : > { %v3080_v51 = vsel %vm505_vm6, %v3076_v48, %v3075_v8  ;;  %v3086_v57 = vand.u32 %v3083_v24, %v10352_v39 }
 0xda2   : > { %v3084_v20 = vand.u32 %v3080_v51, %v10352_v39 }
 0xda3   : > { %3088 = vmatprep.subr.bf16.mxu1 %v3086_v57  ;;  %v3146_v62 = vpop.permute.xlu0 %3145  ;;  %v3302_v47 = vpop.permute.xlu1 %3301  ;;  %v3375_v57 = vrot.slane %v11740_v53, 2 }
 0xda4   : > { %3089 = vmatpush1.bf16.msra.mxu1 %v3084_v20  ;;  %v3147_v50 = vsel %vm488_vm5, %v3144_v6, %v3146_v62  ;;  %v3162_v49 = vsel %vm10348_vm7, %v3138_v54, %v3146_v62  ;;  %v14156_v6 = vrot.slane %v11730_v1, 1 }
 0xda5   : > { %v3161_v61 = vsel %vm10348_vm7, %v3136_v32, %v3147_v50  ;;  %v3379_v50 = vor.u32 %v3378_v16, %v3377_v40  ;;  %v5593_v40 = vrot.slane %v11200_v11, 2  ;;  %v5679_v16 = vrot.slane %v11200_v11, 3 }
 0xda7   : > { %v3159_v55 = vpop.permute.xlu0 %3158  ;;  %8466 = vmatmul.mubr.msk.bf16.vlgmr.msra.gmra.mrb[84].mxu1 %vm527_vm8, %v11837_v60  ;;  %v3311_v36 = vpop.permute.xlu1 %3310 }
 0xda8   : > { %v3168_v0 = vsel %vm505_vm6, %v3162_v49, %v3159_v55  ;;  %v3160_v5 = vsel %vm498_vm3, %v3157_v30, %v3159_v55  ;;  %3205 = vmatprep.mubr.bf16.mxu1 %v14205_v52  ;;  %v3374_v30 = vrot.slane %v11736_v63, 1 }
 0xda9   : > { %v3171_v54 = vand.u32 %v3168_v0, %v10352_v39  ;;  %v3165_v2 = vsel %vm505_vm6, %v3161_v61, %v3160_v5 }
 0xdaa   : > { %v3169_v59 = vand.u32 %v3165_v2, %v10352_v39  ;;  %v3376_v55 = vor.u32 %v3375_v57, %v3374_v30  ;;  %v5765_v30 = vrot.slane %v11200_v11, 4 }
 0xdab   : > { %v3304_v58 = vpop.permute.xlu0 %3303  ;;  %3173 = vmatprep.subr.bf16.mxu1 %v3171_v54  ;;  %v3383_v48 = vpop.permute.xlu1 %3382 }
 0xdac   : > { %3174 = vmatpush1.bf16.msra.mxu1 %v3169_v59  ;;  %v3305_v32 = vsel %vm488_vm5, %v3302_v47, %v3304_v58  ;;  %v3316_v29 = vsel %vm10348_vm7, %v14155_v37, %v3304_v58 }
 0xdad   : > { %v3315_v24 = vsel %vm10348_vm7, %v14156_v6, %v3305_v32 }
 0xdaf   : > { %v3313_v23 = vpop.permute.xlu0 %3312  ;;  %8467 = vmatmul.mubr.msk.bf16.vlgmr.msra.gmra.mrb[88].mxu1 %vm527_vm8, %v11837_v60  ;;  %v3390_v0 = vpop.permute.xlu1 %3389 }
 0xdb0   : > { %v3322_v8 = vsel %vm505_vm6, %v3316_v29, %v3313_v23  ;;  %v3314_v51 = vsel %vm498_vm3, %v3311_v36, %v3313_v23  ;;  %3359 = vmatprep.mubr.bf16.mxu1 %v14205_v52  ;;  %v5507_v23 = vrot.slane %v11200_v11, 1 }
 0xdb1   : > { %v3325_v20 = vand.u32 %v3322_v8, %v10352_v39  ;;  %v3319_v62 = vsel %vm505_vm6, %v3315_v24, %v3314_v51  ;;  %v5941_v24 = vrot.slane %v11200_v11, 6  ;;  %v6029_v8 = vrot.slane %v11200_v11, 7 }
 0xdb2   : > { %v3323_v47 = vand.u32 %v3319_v62, %v10352_v39 }
 0xdb3   : > { %v3385_v49 = vpop.permute.xlu0 %3384  ;;  %3327 = vmatprep.subr.bf16.mxu1 %v3325_v20 }
 0xdb4   : > { %3328 = vmatpush1.bf16.msra.mxu1 %v3323_v47  ;;  %v3386_v61 = vsel %vm488_vm5, %v3383_v48, %v3385_v49  ;;  %v3395_v5 = vsel %vm10348_vm7, %v3379_v50, %v3385_v49  ;;  %v5853_v48 = vrot.slane %v11200_v11, 5 }
 0xdb5   : > { %v3394_v2 = vsel %vm10348_vm7, %v3376_v55, %v3386_v61  ;;  %v14211_v55 = vld [vmem:[#allocation11_spill] sm:$0xff] }
 0xdb6   : > { %v6207_v61 = vrot.slane %v14211_v55, 1 }
 0xdb7   : > { %v3392_v54 = vpop.permute.xlu0 %3391  ;;  %8469 = vmatmul.mubr.msk.bf16.vlgmr.msra.gmra.mrb[92].mxu1 %vm527_vm8, %v11837_v60 }
 0xdb8   : > { %v3401_v36 = vsel %vm505_vm6, %v3395_v5, %v3392_v54  ;;  %v3393_v59 = vsel %vm498_vm3, %v3390_v0, %v3392_v54  ;;  %3438 = vmatprep.mubr.bf16.mxu1 %v14205_v52  ;;  %v6293_v0 = vrot.slane %v14211_v55, 2  ;;  %v6379_v54 = vrot.slane %v14211_v55, 3 }
 0xdb9   : > { %v3404_v58 = vand.u32 %v3401_v36, %v10352_v39  ;;  %v3398_v32 = vsel %vm505_vm6, %v3394_v2, %v3393_v59  ;;  %v6465_v2 = vrot.slane %v14211_v55, 4  ;;  %v6553_v36 = vrot.slane %v14211_v55, 5 }
 0xdba   : > { %v3402_v29 = vand.u32 %v3398_v32, %v10352_v39  ;;  %v6641_v59 = vrot.slane %v14211_v55, 6  ;;  %v6729_v32 = vrot.slane %v14211_v55, 7 }
 0xdbb   : > { %3406 = vmatprep.subr.bf16.mxu1 %v3404_v58 }
 0xdbc   : > { %3407 = vmatpush1.bf16.msra.mxu1 %v3402_v29 }
 0xdbd   : > { %3484 = vmatprep.subr.bf16.mxu1 %v14205_v52 }
 0xdbf   : > { %8470 = vmatmul.mubr.msk.bf16.vlgmr.msra.gmra.mrb[96].mxu1 %vm527_vm8, %v11837_v60 }
 0xdc0   : > { %3485 = vmatpush1.bf16.msra.mxu1 %v11636_v33  ;;  %v3527_v33 = vrot.slane %v11746_v19, 2 }
 0xdc1   : > { %3486 = vmatprep.subr.bf16.mxu1 %v14205_v52 }
 0xdc4   : > { %3487 = vmatpush1.bf16.msra.mxu1 %v11643_v26  ;;  %v11916_v26 = vpop.permute.xlu0 %3532 }
 0xdc5   : > { %3488 = vmatprep.subr.bf16.mxu1 %v14205_v52 }
 0xdc8   : > { %3489 = vmatpush1.bf16.msra.mxu1 %v11650_v17  ;;  %v3543_v17 = vsel %vm10348_vm7, %v3527_v33, %v11916_v26 }
 0xdc9   : > { %3490 = vmatprep.subr.bf16.mxu1 %v14205_v52 }
 0xdcc   : > { %3491 = vmatpush1.bf16.msra.mxu1 %v11657_v21  ;;  %v11921_v21 = vpop.permute.xlu0 %3539 }
 0xdcd   : > { %3492 = vmatprep.subr.bf16.mxu1 %v14205_v52 }
 0xdd0   : > { %3493 = vmatpush1.bf16.msra.mxu1 %v11664_v18  ;;  %v3549_v18 = vsel %vm505_vm6, %v3543_v17, %v11921_v21 }
 0xdd1   : > { %3494 = vmatprep.subr.bf16.mxu1 %v14205_v52 }
 0xdd4   : > { %3495 = vmatpush1.bf16.msra.mxu1 %v11671_v46  ;;  %v3552_v46 = vand.u32 %v3549_v18, %v10352_v39 }
 0xdd5   : > { %3496 = vmatprep.subr.bf16.mxu1 %v14205_v52 }
 0xdd6   : > { %3554 = vmatprep.subr.bf16.mxu0 %v3552_v46 }
 0xdd8   : > { %3497 = vmatpush1.bf16.msra.mxu1 %v11678_v9 }
 0xdd9   : > { %3498 = vmatprep.subr.bf16.mxu1 %v14205_v52 }
 0xddc   : > { %3499 = vmatpush1.bf16.msra.mxu1 %v11685_v56 }
 0xddd   : > { %3500 = vmatprep.subr.bf16.mxu1 %v14205_v52 }
 0xde0   : > { %3501 = vmatpush1.bf16.msra.mxu1 %v11692_v35 }
 0xde1   : > { %3502 = vmatprep.subr.bf16.mxu1 %v14205_v52 }
 0xde4   : > { %3503 = vmatpush1.bf16.msra.mxu1 %v11699_v42 }
 0xde5   : > { %3504 = vmatprep.subr.bf16.mxu1 %v14205_v52 }
 0xde8   : > { %3505 = vmatpush1.bf16.msra.mxu1 %v11706_v7 }
 0xde9   : > { %3506 = vmatprep.subr.bf16.mxu1 %v14205_v52 }
 0xdec   : > { %3507 = vmatpush1.bf16.msra.mxu1 %v11713_v25 }
 0xded   : > { %3508 = vmatprep.subr.bf16.mxu1 %v14205_v52 }
 0xdf0   : > { %3509 = vmatpush1.bf16.msra.mxu1 %v11720_v31 }
 0xdf1   : > { %3510 = vmatprep.subr.bf16.mxu1 %v14205_v52 }
 0xdf4   : > { %3511 = vmatpush1.bf16.msra.mxu1 %v10496_v41 }
 0xe71   : > { %v11949_v5 = vpop.f32.mrb[80].mxu1 }
 0xe72   : > { %v3021_v58 = vpop.f32.mrb[81].mxu1  ;;  %v6818_v29 = vrot.slane %v11949_v5, 7  ;;  %v6995_v33 = vrot.slane %v11949_v5, 1  ;;  %v7081_v18 = vrot.slane %v11949_v5, 2  ;;  %v7167_v46 = vrot.slane %v11949_v5, 3 }
 0xe73   : > { %v11958_v17 = vpop.f32.mrb[82].mxu1  ;;  %v7255_v37 = vrot.slane %v11949_v5, 4  ;;  %v7343_v6 = vrot.slane %v11949_v5, 5  ;;  %v7431_v50 = vrot.slane %v11949_v5, 6  ;;  %v5417_v47 = vrot.slane %v3021_v58, 7 }
 0xe74   : > { %v3024_v49 = vpop.f32.mrb[83].mxu1  ;;  %v5595_v62 = vrot.slane %v3021_v58, 1  ;;  %v5681_v20 = vrot.slane %v3021_v58, 2  ;;  %v5767_v57 = vrot.slane %v3021_v58, 3  ;;  %v5855_v51 = vrot.slane %v3021_v58, 4 }
 0xe75   : > { %v5943_v31 = vrot.slane %v3021_v58, 5  ;;  %v6031_v25 = vrot.slane %v3021_v58, 6  ;;  %v7518_v7 = vrot.slane %v11958_v17, 7  ;;  %v6118_v42 = vrot.slane %v3024_v49, 7 }
 0xe76   : > { %v6295_v35 = vrot.slane %v3024_v49, 1  ;;  %v6381_v56 = vrot.slane %v3024_v49, 2  ;;  %v6467_v9 = vrot.slane %v3024_v49, 3  ;;  %v6555_v10 = vrot.slane %v3024_v49, 4 }
 0xe77   : > { %v6643_v45 = vrot.slane %v3024_v49, 5  ;;  %v6731_v44 = vrot.slane %v3024_v49, 6  ;;  %v11968_v43 = vsel %vm5425_vm12, %v11200_v11, %v5417_v47  ;;  %v11971_v14 = vsel %vm5425_vm12, %v5507_v23, %v3021_v58 }
 0xe78   : > { %v11974_v41 = vsel %vm5425_vm12, %v5593_v40, %v5595_v62  ;;  %v11977_v60 = vsel %vm5425_vm12, %v5679_v16, %v5681_v20  ;;  %v11980_v39 = vsel %vm5425_vm12, %v5765_v30, %v5767_v57  ;;  %v11983_v53 = vsel %vm5425_vm12, %v5853_v48, %v5855_v51 }
 0xe79   : > { %v11986_v63 = vsel %vm5425_vm12, %v5941_v24, %v5943_v31  ;;  %v11989_v11 = vsel %vm5425_vm12, %v6029_v8, %v6031_v25  ;;  %v7695_v23 = vrot.slane %v11958_v17, 1  ;;  %v11994_v16 = vsel %vm5425_vm12, %v14211_v55, %v6118_v42 }
 0xe7a   : > { %v3122_v52 = vpop.f32.mrb[84].mxu1  ;;  %v11997_v20 = vsel %vm5425_vm12, %v6207_v61, %v3024_v49  ;;  %v12000_v30 = vsel %vm5425_vm12, %v6293_v0, %v6295_v35  ;;  %v7781_v48 = vrot.slane %v11958_v17, 2  ;;  %v12004_v24 = vsel %vm5425_vm12, %v6379_v54, %v6381_v56 }
 0xe7b   : > { %v3124_v40 = vpop.f32.mrb[85].mxu1  ;;  %v12007_v25 = vsel %vm5425_vm12, %v6465_v2, %v6467_v9  ;;  %v12010_v8 = vsel %vm5425_vm12, %v6553_v36, %v6555_v10  ;;  %v7867_v42 = vrot.slane %v11958_v17, 3  ;;  %v7955_v51 = vrot.slane %v11958_v17, 4 }
 0xe7c   : > { %v3126_v31 = vpop.f32.mrb[86].mxu1  ;;  %14212 = vst [vmem:[#allocation11_spill] sm:$0xff] %v12007_v25  ;;  %14213 = vst [vmem:[#allocation15_spill] sm:$0xff] %v12010_v8  ;;  %v12015_v35 = vsel %vm5425_vm12, %v6641_v59, %v6643_v45  ;;  %v12018_v62 = vsel %vm5425_vm12, %v6729_v32, %v6731_v44  ;;  %v8043_v56 = vrot.slane %v11958_v17, 5  ;;  %v8131_v47 = vrot.slane %v11958_v17, 6 }
 0xe7d   : > { %v3128_v57 = vpop.f32.mrb[87].mxu1  ;;  %14214 = vst [vmem:[#allocation16_spill] sm:$0xff] %v12015_v35  ;;  %14215 = vst [vmem:[#allocation17_spill] sm:$0xff] %v12018_v62  ;;  %v12024_v9 = vsel %vm5425_vm12, %v11198_v4, %v6818_v29  ;;  %v14217_v10 = vrot.slane %v11198_v4, 1  ;;  %v3123_v45 = vadd.f32 %v3122_v52, %v10475_v15  ;;  %v14219_v55 = vrot.slane %v11198_v4, 2 }
 0xe7e   : > { %14216 = vst [vmem:[#allocation18_spill] sm:$0xff] %v12024_v9  ;;  %v14220_v61 = vrot.slane %v11198_v4, 3  ;;  %v14222_v54 = vrot.slane %v11198_v4, 4  ;;  %v14224_v36 = vrot.slane %v11198_v4, 5  ;;  %v14226_v59 = vrot.slane %v11198_v4, 6 }
 0xe7f   : > { %v12030_v49 = vsel %vm5425_vm12, %v14217_v10, %v11949_v5  ;;  %v12036_v44 = vsel %vm5425_vm12, %v14219_v55, %v6995_v33  ;;  %v3125_v5 = vadd.f32 %v3124_v40, %v10475_v15  ;;  %v14228_v32 = vrot.slane %v11198_v4, 7 }
 0xe80   : > { %14218 = vst [vmem:[#allocation19_spill] sm:$0xff] %v12030_v49  ;;  %v12041_v0 = vsel %vm5425_vm12, %v14220_v61, %v7081_v18  ;;  %v12046_v2 = vsel %vm5425_vm12, %v14222_v54, %v7167_v46  ;;  %v12052_v52 = vsel %vm5425_vm12, %v14224_v36, %v7255_v37  ;;  %v12057_v58 = vsel %vm5425_vm12, %v14226_v59, %v7343_v6 }
 0xe81   : > { %14221 = vst [vmem:[#allocation20_spill] sm:$0xff] %v12041_v0  ;;  %14223 = vst [vmem:[#allocation21_spill] sm:$0xff] %v12046_v2  ;;  %v12062_v29 = vsel %vm5425_vm12, %v14228_v32, %v7431_v50  ;;  %v12066_v33 = vsel %vm5425_vm12, %v11202_v12, %v7518_v7  ;;  %v14231_v18 = vrot.slane %v11202_v12, 1  ;;  %v14233_v46 = vrot.slane %v11202_v12, 2 }
 0xe82   : > { %14225 = vst [vmem:[#allocation22_spill] sm:$0xff] %v12052_v52  ;;  %14227 = vst [vmem:[#allocation23_spill] sm:$0xff] %v12057_v58  ;;  %v14235_v4 = vrot.slane %v11202_v12, 3  ;;  %v3207_v40 = vpop.f32.mrb[88].mxu1  ;;  %v14237_v7 = vrot.slane %v11202_v12, 4  ;;  %v14239_v55 = vrot.slane %v11202_v12, 5  ;;  %v3127_v36 = vadd.f32 %v3126_v31, %v10482_v22 }
 0xe83   : > { %14229 = vst [vmem:[#allocation24_spill] sm:$0xff] %v12062_v29  ;;  %14230 = vst [vmem:[#allocation25_spill] sm:$0xff] %v12066_v33  ;;  %v12072_v37 = vsel %vm5425_vm12, %v14231_v18, %v11958_v17  ;;  %v12077_v6 = vsel %vm5425_vm12, %v14233_v46, %v7695_v23  ;;  %v14241_v61 = vrot.slane %v11202_v12, 6  ;;  %v14243_v54 = vrot.slane %v11202_v12, 7  ;;  %v3209_v59 = vpop.f32.mrb[89].mxu1 }
 0xe84   : > { %14232 = vst [vmem:[#allocation26_spill] sm:$0xff] %v12072_v37  ;;  %14234 = vst [vmem:[#allocation27_spill] sm:$0xff] %v12077_v6  ;;  %v12082_v50 = vsel %vm5425_vm12, %v14235_v4, %v7781_v48  ;;  %v12087_v10 = vsel %vm5425_vm12, %v14237_v7, %v7867_v42  ;;  %v12092_v17 = vsel %vm5425_vm12, %v14239_v55, %v7955_v51  ;;  %v3211_v18 = vpop.f32.mrb[90].mxu1  ;;  %v3131_v46 = vmax.f32 %v3123_v45, 0.0 }
 0xe85   : > { %14236 = vst [vmem:[#allocation28_spill] sm:$0xff] %v12082_v50  ;;  %14238 = vst [vmem:[#allocation29_spill] sm:$0xff] %v12087_v10  ;;  %v12097_v23 = vsel %vm5425_vm12, %v14241_v61, %v8043_v56  ;;  %v12102_v48 = vsel %vm5425_vm12, %v14243_v54, %v8131_v47  ;;  %v3208_v42 = vadd.f32 %v3207_v40, %v10475_v15  ;;  %v3213_v7 = vpop.f32.mrb[91].mxu1  ;;  %v3132_v55 = vmax.f32 %v3125_v5, 0.0 }
 0xe86   : > { %14240 = vst [vmem:[#allocation30_spill] sm:$0xff] %v12092_v17  ;;  %14242 = vst [vmem:[#allocation31_spill] sm:$0xff] %v12097_v23  ;;  %v3129_v32 = vadd.f32 %v3128_v57, %v10482_v22  ;;  %v3210_v51 = vadd.f32 %v3209_v59, %v10475_v15  ;;  %v3212_v56 = vadd.f32 %v3211_v18, %v10482_v22  ;;  %v3133_v61 = vmax.f32 %v3127_v36, 0.0 }
 0xe87   : > { %14244 = vst [vmem:[#allocation32_spill] sm:$0xff] %v12102_v48  ;;  %v3216_v4 = vmax.f32 %v3208_v42, 0.0  ;;  %v3214_v47 = vadd.f32 %v3213_v7, %v10482_v22 }
 0xe88   : > { %v3217_v12 = vmax.f32 %v3210_v51, 0.0  ;;  %v3218_v40 = vmax.f32 %v3212_v56, 0.0  ;;  %v3134_v54 = vmax.f32 %v3129_v32, 0.0  ;;  %v14245_v56 = vrot.slane %v11730_v1, 1 }
 0xe89   : > { %v12110_v31 = vmax.f32 %v3131_v46, %v3216_v4  ;;  %v3219_v57 = vmax.f32 %v3214_v47, 0.0  ;;  %v8463_v46 = vld [vmem:[%s10280_s23 + $0x28] sm:$0x77] }
 0xe8a   : > { %v12112_v48 = vmax.f32 %v3132_v55, %v3217_v12  ;;  %v12114_v59 = vmax.f32 %v3133_v61, %v3218_v40  ;;  %v3361_v5 = vpop.f32.mrb[92].mxu1  ;;  %v12126_v4 = vcombine.low %v11726_v3, %v8463_v46  ;;  %v12133_v55 = vcombine.high %v11726_v3, %v8463_v46 }
 0xe8b   : > { %v12118_v42 = vmax.f32 %v3134_v54, %v3219_v57  ;;  %v3363_v51 = vpop.f32.mrb[93].mxu1  ;;  %v3362_v7 = vadd.f32 %v3361_v5, %v10475_v15  ;;  %v14246_v61 = vrot.slane %v11746_v19, 1 }
 0xe8c   : > { %v9822_v45 = vpack.i.bf16 %v12112_v48, %v12110_v31  ;;  %v3365_v36 = vpop.f32.mrb[94].mxu1  ;;  %v3364_v12 = vadd.f32 %v3363_v51, %v10475_v15  ;;  %v12149_v51 = vshll.u32 %v12126_v4, 16 }
 0xe8d   : > { %v9827_v18 = vpack.i.bf16 %v12118_v42, %v12114_v59  ;;  %v3367_v32 = vpop.f32.mrb[95].mxu1  ;;  %v3366_v40 = vadd.f32 %v3365_v36, %v10482_v22  ;;  %v3370_v19 = vmax.f32 %v3362_v7, 0.0 }
 0xe8e   : > { %9823 = vrot.lane.b32.xlu1 %v9822_v45, %s10200_s24  ;;  %v12142_v45 = vshrl.u32 %v12126_v4, 16  ;;  %v3368_v5 = vadd.f32 %v3367_v32, %v10482_v22 }
 0xe8f   : > { %9828 = vrot.lane.b32.xlu0 %v9827_v18, %s10200_s24 }
 0xe92   : > { %3609 = vrot.lane.b32.xlu1 %v14245_v56, %s10200_s24  ;;  %v3440_v47 = vpop.f32.mrb[96].mxu1 }
 0xe93   : > { %3611 = vrot.lane.b32.xlu0 %v14246_v61, %s10200_s24  ;;  %v3441_v54 = vadd.f32 %v3440_v47, %v10475_v15  ;;  %v3442_v57 = vpop.f32.mrb[97].mxu1  ;;  %v12153_v47 = vshrl.u32 %v12133_v55, 16  ;;  %v3371_v61 = vmax.f32 %v3364_v12, 0.0  ;;  %v3768_v12 = vrot.slane %v12149_v51, 2 }
 0xe94   : > { %v3443_v3 = vadd.f32 %v3442_v57, %v10475_v15  ;;  %v3444_v18 = vpop.f32.mrb[98].mxu1  ;;  %v3372_v57 = vmax.f32 %v3366_v40, 0.0 }
 0xe95   : > { %v3449_v46 = vmax.f32 %v3441_v54, 0.0  ;;  %v3445_v36 = vadd.f32 %v3444_v18, %v10482_v22  ;;  %v3446_v56 = vpop.f32.mrb[99].mxu1  ;;  %v3765_v54 = vrot.slane %v12142_v45, 1  ;;  %v3373_v18 = vmax.f32 %v3368_v5, 0.0 }
 0xe96   : > { %3616 = vrot.lane.b32.xlu1 %v11784_v28, %s10201_s25  ;;  %v3450_v23 = vmax.f32 %v3443_v3, 0.0  ;;  %v3447_v32 = vadd.f32 %v3446_v56, %v10482_v22  ;;  %v12159_v28 = vshll.u32 %v12133_v55, 16  ;;  %v3773_v40 = vrot.slane %v12153_v47, 1 }
 0xe97   : > { %3618 = vrot.lane.b32.xlu0 %v11793_v34, %s10201_s25  ;;  %v12161_v17 = vmax.f32 %v3370_v19, %v3449_v46  ;;  %v3451_v7 = vmax.f32 %v3445_v36, 0.0  ;;  %v3866_v36 = vrot.slane %v12149_v51, 1 }
 0xe98   : > { %v12164_v10 = vmax.f32 %v3371_v61, %v3450_v23  ;;  %v3452_v50 = vmax.f32 %v3447_v32, 0.0  ;;  %v3776_v19 = vrot.slane %v12159_v28, 2  ;;  %v3769_v23 = vor.u32 %v3768_v12, %v3765_v54  ;;  %v3531_v54 = vpop.permute.xlu1 %3530 }
 0xe99   : > { %v12167_v3 = vmax.f32 %v3372_v57, %v3451_v7  ;;  %v3858_v61 = vrot.slane %v12133_v55, 2  ;;  %v3868_v32 = vrot.slane %v12159_v28, 1  ;;  %v3867_v57 = vor.u32 %v3866_v36, %v12142_v45 }
 0xe9a   : > { %v9832_v34 = vpack.i.bf16 %v12164_v10, %v12161_v17  ;;  %v12171_v56 = vmax.f32 %v3373_v18, %v3452_v50  ;;  %v3777_v5 = vor.u32 %v3776_v19, %v3773_v40  ;;  %v3857_v50 = vrot.slane %v12126_v4, 2 }
 0xe9b   : > { %v3869_v7 = vor.u32 %v3868_v32, %v12153_v47  ;;  %v3526_v12 = vrot.slane %v11730_v1, 2  ;;  %v3604_v19 = vrot.slane %v11758_v27, 2  ;;  %v14247_v32 = vld [vmem:[#allocation12_spill] sm:$0xff] }
 0xe9c   : > { %v9837_v46 = vpack.i.bf16 %v12171_v56, %v12167_v3  ;;  %9833 = vrot.lane.b32.xlu1 %v9832_v34, %s10200_s24  ;;  %v3538_v18 = vpop.permute.xlu1 %3537  ;;  %v3534_v34 = vsel %vm488_vm5, %v3531_v54, %v11916_v26  ;;  %v14248_v54 = vld [vmem:[#allocation13_spill] sm:$0xff] }
 0xe9d   : > { %v3541_v36 = vsel %vm498_vm3, %v3538_v18, %v11921_v21  ;;  %v3602_v37 = vrot.slane %v14248_v54, 3 }
 0xe9e   : > { %9838 = vrot.lane.b32.xlu0 %v9837_v46, %s10200_s24  ;;  %v3605_v46 = vrot.slane %v11761_v13, 3 }
 0xea0   : > { %3778 = vrot.lane.b32.xlu1 %v3769_v23, %s10200_s24  ;;  %v3606_v27 = vor.u32 %v3605_v46, %v3604_v19 }
 0xea2   : > { %3780 = vrot.lane.b32.xlu0 %v3777_v5, %s10200_s24 }
 0xea4   : > { %3785 = vrot.lane.b32.xlu1 %v12126_v4, %s10201_s25 }
 0xea6   : > { %3787 = vrot.lane.b32.xlu0 %v12133_v55, %s10201_s25 }
 0xea8   : > { %3859 = vrot.lane.b32.xlu1 %v3857_v50, %s10200_s24  ;;  %v3542_v50 = vsel %vm10348_vm7, %v3526_v12, %v3534_v34 }
 0xea9   : > { %v3546_v34 = vsel %vm505_vm6, %v3542_v50, %v3541_v36  ;;  %v14250_v36 = vmov 0  }
 0xeaa   : > { %3861 = vrot.lane.b32.xlu0 %v3858_v61, %s10200_s24 }
 0xeac   : > { %3870 = vrot.lane.b32.xlu1 %v3867_v57, %s10201_s25  ;;  %v3601_v57 = vrot.slane %v14247_v32, 2 }
 0xeae   : > { %3872 = vrot.lane.b32.xlu0 %v3869_v7, %s10201_s25  ;;  %v3603_v6 = vor.u32 %v3602_v37, %v3601_v57 }
 0xf00   : > { %v9824_v40 = vpop.permute.xlu1 %9823 }
 0xf01   : > { %v9826_v23 = vunpack.i.h.bf16 %v9824_v40  ;;  %v9825_v5 = vunpack.i.l.bf16 %v9824_v40  ;;  %v9829_v61 = vpop.permute.xlu0 %9828 }
 0xf02   : > { %v9831_v7 = vunpack.i.h.bf16 %v9829_v61  ;;  %v9830_v26 = vunpack.i.l.bf16 %v9829_v61 }
 0xf03   : > { %v3236_v1 = vsel %vm488_vm5, %v9825_v5, %v9826_v23  ;;  %v3243_v13 = vmax.f32 %v12112_v48, %v9826_v23  ;;  %v14249_v23 = vld [vmem:[#allocation2_spill] sm:$0xff] }
 0xf04   : > { %v3610_v33 = vpop.permute.xlu1 %3609  ;;  %v3245_v40 = vmax.f32 %v12118_v42, %v9831_v7  ;;  %v3237_v12 = vsel %vm488_vm5, %v9830_v26, %v9831_v7  ;;  %v3242_v21 = vmax.f32 %v12110_v31, %v3236_v1  ;;  %v3550_v42 = vand.u32 %v3546_v34, %v14249_v23 }
 0xf05   : > { %v3244_v18 = vmax.f32 %v12114_v59, %v3237_v12  ;;  %v3612_v32 = vpop.permute.xlu0 %3611 }
 0xf06   : > { %v3247_v5 = vpack.c.bf16 %v3245_v40, %v3243_v13  ;;  %v3622_v19 = vsel %vm10348_vm7, %v3606_v27, %v3612_v32  ;;  %v3613_v46 = vsel %vm488_vm5, %v3610_v33, %v3612_v32  ;;  %v14251_v13 = vld [vmem:[#allocation14_spill] sm:$0xff] }
 0xf07   : > { %v3246_v61 = vpack.c.bf16 %v3244_v18, %v3242_v21  ;;  %v3621_v31 = vsel %vm10348_vm7, %v3603_v6, %v3613_v46 }
 0xf08   : > { %v3617_v48 = vpop.permute.xlu1 %3616  ;;  %8468 = vmatprep.mubr.msk.bf16.mxu0 %vm781_vm9, %v3247_v5 }
 0xf09   : > { %3284 = vmatmul.mubr.bf16.vlgmr.msra.gmra.mrb[52].mxu0 %v3246_v61  ;;  %v3619_v50 = vpop.permute.xlu0 %3618 }
 0xf0a   : > { %3555 = vmatpush1.bf16.msra.mxu0 %v3550_v42  ;;  %v3628_v59 = vsel %vm505_vm6, %v3622_v19, %v3619_v50  ;;  %v3620_v37 = vsel %vm498_vm3, %v3617_v48, %v3619_v50  ;;  %3586 = vmatprep.mubr.bf16.mxu0 %v14250_v36  ;;  %v3759_v19 = vrot.slane %v12133_v55, 3  ;;  %v3758_v42 = vrot.slane %v12126_v4, 3 }
 0xf0b   : > { %v3631_v57 = vand.u32 %v3628_v59, %v14249_v23  ;;  %v3625_v33 = vsel %vm505_vm6, %v3621_v31, %v3620_v37  ;;  %v3853_v55 = vrot.slane %v12159_v28, 4  ;;  %v3849_v4 = vrot.slane %v12142_v45, 3 }
 0xf0c   : > { %v3629_v7 = vand.u32 %v3625_v33, %v14249_v23  ;;  %v3850_v33 = vrot.slane %v12149_v51, 4 }
 0xf0d   : > { %3633 = vmatprep.subr.bf16.mxu0 %v3631_v57 }
 0xf0e   : > { %v9834_v1 = vpop.permute.xlu1 %9833 }
 0xf0f   : > { %v9836_v26 = vunpack.i.h.bf16 %v9834_v1  ;;  %v9835_v54 = vunpack.i.l.bf16 %v9834_v1  ;;  %v12256_v1 = vld [vmem:[%s14139_s5] sm:$0xff]  }
 0xf10   : > { %v9839_v27 = vpop.permute.xlu0 %9838 }
 0xf11   : > { %8472 = vmatmul.mubr.msk.bf16.vlgmr.msra.gmra.mrb[56].mxu0 %vm527_vm8, %v14251_v13  ;;  %v3469_v6 = vsel %vm488_vm5, %v9835_v54, %v9836_v26  ;;  %v9841_v40 = vunpack.i.h.bf16 %v9839_v27  ;;  %v9840_v12 = vunpack.i.l.bf16 %v9839_v27  ;;  %v3476_v21 = vmax.f32 %v12164_v10, %v9836_v26  ;;  %v12266_v27 = vld [vmem:[%s14139_s5 + $0x8] sm:$0xff]  }
 0xf12   : > { %3634 = vmatpush1.bf16.msra.mxu0 %v3629_v7  ;;  %3665 = vmatprep.mubr.bf16.mxu0 %v14250_v36  ;;  %v3779_v34 = vpop.permute.xlu1 %3778  ;;  %v3475_v5 = vmax.f32 %v12161_v17, %v3469_v6  ;;  %v3852_v17 = vrot.slane %v12153_v47, 3  ;;  %v3851_v54 = vor.u32 %v3850_v33, %v3849_v4  ;;  %v14252_v4 = vld [vmem:[#allocation5_spill] sm:$0xff] }
 0xf13   : > { %3711 = vmatprep.subr.bf16.mxu0 %v14250_v36  ;;  %v3478_v18 = vmax.f32 %v12171_v56, %v9841_v40  ;;  %v3470_v32 = vsel %vm488_vm5, %v9840_v12, %v9841_v40 }
 0xf14   : > { %v3477_v61 = vmax.f32 %v12167_v3, %v3470_v32  ;;  %v3781_v46 = vpop.permute.xlu0 %3780  ;;  %v3854_v51 = vor.u32 %v3853_v55, %v3852_v17  ;;  %v12366_v17 = vld [vmem:[%s14139_s5 + $0x58] sm:$0xff]   ;;  %v12375_v55 = vld [vmem:[%s14139_s5 + $0x60] sm:$0xff]  }
 0xf15   : > { %v3480_v48 = vpack.c.bf16 %v3478_v18, %v3476_v21  ;;  %v3782_v50 = vsel %vm488_vm5, %v3779_v34, %v3781_v46  ;;  %v3791_v10 = vsel %vm10348_vm7, %v3759_v19, %v3781_v46 }
 0xf16   : > { %v3786_v31 = vpop.permute.xlu1 %3785  ;;  %v3479_v59 = vpack.c.bf16 %v3477_v61, %v3475_v5  ;;  %v3790_v3 = vsel %vm10348_vm7, %v3758_v42, %v3782_v50  ;;  %v12283_v5 = vld [vmem:[%s14139_s5 + $0x10] sm:$0xff]   ;;  %v12303_v42 = vld [vmem:[%s14139_s5 + $0x20] sm:$0xff]   ;;  %v12312_v50 = vld [vmem:[%s14139_s5 + $0x28] sm:$0xff]  }
 0xf17   : > { %8471 = vmatprep.mubr.msk.bf16.mxu1 %vm781_vm9, %v3480_v48  ;;  %v12293_v48 = vld [vmem:[%s14139_s5 + $0x18] sm:$0xff]  }
 0xf18   : > { %v3788_v56 = vpop.permute.xlu0 %3787  ;;  %3517 = vmatmul.mubr.bf16.vlgmr.msra.gmra.mrb[100].mxu1 %v3479_v59  ;;  %v12339_v59 = vld [vmem:[%s14139_s5 + $0x40] sm:$0xff]  }
 0xf19   : > { %8473 = vmatmul.mubr.msk.bf16.vlgmr.msra.gmra.mrb[60].mxu0 %vm527_vm8, %v14251_v13  ;;  %v3797_v37 = vsel %vm505_vm6, %v3791_v10, %v3788_v56  ;;  %v3789_v57 = vsel %vm498_vm3, %v3786_v31, %v3788_v56  ;;  %3834 = vmatprep.mubr.bf16.mxu1 %v14250_v36  ;;  %v12330_v31 = vld [vmem:[%s14139_s5 + $0x38] sm:$0xff]   ;;  %v12348_v10 = vld [vmem:[%s14139_s5 + $0x48] sm:$0xff]   ;;  %v12357_v56 = vld [vmem:[%s14139_s5 + $0x50] sm:$0xff]  }
 0xf1a   : > { %3712 = vmatpush1.bf16.msra.mxu0 %v12256_v1  ;;  %v3800_v45 = vand.u32 %v3797_v37, %v14249_v23  ;;  %v3794_v47 = vsel %vm505_vm6, %v3790_v3, %v3789_v57  ;;  %v3860_v28 = vpop.permute.xlu1 %3859 }
 0xf1b   : > { %3713 = vmatprep.subr.bf16.mxu0 %v14250_v36  ;;  %v3798_v7 = vand.u32 %v3794_v47, %v14249_v23 }
 0xf1c   : > { %3802 = vmatprep.subr.bf16.mxu1 %v3800_v45  ;;  %v3862_v26 = vpop.permute.xlu0 %3861 }
 0xf1d   : > { %3803 = vmatpush1.bf16.msra.mxu1 %v3798_v7  ;;  %v3863_v6 = vsel %vm488_vm5, %v3860_v28, %v3862_v26  ;;  %v3876_v12 = vsel %vm10348_vm7, %v3854_v51, %v3862_v26 }
 0xf1e   : > { %3714 = vmatpush1.bf16.msra.mxu0 %v12266_v27  ;;  %v3871_v40 = vpop.permute.xlu1 %3870  ;;  %v3875_v21 = vsel %vm10348_vm7, %v3851_v54, %v3863_v6 }
 0xf1f   : > { %3715 = vmatprep.subr.bf16.mxu0 %v14250_v36 }
 0xf20   : > { %v3873_v34 = vpop.permute.xlu0 %3872  ;;  %8477 = vmatmul.mubr.msk.bf16.vlgmr.msra.gmra.mrb[104].mxu1 %vm527_vm8, %v14251_v13 }
 0xf21   : > { %v3882_v18 = vsel %vm505_vm6, %v3876_v12, %v3873_v34  ;;  %v3874_v32 = vsel %vm498_vm3, %v3871_v40, %v3873_v34  ;;  %3919 = vmatprep.mubr.bf16.mxu1 %v14250_v36 }
 0xf22   : > { %3716 = vmatpush1.bf16.msra.mxu0 %v12283_v5  ;;  %v3885_v61 = vand.u32 %v3882_v18, %v14249_v23  ;;  %v3879_v19 = vsel %vm505_vm6, %v3875_v21, %v3874_v32 }
 0xf23   : > { %3717 = vmatprep.subr.bf16.mxu0 %v14250_v36  ;;  %v3883_v46 = vand.u32 %v3879_v19, %v14249_v23 }
 0xf24   : > { %3887 = vmatprep.subr.bf16.mxu1 %v3885_v61 }
 0xf25   : > { %3888 = vmatpush1.bf16.msra.mxu1 %v3883_v46 }
 0xf26   : > { %3718 = vmatpush1.bf16.msra.mxu0 %v12293_v48  ;;  %3965 = vmatprep.subr.bf16.mxu1 %v14250_v36 }
 0xf27   : > { %3719 = vmatprep.subr.bf16.mxu0 %v14250_v36 }
 0xf28   : > { %8478 = vmatmul.mubr.msk.bf16.vlgmr.msra.gmra.mrb[108].mxu1 %vm527_vm8, %v14251_v13  ;;  %v12321_v13 = vld [vmem:[%s14139_s5 + $0x30] sm:$0xff]  }
 0xf29   : > { %3966 = vmatpush1.bf16.msra.mxu1 %v12256_v1 }
 0xf2a   : > { %3720 = vmatpush1.bf16.msra.mxu0 %v12303_v42  ;;  %3967 = vmatprep.subr.bf16.mxu1 %v14250_v36 }
 0xf2b   : > { %3721 = vmatprep.subr.bf16.mxu0 %v14250_v36 }
 0xf2d   : > { %3968 = vmatpush1.bf16.msra.mxu1 %v12266_v27 }
 0xf2e   : > { %3722 = vmatpush1.bf16.msra.mxu0 %v12312_v50  ;;  %3969 = vmatprep.subr.bf16.mxu1 %v14250_v36 }
 0xf2f   : > { %3723 = vmatprep.subr.bf16.mxu0 %v14250_v36 }
 0xf31   : > { %3970 = vmatpush1.bf16.msra.mxu1 %v12283_v5 }
 0xf32   : > { %3724 = vmatpush1.bf16.msra.mxu0 %v12321_v13  ;;  %3971 = vmatprep.subr.bf16.mxu1 %v14250_v36 }
 0xf33   : > { %3725 = vmatprep.subr.bf16.mxu0 %v14250_v36 }
 0xf35   : > { %3972 = vmatpush1.bf16.msra.mxu1 %v12293_v48 }
 0xf36   : > { %3726 = vmatpush1.bf16.msra.mxu0 %v12330_v31  ;;  %3973 = vmatprep.subr.bf16.mxu1 %v14250_v36 }
 0xf37   : > { %3727 = vmatprep.subr.bf16.mxu0 %v14250_v36 }
 0xf39   : > { %3974 = vmatpush1.bf16.msra.mxu1 %v12303_v42 }
 0xf3a   : > { %3728 = vmatpush1.bf16.msra.mxu0 %v12339_v59  ;;  %3975 = vmatprep.subr.bf16.mxu1 %v14250_v36 }
 0xf3b   : > { %3729 = vmatprep.subr.bf16.mxu0 %v14250_v36 }
 0xf3d   : > { %3976 = vmatpush1.bf16.msra.mxu1 %v12312_v50 }
 0xf3e   : > { %3730 = vmatpush1.bf16.msra.mxu0 %v12348_v10  ;;  %3977 = vmatprep.subr.bf16.mxu1 %v14250_v36 }
 0xf3f   : > { %3731 = vmatprep.subr.bf16.mxu0 %v14250_v36 }
 0xf41   : > { %3978 = vmatpush1.bf16.msra.mxu1 %v12321_v13 }
 0xf42   : > { %3732 = vmatpush1.bf16.msra.mxu0 %v12357_v56  ;;  %3979 = vmatprep.subr.bf16.mxu1 %v14250_v36 }
 0xf43   : > { %3733 = vmatprep.subr.bf16.mxu0 %v14250_v36 }
 0xf45   : > { %3980 = vmatpush1.bf16.msra.mxu1 %v12330_v31 }
 0xf46   : > { %3734 = vmatpush1.bf16.msra.mxu0 %v12366_v17  ;;  %3981 = vmatprep.subr.bf16.mxu1 %v14250_v36 }
 0xf47   : > { %3735 = vmatprep.subr.bf16.mxu0 %v14250_v36 }
 0xf49   : > { %3982 = vmatpush1.bf16.msra.mxu1 %v12339_v59 }
 0xf4a   : > { %3736 = vmatpush1.bf16.msra.mxu0 %v12375_v55  ;;  %3983 = vmatprep.subr.bf16.mxu1 %v14250_v36 }
 0xf4b   : > { %3737 = vmatprep.subr.bf16.mxu0 %v14250_v36 }
 0xf4d   : > { %3984 = vmatpush1.bf16.msra.mxu1 %v12348_v10 }
 0xf4e   : > { %3738 = vmatpush1.bf16.msra.mxu0 %v14252_v4  ;;  %3985 = vmatprep.subr.bf16.mxu1 %v14250_v36 }
 0xf4f   : > { %4028 = vmatprep.subr.bf16.mxu0 %v14250_v36 }
 0xf51   : > { %3986 = vmatpush1.bf16.msra.mxu1 %v12357_v56 }
 0xf52   : > { %3987 = vmatprep.subr.bf16.mxu1 %v14250_v36 }
 0xf55   : > { %3988 = vmatpush1.bf16.msra.mxu1 %v12366_v17 }
 0xf56   : > { %3989 = vmatprep.subr.bf16.mxu1 %v14250_v36 }
 0xf59   : > { %3990 = vmatpush1.bf16.msra.mxu1 %v12375_v55 }
 0xf5a   : > { %3991 = vmatprep.subr.bf16.mxu1 %v14250_v36 }
 0xf5d   : > { %3992 = vmatpush1.bf16.msra.mxu1 %v14252_v4 }
 0xf5e   : > { %4088 = vmatprep.subr.bf16.mxu1 %v14250_v36 }
 0xfdc   : > { %v3285_v3 = vpop.f32.mrb[52].mxu0 }
 0xfdd   : > { %v3287_v37 = vpop.f32.mrb[53].mxu0 }
 0xfde   : > { %v3288_v57 = vpop.f32.mrb[54].mxu0 }
 0xfdf   : > { %v12393_v33 = vpack.c.bf16 %v3288_v57, %v3285_v3  ;;  %v3290_v45 = vpop.f32.mrb[55].mxu0 }
 0xfe4   : > { %v3588_v47 = vpop.f32.mrb[56].mxu0 }
 0xfe5   : > { %v3590_v28 = vpop.f32.mrb[57].mxu0  ;;  %v3589_v26 = vadd.f32 %v3588_v47, %v10475_v15 }
 0xfe6   : > { %v3592_v7 = vpop.f32.mrb[58].mxu0  ;;  %v3591_v54 = vadd.f32 %v3590_v28, %v10475_v15 }
 0xfe7   : > { %v3594_v51 = vpop.f32.mrb[59].mxu0  ;;  %v3593_v12 = vadd.f32 %v3592_v7, %v10482_v22  ;;  %v3597_v3 = vmax.f32 %v3589_v26, 0.0 }
 0xfe8   : > { %v3595_v32 = vadd.f32 %v3594_v51, %v10482_v22  ;;  %v3598_v29 = vmax.f32 %v3591_v54, 0.0 }
 0xfea   : > { %v3600_v51 = vmax.f32 %v3595_v32, 0.0 }
 0xfeb   : > { %v3518_v6 = vpop.f32.mrb[100].mxu1 }
 0xfec   : > { %v3667_v40 = vpop.f32.mrb[60].mxu0  ;;  %v3520_v21 = vpop.f32.mrb[101].mxu1 }
 0xfed   : > { %v3668_v34 = vadd.f32 %v3667_v40, %v10475_v15  ;;  %v3669_v18 = vpop.f32.mrb[61].mxu0  ;;  %v3521_v19 = vpop.f32.mrb[102].mxu1  ;;  %v3599_v21 = vmax.f32 %v3593_v12, 0.0 }
 0xfee   : > { %v3670_v61 = vadd.f32 %v3669_v18, %v10475_v15  ;;  %v3671_v46 = vpop.f32.mrb[62].mxu0  ;;  %v12401_v57 = vpack.c.bf16 %v3521_v19, %v3518_v6  ;;  %v3523_v47 = vpop.f32.mrb[103].mxu1 }
 0xfef   : > { %v3676_v37 = vmax.f32 %v3668_v34, 0.0  ;;  %v3672_v45 = vadd.f32 %v3671_v46, %v10482_v22  ;;  %v3673_v28 = vpop.f32.mrb[63].mxu0 }
 0xff0   : > { %v3677_v7 = vmax.f32 %v3670_v61, 0.0  ;;  %v3674_v40 = vadd.f32 %v3673_v28, %v10482_v22 }
 0xff1   : > { %v3680_v58 = vmax.f32 %v3597_v3, %v3676_v37  ;;  %v3678_v52 = vmax.f32 %v3672_v45, 0.0 }
 0xff2   : > { %v3681_v2 = vmax.f32 %v3598_v29, %v3677_v7  ;;  %v3679_v18 = vmax.f32 %v3674_v40, 0.0 }
 0xff3   : > { %v3682_v0 = vmax.f32 %v3599_v21, %v3678_v52  ;;  %v3836_v34 = vpop.f32.mrb[104].mxu1 }
 0xff4   : > { %v9842_v62 = vpack.i.bf16 %v3681_v2, %v3680_v58  ;;  %v3683_v26 = vmax.f32 %v3600_v51, %v3679_v18  ;;  %v3838_v6 = vpop.f32.mrb[105].mxu1  ;;  %v3837_v54 = vadd.f32 %v3836_v34, %v10475_v15 }
 0xff5   : > { %v3840_v35 = vpop.f32.mrb[106].mxu1  ;;  %v3839_v12 = vadd.f32 %v3838_v6, %v10475_v15 }
 0xff6   : > { %v9847_v19 = vpack.i.bf16 %v3683_v26, %v3682_v0  ;;  %9843 = vrot.lane.b32.xlu1 %v9842_v62, %s10200_s24  ;;  %v3842_v46 = vpop.f32.mrb[107].mxu1  ;;  %v3841_v29 = vadd.f32 %v3840_v35, %v10482_v22  ;;  %v3845_v47 = vmax.f32 %v3837_v54, 0.0 }
 0xff7   : > { %v3843_v3 = vadd.f32 %v3842_v46, %v10482_v22  ;;  %v3846_v40 = vmax.f32 %v3839_v12, 0.0 }
 0xff8   : > { %9848 = vrot.lane.b32.xlu0 %v9847_v19, %s10200_s24  ;;  %v3847_v18 = vmax.f32 %v3841_v29, 0.0 }
 0xff9   : > { %v3848_v6 = vmax.f32 %v3843_v3, 0.0 }
 0xffb   : > { %v3921_v61 = vpop.f32.mrb[108].mxu1 }
 0xffc   : > { %v3922_v52 = vadd.f32 %v3921_v61, %v10475_v15  ;;  %v3923_v32 = vpop.f32.mrb[109].mxu1 }
 0xffd   : > { %v3924_v37 = vadd.f32 %v3923_v32, %v10475_v15  ;;  %v3925_v45 = vpop.f32.mrb[110].mxu1 }
 0xffe   : > { %v3930_v62 = vmax.f32 %v3922_v52, 0.0  ;;  %v3926_v28 = vadd.f32 %v3925_v45, %v10482_v22  ;;  %v3927_v7 = vpop.f32.mrb[111].mxu1 }
 0xfff   : > { %v3931_v21 = vmax.f32 %v3924_v37, 0.0  ;;  %v3928_v51 = vadd.f32 %v3927_v7, %v10482_v22 }
0x1000   : > { %v3934_v34 = vmax.f32 %v3845_v47, %v3930_v62  ;;  %v3932_v35 = vmax.f32 %v3926_v28, 0.0 }
0x1001   : > { %v3935_v19 = vmax.f32 %v3846_v40, %v3931_v21  ;;  %v3933_v61 = vmax.f32 %v3928_v51, 0.0 }
0x1002   : > { %v3936_v8 = vmax.f32 %v3847_v18, %v3932_v35  ;;  %v10158_v18 = vld [vmem:[%s14137_s3 + $0x4] ss:$8 sps:$4 sm:$0xff]  }
0x1003   : > { %v9852_v46 = vpack.i.bf16 %v3935_v19, %v3934_v34  ;;  %v3937_v25 = vmax.f32 %v3848_v6, %v3933_v61 }
0x1005   : > { %v9857_v32 = vpack.i.bf16 %v3937_v25, %v3936_v8  ;;  %9853 = vrot.lane.b32.xlu1 %v9852_v46, %s10200_s24 }
0x1007   : > { %9858 = vrot.lane.b32.xlu0 %v9857_v32, %s10200_s24 }
0x1009   : > { %4008 = vrot.lane.b32.xlu1 %v12393_v33, %s10200_s24 }
0x100b   : > { %4015 = vrot.lane.b32.xlu0 %v12401_v57, %s10200_s24 }
0x100d   : > { %4011 = vrot.lane.b32.xlu1 %v12393_v33, %s10201_s25 }
0x100f   : > { %4018 = vrot.lane.b32.xlu0 %v12401_v57, %s10201_s25 }
0x1068   : > { %v9844_v54 = vpop.permute.xlu1 %9843 }
0x1069   : > { %v9846_v12 = vunpack.i.h.bf16 %v9844_v54  ;;  %v9845_v29 = vunpack.i.l.bf16 %v9844_v54 }
0x106a   : > { %v9849_v52 = vpop.permute.xlu0 %9848 }
0x106b   : > { %v3696_v3 = vsel %vm488_vm5, %v9845_v29, %v9846_v12  ;;  %v9851_v37 = vunpack.i.h.bf16 %v9849_v52  ;;  %v9850_v45 = vunpack.i.l.bf16 %v9849_v52  ;;  %v3703_v47 = vmax.f32 %v3681_v2, %v9846_v12 }
0x106c   : > { %v3702_v7 = vmax.f32 %v3680_v58, %v3696_v3 }
0x106d   : > { %v3705_v62 = vmax.f32 %v3683_v26, %v9851_v37  ;;  %v3697_v28 = vsel %vm488_vm5, %v9850_v45, %v9851_v37 }
0x106e   : > { %v3704_v40 = vmax.f32 %v3682_v0, %v3697_v28 }
0x106f   : > { %v3707_v21 = vpack.c.bf16 %v3705_v62, %v3703_v47 }
0x1070   : > { %v3706_v51 = vpack.c.bf16 %v3704_v40, %v3702_v7 }
0x1071   : > { %8474 = vmatprep.mubr.msk.bf16.mxu0 %vm781_vm9, %v3707_v21 }
0x1072   : > { %3744 = vmatmul.mubr.bf16.vlgmr.msra.gmra.mrb[64].mxu0 %v3706_v51 }
0x1073   : > { %4029 = vmatpush1.bf16.msra.mxu0 %v12393_v33  ;;  %8480 = vmatprep.mubr.msk.bf16.mxu0 %vm1604_vm10, %v10158_v18 }
0x1074   : > { %4030 = vmatprep.subr.bf16.mxu0 %v14250_v36 }
0x1077   : > { %v9854_v2 = vpop.permute.xlu1 %9853 }
0x1078   : > { %v9856_v26 = vunpack.i.h.bf16 %v9854_v2  ;;  %v9855_v35 = vunpack.i.l.bf16 %v9854_v2  ;;  %v10159_v2 = vld [vmem:[%s14140_s6] sm:$0xff]  }
0x1079   : > { %v9859_v58 = vpop.permute.xlu0 %9858 }
0x107a   : > { %v3950_v0 = vsel %vm488_vm5, %v9855_v35, %v9856_v26  ;;  %v9861_v6 = vunpack.i.h.bf16 %v9859_v58  ;;  %v9860_v61 = vunpack.i.l.bf16 %v9859_v58  ;;  %v3957_v32 = vmax.f32 %v3935_v19, %v9856_v26  ;;  %v10160_v26 = vld [vmem:[%s14137_s3] ss:$8 sps:$4 sm:$0xff]   ;;  %v10161_v35 = vld [vmem:[%s14137_s3 + $0x14] ss:$8 sps:$4 sm:$0xff]  }
0x107b   : > { %v4009_v46 = vpop.permute.xlu1 %4008  ;;  %v3956_v12 = vmax.f32 %v3934_v34, %v3950_v0  ;;  %v10162_v58 = vld [vmem:[%s14140_s6 + $0x8] sm:$0xff]   ;;  %v10163_v0 = vld [vmem:[%s14140_s6 + $0x10] sm:$0xff]  }
0x107c   : > { %v3959_v54 = vmax.f32 %v3937_v25, %v9861_v6  ;;  %v3951_v33 = vsel %vm488_vm5, %v9860_v61, %v9861_v6  ;;  %4031 = vmatpush1.bf16.msra.mxu0 %v4009_v46  ;;  %v10164_v61 = vld [vmem:[%s14137_s3 + $0x10] ss:$8 sps:$4 sm:$0xff]  }
0x107d   : > { %v3958_v29 = vmax.f32 %v3936_v8, %v3951_v33  ;;  %4032 = vmatprep.subr.bf16.mxu0 %v14250_v36  ;;  %v4016_v25 = vpop.permute.xlu0 %4015  ;;  %v10165_v46 = vld [vmem:[%s14140_s6 + $0x18] sm:$0xff]   ;;  %v10167_v33 = vld [vmem:[%s14140_s6 + $0x28] sm:$0xff]  }
0x107e   : > { %v3961_v52 = vpack.c.bf16 %v3959_v54, %v3957_v32  ;;  %v10166_v54 = vld [vmem:[%s14140_s6 + $0x20] sm:$0xff]  }
0x107f   : > { %v4012_v3 = vpop.permute.xlu1 %4011  ;;  %v3960_v37 = vpack.c.bf16 %v3958_v29, %v3956_v12  ;;  %v14253_v12 = vld [vmem:[#allocation10_spill] sm:$0xff]  ;;  %v12492_v29 = vld [vmem:[%s10280_s23 + $0x30] sm:$0xff] }
0x1080   : > { %8479 = vmatprep.mubr.msk.bf16.mxu1 %vm781_vm9, %v3961_v52  ;;  %4033 = vmatpush1.bf16.msra.mxu0 %v4012_v3  ;;  %14254 = vst [vmem:[#allocation12_spill] sm:$0xff] %v12492_v29  ;;  %v12496_v52 = vcombine.low %v12492_v29, %v12492_v29 }
0x1081   : > { %3998 = vmatmul.mubr.bf16.vlgmr.msra.gmra.mrb[112].mxu1 %v3960_v37  ;;  %4034 = vmatprep.subr.bf16.mxu0 %v14250_v36  ;;  %v4019_v8 = vpop.permute.xlu0 %4018 }
0x1082   : > { %4089 = vmatpush1.bf16.msra.mxu1 %v12401_v57  ;;  %8482 = vmatprep.mubr.msk.bf16.mxu1 %vm1604_vm10, %v10158_v18  ;;  %v14177_v3 = vrot.slane %v12496_v52, 7  ;;  %v12500_v37 = vshrl.u32 %v12496_v52, 16 }
0x1083   : > { %4090 = vmatprep.subr.bf16.mxu1 %v14250_v36 }
0x1084   : > { %4035 = vmatpush1.bf16.msra.mxu0 %v12401_v57 }
0x1085   : > { %4036 = vmatprep.subr.bf16.mxu0 %v14250_v36 }
0x1086   : > { %4091 = vmatpush1.bf16.msra.mxu1 %v4016_v25 }
0x1087   : > { %4092 = vmatprep.subr.bf16.mxu1 %v14250_v36 }
0x1088   : > { %4037 = vmatpush1.bf16.msra.mxu0 %v4016_v25  ;;  %v12503_v25 = vshll.u32 %v12496_v52, 16 }
0x1089   : > { %4038 = vmatprep.subr.bf16.mxu0 %v14250_v36 }
0x108a   : > { %4093 = vmatpush1.bf16.msra.mxu1 %v4019_v8  ;;  %v4238_v15 = vrot.slane %v12503_v25, 7 }
0x108b   : > { %4094 = vmatprep.subr.bf16.mxu1 %v14250_v36 }
0x108c   : > { %4039 = vmatpush1.bf16.msra.mxu0 %v4019_v8  ;;  %v4336_v8 = vrot.slane %v12500_v37, 5 }
0x108d   : > { %4040 = vmatprep.subr.bf16.mxu0 %v14250_v36 }
0x1145   : > { %v3745_v34 = vpop.f32.mrb[64].mxu0 }
0x1146   : > { %v3747_v19 = vpop.f32.mrb[65].mxu0 }
0x1147   : > { %v3748_v45 = vpop.f32.mrb[66].mxu0  ;;  %v12512_v19 = vcombine.high %v12492_v29, %v12492_v29 }
0x1148   : > { %v3752_v47 = vpack.c.bf16 %v3748_v45, %v3745_v34  ;;  %v3750_v57 = vpop.f32.mrb[67].mxu0  ;;  %v4337_v34 = vrot.slane %v12503_v25, 6 }
0x1149   : > { %v12516_v57 = vshrl.u32 %v12512_v19, 16 }
0x114a   : > { %4025 = vrot.lane.b32.xlu0 %v3752_v47, %s10201_s25  ;;  %4022 = vrot.lane.b32.xlu1 %v3752_v47, %s10200_s24  ;;  %v4338_v45 = vor.u32 %v4337_v34, %v4336_v8  ;;  %v14255_v34 = vld [vmem:[#allocation6_spill] sm:$0xff] }
0x114b   : > { %4041 = vmatpush1.bf16.msra.mxu0 %v3752_v47  ;;  %4095 = vmatpush1.bf16.msra.mxu1 %v3752_v47  ;;  %v14176_v47 = vrot.slane %v12512_v19, 7 }
0x114c   : > { %4042 = vmatprep.subr.bf16.mxu0 %v14250_v36  ;;  %4096 = vmatprep.subr.bf16.mxu1 %v14250_v36 }
0x1154   : > { %v3999_v62 = vpop.f32.mrb[112].mxu1 }
0x1155   : > { %v4001_v28 = vpop.f32.mrb[113].mxu1 }
0x1156   : > { %v4002_v7 = vpop.f32.mrb[114].mxu1  ;;  %v4339_v28 = vrot.slane %v12516_v57, 5 }
0x1157   : > { %v4006_v40 = vpack.c.bf16 %v4002_v7, %v3999_v62  ;;  %v4004_v21 = vpop.f32.mrb[115].mxu1  ;;  %v12519_v62 = vshll.u32 %v12512_v19, 16 }
0x1159   : > { %4085 = vrot.lane.b32.xlu0 %v4006_v40, %s10201_s25  ;;  %4082 = vrot.lane.b32.xlu1 %v4006_v40, %s10200_s24  ;;  %v4340_v7 = vrot.slane %v12519_v62, 6 }
0x115d   : > { %4329 = vrot.lane.b32.xlu1 %v14177_v3, %s10200_s24  ;;  %4331 = vrot.lane.b32.xlu0 %v14176_v47, %s10200_s24 }
0x1161   : > { %4342 = vrot.lane.b32.xlu1 %v4338_v45, %s10201_s25 }
0x11bc   : > { %v4023_v51 = vpop.permute.xlu1 %4022  ;;  %v4026_v18 = vpop.permute.xlu0 %4025 }
0x11bd   : > { %4043 = vmatpush1.bf16.msra.mxu0 %v4023_v51  ;;  %4097 = vmatpush1.bf16.msra.mxu1 %v4023_v51 }
0x11be   : > { %4044 = vmatprep.subr.bf16.mxu0 %v14250_v36  ;;  %4098 = vmatprep.subr.bf16.mxu1 %v14250_v36 }
0x11c1   : > { %4045 = vmatpush1.bf16.msra.mxu0 %v4026_v18  ;;  %4099 = vmatpush1.bf16.msra.mxu1 %v4026_v18 }
0x11c2   : > { %4100 = vmatprep.subr.bf16.mxu1 %v14250_v36  ;;  %9141 = vmatprep.subr.bf16.mxu0 %v10159_v2 }
0x11c4   : > { %4061 = vmatmul.mubr.bf16.vlgmr.msra.gmra.mrb[68].mxu0 %v10160_v26 }
0x11c5   : > { %4101 = vmatpush1.bf16.msra.mxu1 %v4006_v40  ;;  %8481 = vmatprep.mubr.msk.bf16.mxu0 %vm1604_vm10, %v10161_v35  ;;  %v4341_v40 = vor.u32 %v4340_v7, %v4339_v28 }
0x11c6   : > { %4102 = vmatprep.subr.bf16.mxu1 %v14250_v36  ;;  %9142 = vmatpush3.bf16.msra.mxu0 %v10159_v2 }
0x11c7   : > { %9143 = vmatprep.subr.bf16.mxu0 %v10162_v58  ;;  %4344 = vrot.lane.b32.xlu0 %v4341_v40, %s10201_s25 }
0x11ca   : > { %9144 = vmatpush3.bf16.msra.mxu0 %v10162_v58 }
0x11cb   : > { %9145 = vmatprep.subr.bf16.mxu0 %v10163_v0  ;;  %v4083_v6 = vpop.permute.xlu1 %4082  ;;  %v4086_v32 = vpop.permute.xlu0 %4085 }
0x11cc   : > { %4069 = vmatmul.mubr.bf16.gmra.mrb[72].mxu0 %v10164_v61  ;;  %4103 = vmatpush1.bf16.msra.mxu1 %v4083_v6 }
0x11cd   : > { %4104 = vmatprep.subr.bf16.mxu1 %v14250_v36 }
0x11ce   : > { %9146 = vmatpush3.bf16.msra.mxu0 %v10163_v0 }
0x11cf   : > { %9147 = vmatprep.subr.bf16.mxu0 %v10165_v46 }
0x11d0   : > { %4105 = vmatpush1.bf16.msra.mxu1 %v4086_v32 }
0x11d2   : > { %9148 = vmatpush3.bf16.msra.mxu0 %v10165_v46 }
0x11d3   : > { %9149 = vmatprep.subr.bf16.mxu0 %v10166_v54  ;;  %4121 = vmatmul.mubr.bf16.vlgmr.msra.gmra.mrb[116].mxu1 %v10160_v26  ;;  %v4321_v26 = vrot.slane %v12503_v25, 1 }
0x11d4   : > { %8483 = vmatprep.mubr.msk.bf16.mxu1 %vm1604_vm10, %v10161_v35  ;;  %v4323_v35 = vrot.slane %v12519_v62, 1 }
0x11d5   : > { %v12531_v46 = vor.u32 %v4321_v26, %v12500_v37 }
0x11d6   : > { %9150 = vmatpush3.bf16.msra.mxu0 %v10166_v54  ;;  %v12534_v32 = vor.u32 %v4323_v35, %v12516_v57  ;;  %v4330_v54 = vpop.permute.xlu1 %4329 }
0x11d7   : > { %9151 = vmatprep.subr.bf16.mxu0 %v10167_v33 }
0x11da   : > { %9152 = vmatpush3.bf16.msra.mxu0 %v10167_v33  ;;  %v4332_v33 = vpop.permute.xlu0 %4331 }
0x11db   : > { %9153 = vmatprep.subr.bf16.mxu0 %v14253_v12  ;;  %4129 = vmatmul.mubr.bf16.gmra.mrb[120].mxu1 %v10164_v61  ;;  %v12537_v8 = vsel %vm488_vm5, %v4330_v54, %v4332_v33  ;;  %v4348_v7 = vsel %vm10348_vm7, %v12534_v32, %v4332_v33 }
0x11dc   : > { %4306 = vmatprep.mubr.bf16.mxu1 %v14250_v36 }
0x11de   : > { %9154 = vmatpush3.bf16.msra.mxu0 %v14253_v12 }
0x1297   : > { %v4062_v21 = vpop.f32.mrb[68].mxu0 }
0x1298   : > { %v4064_v51 = vpop.f32.mrb[69].mxu0  ;;  %v4063_v45 = vadd.f32 %v4062_v21, %v14255_v34 }
0x1299   : > { %v4065_v18 = vpop.f32.mrb[70].mxu0  ;;  %v14256_v51 = vld [vmem:[#allocation7_spill] sm:$0xff] }
0x129a   : > { %v4067_v2 = vpop.f32.mrb[71].mxu0  ;;  %v4077_v54 = vmax.f32 %v4063_v45, 0.0 }
0x129b   : > { %v4066_v2 = vadd.f32 %v4065_v18, %v14256_v51  ;;  %v14257_v18 = vld [vmem:[#allocation8_spill] sm:$0xff] }
0x129d   : > { %v4078_v33 = vmax.f32 %v4066_v2, 0.0 }
0x129f   : > { %v4070_v58 = vpop.f32.mrb[72].mxu0 }
0x12a0   : > { %v4072_v0 = vpop.f32.mrb[73].mxu0 }
0x12a1   : > { %v4073_v6 = vpop.f32.mrb[74].mxu0  ;;  %v12549_v0 = vpop.permute.xlu0 %4344 }
0x12a2   : > { %v4075_v61 = vpop.f32.mrb[75].mxu0  ;;  %v4354_v21 = vsel %vm505_vm6, %v4348_v7, %v12549_v0  ;;  %v14258_v7 = vld [vmem:[#allocation9_spill] sm:$0xff] }
0x12a3   : > { %v4357_v12 = vand.u32 %v4354_v21, %v14249_v23  ;;  %v4074_v45 = vadd.f32 %v4073_v6, %v14258_v7  ;;  %v4246_v6 = vrot.slane %v12519_v62, 7 }
0x12a5   : > { %4359 = vmatprep.subr.bf16.mxu0 %v4357_v12 }
0x12a6   : > { %v4122_v40 = vpop.f32.mrb[116].mxu1 }
0x12a7   : > { %v4123_v26 = vadd.f32 %v4122_v40, %v14255_v34  ;;  %v4124_v35 = vpop.f32.mrb[117].mxu1  ;;  %v4071_v40 = vadd.f32 %v4070_v58, %v14257_v18  ;;  %v4235_v34 = vrot.slane %v12500_v37, 6  ;;  %v4080_v58 = vmax.f32 %v4074_v45, 0.0 }
0x12a8   : > { %v4125_v61 = vpop.f32.mrb[118].mxu1  ;;  %v4485_v45 = vrot.slane %v12516_v57, 7 }
0x12a9   : > { %v4137_v47 = vmax.f32 %v4123_v26, 0.0  ;;  %v4126_v28 = vadd.f32 %v4125_v61, %v14256_v51  ;;  %v4127_v3 = vpop.f32.mrb[119].mxu1  ;;  %v4079_v21 = vmax.f32 %v4071_v40, 0.0  ;;  %v4483_v40 = vrot.slane %v12500_v37, 7 }
0x12ab   : > { %v4141_v29 = vmax.f32 %v4077_v54, %v4137_v47  ;;  %v4138_v22 = vmax.f32 %v4126_v28, 0.0 }
0x12ad   : > { %v4142_v35 = vmax.f32 %v4078_v33, %v4138_v22  ;;  %v4239_v22 = vor.u32 %v4238_v15, %v4235_v34  ;;  %v4243_v33 = vrot.slane %v12516_v57, 6  ;;  %v12570_v15 = vor.u32 %v4483_v40, %v12503_v25 }
0x12ae   : > { %v4130_v49 = vpop.f32.mrb[120].mxu1  ;;  %v4256_v34 = vrot.slane %v12512_v19, 5 }
0x12af   : > { %v9862_v26 = vpack.i.bf16 %v4142_v35, %v4141_v29  ;;  %v4131_v61 = vadd.f32 %v4130_v49, %v14257_v18  ;;  %v4132_v3 = vpop.f32.mrb[121].mxu1  ;;  %v4255_v49 = vrot.slane %v12496_v52, 5 }
0x12b0   : > { %v4133_v51 = vpop.f32.mrb[122].mxu1  ;;  %v12580_v3 = vor.u32 %v4485_v45, %v12519_v62 }
0x12b1   : > { %v4139_v2 = vmax.f32 %v4131_v61, 0.0  ;;  %v4134_v47 = vadd.f32 %v4133_v51, %v14258_v7  ;;  %v4135_v12 = vpop.f32.mrb[123].mxu1  ;;  %9863 = vrot.lane.b32.xlu1 %v9862_v26, %s10200_s24  ;;  %v4247_v51 = vor.u32 %v4246_v6, %v4243_v33  ;;  %v4494_v26 = vrot.slane %v12496_v52, 6 }
0x12b2   : > { %v4343_v12 = vpop.permute.xlu1 %4342 }
0x12b3   : > { %v4143_v28 = vmax.f32 %v4079_v21, %v4139_v2  ;;  %v4140_v54 = vmax.f32 %v4134_v47, 0.0  ;;  %v4495_v21 = vrot.slane %v12512_v19, 6  ;;  %v14259_v2 = vrot.slane %v12496_v52, 7 }
0x12b4   : > { %v14260_v47 = vrot.slane %v12512_v19, 7 }
0x12b5   : > { %v4144_v9 = vmax.f32 %v4080_v58, %v4140_v54  ;;  %4248 = vrot.lane.b32.xlu1 %v4239_v22, %s10200_s24 }
0x12b7   : > { %v9867_v61 = vpack.i.bf16 %v4144_v9, %v4143_v28 }
0x12b9   : > { %9868 = vrot.lane.b32.xlu0 %v9867_v61, %s10200_s24  ;;  %4257 = vrot.lane.b32.xlu1 %v4255_v49, %s10201_s25  ;;  %v4346_v61 = vsel %vm498_vm3, %v4343_v12, %v12549_v0 }
0x12bd   : > { %4250 = vrot.lane.b32.xlu0 %v4247_v51, %s10200_s24  ;;  %4487 = vrot.lane.b32.xlu1 %v12570_v15, %s10200_s24 }
0x12c1   : > { %4259 = vrot.lane.b32.xlu0 %v4256_v34, %s10201_s25  ;;  %4496 = vrot.lane.b32.xlu1 %v4494_v26, %s10201_s25  ;;  %v14261_v26 = vsel %vm10348_vm7, %v12531_v46, %v12537_v8 }
0x12c5   : > { %4489 = vrot.lane.b32.xlu0 %v12580_v3, %s10200_s24  ;;  %4568 = vrot.lane.b32.xlu1 %v12496_v52, %s10200_s24 }
0x12c9   : > { %4498 = vrot.lane.b32.xlu0 %v4495_v21, %s10201_s25  ;;  %4575 = vrot.lane.b32.xlu1 %v4239_v22, %s10201_s25  ;;  %v4351_v21 = vsel %vm505_vm6, %v14261_v26, %v4346_v61 }
0x12cd   : > { %4570 = vrot.lane.b32.xlu0 %v12512_v19, %s10200_s24  ;;  %4716 = vrot.lane.b32.xlu1 %v12531_v46, %s10200_s24 }
0x12d1   : > { %4577 = vrot.lane.b32.xlu0 %v4247_v51, %s10201_s25  ;;  %4723 = vrot.lane.b32.xlu1 %v14259_v2, %s10201_s25 }
0x12d5   : > { %4718 = vrot.lane.b32.xlu0 %v12534_v32, %s10200_s24 }
0x12d9   : > { %4725 = vrot.lane.b32.xlu0 %v14260_v47, %s10201_s25 }
0x1323   : > { %v9864_v22 = vpop.permute.xlu1 %9863 }
0x1324   : > { %v9866_v58 = vunpack.i.h.bf16 %v9864_v22  ;;  %v9865_v54 = vunpack.i.l.bf16 %v9864_v22 }
0x1326   : > { %v4162_v33 = vmax.f32 %v4142_v35, %v9866_v58  ;;  %v4161_v6 = vmax.f32 %v4141_v29, %v9865_v54  ;;  %v4355_v58 = vand.u32 %v4351_v21, %v14249_v23  ;;  %v4563_v21 = vrot.slane %v12516_v57, 1 }
0x1327   : > { %v4249_v49 = vpop.permute.xlu1 %4248 }
0x1328   : > { %v4165_v40 = vpack.c.bf16 %v4162_v33, %v4161_v6 }
0x132a   : > { %9155 = vmatprep.mubr.msk.bf16.mxu0 %vm1789_vm11, %v4165_v40  ;;  %v14187_v40 = vrot.slane %v12512_v19, 1 }
0x132b   : > { %v9869_v51 = vpop.permute.xlu0 %9868  ;;  %v4258_v34 = vpop.permute.xlu1 %4257 }
0x132c   : > { %v9871_v32 = vunpack.i.h.bf16 %v9869_v51  ;;  %v9870_v45 = vunpack.i.l.bf16 %v9869_v51  ;;  %v14188_v51 = vrot.slane %v12496_v52, 1 }
0x132e   : > { %v4164_v35 = vmax.f32 %v4144_v9, %v9871_v32  ;;  %v4163_v29 = vmax.f32 %v4143_v28, %v9870_v45 }
0x132f   : > { %v4251_v2 = vpop.permute.xlu0 %4250  ;;  %v4488_v47 = vpop.permute.xlu1 %4487 }
0x1330   : > { %v4166_v22 = vpack.c.bf16 %v4164_v35, %v4163_v29  ;;  %v4252_v0 = vsel %vm488_vm5, %v4249_v49, %v4251_v2  ;;  %v4263_v12 = vsel %vm10348_vm7, %v12512_v19, %v4251_v2  ;;  %v4564_v35 = vrot.slane %v12519_v62, 2 }
0x1331   : > { %v4262_v9 = vsel %vm10348_vm7, %v12496_v52, %v4252_v0  ;;  %v4560_v29 = vrot.slane %v12500_v37, 1  ;;  %v4561_v0 = vrot.slane %v12503_v25, 2 }
0x1332   : > { %9156 = vmatmul.mubr.msk.bf16.vlgmr.msra.gmra.mrb[76].mxu0 %vm1789_vm11, %v4166_v22 }
0x1333   : > { %4360 = vmatpush1.bf16.msra.mxu0 %v4355_v58  ;;  %v4260_v54 = vpop.permute.xlu0 %4259  ;;  %4391 = vmatprep.mubr.bf16.mxu0 %v14250_v36  ;;  %v4497_v6 = vpop.permute.xlu1 %4496 }
0x1334   : > { %v4269_v46 = vsel %vm505_vm6, %v4263_v12, %v4260_v54  ;;  %v4261_v8 = vsel %vm498_vm3, %v4258_v34, %v4260_v54  ;;  %v12634_v34 = vld [vmem:[%s14135_s1] sm:$0xff]  }
0x1335   : > { %v4272_v28 = vand.u32 %v4269_v46, %v14249_v23  ;;  %v4266_v33 = vsel %vm505_vm6, %v4262_v9, %v4261_v8  ;;  %v4565_v46 = vor.u32 %v4564_v35, %v4563_v21 }
0x1336   : > { %v4270_v49 = vand.u32 %v4266_v33, %v14249_v23 }
0x1337   : > { %4274 = vmatprep.subr.bf16.mxu1 %v4272_v28  ;;  %v4490_v61 = vpop.permute.xlu0 %4489  ;;  %v4569_v2 = vpop.permute.xlu1 %4568  ;;  %v4562_v28 = vor.u32 %v4561_v0, %v4560_v29 }
0x1338   : > { %4275 = vmatpush1.bf16.msra.mxu1 %v4270_v49  ;;  %v4491_v32 = vsel %vm488_vm5, %v4488_v47, %v4490_v61  ;;  %v4502_v45 = vsel %vm10348_vm7, %v14187_v40, %v4490_v61 }
0x1339   : > { %4437 = vmatprep.subr.bf16.mxu1 %v14250_v36  ;;  %v4501_v47 = vsel %vm10348_vm7, %v14188_v51, %v4491_v32  ;;  %v14286_v51 = vld [vmem:[#allocation26_spill] sm:$0xff] }
0x133a   : > { %8491 = vmatmul.mubr.msk.bf16.vlgmr.msra.gmra.mrb[80].mxu0 %vm527_vm8, %v12634_v34 }
0x133b   : > { %v4499_v26 = vpop.permute.xlu0 %4498  ;;  %8490 = vmatmul.mubr.msk.bf16.vlgmr.msra.gmra.mrb[124].mxu1 %vm527_vm8, %v12634_v34  ;;  %4545 = vmatprep.mubr.bf16.mxu0 %v14250_v36 }
0x133c   : > { %v4508_v22 = vsel %vm505_vm6, %v4502_v45, %v4499_v26  ;;  %v4500_v58 = vsel %vm498_vm3, %v4497_v6, %v4499_v26  ;;  %4438 = vmatpush1.bf16.msra.mxu1 %v12256_v1  ;;  %v4576_v6 = vpop.permute.xlu1 %4575 }
0x133d   : > { %v4511_v12 = vand.u32 %v4508_v22, %v14249_v23  ;;  %v4505_v54 = vsel %vm505_vm6, %v4501_v47, %v4500_v58  ;;  %4439 = vmatprep.subr.bf16.mxu1 %v14250_v36 }
0x133e   : > { %v4509_v9 = vand.u32 %v4505_v54, %v14249_v23 }
0x133f   : > { %v4571_v8 = vpop.permute.xlu0 %4570  ;;  %4513 = vmatprep.subr.bf16.mxu0 %v4511_v12 }
0x1340   : > { %4514 = vmatpush1.bf16.msra.mxu0 %v4509_v9  ;;  %4440 = vmatpush1.bf16.msra.mxu1 %v12266_v27  ;;  %v4572_v33 = vsel %vm488_vm5, %v4569_v2, %v4571_v8  ;;  %v4581_v49 = vsel %vm10348_vm7, %v4565_v46, %v4571_v8 }
0x1341   : > { %4441 = vmatprep.subr.bf16.mxu1 %v14250_v36  ;;  %v4580_v32 = vsel %vm10348_vm7, %v4562_v28, %v4572_v33 }
0x1343   : > { %v4578_v61 = vpop.permute.xlu0 %4577  ;;  %8493 = vmatmul.mubr.msk.bf16.vlgmr.msra.gmra.mrb[84].mxu0 %vm527_vm8, %v12634_v34 }
0x1344   : > { %v4587_v45 = vsel %vm505_vm6, %v4581_v49, %v4578_v61  ;;  %v4579_v26 = vsel %vm498_vm3, %v4576_v6, %v4578_v61  ;;  %4624 = vmatprep.mubr.bf16.mxu0 %v14250_v36  ;;  %4442 = vmatpush1.bf16.msra.mxu1 %v12283_v5 }
0x1345   : > { %v4590_v21 = vand.u32 %v4587_v45, %v14249_v23  ;;  %v4584_v35 = vsel %vm505_vm6, %v4580_v32, %v4579_v26  ;;  %4443 = vmatprep.subr.bf16.mxu1 %v14250_v36 }
0x1346   : > { %v4588_v29 = vand.u32 %v4584_v35, %v14249_v23 }
0x1347   : > { %4592 = vmatprep.subr.bf16.mxu0 %v4590_v21 }
0x1348   : > { %4593 = vmatpush1.bf16.msra.mxu0 %v4588_v29  ;;  %4444 = vmatpush1.bf16.msra.mxu1 %v12293_v48 }
0x1349   : > { %4445 = vmatprep.subr.bf16.mxu1 %v14250_v36  ;;  %4670 = vmatprep.subr.bf16.mxu0 %v14250_v36 }
0x134b   : > { %8494 = vmatmul.mubr.msk.bf16.vlgmr.msra.gmra.mrb[88].mxu0 %vm527_vm8, %v12634_v34 }
0x134c   : > { %4446 = vmatpush1.bf16.msra.mxu1 %v12303_v42  ;;  %4671 = vmatpush1.bf16.msra.mxu0 %v12256_v1  ;;  %v4713_v1 = vrot.slane %v12512_v19, 2 }
0x134d   : > { %4447 = vmatprep.subr.bf16.mxu1 %v14250_v36  ;;  %4672 = vmatprep.subr.bf16.mxu0 %v14250_v36 }
0x1350   : > { %4448 = vmatpush1.bf16.msra.mxu1 %v12312_v50  ;;  %4673 = vmatpush1.bf16.msra.mxu0 %v12266_v27  ;;  %v12729_v27 = vpop.permute.xlu0 %4718 }
0x1351   : > { %4449 = vmatprep.subr.bf16.mxu1 %v14250_v36  ;;  %4674 = vmatprep.subr.bf16.mxu0 %v14250_v36 }
0x1354   : > { %4450 = vmatpush1.bf16.msra.mxu1 %v12321_v13  ;;  %4675 = vmatpush1.bf16.msra.mxu0 %v12283_v5  ;;  %v4729_v5 = vsel %vm10348_vm7, %v4713_v1, %v12729_v27  ;;  %v14266_v1 = vld [vmem:[#allocation3_spill] sm:$0xff] }
0x1355   : > { %4451 = vmatprep.subr.bf16.mxu1 %v14250_v36  ;;  %4676 = vmatprep.subr.bf16.mxu0 %v14250_v36 }
0x1358   : > { %4452 = vmatpush1.bf16.msra.mxu1 %v12330_v31  ;;  %4677 = vmatpush1.bf16.msra.mxu0 %v12293_v48  ;;  %v12734_v48 = vpop.permute.xlu0 %4725 }
0x1359   : > { %4453 = vmatprep.subr.bf16.mxu1 %v14250_v36  ;;  %4678 = vmatprep.subr.bf16.mxu0 %v14250_v36 }
0x135c   : > { %4454 = vmatpush1.bf16.msra.mxu1 %v12339_v59  ;;  %4679 = vmatpush1.bf16.msra.mxu0 %v12303_v42  ;;  %v4735_v42 = vsel %vm505_vm6, %v4729_v5, %v12734_v48 }
0x135d   : > { %4455 = vmatprep.subr.bf16.mxu1 %v14250_v36  ;;  %4680 = vmatprep.subr.bf16.mxu0 %v14250_v36 }
0x1360   : > { %4456 = vmatpush1.bf16.msra.mxu1 %v12348_v10  ;;  %4681 = vmatpush1.bf16.msra.mxu0 %v12312_v50  ;;  %v4738_v50 = vand.u32 %v4735_v42, %v14249_v23 }
0x1361   : > { %4457 = vmatprep.subr.bf16.mxu1 %v14250_v36  ;;  %4682 = vmatprep.subr.bf16.mxu0 %v14250_v36 }
0x1364   : > { %4458 = vmatpush1.bf16.msra.mxu1 %v12357_v56  ;;  %4683 = vmatpush1.bf16.msra.mxu0 %v12321_v13 }
0x1365   : > { %4459 = vmatprep.subr.bf16.mxu1 %v14250_v36  ;;  %4684 = vmatprep.subr.bf16.mxu0 %v14250_v36 }
0x1368   : > { %4460 = vmatpush1.bf16.msra.mxu1 %v12366_v17  ;;  %4685 = vmatpush1.bf16.msra.mxu0 %v12330_v31 }
0x1369   : > { %4461 = vmatprep.subr.bf16.mxu1 %v14250_v36  ;;  %4686 = vmatprep.subr.bf16.mxu0 %v14250_v36 }
0x136c   : > { %4462 = vmatpush1.bf16.msra.mxu1 %v12375_v55  ;;  %4687 = vmatpush1.bf16.msra.mxu0 %v12339_v59 }
0x136d   : > { %4463 = vmatprep.subr.bf16.mxu1 %v14250_v36  ;;  %4688 = vmatprep.subr.bf16.mxu0 %v14250_v36 }
0x1370   : > { %4464 = vmatpush1.bf16.msra.mxu1 %v14252_v4  ;;  %4689 = vmatpush1.bf16.msra.mxu0 %v12348_v10 }
0x1371   : > { %4690 = vmatprep.subr.bf16.mxu0 %v14250_v36  ;;  %4740 = vmatprep.subr.bf16.mxu1 %v4738_v50 }
0x1374   : > { %4691 = vmatpush1.bf16.msra.mxu0 %v12357_v56 }
0x1375   : > { %4692 = vmatprep.subr.bf16.mxu0 %v14250_v36 }
0x1378   : > { %4693 = vmatpush1.bf16.msra.mxu0 %v12366_v17 }
0x1379   : > { %4694 = vmatprep.subr.bf16.mxu0 %v14250_v36 }
0x137c   : > { %4695 = vmatpush1.bf16.msra.mxu0 %v12375_v55 }
0x137d   : > { %4696 = vmatprep.subr.bf16.mxu0 %v14250_v36 }
0x1380   : > { %4697 = vmatpush1.bf16.msra.mxu0 %v14252_v4 }
0x1405   : > { %v12739_v13 = vpop.f32.mrb[76].mxu0 }
0x1406   : > { %v4207_v31 = vpop.f32.mrb[77].mxu0  ;;  %v6821_v59 = vrot.slane %v12739_v13, 6  ;;  %v6909_v10 = vrot.slane %v12739_v13, 7  ;;  %v12746_v56 = vsel %vm500_vm1, %v12036_v44, %v12739_v13  ;;  %v7083_v17 = vrot.slane %v12739_v13, 1 }
0x1407   : > { %14262 = vst [vmem:[#allocation13_spill] sm:$0xff] %v12746_v56  ;;  %v5420_v55 = vrot.slane %v4207_v31, 6  ;;  %v12749_v2 = vpop.f32.mrb[78].mxu0  ;;  %v5509_v47 = vrot.slane %v4207_v31, 7  ;;  %v12753_v22 = vsel %vm500_vm1, %v11974_v41, %v4207_v31  ;;  %v5683_v58 = vrot.slane %v4207_v31, 1 }
0x1408   : > { %v4210_v0 = vpop.f32.mrb[79].mxu0  ;;  %v5769_v12 = vrot.slane %v4207_v31, 2  ;;  %v5857_v54 = vrot.slane %v4207_v31, 3  ;;  %v5945_v9 = vrot.slane %v4207_v31, 4  ;;  %v6033_v46 = vrot.slane %v4207_v31, 5  ;;  %v14267_v31 = vld [vmem:[#allocation11_spill] sm:$0xff] }
0x1409   : > { %v12757_v44 = vsel %vm500_vm1, %v11968_v43, %v5420_v55  ;;  %v12761_v8 = vsel %vm500_vm1, %v11971_v14, %v5509_v47  ;;  %v12765_v28 = vsel %vm500_vm1, %v11977_v60, %v5683_v58  ;;  %v6121_v41 = vrot.slane %v4210_v0, 6  ;;  %v14268_v55 = vld [vmem:[#allocation15_spill] sm:$0xff]  ;;  %v14269_v47 = vld [vmem:[#allocation16_spill] sm:$0xff] }
0x140a   : > { %v12769_v33 = vsel %vm500_vm1, %v11980_v39, %v5769_v12  ;;  %v12773_v6 = vsel %vm500_vm1, %v11983_v53, %v5857_v54  ;;  %v12777_v43 = vsel %vm500_vm1, %v11986_v63, %v5945_v9  ;;  %v12781_v14 = vsel %vm500_vm1, %v11989_v11, %v6033_v46  ;;  %v14270_v54 = vld [vmem:[#allocation17_spill] sm:$0xff]  ;;  %v14271_v46 = vld [vmem:[#allocation20_spill] sm:$0xff] }
0x140b   : > { %v12785_v60 = vsel %vm500_vm1, %v11994_v16, %v6121_v41  ;;  %v6209_v49 = vrot.slane %v4210_v0, 7  ;;  %v12789_v39 = vsel %vm500_vm1, %v12000_v30, %v4210_v0  ;;  %v6383_v61 = vrot.slane %v4210_v0, 1  ;;  %v14263_v16 = vld [vmem:[#allocation18_spill] sm:$0xff]  ;;  %v14264_v30 = vld [vmem:[#allocation19_spill] sm:$0xff] }
0x140c   : > { %v6469_v53 = vrot.slane %v4210_v0, 2  ;;  %v6557_v32 = vrot.slane %v4210_v0, 3  ;;  %v6645_v45 = vrot.slane %v4210_v0, 4  ;;  %v6733_v26 = vrot.slane %v4210_v0, 5 }
0x140d   : > { %v4393_v63 = vpop.f32.mrb[80].mxu0  ;;  %v12793_v21 = vsel %vm500_vm1, %v11997_v20, %v6209_v49  ;;  %v12797_v11 = vsel %vm500_vm1, %v12004_v24, %v6383_v61  ;;  %v12801_v35 = vsel %vm500_vm1, %v14263_v16, %v6821_v59  ;;  %v12805_v29 = vsel %vm500_vm1, %v14264_v30, %v6909_v10 }
0x140e   : > { %14265 = vst [vmem:[#allocation2_spill] sm:$0xff] %v12805_v29  ;;  %v4394_v5 = vadd.f32 %v4393_v63, %v14266_v1  ;;  %v4308_v42 = vpop.f32.mrb[124].mxu1  ;;  %v4395_v50 = vpop.f32.mrb[81].mxu0  ;;  %v12810_v20 = vsel %vm500_vm1, %v14267_v31, %v6469_v53  ;;  %v12814_v24 = vsel %vm500_vm1, %v14268_v55, %v6557_v32  ;;  %v12818_v59 = vsel %vm500_vm1, %v14269_v47, %v6645_v45  ;;  %v14272_v53 = vld [vmem:[#allocation4_spill] sm:$0xff] }
0x140f   : > { %v4309_v58 = vadd.f32 %v4308_v42, %v14266_v1  ;;  %v4396_v10 = vadd.f32 %v4395_v50, %v14266_v1  ;;  %v4310_v0 = vpop.f32.mrb[125].mxu1  ;;  %v4397_v12 = vpop.f32.mrb[82].mxu0  ;;  %v12824_v9 = vsel %vm500_vm1, %v14270_v54, %v6733_v26  ;;  %v12828_v41 = vsel %vm500_vm1, %v14271_v46, %v7083_v17 }
0x1410   : > { %v4402_v49 = vmax.f32 %v4394_v5, 0.0  ;;  %v4311_v61 = vadd.f32 %v4310_v0, %v14266_v1  ;;  %v4398_v32 = vadd.f32 %v4397_v12, %v14272_v53  ;;  %v4312_v45 = vpop.f32.mrb[126].mxu1  ;;  %v4399_v63 = vpop.f32.mrb[83].mxu0  ;;  %v7169_v16 = vrot.slane %v12739_v13, 2  ;;  %v14273_v5 = vld [vmem:[#allocation21_spill] sm:$0xff] }
0x1411   : > { %v4317_v30 = vmax.f32 %v4309_v58, 0.0  ;;  %v4403_v42 = vmax.f32 %v4396_v10, 0.0  ;;  %v4313_v50 = vadd.f32 %v4312_v45, %v14272_v53  ;;  %v4400_v26 = vadd.f32 %v4399_v63, %v14272_v53  ;;  %v4314_v31 = vpop.f32.mrb[127].mxu1 }
0x1412   : > { %v4318_v55 = vmax.f32 %v4311_v61, 0.0  ;;  %v4404_v47 = vmax.f32 %v4398_v32, 0.0  ;;  %v4315_v17 = vadd.f32 %v4314_v31, %v14272_v53  ;;  %v12838_v0 = vsel %vm500_vm1, %v14273_v5, %v7169_v16  ;;  %v8487_v5 = vld [vmem:[%s10280_s23 + $0x38] sm:$0x77] }
0x1413   : > { %14274 = vst [vmem:[#allocation14_spill] sm:$0xff] %v12838_v0  ;;  %v12840_v12 = vmax.f32 %v4317_v30, %v4402_v49  ;;  %v4319_v54 = vmax.f32 %v4313_v50, 0.0  ;;  %v4405_v46 = vmax.f32 %v4400_v26, 0.0  ;;  %v7257_v63 = vrot.slane %v12739_v13, 3  ;;  %v14275_v50 = vld [vmem:[#allocation22_spill] sm:$0xff]  ;;  %v14277_v26 = vld [vmem:[#allocation23_spill] sm:$0xff] }
0x1414   : > { %v12842_v58 = vmax.f32 %v4318_v55, %v4403_v42  ;;  %v4320_v10 = vmax.f32 %v4315_v17, 0.0  ;;  %v7345_v61 = vrot.slane %v12739_v13, 4  ;;  %v7433_v49 = vrot.slane %v12739_v13, 5  ;;  %v14293_v0 = vld [vmem:[#allocation30_spill] sm:$0xff] }
0x1415   : > { %v12844_v45 = vmax.f32 %v4319_v54, %v4404_v47  ;;  %v12855_v42 = vsel %vm500_vm1, %v14275_v50, %v7257_v63  ;;  %v14279_v54 = vld [vmem:[#allocation24_spill] sm:$0xff]  ;;  %v7521_v13 = vrot.slane %v12749_v2, 6  ;;  %v7609_v63 = vrot.slane %v12749_v2, 7  ;;  %v14281_v50 = vld [vmem:[#allocation27_spill] sm:$0xff] }
0x1416   : > { %v9872_v32 = vpack.i.bf16 %v12842_v58, %v12840_v12  ;;  %v12850_v31 = vmax.f32 %v4320_v10, %v4405_v46  ;;  %v4547_v16 = vpop.f32.mrb[84].mxu0  ;;  %14276 = vst [vmem:[#allocation5_spill] sm:$0xff] %v12855_v42  ;;  %v12859_v55 = vsel %vm500_vm1, %v14277_v26, %v7345_v61  ;;  %v12867_v46 = vsel %vm500_vm1, %v14279_v54, %v7433_v49  ;;  %v14283_v26 = vld [vmem:[#allocation25_spill] sm:$0xff]  ;;  %v14285_v49 = vld [vmem:[#allocation12_spill] sm:$0xff] }
0x1417   : > { %v4549_v30 = vpop.f32.mrb[85].mxu0  ;;  %14278 = vst [vmem:[#allocation8_spill] sm:$0xff] %v12859_v55  ;;  %14280 = vst [vmem:[#allocation9_spill] sm:$0xff] %v12867_v46  ;;  %v12874_v61 = vsel %vm500_vm1, %v14281_v50, %v12749_v2  ;;  %v7783_v40 = vrot.slane %v12749_v2, 1  ;;  %v12883_v54 = vcombine.low %v14285_v49, %v8487_v5  ;;  %v12887_v46 = vsel %vm500_vm1, %v14286_v51, %v7609_v63  ;;  %v14291_v63 = vld [vmem:[#allocation29_spill] sm:$0xff] }
0x1418   : > { %v9877_v47 = vpack.i.bf16 %v12850_v31, %v12844_v45  ;;  %v4551_v17 = vpop.f32.mrb[86].mxu0  ;;  %9873 = vrot.lane.b32.xlu1 %v9872_v32, %s10200_s24  ;;  %14282 = vst [vmem:[#allocation18_spill] sm:$0xff] %v12874_v61  ;;  %v12879_v32 = vsel %vm500_vm1, %v14283_v26, %v7521_v13  ;;  %14287 = vst [vmem:[#allocation3_spill] sm:$0xff] %v12887_v46  ;;  %v7869_v55 = vrot.slane %v12749_v2, 2  ;;  %v7957_v50 = vrot.slane %v12749_v2, 3  ;;  %v14289_v61 = vld [vmem:[#allocation28_spill] sm:$0xff] }
0x1419   : > { %v4553_v10 = vpop.f32.mrb[87].mxu0  ;;  %14284 = vst [vmem:[#allocation19_spill] sm:$0xff] %v12879_v32  ;;  %v12896_v13 = vsel %vm500_vm1, %v14289_v61, %v7783_v40  ;;  %v8045_v26 = vrot.slane %v12749_v2, 4  ;;  %v8133_v32 = vrot.slane %v12749_v2, 5  ;;  %v4548_v42 = vadd.f32 %v4547_v16, %v14266_v1  ;;  %v14296_v2 = vld [vmem:[#allocation31_spill] sm:$0xff] }
0x141a   : > { %9878 = vrot.lane.b32.xlu0 %v9877_v47, %s10200_s24  ;;  %v14288_v47 = vrot.slane %v12496_v52, 1  ;;  %14290 = vst [vmem:[#allocation11_spill] sm:$0xff] %v12896_v13  ;;  %v12902_v51 = vcombine.high %v14285_v49, %v8487_v5  ;;  %v12906_v46 = vsel %vm500_vm1, %v14291_v63, %v7869_v55  ;;  %v4550_v40 = vadd.f32 %v4549_v30, %v14266_v1  ;;  %v14298_v5 = vld [vmem:[#allocation32_spill] sm:$0xff] }
0x141b   : > { %14292 = vst [vmem:[#allocation15_spill] sm:$0xff] %v12906_v46  ;;  %v14295_v13 = vrot.slane %v12512_v19, 1  ;;  %v12918_v16 = vsel %vm500_vm1, %v14296_v2, %v8045_v26  ;;  %v12922_v49 = vsel %vm500_vm1, %v14298_v5, %v8133_v32  ;;  %v4552_v55 = vadd.f32 %v4551_v17, %v14272_v53 }
0x141c   : > { %4795 = vrot.lane.b32.xlu1 %v14288_v47, %s10200_s24  ;;  %v12910_v47 = vsel %vm500_vm1, %v14293_v0, %v7957_v50  ;;  %14297 = vst [vmem:[#allocation17_spill] sm:$0xff] %v12918_v16  ;;  %14299 = vst [vmem:[#allocation20_spill] sm:$0xff] %v12922_v49  ;;  %v12927_v30 = vshrl.u32 %v12883_v54, 16  ;;  %v4554_v63 = vadd.f32 %v4553_v10, %v14272_v53  ;;  %v12934_v26 = vshll.u32 %v12883_v54, 16 }
0x141d   : > { %14294 = vst [vmem:[#allocation16_spill] sm:$0xff] %v12910_v47  ;;  %v4556_v32 = vmax.f32 %v4548_v42, 0.0  ;;  %v12938_v5 = vshrl.u32 %v12902_v51, 16  ;;  %v4557_v49 = vmax.f32 %v4550_v40, 0.0 }
0x141e   : > { %v4626_v61 = vpop.f32.mrb[88].mxu0  ;;  %4797 = vrot.lane.b32.xlu0 %v14295_v13, %s10200_s24  ;;  %v4954_v40 = vrot.slane %v12934_v26, 2 }
0x141f   : > { %v4627_v0 = vadd.f32 %v4626_v61, %v14266_v1  ;;  %v4628_v50 = vpop.f32.mrb[89].mxu0 }
0x1420   : > { %v4629_v19 = vadd.f32 %v4628_v50, %v14266_v1  ;;  %v4630_v13 = vpop.f32.mrb[90].mxu0  ;;  %4802 = vrot.lane.b32.xlu1 %v12570_v15, %s10201_s25  ;;  %v12944_v15 = vshll.u32 %v12902_v51, 16  ;;  %v4558_v50 = vmax.f32 %v4552_v55, 0.0  ;;  %v4959_v55 = vrot.slane %v12938_v5, 1 }
0x1421   : > { %v4635_v2 = vmax.f32 %v4627_v0, 0.0  ;;  %v4631_v17 = vadd.f32 %v4630_v13, %v14272_v53  ;;  %v4632_v61 = vpop.f32.mrb[91].mxu0  ;;  %v4951_v0 = vrot.slane %v12927_v30, 1  ;;  %v4559_v13 = vmax.f32 %v4554_v63, 0.0 }
0x1422   : > { %v4636_v16 = vmax.f32 %v4629_v19, 0.0  ;;  %v4633_v10 = vadd.f32 %v4632_v61, %v14272_v53  ;;  %4804 = vrot.lane.b32.xlu0 %v12580_v3, %s10201_s25  ;;  %v5052_v63 = vrot.slane %v12934_v26, 1 }
0x1423   : > { %v12946_v47 = vmax.f32 %v4556_v32, %v4635_v2  ;;  %v4637_v42 = vmax.f32 %v4631_v17, 0.0  ;;  %v4962_v32 = vrot.slane %v12944_v15, 2  ;;  %v5044_v17 = vrot.slane %v12902_v51, 2 }
0x1424   : > { %v12949_v46 = vmax.f32 %v4557_v49, %v4636_v16  ;;  %v4638_v56 = vmax.f32 %v4633_v10, 0.0  ;;  %v4955_v16 = vor.u32 %v4954_v40, %v4951_v0  ;;  %v5054_v10 = vrot.slane %v12944_v15, 1  ;;  %v4717_v0 = vpop.permute.xlu1 %4716 }
0x1425   : > { %v12952_v19 = vmax.f32 %v4558_v50, %v4637_v42  ;;  %v4963_v49 = vor.u32 %v4962_v32, %v4959_v55  ;;  %v5053_v50 = vor.u32 %v5052_v63, %v12927_v30  ;;  %v4712_v40 = vrot.slane %v12496_v52, 2 }
0x1426   : > { %v9882_v3 = vpack.i.bf16 %v12949_v46, %v12946_v47  ;;  %v12956_v61 = vmax.f32 %v4559_v13, %v4638_v56  ;;  %v5043_v56 = vrot.slane %v12883_v54, 2  ;;  %v5055_v42 = vor.u32 %v5054_v10, %v12938_v5 }
0x1427   : > { %v4790_v32 = vrot.slane %v12516_v57, 2  ;;  %v4787_v10 = vrot.slane %v12500_v37, 2 }
0x1428   : > { %v9887_v2 = vpack.i.bf16 %v12956_v61, %v12952_v19  ;;  %9883 = vrot.lane.b32.xlu1 %v9882_v3, %s10200_s24  ;;  %v4724_v13 = vpop.permute.xlu1 %4723  ;;  %v4720_v3 = vsel %vm488_vm5, %v4717_v0, %v12729_v27 }
0x1429   : > { %v4727_v63 = vsel %vm498_vm3, %v4724_v13, %v12734_v48 }
0x142a   : > { %9888 = vrot.lane.b32.xlu0 %v9887_v2, %s10200_s24  ;;  %v4791_v2 = vrot.slane %v12519_v62, 3 }
0x142c   : > { %4964 = vrot.lane.b32.xlu1 %v4955_v16, %s10200_s24  ;;  %v4792_v0 = vor.u32 %v4791_v2, %v4790_v32 }
0x142e   : > { %4966 = vrot.lane.b32.xlu0 %v4963_v49, %s10200_s24 }
0x1430   : > { %4971 = vrot.lane.b32.xlu1 %v12883_v54, %s10201_s25 }
0x1432   : > { %4973 = vrot.lane.b32.xlu0 %v12902_v51, %s10201_s25 }
0x1434   : > { %5045 = vrot.lane.b32.xlu1 %v5043_v56, %s10200_s24  ;;  %v4728_v56 = vsel %vm10348_vm7, %v4712_v40, %v4720_v3 }
0x1435   : > { %v4732_v3 = vsel %vm505_vm6, %v4728_v56, %v4727_v63 }
0x1436   : > { %5047 = vrot.lane.b32.xlu0 %v5044_v17, %s10200_s24 }
0x1438   : > { %5056 = vrot.lane.b32.xlu1 %v5053_v50, %s10201_s25 }
0x143a   : > { %5058 = vrot.lane.b32.xlu0 %v5055_v42, %s10201_s25  ;;  %v4788_v42 = vrot.slane %v12503_v25, 3 }
0x143c   : > { %v4789_v29 = vor.u32 %v4788_v42, %v4787_v10 }
0x148a   : > { %v9874_v55 = vpop.permute.xlu1 %9873 }
0x148b   : > { %v9876_v16 = vunpack.i.h.bf16 %v9874_v55  ;;  %v9875_v49 = vunpack.i.l.bf16 %v9874_v55 }
0x148c   : > { %v9879_v17 = vpop.permute.xlu0 %9878 }
0x148d   : > { %v4422_v52 = vsel %vm488_vm5, %v9875_v49, %v9876_v16  ;;  %v9881_v50 = vunpack.i.h.bf16 %v9879_v17  ;;  %v9880_v27 = vunpack.i.l.bf16 %v9879_v17  ;;  %v4429_v62 = vmax.f32 %v12842_v58, %v9876_v16 }
0x148e   : > { %v4796_v57 = vpop.permute.xlu1 %4795  ;;  %v4428_v48 = vmax.f32 %v12840_v12, %v4422_v52 }
0x148f   : > { %v4431_v55 = vmax.f32 %v12850_v31, %v9881_v50  ;;  %v4423_v40 = vsel %vm488_vm5, %v9880_v27, %v9881_v50  ;;  %v4736_v31 = vand.u32 %v4732_v3, %v14249_v23 }
0x1490   : > { %v4430_v37 = vmax.f32 %v12844_v45, %v4423_v40  ;;  %v4798_v13 = vpop.permute.xlu0 %4797 }
0x1491   : > { %v4433_v49 = vpack.c.bf16 %v4431_v55, %v4429_v62  ;;  %v4799_v17 = vsel %vm488_vm5, %v4796_v57, %v4798_v13  ;;  %v4808_v25 = vsel %vm10348_vm7, %v4792_v0, %v4798_v13  ;;  %v4945_v13 = vrot.slane %v12902_v51, 3 }
0x1492   : > { %v4432_v32 = vpack.c.bf16 %v4430_v37, %v4428_v48  ;;  %v4803_v58 = vpop.permute.xlu1 %4802  ;;  %v4807_v12 = vsel %vm10348_vm7, %v4789_v29, %v4799_v17  ;;  %v5038_v51 = vrot.slane %v12938_v5, 3 }
0x1493   : > { %8492 = vmatprep.mubr.msk.bf16.mxu1 %vm781_vm9, %v4433_v49 }
0x1494   : > { %4470 = vmatmul.mubr.bf16.vlgmr.msra.gmra.mrb[128].mxu1 %v4432_v32  ;;  %v4805_v2 = vpop.permute.xlu0 %4804 }
0x1495   : > { %4741 = vmatpush1.bf16.msra.mxu1 %v4736_v31  ;;  %v4806_v45 = vsel %vm498_vm3, %v4803_v58, %v4805_v2  ;;  %v4814_v16 = vsel %vm505_vm6, %v4808_v25, %v4805_v2  ;;  %4772 = vmatprep.mubr.bf16.mxu1 %v14250_v36  ;;  %v4944_v25 = vrot.slane %v12883_v54, 3  ;;  %v5035_v54 = vrot.slane %v12927_v30, 3 }
0x1496   : > { %v4817_v56 = vand.u32 %v4814_v16, %v14249_v23  ;;  %v4811_v63 = vsel %vm505_vm6, %v4807_v12, %v4806_v45  ;;  %v5036_v45 = vrot.slane %v12934_v26, 4  ;;  %v10169_v16 = vld [vmem:[%s14139_s5] sm:$0xff]  }
0x1497   : > { %v4815_v52 = vand.u32 %v4811_v63, %v14249_v23 }
0x1498   : > { %4819 = vmatprep.subr.bf16.mxu1 %v4817_v56  ;;  %v5037_v26 = vor.u32 %v5036_v45, %v5035_v54 }
0x149a   : > { %v9884_v10 = vpop.permute.xlu1 %9883 }
0x149b   : > { %v9886_v50 = vunpack.i.h.bf16 %v9884_v10  ;;  %v9885_v27 = vunpack.i.l.bf16 %v9884_v10 }
0x149c   : > { %v9889_v42 = vpop.permute.xlu0 %9888  ;;  %8496 = vmatmul.mubr.msk.bf16.vlgmr.msra.gmra.mrb[132].mxu1 %vm527_vm8, %v12634_v34 }
0x149d   : > { %v4655_v29 = vsel %vm488_vm5, %v9885_v27, %v9886_v50  ;;  %v9891_v57 = vunpack.i.h.bf16 %v9889_v42  ;;  %v9890_v0 = vunpack.i.l.bf16 %v9889_v42  ;;  %4820 = vmatpush1.bf16.msra.mxu1 %v4815_v52  ;;  %4851 = vmatprep.mubr.bf16.mxu1 %v14250_v36  ;;  %v4662_v55 = vmax.f32 %v12949_v46, %v9886_v50  ;;  %v10170_v52 = vld [vmem:[%s14139_s5 + $0x8] sm:$0xff]  }
0x149e   : > { %v4965_v62 = vpop.permute.xlu1 %4964  ;;  %4897 = vmatprep.subr.bf16.mxu1 %v14250_v36  ;;  %v4661_v48 = vmax.f32 %v12946_v47, %v4655_v29  ;;  %v5039_v47 = vrot.slane %v12944_v15, 4 }
0x149f   : > { %v4664_v40 = vmax.f32 %v12956_v61, %v9891_v57  ;;  %v4656_v3 = vsel %vm488_vm5, %v9890_v0, %v9891_v57 }
0x14a0   : > { %v4663_v37 = vmax.f32 %v12952_v19, %v4656_v3  ;;  %v4967_v49 = vpop.permute.xlu0 %4966  ;;  %v5040_v63 = vor.u32 %v5039_v47, %v5038_v51 }
0x14a1   : > { %v4666_v17 = vpack.c.bf16 %v4664_v40, %v4662_v55  ;;  %v4968_v32 = vsel %vm488_vm5, %v4965_v62, %v4967_v49  ;;  %v4977_v46 = vsel %vm10348_vm7, %v4945_v13, %v4967_v49  ;;  %v10171_v55 = vld [vmem:[%s14139_s5 + $0x10] sm:$0xff]   ;;  %v10176_v13 = vld [vmem:[%s14139_s5 + $0x38] sm:$0xff]   ;;  %v10177_v49 = vld [vmem:[%s14139_s5 + $0x40] sm:$0xff]  }
0x14a2   : > { %v4972_v58 = vpop.permute.xlu1 %4971  ;;  %v4665_v31 = vpack.c.bf16 %v4663_v37, %v4661_v48  ;;  %v4976_v19 = vsel %vm10348_vm7, %v4944_v25, %v4968_v32  ;;  %v10172_v48 = vld [vmem:[%s14139_s5 + $0x18] sm:$0xff]   ;;  %v10173_v37 = vld [vmem:[%s14139_s5 + $0x20] sm:$0xff]   ;;  %v10179_v25 = vld [vmem:[%s14139_s5 + $0x50] sm:$0xff]  }
0x14a3   : > { %8495 = vmatprep.mubr.msk.bf16.mxu0 %vm781_vm9, %v4666_v17  ;;  %v10178_v17 = vld [vmem:[%s14139_s5 + $0x48] sm:$0xff]   ;;  %v10180_v32 = vld [vmem:[%s14139_s5 + $0x58] sm:$0xff]  }
0x14a4   : > { %v4974_v61 = vpop.permute.xlu0 %4973  ;;  %4703 = vmatmul.mubr.bf16.vlgmr.msra.gmra.mrb[92].mxu0 %v4665_v31  ;;  %8497 = vmatmul.mubr.msk.bf16.vlgmr.msra.gmra.mrb[136].mxu1 %vm527_vm8, %v12634_v34 }
0x14a5   : > { %v4983_v2 = vsel %vm505_vm6, %v4977_v46, %v4974_v61  ;;  %v4975_v12 = vsel %vm498_vm3, %v4972_v58, %v4974_v61  ;;  %5020 = vmatprep.mubr.bf16.mxu0 %v14250_v36  ;;  %4898 = vmatpush1.bf16.msra.mxu1 %v10169_v16  ;;  %v10181_v58 = vld [vmem:[%s14139_s5 + $0x60] sm:$0xff]  }
0x14a6   : > { %v4986_v5 = vand.u32 %v4983_v2, %v14249_v23  ;;  %v4980_v30 = vsel %vm505_vm6, %v4976_v19, %v4975_v12  ;;  %v5046_v15 = vpop.permute.xlu1 %5045  ;;  %4899 = vmatprep.subr.bf16.mxu1 %v14250_v36 }
0x14a7   : > { %v4984_v56 = vand.u32 %v4980_v30, %v14249_v23 }
0x14a8   : > { %4988 = vmatprep.subr.bf16.mxu0 %v4986_v5  ;;  %v5048_v10 = vpop.permute.xlu0 %5047 }
0x14a9   : > { %4989 = vmatpush1.bf16.msra.mxu0 %v4984_v56  ;;  %4900 = vmatpush1.bf16.msra.mxu1 %v10170_v52  ;;  %v5049_v50 = vsel %vm488_vm5, %v5046_v15, %v5048_v10  ;;  %v5062_v42 = vsel %vm10348_vm7, %v5040_v63, %v5048_v10 }
0x14aa   : > { %v5057_v27 = vpop.permute.xlu1 %5056  ;;  %4901 = vmatprep.subr.bf16.mxu1 %v14250_v36  ;;  %v5061_v57 = vsel %vm10348_vm7, %v5037_v26, %v5049_v50 }
0x14ac   : > { %v5059_v29 = vpop.permute.xlu0 %5058  ;;  %8501 = vmatmul.mubr.msk.bf16.vlgmr.msra.gmra.mrb[96].mxu0 %vm527_vm8, %v12634_v34 }
0x14ad   : > { %v5068_v0 = vsel %vm505_vm6, %v5062_v42, %v5059_v29  ;;  %v5060_v62 = vsel %vm498_vm3, %v5057_v27, %v5059_v29  ;;  %5105 = vmatprep.mubr.bf16.mxu0 %v14250_v36  ;;  %4902 = vmatpush1.bf16.msra.mxu1 %v10171_v55 }
0x14ae   : > { %v5071_v40 = vand.u32 %v5068_v0, %v14249_v23  ;;  %v5065_v3 = vsel %vm505_vm6, %v5061_v57, %v5060_v62  ;;  %4903 = vmatprep.subr.bf16.mxu1 %v14250_v36 }
0x14af   : > { %v5069_v38 = vand.u32 %v5065_v3, %v14249_v23  ;;  %v10174_v23 = vld [vmem:[%s14139_s5 + $0x28] sm:$0xff]  }
0x14b0   : > { %5073 = vmatprep.subr.bf16.mxu0 %v5071_v40 }
0x14b1   : > { %5074 = vmatpush1.bf16.msra.mxu0 %v5069_v38  ;;  %4904 = vmatpush1.bf16.msra.mxu1 %v10172_v48 }
0x14b2   : > { %4905 = vmatprep.subr.bf16.mxu1 %v14250_v36  ;;  %5151 = vmatprep.subr.bf16.mxu0 %v14250_v36 }
0x14b4   : > { %8502 = vmatmul.mubr.msk.bf16.vlgmr.msra.gmra.mrb[100].mxu0 %vm527_vm8, %v12634_v34  ;;  %v10175_v34 = vld [vmem:[%s14139_s5 + $0x30] sm:$0xff]  }
0x14b5   : > { %4906 = vmatpush1.bf16.msra.mxu1 %v10173_v37  ;;  %5152 = vmatpush1.bf16.msra.mxu0 %v10169_v16 }
0x14b6   : > { %4907 = vmatprep.subr.bf16.mxu1 %v14250_v36  ;;  %5153 = vmatprep.subr.bf16.mxu0 %v14250_v36 }
0x14b9   : > { %4908 = vmatpush1.bf16.msra.mxu1 %v10174_v23  ;;  %5154 = vmatpush1.bf16.msra.mxu0 %v10170_v52 }
0x14ba   : > { %4909 = vmatprep.subr.bf16.mxu1 %v14250_v36  ;;  %5155 = vmatprep.subr.bf16.mxu0 %v14250_v36 }
0x14bd   : > { %4910 = vmatpush1.bf16.msra.mxu1 %v10175_v34  ;;  %5156 = vmatpush1.bf16.msra.mxu0 %v10171_v55 }
0x14be   : > { %4911 = vmatprep.subr.bf16.mxu1 %v14250_v36  ;;  %5157 = vmatprep.subr.bf16.mxu0 %v14250_v36 }
0x14c1   : > { %4912 = vmatpush1.bf16.msra.mxu1 %v10176_v13  ;;  %5158 = vmatpush1.bf16.msra.mxu0 %v10172_v48 }
0x14c2   : > { %4913 = vmatprep.subr.bf16.mxu1 %v14250_v36  ;;  %5159 = vmatprep.subr.bf16.mxu0 %v14250_v36 }
0x14c5   : > { %4914 = vmatpush1.bf16.msra.mxu1 %v10177_v49  ;;  %5160 = vmatpush1.bf16.msra.mxu0 %v10173_v37 }
0x14c6   : > { %4915 = vmatprep.subr.bf16.mxu1 %v14250_v36  ;;  %5161 = vmatprep.subr.bf16.mxu0 %v14250_v36 }
0x14c9   : > { %4916 = vmatpush1.bf16.msra.mxu1 %v10178_v17  ;;  %5162 = vmatpush1.bf16.msra.mxu0 %v10174_v23 }
0x14ca   : > { %4917 = vmatprep.subr.bf16.mxu1 %v14250_v36  ;;  %5163 = vmatprep.subr.bf16.mxu0 %v14250_v36 }
0x14cd   : > { %4918 = vmatpush1.bf16.msra.mxu1 %v10179_v25  ;;  %5164 = vmatpush1.bf16.msra.mxu0 %v10175_v34 }
0x14ce   : > { %4919 = vmatprep.subr.bf16.mxu1 %v14250_v36  ;;  %5165 = vmatprep.subr.bf16.mxu0 %v14250_v36 }
0x14d1   : > { %4920 = vmatpush1.bf16.msra.mxu1 %v10180_v32  ;;  %5166 = vmatpush1.bf16.msra.mxu0 %v10176_v13 }
0x14d2   : > { %4921 = vmatprep.subr.bf16.mxu1 %v14250_v36  ;;  %5167 = vmatprep.subr.bf16.mxu0 %v14250_v36 }
0x14d5   : > { %4922 = vmatpush1.bf16.msra.mxu1 %v10181_v58  ;;  %5168 = vmatpush1.bf16.msra.mxu0 %v10177_v49 }
0x14d6   : > { %4923 = vmatprep.subr.bf16.mxu1 %v14250_v36  ;;  %5169 = vmatprep.subr.bf16.mxu0 %v14250_v36 }
0x14d9   : > { %4924 = vmatpush1.bf16.msra.mxu1 %v14252_v4  ;;  %5170 = vmatpush1.bf16.msra.mxu0 %v10178_v17 }
0x14da   : > { %5171 = vmatprep.subr.bf16.mxu0 %v14250_v36  ;;  %5214 = vmatprep.subr.bf16.mxu1 %v14250_v36 }
0x14dd   : > { %5172 = vmatpush1.bf16.msra.mxu0 %v10179_v25 }
0x14de   : > { %5173 = vmatprep.subr.bf16.mxu0 %v14250_v36 }
0x14e1   : > { %5174 = vmatpush1.bf16.msra.mxu0 %v10180_v32 }
0x14e2   : > { %5175 = vmatprep.subr.bf16.mxu0 %v14250_v36 }
0x14e5   : > { %5176 = vmatpush1.bf16.msra.mxu0 %v10181_v58 }
0x14e6   : > { %5177 = vmatprep.subr.bf16.mxu0 %v14250_v36 }
0x14e9   : > { %5178 = vmatpush1.bf16.msra.mxu0 %v14252_v4 }
0x14ea   : > { %5274 = vmatprep.subr.bf16.mxu0 %v14250_v36 }
0x1567   : > { %v4471_v31 = vpop.f32.mrb[128].mxu1 }
0x1568   : > { %v4473_v46 = vpop.f32.mrb[129].mxu1 }
0x1569   : > { %v4474_v61 = vpop.f32.mrb[130].mxu1 }
0x156a   : > { %v13126_v51 = vpack.c.bf16 %v4474_v61, %v4471_v31  ;;  %v4476_v47 = vpop.f32.mrb[131].mxu1 }
0x156f   : > { %v4774_v54 = vpop.f32.mrb[132].mxu1 }
0x1570   : > { %v4776_v19 = vpop.f32.mrb[133].mxu1  ;;  %v4775_v45 = vadd.f32 %v4774_v54, %v14266_v1 }
0x1571   : > { %v4778_v2 = vpop.f32.mrb[134].mxu1  ;;  %v4777_v16 = vadd.f32 %v4776_v19, %v14266_v1 }
0x1572   : > { %v4780_v12 = vpop.f32.mrb[135].mxu1  ;;  %v4779_v4 = vadd.f32 %v4778_v2, %v14272_v53  ;;  %v4783_v27 = vmax.f32 %v4775_v45, 0.0 }
0x1573   : > { %v4781_v10 = vadd.f32 %v4780_v12, %v14272_v53  ;;  %v4784_v55 = vmax.f32 %v4777_v16, 0.0 }
0x1574   : > { %v4785_v38 = vmax.f32 %v4779_v4, 0.0 }
0x1575   : > { %v4786_v23 = vmax.f32 %v4781_v10, 0.0 }
0x1577   : > { %v4704_v5 = vpop.f32.mrb[92].mxu0  ;;  %v4853_v30 = vpop.f32.mrb[136].mxu1 }
0x1578   : > { %v4854_v15 = vadd.f32 %v4853_v30, %v14266_v1  ;;  %v4706_v56 = vpop.f32.mrb[93].mxu0  ;;  %v4855_v63 = vpop.f32.mrb[137].mxu1 }
0x1579   : > { %v4856_v26 = vadd.f32 %v4855_v63, %v14266_v1  ;;  %v4707_v52 = vpop.f32.mrb[94].mxu0  ;;  %v4857_v50 = vpop.f32.mrb[138].mxu1 }
0x157a   : > { %v4862_v42 = vmax.f32 %v4854_v15, 0.0  ;;  %v13134_v29 = vpack.c.bf16 %v4707_v52, %v4704_v5  ;;  %v4858_v57 = vadd.f32 %v4857_v50, %v14272_v53  ;;  %v4709_v0 = vpop.f32.mrb[95].mxu0  ;;  %v4859_v62 = vpop.f32.mrb[139].mxu1 }
0x157b   : > { %v4863_v40 = vmax.f32 %v4856_v26, 0.0  ;;  %v4860_v3 = vadd.f32 %v4859_v62, %v14272_v53 }
0x157c   : > { %v4866_v48 = vmax.f32 %v4783_v27, %v4862_v42  ;;  %v4864_v37 = vmax.f32 %v4858_v57, 0.0 }
0x157d   : > { %v4867_v34 = vmax.f32 %v4784_v55, %v4863_v40  ;;  %v4865_v13 = vmax.f32 %v4860_v3, 0.0 }
0x157e   : > { %v4868_v49 = vmax.f32 %v4785_v38, %v4864_v37 }
0x157f   : > { %v9892_v17 = vpack.i.bf16 %v4867_v34, %v4866_v48  ;;  %v4869_v25 = vmax.f32 %v4786_v23, %v4865_v13  ;;  %v5022_v32 = vpop.f32.mrb[96].mxu0 }
0x1580   : > { %v5024_v58 = vpop.f32.mrb[97].mxu0  ;;  %v5023_v47 = vadd.f32 %v5022_v32, %v14266_v1 }
0x1581   : > { %v9897_v31 = vpack.i.bf16 %v4869_v25, %v4868_v49  ;;  %v5026_v46 = vpop.f32.mrb[98].mxu0  ;;  %9893 = vrot.lane.b32.xlu1 %v9892_v17, %s10200_s24  ;;  %v5025_v54 = vadd.f32 %v5024_v58, %v14266_v1 }
0x1582   : > { %v5028_v61 = vpop.f32.mrb[99].mxu0  ;;  %v5027_v2 = vadd.f32 %v5026_v46, %v14272_v53  ;;  %v5031_v4 = vmax.f32 %v5023_v47, 0.0 }
0x1583   : > { %9898 = vrot.lane.b32.xlu0 %v9897_v31, %s10200_s24  ;;  %v5029_v16 = vadd.f32 %v5028_v61, %v14272_v53  ;;  %v5032_v10 = vmax.f32 %v5025_v54, 0.0 }
0x1584   : > { %v5033_v50 = vmax.f32 %v5027_v2, 0.0  ;;  %v10182_v2 = vld [vmem:[%s14137_s3 + $0x4] ss:$8 sps:$4 sm:$0xff]  }
0x1585   : > { %v5034_v57 = vmax.f32 %v5029_v16, 0.0 }
0x1587   : > { %v5107_v19 = vpop.f32.mrb[100].mxu0 }
0x1588   : > { %v5108_v12 = vadd.f32 %v5107_v19, %v14266_v1  ;;  %v5109_v45 = vpop.f32.mrb[101].mxu0 }
0x1589   : > { %v5110_v5 = vadd.f32 %v5109_v45, %v14266_v1  ;;  %v5111_v30 = vpop.f32.mrb[102].mxu0 }
0x158a   : > { %v5116_v15 = vmax.f32 %v5108_v12, 0.0  ;;  %v5112_v56 = vadd.f32 %v5111_v30, %v14272_v53  ;;  %v5113_v63 = vpop.f32.mrb[103].mxu0 }
0x158b   : > { %v5117_v26 = vmax.f32 %v5110_v5, 0.0  ;;  %v5114_v52 = vadd.f32 %v5113_v63, %v14272_v53 }
0x158c   : > { %v5120_v27 = vmax.f32 %v5031_v4, %v5116_v15  ;;  %v5118_v42 = vmax.f32 %v5112_v56, 0.0 }
0x158d   : > { %v5121_v0 = vmax.f32 %v5032_v10, %v5117_v26  ;;  %v5119_v62 = vmax.f32 %v5114_v52, 0.0 }
0x158e   : > { %v5122_v55 = vmax.f32 %v5033_v50, %v5118_v42 }
0x158f   : > { %v9902_v40 = vpack.i.bf16 %v5121_v0, %v5120_v27  ;;  %v5123_v3 = vmax.f32 %v5034_v57, %v5119_v62 }
0x1591   : > { %v9907_v1 = vpack.i.bf16 %v5123_v3, %v5122_v55  ;;  %9903 = vrot.lane.b32.xlu1 %v9902_v40, %s10200_s24 }
0x1593   : > { %9908 = vrot.lane.b32.xlu0 %v9907_v1, %s10200_s24 }
0x1595   : > { %5194 = vrot.lane.b32.xlu1 %v13126_v51, %s10200_s24 }
0x1597   : > { %5201 = vrot.lane.b32.xlu0 %v13134_v29, %s10200_s24 }
0x1599   : > { %5197 = vrot.lane.b32.xlu1 %v13126_v51, %s10201_s25 }
0x159b   : > { %5204 = vrot.lane.b32.xlu0 %v13134_v29, %s10201_s25 }
0x15f3   : > { %v9894_v53 = vpop.permute.xlu1 %9893 }
0x15f4   : > { %v9896_v38 = vunpack.i.h.bf16 %v9894_v53  ;;  %v9895_v37 = vunpack.i.l.bf16 %v9894_v53 }
0x15f5   : > { %v9899_v23 = vpop.permute.xlu0 %9898 }
0x15f6   : > { %v4882_v13 = vsel %vm488_vm5, %v9895_v37, %v9896_v38  ;;  %v9901_v17 = vunpack.i.h.bf16 %v9899_v23  ;;  %v9900_v32 = vunpack.i.l.bf16 %v9899_v23  ;;  %v4889_v58 = vmax.f32 %v4867_v34, %v9896_v38  ;;  %v10183_v37 = vld [vmem:[%s14140_s6] sm:$0xff]  }
0x15f7   : > { %v4888_v61 = vmax.f32 %v4866_v48, %v4882_v13  ;;  %v10184_v23 = vld [vmem:[%s14137_s3] ss:$8 sps:$4 sm:$0xff]   ;;  %v10185_v13 = vld [vmem:[%s14137_s3 + $0x14] ss:$8 sps:$4 sm:$0xff]  }
0x15f8   : > { %v4891_v31 = vmax.f32 %v4869_v25, %v9901_v17  ;;  %v4883_v46 = vsel %vm488_vm5, %v9900_v32, %v9901_v17  ;;  %v10186_v17 = vld [vmem:[%s14140_s6 + $0x8] sm:$0xff]   ;;  %v10187_v32 = vld [vmem:[%s14140_s6 + $0x10] sm:$0xff]  }
0x15f9   : > { %v4890_v47 = vmax.f32 %v4868_v49, %v4883_v46  ;;  %v10189_v46 = vld [vmem:[%s14140_s6 + $0x18] sm:$0xff]  }
0x15fa   : > { %v4893_v54 = vpack.c.bf16 %v4891_v31, %v4889_v58  ;;  %v10188_v31 = vld [vmem:[%s14137_s3 + $0x10] ss:$8 sps:$4 sm:$0xff]  }
0x15fb   : > { %v4892_v19 = vpack.c.bf16 %v4890_v47, %v4888_v61  ;;  %v10190_v47 = vld [vmem:[%s14140_s6 + $0x20] sm:$0xff]  }
0x15fc   : > { %8498 = vmatprep.mubr.msk.bf16.mxu1 %vm781_vm9, %v4893_v54  ;;  %v14300_v54 = vld [vmem:[#allocation10_spill] sm:$0xff] }
0x15fd   : > { %4930 = vmatmul.mubr.bf16.vlgmr.msra.gmra.mrb[140].mxu1 %v4892_v19 }
0x15fe   : > { %5215 = vmatpush1.bf16.msra.mxu1 %v13126_v51  ;;  %8504 = vmatprep.mubr.msk.bf16.mxu1 %vm1604_vm10, %v10182_v2 }
0x15ff   : > { %5216 = vmatprep.subr.bf16.mxu1 %v14250_v36 }
0x1603   : > { %v9904_v34 = vpop.permute.xlu1 %9903 }
0x1604   : > { %v9906_v25 = vunpack.i.h.bf16 %v9904_v34  ;;  %v9905_v12 = vunpack.i.l.bf16 %v9904_v34 }
0x1605   : > { %v9909_v48 = vpop.permute.xlu0 %9908 }
0x1606   : > { %v5136_v49 = vsel %vm488_vm5, %v9905_v12, %v9906_v25  ;;  %v9911_v45 = vunpack.i.h.bf16 %v9909_v48  ;;  %v9910_v16 = vunpack.i.l.bf16 %v9909_v48  ;;  %v5143_v30 = vmax.f32 %v5121_v0, %v9906_v25 }
0x1607   : > { %v5195_v5 = vpop.permute.xlu1 %5194  ;;  %v5142_v15 = vmax.f32 %v5120_v27, %v5136_v49 }
0x1608   : > { %v5145_v4 = vmax.f32 %v5123_v3, %v9911_v45  ;;  %v5137_v51 = vsel %vm488_vm5, %v9910_v16, %v9911_v45  ;;  %5217 = vmatpush1.bf16.msra.mxu1 %v5195_v5  ;;  %v14301_v16 = vld [vmem:[#allocation6_spill] sm:$0xff] }
0x1609   : > { %v5144_v56 = vmax.f32 %v5122_v55, %v5137_v51  ;;  %5218 = vmatprep.subr.bf16.mxu1 %v14250_v36  ;;  %v5202_v52 = vpop.permute.xlu0 %5201 }
0x160a   : > { %v5147_v63 = vpack.c.bf16 %v5145_v4, %v5143_v30  ;;  %v14302_v4 = vld [vmem:[#allocation7_spill] sm:$0xff] }
0x160b   : > { %v5198_v10 = vpop.permute.xlu1 %5197  ;;  %v5146_v26 = vpack.c.bf16 %v5144_v56, %v5142_v15 }
0x160c   : > { %8503 = vmatprep.mubr.msk.bf16.mxu0 %vm781_vm9, %v5147_v63  ;;  %5219 = vmatpush1.bf16.msra.mxu1 %v5198_v10 }
0x160d   : > { %5184 = vmatmul.mubr.bf16.vlgmr.msra.gmra.mrb[104].mxu0 %v5146_v26  ;;  %5220 = vmatprep.subr.bf16.mxu1 %v14250_v36  ;;  %v5205_v50 = vpop.permute.xlu0 %5204 }
0x160e   : > { %5275 = vmatpush1.bf16.msra.mxu0 %v13134_v29  ;;  %8506 = vmatprep.mubr.msk.bf16.mxu0 %vm1604_vm10, %v10182_v2 }
0x160f   : > { %5276 = vmatprep.subr.bf16.mxu0 %v14250_v36 }
0x1610   : > { %5221 = vmatpush1.bf16.msra.mxu1 %v13134_v29 }
0x1611   : > { %5222 = vmatprep.subr.bf16.mxu1 %v14250_v36 }
0x1612   : > { %5277 = vmatpush1.bf16.msra.mxu0 %v5202_v52 }
0x1613   : > { %5278 = vmatprep.subr.bf16.mxu0 %v14250_v36 }
0x1614   : > { %5223 = vmatpush1.bf16.msra.mxu1 %v5202_v52 }
0x1615   : > { %5224 = vmatprep.subr.bf16.mxu1 %v14250_v36 }
0x1616   : > { %5279 = vmatpush1.bf16.msra.mxu0 %v5205_v50 }
0x1617   : > { %5280 = vmatprep.subr.bf16.mxu0 %v14250_v36 }
0x1618   : > { %5225 = vmatpush1.bf16.msra.mxu1 %v5205_v50 }
0x1619   : > { %5226 = vmatprep.subr.bf16.mxu1 %v14250_v36 }
0x16d0   : > { %v4931_v27 = vpop.f32.mrb[140].mxu1 }
0x16d1   : > { %v4933_v42 = vpop.f32.mrb[141].mxu1 }
0x16d2   : > { %v4934_v57 = vpop.f32.mrb[142].mxu1 }
0x16d3   : > { %v4938_v0 = vpack.c.bf16 %v4934_v57, %v4931_v27  ;;  %v4936_v29 = vpop.f32.mrb[143].mxu1 }
0x16d5   : > { %5211 = vrot.lane.b32.xlu0 %v4938_v0, %s10201_s25  ;;  %5208 = vrot.lane.b32.xlu1 %v4938_v0, %s10200_s24 }
0x16d6   : > { %5227 = vmatpush1.bf16.msra.mxu1 %v4938_v0  ;;  %5281 = vmatpush1.bf16.msra.mxu0 %v4938_v0 }
0x16d7   : > { %5228 = vmatprep.subr.bf16.mxu1 %v14250_v36  ;;  %5282 = vmatprep.subr.bf16.mxu0 %v14250_v36 }
0x16e0   : > { %v5185_v62 = vpop.f32.mrb[104].mxu0 }
0x16e1   : > { %v5187_v55 = vpop.f32.mrb[105].mxu0 }
0x16e2   : > { %v5188_v40 = vpop.f32.mrb[106].mxu0 }
0x16e3   : > { %v5192_v3 = vpack.c.bf16 %v5188_v40, %v5185_v62  ;;  %v5190_v1 = vpop.f32.mrb[107].mxu0 }
0x16e5   : > { %5271 = vrot.lane.b32.xlu0 %v5192_v3, %s10201_s25  ;;  %5268 = vrot.lane.b32.xlu1 %v5192_v3, %s10200_s24 }
0x1747   : > { %v5209_v53 = vpop.permute.xlu1 %5208  ;;  %v5212_v38 = vpop.permute.xlu0 %5211 }
0x1748   : > { %5229 = vmatpush1.bf16.msra.mxu1 %v5209_v53  ;;  %5283 = vmatpush1.bf16.msra.mxu0 %v5209_v53 }
0x1749   : > { %5230 = vmatprep.subr.bf16.mxu1 %v14250_v36  ;;  %5284 = vmatprep.subr.bf16.mxu0 %v14250_v36 }
0x174c   : > { %5231 = vmatpush1.bf16.msra.mxu1 %v5212_v38  ;;  %5285 = vmatpush1.bf16.msra.mxu0 %v5212_v38 }
0x174d   : > { %5286 = vmatprep.subr.bf16.mxu0 %v14250_v36  ;;  %9159 = vmatprep.subr.bf16.mxu1 %v10183_v37 }
0x174f   : > { %5247 = vmatmul.mubr.bf16.vlgmr.msra.gmra.mrb[144].mxu1 %v10184_v23 }
0x1750   : > { %5287 = vmatpush1.bf16.msra.mxu0 %v5192_v3  ;;  %8505 = vmatprep.mubr.msk.bf16.mxu1 %vm1604_vm10, %v10185_v13 }
0x1751   : > { %5288 = vmatprep.subr.bf16.mxu0 %v14250_v36  ;;  %9160 = vmatpush3.bf16.msra.mxu1 %v10183_v37 }
0x1752   : > { %9161 = vmatprep.subr.bf16.mxu1 %v10186_v17 }
0x1755   : > { %9162 = vmatpush3.bf16.msra.mxu1 %v10186_v17  ;;  %v9966_v17 = vld [vmem:[%s14141_s7] sm:$0xff]  }
0x1756   : > { %9163 = vmatprep.subr.bf16.mxu1 %v10187_v32 }
0x1757   : > { %v5269_v58 = vpop.permute.xlu1 %5268  ;;  %5255 = vmatmul.mubr.bf16.gmra.mrb[148].mxu1 %v10188_v31  ;;  %v5272_v61 = vpop.permute.xlu0 %5271 }
0x1758   : > { %5289 = vmatpush1.bf16.msra.mxu0 %v5269_v58 }
0x1759   : > { %5290 = vmatprep.subr.bf16.mxu0 %v14250_v36  ;;  %9164 = vmatpush3.bf16.msra.mxu1 %v10187_v32  ;;  %v10191_v36 = vld [vmem:[%s14140_s6 + $0x28] sm:$0xff]  }
0x175a   : > { %9165 = vmatprep.subr.bf16.mxu1 %v10189_v46 }
0x175c   : > { %5291 = vmatpush1.bf16.msra.mxu0 %v5272_v61 }
0x175d   : > { %9166 = vmatpush3.bf16.msra.mxu1 %v10189_v46  ;;  %v10204_v46 = vmov 0.0  }
0x175e   : > { %9167 = vmatprep.subr.bf16.mxu1 %v10190_v47  ;;  %9177 = vmatprep.subr.bf16.mxu0 %v10204_v46 }
0x175f   : > { %5307 = vmatmul.mubr.bf16.vlgmr.msra.gmra.mrb[108].mxu0 %v10184_v23 }
0x1760   : > { %8507 = vmatprep.mubr.msk.bf16.mxu0 %vm1604_vm10, %v10185_v13  ;;  %9178 = vmatpush3.bf16.msra.mxu0 %v9966_v17 }
0x1761   : > { %9168 = vmatpush3.bf16.msra.mxu1 %v10190_v47  ;;  %9179 = vmatprep.subr.bf16.mxu0 %v10204_v46  ;;  %v9968_v47 = vld [vmem:[%s14141_s7 + $0x10] sm:$0xff]  }
0x1762   : > { %9169 = vmatprep.subr.bf16.mxu1 %v10191_v36 }
0x1765   : > { %9170 = vmatpush3.bf16.msra.mxu1 %v10191_v36 }
0x1766   : > { %9171 = vmatprep.subr.bf16.mxu1 %v14300_v54 }
0x1767   : > { %5315 = vmatmul.mubr.bf16.gmra.mrb[112].mxu0 %v10188_v31 }
0x1768   : > { %9185 = vmatprep.mubr.msk.bf16.mxu0 %vm10205_vm13, %v10204_v46 }
0x1769   : > { %9172 = vmatpush3.bf16.msra.mxu1 %v14300_v54 }
0x176a   : > { %9561 = vmatprep.subr.bf16.mxu1 %v10204_v46 }
0x1822   : > { %v5248_v19 = vpop.f32.mrb[144].mxu1 }
0x1823   : > { %v5250_v2 = vpop.f32.mrb[145].mxu1  ;;  %v5249_v5 = vadd.f32 %v5248_v19, %v14301_v16 }
0x1824   : > { %v5251_v34 = vpop.f32.mrb[146].mxu1 }
0x1825   : > { %v5253_v25 = vpop.f32.mrb[147].mxu1  ;;  %v5252_v51 = vadd.f32 %v5251_v34, %v14302_v4  ;;  %v5263_v10 = vmax.f32 %v5249_v5, 0.0 }
0x1827   : > { %v5264_v27 = vmax.f32 %v5252_v51, 0.0 }
0x182a   : > { %v5256_v12 = vpop.f32.mrb[148].mxu1 }
0x182b   : > { %v5258_v48 = vpop.f32.mrb[149].mxu1  ;;  %v5257_v0 = vadd.f32 %v5256_v12, %v14257_v18 }
0x182c   : > { %v5259_v49 = vpop.f32.mrb[150].mxu1 }
0x182d   : > { %v5261_v45 = vpop.f32.mrb[151].mxu1  ;;  %v5260_v55 = vadd.f32 %v5259_v49, %v14258_v7  ;;  %v5265_v38 = vmax.f32 %v5257_v0, 0.0 }
0x182f   : > { %v5266_v32 = vmax.f32 %v5260_v55, 0.0 }
0x1832   : > { %v5308_v30 = vpop.f32.mrb[108].mxu0 }
0x1833   : > { %v5309_v15 = vadd.f32 %v5308_v30, %v14301_v16  ;;  %v5310_v56 = vpop.f32.mrb[109].mxu0  ;;  %v9969_v30 = vld [vmem:[%s14141_s7 + $0x18] ss:$0 sps:$4 sm:$0x33]  }
0x1834   : > { %v5311_v63 = vpop.f32.mrb[110].mxu0 }
0x1835   : > { %v5323_v26 = vmax.f32 %v5309_v15, 0.0  ;;  %v5312_v52 = vadd.f32 %v5311_v63, %v14302_v4  ;;  %v5313_v50 = vpop.f32.mrb[111].mxu0  ;;  %v5463_v4 = vsel %vm500_vm1, %v9969_v30, 0  ;;  %v14308_v30 = vld [vmem:[#allocation9_spill] sm:$0xff] }
0x1837   : > { %v5327_v42 = vmax.f32 %v5263_v10, %v5323_v26  ;;  %v5324_v57 = vmax.f32 %v5312_v52, 0.0 }
0x1839   : > { %v5328_v29 = vmax.f32 %v5264_v27, %v5324_v57 }
0x183a   : > { %v5316_v62 = vpop.f32.mrb[112].mxu0 }
0x183b   : > { %v9912_v40 = vpack.i.bf16 %v5328_v29, %v5327_v42  ;;  %v5317_v3 = vadd.f32 %v5316_v62, %v14257_v18  ;;  %v5318_v1 = vpop.f32.mrb[113].mxu0  ;;  %v9967_v18 = vld [vmem:[%s14141_s7 + $0x8] sm:$0xff]  }
0x183c   : > { %v5319_v53 = vpop.f32.mrb[114].mxu0  ;;  %9180 = vmatpush3.bf16.msra.mxu0 %v9967_v18  ;;  %v9972_v18 = vld [vmem:[%s14141_s7 + $0x2c] sm:$0xff]  }
0x183d   : > { %v5325_v37 = vmax.f32 %v5317_v3, 0.0  ;;  %v5320_v23 = vadd.f32 %v5319_v53, %v14258_v7  ;;  %9913 = vrot.lane.b32.xlu1 %v9912_v40, %s10200_s24  ;;  %v5321_v13 = vpop.f32.mrb[115].mxu0  ;;  %9181 = vmatprep.subr.bf16.mxu0 %v10204_v46 }
0x183f   : > { %v5329_v58 = vmax.f32 %v5265_v38, %v5325_v37  ;;  %v5326_v31 = vmax.f32 %v5320_v23, 0.0 }
0x1840   : > { %9182 = vmatpush3.bf16.msra.mxu0 %v9968_v47 }
0x1841   : > { %v5330_v7 = vmax.f32 %v5266_v32, %v5326_v31  ;;  %9183 = vmatprep.subr.bf16.mxu0 %v10204_v46 }
0x1843   : > { %v9917_v61 = vpack.i.bf16 %v5330_v7, %v5329_v58 }
0x1844   : > { %9184 = vmatpush3.bf16.msra.mxu0 %v5463_v4 }
0x1845   : > { %9918 = vrot.lane.b32.xlu0 %v9917_v61, %s10200_s24  ;;  %9189 = vmatprep.subr.bf16.mxu0 %v10204_v46 }
0x18af   : > { %v9914_v36 = vpop.permute.xlu1 %9913 }
0x18b0   : > { %v9916_v54 = vunpack.i.h.bf16 %v9914_v36  ;;  %v9915_v19 = vunpack.i.l.bf16 %v9914_v36 }
0x18b2   : > { %v5348_v2 = vmax.f32 %v5328_v29, %v9916_v54  ;;  %v5347_v34 = vmax.f32 %v5327_v42, %v9915_v19  ;;  %v14304_v54 = vld [vmem:[#allocation13_spill] sm:$0xff] }
0x18b4   : > { %v5351_v25 = vpack.c.bf16 %v5348_v2, %v5347_v34 }
0x18b6   : > { %9173 = vmatprep.mubr.msk.bf16.mxu1 %vm1789_vm11, %v5351_v25 }
0x18b7   : > { %v9919_v12 = vpop.permute.xlu0 %9918 }
0x18b8   : > { %v9921_v48 = vunpack.i.h.bf16 %v9919_v12  ;;  %v9920_v49 = vunpack.i.l.bf16 %v9919_v12  ;;  %v14305_v12 = vld [vmem:[#allocation14_spill] sm:$0xff] }
0x18ba   : > { %v5350_v45 = vmax.f32 %v5330_v7, %v9921_v48  ;;  %v5349_v16 = vmax.f32 %v5329_v58, %v9920_v49  ;;  %v14306_v49 = vld [vmem:[#allocation5_spill] sm:$0xff] }
0x18bc   : > { %v5352_v5 = vpack.c.bf16 %v5350_v45, %v5349_v16  ;;  %v14307_v16 = vld [vmem:[#allocation8_spill] sm:$0xff] }
0x18be   : > { %9174 = vmatmul.mubr.msk.bf16.vlgmr.msra.gmra.mrb[152].mxu1 %vm1789_vm11, %v5352_v5 }
0x18bf   : > { %9577 = vmatprep.mubr.msk.bf16.mxu1 %vm10205_vm13, %v10204_v46 }
0x1991   : > { %v13258_v51 = vpop.f32.mrb[152].mxu1 }
0x1992   : > { %v5393_v15 = vpop.f32.mrb[153].mxu1  ;;  %v13263_v56 = vsel %vm505_vm6, %v12828_v41, %v13258_v51  ;;  %v9970_v41 = vld [vmem:[%s14141_s7 + $0x1c] sm:$0xff]   ;;  %v6911_v13 = vrot.slane %v13258_v51, 6  ;;  %v7171_v47 = vrot.slane %v13258_v51, 1  ;;  %v7347_v36 = vrot.slane %v13258_v51, 3 }
0x1993   : > { %v5423_v63 = vrot.slane %v5393_v15, 5  ;;  %v13265_v10 = vpop.f32.mrb[154].mxu1  ;;  %v5511_v26 = vrot.slane %v5393_v15, 6  ;;  %v5597_v52 = vrot.slane %v5393_v15, 7  ;;  %v13269_v50 = vsel %vm505_vm6, %v12765_v28, %v5393_v15 }
0x1994   : > { %v5396_v27 = vpop.f32.mrb[155].mxu1  ;;  %v5771_v42 = vrot.slane %v5393_v15, 1  ;;  %v5859_v57 = vrot.slane %v5393_v15, 2  ;;  %v5947_v0 = vrot.slane %v5393_v15, 3  ;;  %v6035_v55 = vrot.slane %v5393_v15, 4 }
0x1995   : > { %v5428_v29 = vsel %vm505_vm6, %v12757_v44, %v5423_v63  ;;  %v13278_v62 = vsel %vm505_vm6, %v12761_v8, %v5511_v26  ;;  %v13282_v28 = vsel %vm505_vm6, %v12753_v22, %v5597_v52  ;;  %v6824_v22 = vrot.slane %v13258_v51, 5  ;;  %v14310_v63 = vld [vmem:[#allocation3_spill] sm:$0xff]  ;;  %v9974_v52 = vld [vmem:[%s14141_s7 + $0x38] sm:$0xff]  }
0x1996   : > { %v5429_v40 = vpack.c.bf16 %v5428_v29, %v5428_v29  ;;  %v13286_v3 = vsel %vm505_vm6, %v12769_v33, %v5771_v42  ;;  %v13290_v44 = vsel %vm505_vm6, %v12773_v6, %v5859_v57  ;;  %v13294_v1 = vsel %vm505_vm6, %v12777_v43, %v5947_v0  ;;  %v9971_v33 = vld [vmem:[%s14141_s7 + $0x24] sm:$0xff]  }
0x1997   : > { %v13298_v8 = vsel %vm505_vm6, %v12781_v14, %v6035_v55  ;;  %v6124_v6 = vrot.slane %v5396_v27, 5  ;;  %v6211_v53 = vrot.slane %v5396_v27, 6  ;;  %v6297_v43 = vrot.slane %v5396_v27, 7  ;;  %v14311_v42 = vld [vmem:[#allocation11_spill] sm:$0xff] }
0x1998   : > { %9186 = vmatmul.mubr.msk.bf16.vlgmr.msra.gmra.mrb[116].mxu0 %vm5458_vm14, %v5429_v40  ;;  %v13309_v38 = vsel %vm505_vm6, %v12797_v11, %v5396_v27  ;;  %v6471_v14 = vrot.slane %v5396_v27, 1  ;;  %v6559_v37 = vrot.slane %v5396_v27, 2  ;;  %v6647_v23 = vrot.slane %v5396_v27, 3  ;;  %v14312_v40 = vld [vmem:[#allocation18_spill] sm:$0xff] }
0x1999   : > { %9190 = vmatpush3.bf16.msra.mxu0 %v9970_v41  ;;  %9197 = vmatprep.mubr.msk.bf16.mxu0 %vm10205_vm13, %v10204_v46  ;;  %v13315_v17 = vsel %vm505_vm6, %v12785_v60, %v6124_v6  ;;  %v13319_v32 = vsel %vm505_vm6, %v12793_v21, %v6211_v53  ;;  %v13323_v58 = vsel %vm505_vm6, %v12789_v39, %v6297_v43  ;;  %v6735_v11 = vrot.slane %v5396_v27, 4  ;;  %v14313_v6 = vld [vmem:[#allocation15_spill] sm:$0xff] }
0x199a   : > { %9191 = vmatprep.subr.bf16.mxu0 %v10204_v46  ;;  %v13327_v31 = vsel %vm505_vm6, %v12810_v20, %v6471_v14  ;;  %v13334_v60 = vsel %vm505_vm6, %v12814_v24, %v6559_v37  ;;  %v13338_v21 = vsel %vm505_vm6, %v12818_v59, %v6647_v23  ;;  %v9973_v20 = vld [vmem:[%s14141_s7 + $0x34] ss:$0 sps:$4 sm:$0x33]   ;;  %v13350_v7 = vsel %vm505_vm6, %v12801_v35, %v6824_v22  ;;  %v14303_v24 = vld [vmem:[#allocation2_spill] sm:$0xff]  ;;  %v14315_v14 = vld [vmem:[#allocation17_spill] sm:$0xff] }
0x199b   : > { %v13342_v39 = vsel %vm505_vm6, %v12824_v9, %v6735_v11  ;;  %v13354_v61 = vsel %vm505_vm6, %v14303_v24, %v6911_v13  ;;  %v6997_v59 = vrot.slane %v13258_v51, 7  ;;  %v7259_v9 = vrot.slane %v13258_v51, 2  ;;  %v9975_v23 = vld [vmem:[%s14141_s7 + $0x40] sm:$0xff]   ;;  %v9976_v11 = vld [vmem:[%s14141_s7 + $0x48] sm:$0xff]   ;;  %v9978_v24 = vld [vmem:[%s14141_s7 + $0x54] sm:$0xff]  }
0x199c   : > { %v7435_v35 = vrot.slane %v13258_v51, 4  ;;  %v7524_v2 = vrot.slane %v13265_v10, 5  ;;  %v7611_v34 = vrot.slane %v13265_v10, 6  ;;  %v5550_v25 = vsel %vm500_vm1, %v9973_v20, 0  ;;  %v14309_v51 = vld [vmem:[#allocation19_spill] sm:$0xff] }
0x199d   : > { %9192 = vmatpush3.bf16.msra.mxu0 %v9971_v33  ;;  %v13362_v19 = vsel %vm505_vm6, %v14304_v54, %v6997_v59  ;;  %v13371_v48 = vsel %vm505_vm6, %v14305_v12, %v7171_v47  ;;  %v13375_v45 = vsel %vm505_vm6, %v14306_v49, %v7259_v9  ;;  %v13379_v5 = vsel %vm505_vm6, %v14307_v16, %v7347_v36  ;;  %v9979_v47 = vld [vmem:[%s14141_s7 + $0x5c] sm:$0xff]   ;;  %v9980_v9 = vld [vmem:[%s14141_s7 + $0x64] sm:$0xff]   ;;  %v9982_v54 = vld [vmem:[%s14141_s7 + $0x70] sm:$0xff]  }
0x199e   : > { %9193 = vmatprep.subr.bf16.mxu0 %v10204_v46  ;;  %v13383_v4 = vsel %vm505_vm6, %v14308_v30, %v7435_v35  ;;  %v13387_v15 = vsel %vm505_vm6, %v14309_v51, %v7524_v2  ;;  %v13391_v26 = vsel %vm505_vm6, %v14310_v63, %v7611_v34  ;;  %v7697_v27 = vrot.slane %v13265_v10, 7  ;;  %v9983_v2 = vld [vmem:[%s14141_s7 + $0x78] sm:$0xff]   ;;  %v9984_v34 = vld [vmem:[%s14141_s7 + $0x80] sm:$0xff]   ;;  %v9986_v12 = vld [vmem:[%s14141_s7 + $0x8c] sm:$0xff]  }
0x199f   : > { %v13400_v57 = vsel %vm505_vm6, %v14311_v42, %v13265_v10  ;;  %v5516_v0 = vpack.c.bf16 %v13278_v62, %v13278_v62  ;;  %v7871_v29 = vrot.slane %v13265_v10, 1  ;;  %v7959_v41 = vrot.slane %v13265_v10, 2  ;;  %v14314_v62 = vld [vmem:[#allocation16_spill] sm:$0xff]  ;;  %v9988_v30 = vld [vmem:[%s14141_s7 + $0x9c] sm:$0xff]   ;;  %v9990_v63 = vld [vmem:[%s14141_s7 + $0xa8] sm:$0xff]  }
0x19a0   : > { %v8047_v55 = vrot.slane %v13265_v10, 3  ;;  %v13410_v22 = vsel %vm505_vm6, %v14312_v40, %v7697_v27  ;;  %v8135_v33 = vrot.slane %v13265_v10, 4  ;;  %v14316_v10 = vld [vmem:[#allocation20_spill] sm:$0xff]  ;;  %v5602_v59 = vpack.c.bf16 %v13282_v28, %v13282_v28  ;;  %v9981_v28 = vld [vmem:[%s14141_s7 + $0x6c] ss:$0 sps:$4 sm:$0x33]  }
0x19a1   : > { %9194 = vmatpush3.bf16.msra.mxu0 %v9972_v18  ;;  %v13416_v53 = vsel %vm505_vm6, %v14313_v6, %v7871_v29  ;;  %v13420_v43 = vsel %vm505_vm6, %v14314_v62, %v7959_v41  ;;  %v9977_v18 = vld [vmem:[%s14141_s7 + $0x50] ss:$0 sps:$4 sm:$0x33]   ;;  %v5722_v36 = vsel %vm500_vm1, %v9981_v28, 0  ;;  %v5688_v35 = vpack.c.bf16 %v13269_v50, %v13269_v50  ;;  %v9987_v16 = vld [vmem:[%s14141_s7 + $0x94] sm:$0xff]   ;;  %v9994_v29 = vld [vmem:[%s14141_s7 + $0xc4] sm:$0xff]  }
0x19a2   : > { %9195 = vmatprep.subr.bf16.mxu0 %v10204_v46  ;;  %v13424_v37 = vsel %vm505_vm6, %v14315_v14, %v8047_v55  ;;  %v13434_v13 = vsel %vm505_vm6, %v14316_v10, %v8135_v33  ;;  %v5636_v20 = vsel %vm500_vm1, %v9977_v18, 0  ;;  %v9985_v50 = vld [vmem:[%s14141_s7 + $0x88] ss:$0 sps:$4 sm:$0x33]   ;;  %v5776_v49 = vpack.c.bf16 %v13286_v3, %v13286_v3  ;;  %v9991_v27 = vld [vmem:[%s14141_s7 + $0xb0] sm:$0xff]   ;;  %v9992_v42 = vld [vmem:[%s14141_s7 + $0xb8] sm:$0xff]  }
0x19a3   : > { %v9989_v3 = vld [vmem:[%s14141_s7 + $0xa4] ss:$0 sps:$4 sm:$0x33]   ;;  %v5952_v41 = vpack.c.bf16 %v13294_v1, %v13294_v1  ;;  %v9995_v55 = vld [vmem:[%s14141_s7 + $0xcc] sm:$0xff]   ;;  %v9996_v40 = vld [vmem:[%s14141_s7 + $0xd4] sm:$0xff]   ;;  %v6040_v62 = vpack.c.bf16 %v13298_v8, %v13298_v8  ;;  %v6129_v18 = vpack.c.bf16 %v13315_v17, %v13315_v17 }
0x19a4   : > { %v5898_v51 = vsel %vm500_vm1, %v9989_v3, 0  ;;  %v9997_v1 = vld [vmem:[%s14141_s7 + $0xdc] ss:$0 sps:$4 sm:$0x33]   ;;  %v9998_v6 = vld [vmem:[%s14141_s7 + $0xe0] sm:$0xff]   ;;  %v9999_v14 = vld [vmem:[%s14141_s7 + $0xe8] sm:$0xff]  }
0x19a5   : > { %9196 = vmatpush3.bf16.msra.mxu0 %v5550_v25  ;;  %v5810_v25 = vsel %vm500_vm1, %v9985_v50, 0  ;;  %v6074_v33 = vsel %vm500_vm1, %v9997_v1, 0  ;;  %v10001_v8 = vld [vmem:[%s14141_s7 + $0xf8] ss:$0 sps:$4 sm:$0x33]   ;;  %v10007_v28 = vld [vmem:[%s14141_s7 + $0x120] sm:$0xff]   ;;  %v6652_v1 = vpack.c.bf16 %v13338_v21, %v13338_v21 }
0x19a6   : > { %9201 = vmatprep.subr.bf16.mxu0 %v10204_v46  ;;  %v6163_v10 = vsel %vm500_vm1, %v10001_v8, 0  ;;  %v10005_v17 = vld [vmem:[%s14141_s7 + $0x114] ss:$0 sps:$4 sm:$0x33]   ;;  %v10012_v50 = vld [vmem:[%s14141_s7 + $0x144] sm:$0xff]  }
0x19a7   : > { %v10029_v21 = vld [vmem:[%s14141_s7 + $0x1bc] ss:$0 sps:$4 sm:$0x33]   ;;  %v10031_v8 = vld [vmem:[%s14141_s7 + $0x1c8] sm:$0xff]  }
0x19a8   : > { %9198 = vmatmul.mubr.msk.bf16.vlgmr.msra.gmra.mrb[116].mxu0 %vm5458_vm14, %v5516_v0 }
0x19a9   : > { %9202 = vmatpush3.bf16.msra.mxu0 %v9974_v52  ;;  %9209 = vmatprep.mubr.msk.bf16.mxu0 %vm10205_vm13, %v10204_v46  ;;  %v5864_v52 = vpack.c.bf16 %v13290_v44, %v13290_v44  ;;  %v9993_v44 = vld [vmem:[%s14141_s7 + $0xc0] ss:$0 sps:$4 sm:$0x33]  }
0x19aa   : > { %9203 = vmatprep.subr.bf16.mxu0 %v10204_v46  ;;  %v5986_v0 = vsel %vm500_vm1, %v9993_v44, 0  ;;  %v10022_v44 = vld [vmem:[%s14141_s7 + $0x188] sm:$0xff]  }
0x19ad   : > { %9204 = vmatpush3.bf16.msra.mxu0 %v9975_v23  ;;  %v10000_v23 = vld [vmem:[%s14141_s7 + $0xf0] sm:$0xff]  }
0x19ae   : > { %9205 = vmatprep.subr.bf16.mxu0 %v10204_v46 }
0x19b1   : > { %9206 = vmatpush3.bf16.msra.mxu0 %v9976_v11  ;;  %v10002_v11 = vld [vmem:[%s14141_s7 + $0xfc] sm:$0xff]  }
0x19b2   : > { %9207 = vmatprep.subr.bf16.mxu0 %v10204_v46 }
0x19b5   : > { %9208 = vmatpush3.bf16.msra.mxu0 %v5636_v20  ;;  %v10003_v20 = vld [vmem:[%s14141_s7 + $0x104] sm:$0xff]  }
0x19b6   : > { %9213 = vmatprep.subr.bf16.mxu0 %v10204_v46 }
0x19b8   : > { %9210 = vmatmul.mubr.msk.bf16.vlgmr.msra.gmra.mrb[116].mxu0 %vm5458_vm14, %v5602_v59  ;;  %v6250_v59 = vsel %vm500_vm1, %v10005_v17, 0  ;;  %v10036_v17 = vld [vmem:[%s14141_s7 + $0x1ec] sm:$0xff]  }
0x19b9   : > { %9214 = vmatpush3.bf16.msra.mxu0 %v9978_v24  ;;  %9221 = vmatprep.mubr.msk.bf16.mxu0 %vm10205_vm13, %v10204_v46  ;;  %v10004_v24 = vld [vmem:[%s14141_s7 + $0x10c] sm:$0xff]  }
0x19ba   : > { %9215 = vmatprep.subr.bf16.mxu0 %v10204_v46 }
0x19bd   : > { %9216 = vmatpush3.bf16.msra.mxu0 %v9979_v47  ;;  %v10006_v47 = vld [vmem:[%s14141_s7 + $0x118] sm:$0xff]  }
0x19be   : > { %9217 = vmatprep.subr.bf16.mxu0 %v10204_v46 }
0x19c1   : > { %9218 = vmatpush3.bf16.msra.mxu0 %v9980_v9  ;;  %v6216_v9 = vpack.c.bf16 %v13319_v32, %v13319_v32  ;;  %v10009_v32 = vld [vmem:[%s14141_s7 + $0x130] ss:$0 sps:$4 sm:$0x33]  }
0x19c2   : > { %9219 = vmatprep.subr.bf16.mxu0 %v10204_v46 }
0x19c5   : > { %9220 = vmatpush3.bf16.msra.mxu0 %v5722_v36  ;;  %v10008_v36 = vld [vmem:[%s14141_s7 + $0x128] sm:$0xff]  }
0x19c6   : > { %9225 = vmatprep.subr.bf16.mxu0 %v10204_v46 }
0x19c8   : > { %9222 = vmatmul.mubr.msk.bf16.vlgmr.msra.gmra.mrb[116].mxu0 %vm5458_vm14, %v5688_v35  ;;  %v10010_v35 = vld [vmem:[%s14141_s7 + $0x134] sm:$0xff]  }
0x19c9   : > { %9226 = vmatpush3.bf16.msra.mxu0 %v9982_v54  ;;  %9233 = vmatprep.mubr.msk.bf16.mxu0 %vm10205_vm13, %v10204_v46  ;;  %v6336_v54 = vsel %vm500_vm1, %v10009_v32, 0 }
0x19ca   : > { %9227 = vmatprep.subr.bf16.mxu0 %v10204_v46 }
0x19cd   : > { %9228 = vmatpush3.bf16.msra.mxu0 %v9983_v2  ;;  %v6302_v2 = vpack.c.bf16 %v13323_v58, %v13323_v58  ;;  %v10013_v58 = vld [vmem:[%s14141_s7 + $0x14c] ss:$0 sps:$4 sm:$0x33]  }
0x19ce   : > { %9229 = vmatprep.subr.bf16.mxu0 %v10204_v46 }
0x19d1   : > { %9230 = vmatpush3.bf16.msra.mxu0 %v9984_v34  ;;  %v10011_v34 = vld [vmem:[%s14141_s7 + $0x13c] sm:$0xff]  }
0x19d2   : > { %9231 = vmatprep.subr.bf16.mxu0 %v10204_v46 }
0x19d5   : > { %9232 = vmatpush3.bf16.msra.mxu0 %v5810_v25  ;;  %v6422_v25 = vsel %vm500_vm1, %v10013_v58, 0  ;;  %v10046_v58 = vld [vmem:[%s14141_s7 + $0x230] sm:$0xff]  }
0x19d6   : > { %9237 = vmatprep.subr.bf16.mxu0 %v10204_v46 }
0x19d8   : > { %9234 = vmatmul.mubr.msk.bf16.vlgmr.msra.gmra.mrb[116].mxu0 %vm5458_vm14, %v5776_v49  ;;  %v6388_v49 = vpack.c.bf16 %v13309_v38, %v13309_v38  ;;  %v10017_v38 = vld [vmem:[%s14141_s7 + $0x168] ss:$0 sps:$4 sm:$0x33]  }
0x19d9   : > { %9238 = vmatpush3.bf16.msra.mxu0 %v9986_v12  ;;  %9245 = vmatprep.mubr.msk.bf16.mxu0 %vm10205_vm13, %v10204_v46  ;;  %v10014_v12 = vld [vmem:[%s14141_s7 + $0x150] sm:$0xff]   ;;  %v6510_v3 = vsel %vm500_vm1, %v10017_v38, 0  ;;  %v7176_v38 = vpack.c.bf16 %v13371_v48, %v13371_v48  ;;  %v10053_v48 = vld [vmem:[%s14141_s7 + $0x264] ss:$0 sps:$4 sm:$0x33]  }
0x19da   : > { %9239 = vmatprep.subr.bf16.mxu0 %v10204_v46 }
0x19dd   : > { %9240 = vmatpush3.bf16.msra.mxu0 %v9987_v16  ;;  %v10015_v16 = vld [vmem:[%s14141_s7 + $0x158] sm:$0xff]  }
0x19de   : > { %9241 = vmatprep.subr.bf16.mxu0 %v10204_v46 }
0x19e1   : > { %9242 = vmatpush3.bf16.msra.mxu0 %v9988_v30  ;;  %v10016_v30 = vld [vmem:[%s14141_s7 + $0x160] sm:$0xff]  }
0x19e2   : > { %9243 = vmatprep.subr.bf16.mxu0 %v10204_v46 }
0x19e5   : > { %9244 = vmatpush3.bf16.msra.mxu0 %v5898_v51  ;;  %v10018_v51 = vld [vmem:[%s14141_s7 + $0x16c] sm:$0xff]  }
0x19e6   : > { %9249 = vmatprep.subr.bf16.mxu0 %v10204_v46 }
0x19e8   : > { %9246 = vmatmul.mubr.msk.bf16.vlgmr.msra.gmra.mrb[116].mxu0 %vm5458_vm14, %v5864_v52  ;;  %v10019_v52 = vld [vmem:[%s14141_s7 + $0x174] sm:$0xff]  }
0x19e9   : > { %9250 = vmatpush3.bf16.msra.mxu0 %v9990_v63  ;;  %9257 = vmatprep.mubr.msk.bf16.mxu0 %vm10205_vm13, %v10204_v46  ;;  %v6476_v63 = vpack.c.bf16 %v13327_v31, %v13327_v31  ;;  %v10021_v31 = vld [vmem:[%s14141_s7 + $0x184] ss:$0 sps:$4 sm:$0x33]  }
0x19ea   : > { %9251 = vmatprep.subr.bf16.mxu0 %v10204_v46 }
0x19ed   : > { %9252 = vmatpush3.bf16.msra.mxu0 %v9991_v27  ;;  %v10020_v27 = vld [vmem:[%s14141_s7 + $0x17c] sm:$0xff]  }
0x19ee   : > { %9253 = vmatprep.subr.bf16.mxu0 %v10204_v46 }
0x19f1   : > { %9254 = vmatpush3.bf16.msra.mxu0 %v9992_v42  ;;  %v6598_v42 = vsel %vm500_vm1, %v10021_v31, 0  ;;  %v10055_v31 = vld [vmem:[%s14141_s7 + $0x270] sm:$0xff]  }
0x19f2   : > { %9255 = vmatprep.subr.bf16.mxu0 %v10204_v46 }
0x19f5   : > { %9256 = vmatpush3.bf16.msra.mxu0 %v5986_v0  ;;  %v6564_v0 = vpack.c.bf16 %v13334_v60, %v13334_v60  ;;  %v10025_v60 = vld [vmem:[%s14141_s7 + $0x1a0] ss:$0 sps:$4 sm:$0x33]  }
0x19f6   : > { %9261 = vmatprep.subr.bf16.mxu0 %v10204_v46 }
0x19f8   : > { %9258 = vmatmul.mubr.msk.bf16.vlgmr.msra.gmra.mrb[116].mxu0 %vm5458_vm14, %v5952_v41  ;;  %v10024_v41 = vld [vmem:[%s14141_s7 + $0x198] sm:$0xff]  }
0x19f9   : > { %9262 = vmatpush3.bf16.msra.mxu0 %v9994_v29  ;;  %9269 = vmatprep.mubr.msk.bf16.mxu0 %vm10205_vm13, %v10204_v46  ;;  %v10023_v29 = vld [vmem:[%s14141_s7 + $0x190] sm:$0xff]  }
0x19fa   : > { %9263 = vmatprep.subr.bf16.mxu0 %v10204_v46 }
0x19fd   : > { %9264 = vmatpush3.bf16.msra.mxu0 %v9995_v55  ;;  %v6686_v55 = vsel %vm500_vm1, %v10025_v60, 0  ;;  %v10060_v60 = vld [vmem:[%s14141_s7 + $0x294] sm:$0xff]  }
0x19fe   : > { %9265 = vmatprep.subr.bf16.mxu0 %v10204_v46 }
0x1a01   : > { %9266 = vmatpush3.bf16.msra.mxu0 %v9996_v40  ;;  %v10026_v40 = vld [vmem:[%s14141_s7 + $0x1a4] sm:$0xff]  }
0x1a02   : > { %9267 = vmatprep.subr.bf16.mxu0 %v10204_v46 }
0x1a05   : > { %9268 = vmatpush3.bf16.msra.mxu0 %v6074_v33  ;;  %v10027_v33 = vld [vmem:[%s14141_s7 + $0x1ac] sm:$0xff]  }
0x1a06   : > { %9273 = vmatprep.subr.bf16.mxu0 %v10204_v46 }
0x1a08   : > { %9270 = vmatmul.mubr.msk.bf16.vlgmr.msra.gmra.mrb[116].mxu0 %vm5458_vm14, %v6040_v62  ;;  %v6774_v62 = vsel %vm500_vm1, %v10029_v21, 0  ;;  %v10064_v21 = vld [vmem:[%s14141_s7 + $0x2b0] sm:$0xff]  }
0x1a09   : > { %9274 = vmatpush3.bf16.msra.mxu0 %v9998_v6  ;;  %9281 = vmatprep.mubr.msk.bf16.mxu0 %vm10205_vm13, %v10204_v46  ;;  %v10028_v6 = vld [vmem:[%s14141_s7 + $0x1b4] sm:$0xff]  }
0x1a0a   : > { %9275 = vmatprep.subr.bf16.mxu0 %v10204_v46 }
0x1a0d   : > { %9276 = vmatpush3.bf16.msra.mxu0 %v9999_v14  ;;  %v10030_v14 = vld [vmem:[%s14141_s7 + $0x1c0] sm:$0xff]  }
0x1a0e   : > { %9277 = vmatprep.subr.bf16.mxu0 %v10204_v46 }
0x1a11   : > { %9278 = vmatpush3.bf16.msra.mxu0 %v10000_v23  ;;  %v6740_v23 = vpack.c.bf16 %v13342_v39, %v13342_v39  ;;  %v10033_v39 = vld [vmem:[%s14141_s7 + $0x1d8] ss:$0 sps:$4 sm:$0x33]  }
0x1a12   : > { %9279 = vmatprep.subr.bf16.mxu0 %v10204_v46 }
0x1a15   : > { %9280 = vmatpush3.bf16.msra.mxu0 %v6163_v10  ;;  %v10032_v10 = vld [vmem:[%s14141_s7 + $0x1d0] sm:$0xff]  }
0x1a16   : > { %9285 = vmatprep.subr.bf16.mxu0 %v10204_v46 }
0x1a18   : > { %9282 = vmatmul.mubr.msk.bf16.vlgmr.msra.gmra.mrb[116].mxu0 %vm5458_vm14, %v6129_v18  ;;  %v10034_v18 = vld [vmem:[%s14141_s7 + $0x1dc] sm:$0xff]  }
0x1a19   : > { %9286 = vmatpush3.bf16.msra.mxu0 %v10002_v11  ;;  %9293 = vmatprep.mubr.msk.bf16.mxu0 %vm10205_vm13, %v10204_v46  ;;  %v6863_v11 = vsel %vm500_vm1, %v10033_v39, 0  ;;  %v7529_v39 = vpack.c.bf16 %v13387_v15, %v13387_v15  ;;  %v10099_v15 = vld [vmem:[%s14143_s9 + $0x28] sm:$0xff]  }
0x1a1a   : > { %9287 = vmatprep.subr.bf16.mxu0 %v10204_v46 }
0x1a1d   : > { %9288 = vmatpush3.bf16.msra.mxu0 %v10003_v20  ;;  %v6829_v20 = vpack.c.bf16 %v13350_v7, %v13350_v7  ;;  %v10037_v7 = vld [vmem:[%s14141_s7 + $0x1f4] ss:$0 sps:$4 sm:$0x33]  }
0x1a1e   : > { %9289 = vmatprep.subr.bf16.mxu0 %v10204_v46 }
0x1a21   : > { %9290 = vmatpush3.bf16.msra.mxu0 %v10004_v24  ;;  %v10035_v24 = vld [vmem:[%s14141_s7 + $0x1e4] sm:$0xff]  }
0x1a22   : > { %9291 = vmatprep.subr.bf16.mxu0 %v10204_v46 }
0x1a25   : > { %9292 = vmatpush3.bf16.msra.mxu0 %v6250_v59  ;;  %v6950_v59 = vsel %vm500_vm1, %v10037_v7, 0  ;;  %v10070_v7 = vld [vmem:[%s14141_s7 + $0x2d8] sm:$0xff]  }
0x1a26   : > { %9297 = vmatprep.subr.bf16.mxu0 %v10204_v46 }
0x1a28   : > { %9294 = vmatmul.mubr.msk.bf16.vlgmr.msra.gmra.mrb[116].mxu0 %vm5458_vm14, %v6216_v9  ;;  %v6916_v9 = vpack.c.bf16 %v13354_v61, %v13354_v61  ;;  %v10041_v61 = vld [vmem:[%s14141_s7 + $0x210] ss:$0 sps:$4 sm:$0x33]  }
0x1a29   : > { %9298 = vmatpush3.bf16.msra.mxu0 %v10006_v47  ;;  %9305 = vmatprep.mubr.msk.bf16.mxu0 %vm10205_vm13, %v10204_v46  ;;  %v10038_v47 = vld [vmem:[%s14141_s7 + $0x1f8] sm:$0xff]   ;;  %v7036_v32 = vsel %vm500_vm1, %v10041_v61, 0  ;;  %v7702_v61 = vpack.c.bf16 %v13410_v22, %v13410_v22  ;;  %v10077_v22 = vld [vmem:[%s14141_s7 + $0x30c] ss:$0 sps:$4 sm:$0x33]  }
0x1a2a   : > { %9299 = vmatprep.subr.bf16.mxu0 %v10204_v46 }
0x1a2d   : > { %9300 = vmatpush3.bf16.msra.mxu0 %v10007_v28  ;;  %v10039_v28 = vld [vmem:[%s14141_s7 + $0x200] sm:$0xff]  }
0x1a2e   : > { %9301 = vmatprep.subr.bf16.mxu0 %v10204_v46 }
0x1a31   : > { %9302 = vmatpush3.bf16.msra.mxu0 %v10008_v36  ;;  %v10040_v36 = vld [vmem:[%s14141_s7 + $0x208] sm:$0xff]  }
0x1a32   : > { %9303 = vmatprep.subr.bf16.mxu0 %v10204_v46 }
0x1a35   : > { %9304 = vmatpush3.bf16.msra.mxu0 %v6336_v54  ;;  %v10042_v54 = vld [vmem:[%s14141_s7 + $0x214] sm:$0xff]  }
0x1a36   : > { %9309 = vmatprep.subr.bf16.mxu0 %v10204_v46 }
0x1a38   : > { %9306 = vmatmul.mubr.msk.bf16.vlgmr.msra.gmra.mrb[116].mxu0 %vm5458_vm14, %v6302_v2  ;;  %v10043_v2 = vld [vmem:[%s14141_s7 + $0x21c] sm:$0xff]  }
0x1a39   : > { %9310 = vmatpush3.bf16.msra.mxu0 %v10010_v35  ;;  %9317 = vmatprep.mubr.msk.bf16.mxu0 %vm10205_vm13, %v10204_v46  ;;  %v7002_v35 = vpack.c.bf16 %v13362_v19, %v13362_v19  ;;  %v10045_v19 = vld [vmem:[%s14141_s7 + $0x22c] ss:$0 sps:$4 sm:$0x33]  }
0x1a3a   : > { %9311 = vmatprep.subr.bf16.mxu0 %v10204_v46 }
0x1a3d   : > { %9312 = vmatpush3.bf16.msra.mxu0 %v10011_v34  ;;  %v10044_v34 = vld [vmem:[%s14141_s7 + $0x224] sm:$0xff]  }
0x1a3e   : > { %9313 = vmatprep.subr.bf16.mxu0 %v10204_v46 }
0x1a41   : > { %9314 = vmatpush3.bf16.msra.mxu0 %v10012_v50  ;;  %v7122_v50 = vsel %vm500_vm1, %v10045_v19, 0  ;;  %v10079_v19 = vld [vmem:[%s14141_s7 + $0x318] sm:$0xff]  }
0x1a42   : > { %9315 = vmatprep.subr.bf16.mxu0 %v10204_v46 }
0x1a45   : > { %9316 = vmatpush3.bf16.msra.mxu0 %v6422_v25  ;;  %v7088_v25 = vpack.c.bf16 %v13263_v56, %v13263_v56  ;;  %v10049_v56 = vld [vmem:[%s14141_s7 + $0x248] ss:$0 sps:$4 sm:$0x33]  }
0x1a46   : > { %9321 = vmatprep.subr.bf16.mxu0 %v10204_v46 }
0x1a48   : > { %9318 = vmatmul.mubr.msk.bf16.vlgmr.msra.gmra.mrb[116].mxu0 %vm5458_vm14, %v6388_v49  ;;  %v10048_v49 = vld [vmem:[%s14141_s7 + $0x240] sm:$0xff]  }
0x1a49   : > { %9322 = vmatpush3.bf16.msra.mxu0 %v10014_v12  ;;  %9329 = vmatprep.mubr.msk.bf16.mxu0 %vm10205_vm13, %v10204_v46  ;;  %v10047_v12 = vld [vmem:[%s14141_s7 + $0x238] sm:$0xff]  }
0x1a4a   : > { %9323 = vmatprep.subr.bf16.mxu0 %v10204_v46 }
0x1a4d   : > { %9324 = vmatpush3.bf16.msra.mxu0 %v10015_v16  ;;  %v7210_v16 = vsel %vm500_vm1, %v10049_v56, 0  ;;  %v10084_v56 = vld [vmem:[%s14141_s7 + $0x33c] sm:$0xff]  }
0x1a4e   : > { %9325 = vmatprep.subr.bf16.mxu0 %v10204_v46 }
0x1a51   : > { %9326 = vmatpush3.bf16.msra.mxu0 %v10016_v30  ;;  %v10050_v30 = vld [vmem:[%s14141_s7 + $0x24c] sm:$0xff]  }
0x1a52   : > { %9327 = vmatprep.subr.bf16.mxu0 %v10204_v46 }
0x1a55   : > { %9328 = vmatpush3.bf16.msra.mxu0 %v6510_v3  ;;  %v10051_v3 = vld [vmem:[%s14141_s7 + $0x254] sm:$0xff]  }
0x1a56   : > { %9333 = vmatprep.subr.bf16.mxu0 %v10204_v46 }
0x1a58   : > { %9330 = vmatmul.mubr.msk.bf16.vlgmr.msra.gmra.mrb[116].mxu0 %vm5458_vm14, %v6476_v63  ;;  %v7298_v63 = vsel %vm500_vm1, %v10053_v48, 0 }
0x1a59   : > { %9334 = vmatpush3.bf16.msra.mxu0 %v10018_v51  ;;  %9341 = vmatprep.mubr.msk.bf16.mxu0 %vm10205_vm13, %v10204_v46  ;;  %v10052_v51 = vld [vmem:[%s14141_s7 + $0x25c] sm:$0xff]  }
0x1a5a   : > { %9335 = vmatprep.subr.bf16.mxu0 %v10204_v46 }
0x1a5d   : > { %9336 = vmatpush3.bf16.msra.mxu0 %v10019_v52  ;;  %v10054_v52 = vld [vmem:[%s14141_s7 + $0x268] sm:$0xff]  }
0x1a5e   : > { %9337 = vmatprep.subr.bf16.mxu0 %v10204_v46 }
0x1a61   : > { %9338 = vmatpush3.bf16.msra.mxu0 %v10020_v27  ;;  %v7264_v27 = vpack.c.bf16 %v13375_v45, %v13375_v45  ;;  %v10057_v45 = vld [vmem:[%s14141_s7 + $0x280] ss:$0 sps:$4 sm:$0x33]  }
0x1a62   : > { %9339 = vmatprep.subr.bf16.mxu0 %v10204_v46 }
0x1a65   : > { %9340 = vmatpush3.bf16.msra.mxu0 %v6598_v42  ;;  %v10056_v42 = vld [vmem:[%s14141_s7 + $0x278] sm:$0xff]  }
0x1a66   : > { %9345 = vmatprep.subr.bf16.mxu0 %v10204_v46 }
0x1a68   : > { %9342 = vmatmul.mubr.msk.bf16.vlgmr.msra.gmra.mrb[116].mxu0 %vm5458_vm14, %v6564_v0  ;;  %v10058_v0 = vld [vmem:[%s14141_s7 + $0x284] sm:$0xff]  }
0x1a69   : > { %9346 = vmatpush3.bf16.msra.mxu0 %v10022_v44  ;;  %9353 = vmatprep.mubr.msk.bf16.mxu0 %vm10205_vm13, %v10204_v46  ;;  %v7386_v44 = vsel %vm500_vm1, %v10057_v45, 0  ;;  %v8140_v45 = vpack.c.bf16 %v13434_v13, %v13434_v13 }
0x1a6a   : > { %9347 = vmatprep.subr.bf16.mxu0 %v10204_v46 }
0x1a6d   : > { %9348 = vmatpush3.bf16.msra.mxu0 %v10023_v29  ;;  %v7352_v29 = vpack.c.bf16 %v13379_v5, %v13379_v5  ;;  %v10061_v5 = vld [vmem:[%s14141_s7 + $0x29c] ss:$0 sps:$4 sm:$0x33]  }
0x1a6e   : > { %9349 = vmatprep.subr.bf16.mxu0 %v10204_v46 }
0x1a71   : > { %9350 = vmatpush3.bf16.msra.mxu0 %v10024_v41  ;;  %v10059_v41 = vld [vmem:[%s14141_s7 + $0x28c] sm:$0xff]  }
0x1a72   : > { %9351 = vmatprep.subr.bf16.mxu0 %v10204_v46 }
0x1a75   : > { %9352 = vmatpush3.bf16.msra.mxu0 %v6686_v55  ;;  %v7474_v55 = vsel %vm500_vm1, %v10061_v5, 0 }
0x1a76   : > { %9357 = vmatprep.subr.bf16.mxu0 %v10204_v46 }
0x1a78   : > { %9354 = vmatmul.mubr.msk.bf16.vlgmr.msra.gmra.mrb[116].mxu0 %vm5458_vm14, %v6652_v1  ;;  %v7440_v1 = vpack.c.bf16 %v13383_v4, %v13383_v4  ;;  %v10095_v4 = vld [vmem:[%s14143_s9 + $0x8] sm:$0xff]  }
0x1a79   : > { %9358 = vmatpush3.bf16.msra.mxu0 %v10026_v40  ;;  %9365 = vmatprep.mubr.msk.bf16.mxu0 %vm10205_vm13, %v10204_v46  ;;  %v10062_v40 = vld [vmem:[%s14141_s7 + $0x2a0] sm:$0xff]  }
0x1a7a   : > { %9359 = vmatprep.subr.bf16.mxu0 %v10204_v46 }
0x1a7d   : > { %9360 = vmatpush3.bf16.msra.mxu0 %v10027_v33  ;;  %v10094_v33 = vld [vmem:[%s14143_s9] sm:$0xff]  }
0x1a7e   : > { %9361 = vmatprep.subr.bf16.mxu0 %v10204_v46  ;;  %9562 = vmatpush3.bf16.msra.mxu1 %v10094_v33  ;;  %v8888_v33 = vld [vmem:[%s14144_s10] ss:$0 sm:$0xff] }
0x1a7f   : > { %9563 = vmatprep.subr.bf16.mxu1 %v10204_v46 }
0x1a81   : > { %9362 = vmatpush3.bf16.msra.mxu0 %v10028_v6  ;;  %v10063_v6 = vld [vmem:[%s14141_s7 + $0x2a8] sm:$0xff]  }
0x1a82   : > { %9363 = vmatprep.subr.bf16.mxu0 %v10204_v46  ;;  %9564 = vmatpush3.bf16.msra.mxu1 %v10095_v4 }
0x1a83   : > { %9565 = vmatprep.subr.bf16.mxu1 %v10204_v46 }
0x1a85   : > { %9364 = vmatpush3.bf16.msra.mxu0 %v6774_v62  ;;  %v10065_v62 = vld [vmem:[%s14141_s7 + $0x2b8] ss:$0 sps:$4 sm:$0x33]  }
0x1a86   : > { %9369 = vmatprep.subr.bf16.mxu0 %v10204_v46 }
0x1a88   : > { %9366 = vmatmul.mubr.msk.bf16.vlgmr.msra.gmra.mrb[116].mxu0 %vm5458_vm14, %v6740_v23  ;;  %v7563_v23 = vsel %vm500_vm1, %v10065_v62, 0 }
0x1a89   : > { %9370 = vmatpush3.bf16.msra.mxu0 %v10030_v14  ;;  %9377 = vmatprep.mubr.msk.bf16.mxu0 %vm10205_vm13, %v10204_v46  ;;  %v10096_v14 = vld [vmem:[%s14143_s9 + $0x10] sm:$0xff]  }
0x1a8a   : > { %9371 = vmatprep.subr.bf16.mxu0 %v10204_v46  ;;  %9566 = vmatpush3.bf16.msra.mxu1 %v10096_v14 }
0x1a8b   : > { %9567 = vmatprep.subr.bf16.mxu1 %v10204_v46 }
0x1a8d   : > { %9372 = vmatpush3.bf16.msra.mxu0 %v10031_v8  ;;  %v10097_v8 = vld [vmem:[%s14143_s9 + $0x18] sm:$0xff]  }
0x1a8e   : > { %9373 = vmatprep.subr.bf16.mxu0 %v10204_v46  ;;  %9568 = vmatpush3.bf16.msra.mxu1 %v10097_v8 }
0x1a8f   : > { %9569 = vmatprep.subr.bf16.mxu1 %v10204_v46 }
0x1a91   : > { %9374 = vmatpush3.bf16.msra.mxu0 %v10032_v10  ;;  %v10066_v10 = vld [vmem:[%s14141_s7 + $0x2bc] sm:$0xff]  }
0x1a92   : > { %9375 = vmatprep.subr.bf16.mxu0 %v10204_v46 }
0x1a95   : > { %9376 = vmatpush3.bf16.msra.mxu0 %v6863_v11  ;;  %v10098_v11 = vld [vmem:[%s14143_s9 + $0x20] sm:$0xff]  }
0x1a96   : > { %9381 = vmatprep.subr.bf16.mxu0 %v10204_v46  ;;  %9570 = vmatpush3.bf16.msra.mxu1 %v10098_v11 }
0x1a97   : > { %9571 = vmatprep.subr.bf16.mxu1 %v10204_v46 }
0x1a98   : > { %9378 = vmatmul.mubr.msk.bf16.vlgmr.msra.gmra.mrb[116].mxu0 %vm5458_vm14, %v6829_v20  ;;  %v10068_v20 = vld [vmem:[%s14141_s7 + $0x2cc] sm:$0xff]  }
0x1a99   : > { %9382 = vmatpush3.bf16.msra.mxu0 %v10034_v18  ;;  %9389 = vmatprep.mubr.msk.bf16.mxu0 %vm10205_vm13, %v10204_v46  ;;  %v10067_v18 = vld [vmem:[%s14141_s7 + $0x2c4] sm:$0xff]  }
0x1a9a   : > { %9383 = vmatprep.subr.bf16.mxu0 %v10204_v46  ;;  %9572 = vmatpush3.bf16.msra.mxu1 %v10099_v15 }
0x1a9b   : > { %9573 = vmatprep.subr.bf16.mxu1 %v10204_v46 }
0x1a9d   : > { %9384 = vmatpush3.bf16.msra.mxu0 %v10035_v24  ;;  %v10069_v24 = vld [vmem:[%s14141_s7 + $0x2d4] ss:$0 sps:$4 sm:$0x33]  }
0x1a9e   : > { %9385 = vmatprep.subr.bf16.mxu0 %v10204_v46 }
0x1aa1   : > { %9386 = vmatpush3.bf16.msra.mxu0 %v10036_v17  ;;  %v7650_v17 = vsel %vm500_vm1, %v10069_v24, 0 }
0x1aa2   : > { %9387 = vmatprep.subr.bf16.mxu0 %v10204_v46 }
0x1aa5   : > { %9388 = vmatpush3.bf16.msra.mxu0 %v6950_v59  ;;  %v7616_v59 = vpack.c.bf16 %v13391_v26, %v13391_v26  ;;  %v10073_v26 = vld [vmem:[%s14141_s7 + $0x2f0] ss:$0 sps:$4 sm:$0x33]  }
0x1aa6   : > { %9393 = vmatprep.subr.bf16.mxu0 %v10204_v46 }
0x1aa8   : > { %9390 = vmatmul.mubr.msk.bf16.vlgmr.msra.gmra.mrb[116].mxu0 %vm5458_vm14, %v6916_v9  ;;  %v10072_v9 = vld [vmem:[%s14141_s7 + $0x2e8] sm:$0xff]  }
0x1aa9   : > { %9394 = vmatpush3.bf16.msra.mxu0 %v10038_v47  ;;  %9401 = vmatprep.mubr.msk.bf16.mxu0 %vm10205_vm13, %v10204_v46  ;;  %v10071_v47 = vld [vmem:[%s14141_s7 + $0x2e0] sm:$0xff]  }
0x1aaa   : > { %9395 = vmatprep.subr.bf16.mxu0 %v10204_v46 }
0x1aad   : > { %9396 = vmatpush3.bf16.msra.mxu0 %v10039_v28  ;;  %v7736_v28 = vsel %vm500_vm1, %v10073_v26, 0 }
0x1aae   : > { %9397 = vmatprep.subr.bf16.mxu0 %v10204_v46 }
0x1ab1   : > { %9398 = vmatpush3.bf16.msra.mxu0 %v10040_v36  ;;  %v10074_v36 = vld [vmem:[%s14141_s7 + $0x2f4] sm:$0xff]  }
0x1ab2   : > { %9399 = vmatprep.subr.bf16.mxu0 %v10204_v46 }
0x1ab5   : > { %9400 = vmatpush3.bf16.msra.mxu0 %v7036_v32  ;;  %v10075_v32 = vld [vmem:[%s14141_s7 + $0x2fc] sm:$0xff]  }
0x1ab6   : > { %9405 = vmatprep.subr.bf16.mxu0 %v10204_v46 }
0x1ab8   : > { %9402 = vmatmul.mubr.msk.bf16.vlgmr.msra.gmra.mrb[116].mxu0 %vm5458_vm14, %v7002_v35  ;;  %v7822_v35 = vsel %vm500_vm1, %v10077_v22, 0 }
0x1ab9   : > { %9406 = vmatpush3.bf16.msra.mxu0 %v10042_v54  ;;  %9413 = vmatprep.mubr.msk.bf16.mxu0 %vm10205_vm13, %v10204_v46  ;;  %v10076_v54 = vld [vmem:[%s14141_s7 + $0x304] sm:$0xff]  }
0x1aba   : > { %9407 = vmatprep.subr.bf16.mxu0 %v10204_v46 }
0x1abd   : > { %9408 = vmatpush3.bf16.msra.mxu0 %v10043_v2  ;;  %v10078_v2 = vld [vmem:[%s14141_s7 + $0x310] sm:$0xff]  }
0x1abe   : > { %9409 = vmatprep.subr.bf16.mxu0 %v10204_v46 }
0x1ac1   : > { %9410 = vmatpush3.bf16.msra.mxu0 %v10044_v34  ;;  %v7788_v34 = vpack.c.bf16 %v13400_v57, %v13400_v57  ;;  %v10081_v57 = vld [vmem:[%s14141_s7 + $0x328] ss:$0 sps:$4 sm:$0x33]  }
0x1ac2   : > { %9411 = vmatprep.subr.bf16.mxu0 %v10204_v46 }
0x1ac5   : > { %9412 = vmatpush3.bf16.msra.mxu0 %v7122_v50  ;;  %v10080_v50 = vld [vmem:[%s14141_s7 + $0x320] sm:$0xff]  }
0x1ac6   : > { %9417 = vmatprep.subr.bf16.mxu0 %v10204_v46 }
0x1ac8   : > { %9414 = vmatmul.mubr.msk.bf16.vlgmr.msra.gmra.mrb[116].mxu0 %vm5458_vm14, %v7088_v25  ;;  %v10082_v25 = vld [vmem:[%s14141_s7 + $0x32c] sm:$0xff]  }
0x1ac9   : > { %9418 = vmatpush3.bf16.msra.mxu0 %v10046_v58  ;;  %9425 = vmatprep.mubr.msk.bf16.mxu0 %vm10205_vm13, %v10204_v46  ;;  %v7910_v58 = vsel %vm500_vm1, %v10081_v57, 0 }
0x1aca   : > { %9419 = vmatprep.subr.bf16.mxu0 %v10204_v46 }
0x1acd   : > { %9420 = vmatpush3.bf16.msra.mxu0 %v10047_v12  ;;  %v7876_v12 = vpack.c.bf16 %v13416_v53, %v13416_v53  ;;  %v10085_v53 = vld [vmem:[%s14141_s7 + $0x344] ss:$0 sps:$4 sm:$0x33]  }
0x1ace   : > { %9421 = vmatprep.subr.bf16.mxu0 %v10204_v46 }
0x1ad1   : > { %9422 = vmatpush3.bf16.msra.mxu0 %v10048_v49  ;;  %v10083_v49 = vld [vmem:[%s14141_s7 + $0x334] sm:$0xff]  }
0x1ad2   : > { %9423 = vmatprep.subr.bf16.mxu0 %v10204_v46 }
0x1ad5   : > { %9424 = vmatpush3.bf16.msra.mxu0 %v7210_v16  ;;  %v7998_v16 = vsel %vm500_vm1, %v10085_v53, 0 }
0x1ad6   : > { %9429 = vmatprep.subr.bf16.mxu0 %v10204_v46 }
0x1ad8   : > { %9426 = vmatmul.mubr.msk.bf16.vlgmr.msra.gmra.mrb[116].mxu0 %vm5458_vm14, %v7176_v38  ;;  %v7964_v38 = vpack.c.bf16 %v13420_v43, %v13420_v43  ;;  %v10089_v43 = vld [vmem:[%s14141_s7 + $0x360] ss:$0 sps:$4 sm:$0x33]  }
0x1ad9   : > { %9430 = vmatpush3.bf16.msra.mxu0 %v10050_v30  ;;  %9437 = vmatprep.mubr.msk.bf16.mxu0 %vm10205_vm13, %v10204_v46  ;;  %v10086_v30 = vld [vmem:[%s14141_s7 + $0x348] sm:$0xff]   ;;  %v8086_v48 = vsel %vm500_vm1, %v10089_v43, 0 }
0x1ada   : > { %9431 = vmatprep.subr.bf16.mxu0 %v10204_v46 }
0x1add   : > { %9432 = vmatpush3.bf16.msra.mxu0 %v10051_v3  ;;  %v10087_v3 = vld [vmem:[%s14141_s7 + $0x350] sm:$0xff]  }
0x1ade   : > { %9433 = vmatprep.subr.bf16.mxu0 %v10204_v46 }
0x1ae1   : > { %9434 = vmatpush3.bf16.msra.mxu0 %v10052_v51  ;;  %v10088_v51 = vld [vmem:[%s14141_s7 + $0x358] sm:$0xff]  }
0x1ae2   : > { %9435 = vmatprep.subr.bf16.mxu0 %v10204_v46 }
0x1ae5   : > { %9436 = vmatpush3.bf16.msra.mxu0 %v7298_v63  ;;  %v10090_v63 = vld [vmem:[%s14141_s7 + $0x364] sm:$0xff]  }
0x1ae6   : > { %9441 = vmatprep.subr.bf16.mxu0 %v10204_v46 }
0x1ae8   : > { %9438 = vmatmul.mubr.msk.bf16.vlgmr.msra.gmra.mrb[116].mxu0 %vm5458_vm14, %v7264_v27  ;;  %v10091_v27 = vld [vmem:[%s14141_s7 + $0x36c] sm:$0xff]  }
0x1ae9   : > { %9442 = vmatpush3.bf16.msra.mxu0 %v10054_v52  ;;  %9449 = vmatprep.mubr.msk.bf16.mxu0 %vm10205_vm13, %v10204_v46  ;;  %v8052_v52 = vpack.c.bf16 %v13424_v37, %v13424_v37  ;;  %v10093_v37 = vld [vmem:[%s14141_s7 + $0x37c] ss:$0 sps:$4 sm:$0x33]  }
0x1aea   : > { %9443 = vmatprep.subr.bf16.mxu0 %v10204_v46 }
0x1aed   : > { %9444 = vmatpush3.bf16.msra.mxu0 %v10055_v31  ;;  %v10092_v31 = vld [vmem:[%s14141_s7 + $0x374] sm:$0xff]  }
0x1aee   : > { %9445 = vmatprep.subr.bf16.mxu0 %v10204_v46 }
0x1af1   : > { %9446 = vmatpush3.bf16.msra.mxu0 %v10056_v42  ;;  %v8174_v42 = vsel %vm500_vm1, %v10093_v37, 0 }
0x1af2   : > { %9447 = vmatprep.subr.bf16.mxu0 %v10204_v46 }
0x1af5   : > { %9448 = vmatpush3.bf16.msra.mxu0 %v7386_v44  ;;  %v10100_v44 = vld [vmem:[%s14143_s9 + $0x30] sm:$0xff]  }
0x1af6   : > { %9453 = vmatprep.subr.bf16.mxu0 %v10204_v46  ;;  %9574 = vmatpush3.bf16.msra.mxu1 %v10100_v44 }
0x1af7   : > { %9575 = vmatprep.subr.bf16.mxu1 %v10204_v46 }
0x1af8   : > { %9450 = vmatmul.mubr.msk.bf16.vlgmr.msra.gmra.mrb[116].mxu0 %vm5458_vm14, %v7352_v29  ;;  %v8510_v29 = vld [vmem:[%s14142_s8] ss:$0 sm:$0xff] }
0x1af9   : > { %9454 = vmatpush3.bf16.msra.mxu0 %v10058_v0  ;;  %9461 = vmatprep.mubr.msk.bf16.mxu0 %vm10205_vm13, %v10204_v46  ;;  %v10101_v0 = vld [vmem:[%s14143_s9 + $0x38] sm:$0xff]  }
0x1afa   : > { %9455 = vmatprep.subr.bf16.mxu0 %v10204_v46  ;;  %9576 = vmatpush3.bf16.msra.mxu1 %v10101_v0 }
0x1afd   : > { %9456 = vmatpush3.bf16.msra.mxu0 %v10059_v41 }
0x1afe   : > { %9457 = vmatprep.subr.bf16.mxu0 %v10204_v46 }
0x1b01   : > { %9458 = vmatpush3.bf16.msra.mxu0 %v10060_v60 }
0x1b02   : > { %9459 = vmatprep.subr.bf16.mxu0 %v10204_v46 }
0x1b05   : > { %9460 = vmatpush3.bf16.msra.mxu0 %v7474_v55 }
0x1b06   : > { %9465 = vmatprep.subr.bf16.mxu0 %v10204_v46 }
0x1b08   : > { %9462 = vmatmul.mubr.msk.bf16.vlgmr.msra.gmra.mrb[116].mxu0 %vm5458_vm14, %v7440_v1 }
0x1b09   : > { %9466 = vmatpush3.bf16.msra.mxu0 %v10062_v40  ;;  %9473 = vmatprep.mubr.msk.bf16.mxu0 %vm10205_vm13, %v10204_v46 }
0x1b0a   : > { %9467 = vmatprep.subr.bf16.mxu0 %v10204_v46 }
0x1b0d   : > { %9468 = vmatpush3.bf16.msra.mxu0 %v10063_v6 }
0x1b0e   : > { %9469 = vmatprep.subr.bf16.mxu0 %v10204_v46 }
0x1b11   : > { %9470 = vmatpush3.bf16.msra.mxu0 %v10064_v21 }
0x1b12   : > { %9471 = vmatprep.subr.bf16.mxu0 %v10204_v46 }
0x1b15   : > { %9472 = vmatpush3.bf16.msra.mxu0 %v7563_v23 }
0x1b16   : > { %9477 = vmatprep.subr.bf16.mxu0 %v10204_v46 }
0x1b18   : > { %9474 = vmatmul.mubr.msk.bf16.vlgmr.msra.gmra.mrb[116].mxu0 %vm5458_vm14, %v7529_v39 }
0x1b19   : > { %9478 = vmatpush3.bf16.msra.mxu0 %v10066_v10  ;;  %9485 = vmatprep.mubr.msk.bf16.mxu0 %vm10205_vm13, %v10204_v46 }
0x1b1a   : > { %9479 = vmatprep.subr.bf16.mxu0 %v10204_v46 }
0x1b1d   : > { %9480 = vmatpush3.bf16.msra.mxu0 %v10067_v18 }
0x1b1e   : > { %9481 = vmatprep.subr.bf16.mxu0 %v10204_v46 }
0x1b21   : > { %9482 = vmatpush3.bf16.msra.mxu0 %v10068_v20 }
0x1b22   : > { %9483 = vmatprep.subr.bf16.mxu0 %v10204_v46 }
0x1b25   : > { %9484 = vmatpush3.bf16.msra.mxu0 %v7650_v17 }
0x1b26   : > { %9489 = vmatprep.subr.bf16.mxu0 %v10204_v46 }
0x1b28   : > { %9486 = vmatmul.mubr.msk.bf16.vlgmr.msra.gmra.mrb[116].mxu0 %vm5458_vm14, %v7616_v59 }
0x1b29   : > { %9490 = vmatpush3.bf16.msra.mxu0 %v10070_v7  ;;  %9497 = vmatprep.mubr.msk.bf16.mxu0 %vm10205_vm13, %v10204_v46 }
0x1b2a   : > { %9491 = vmatprep.subr.bf16.mxu0 %v10204_v46 }
0x1b2d   : > { %9492 = vmatpush3.bf16.msra.mxu0 %v10071_v47 }
0x1b2e   : > { %9493 = vmatprep.subr.bf16.mxu0 %v10204_v46 }
0x1b31   : > { %9494 = vmatpush3.bf16.msra.mxu0 %v10072_v9 }
0x1b32   : > { %9495 = vmatprep.subr.bf16.mxu0 %v10204_v46 }
0x1b35   : > { %9496 = vmatpush3.bf16.msra.mxu0 %v7736_v28 }
0x1b36   : > { %9501 = vmatprep.subr.bf16.mxu0 %v10204_v46 }
0x1b38   : > { %9498 = vmatmul.mubr.msk.bf16.vlgmr.msra.gmra.mrb[116].mxu0 %vm5458_vm14, %v7702_v61 }
0x1b39   : > { %9502 = vmatpush3.bf16.msra.mxu0 %v10074_v36  ;;  %9509 = vmatprep.mubr.msk.bf16.mxu0 %vm10205_vm13, %v10204_v46 }
0x1b3a   : > { %9503 = vmatprep.subr.bf16.mxu0 %v10204_v46 }
0x1b3d   : > { %9504 = vmatpush3.bf16.msra.mxu0 %v10075_v32 }
0x1b3e   : > { %9505 = vmatprep.subr.bf16.mxu0 %v10204_v46 }
0x1b41   : > { %9506 = vmatpush3.bf16.msra.mxu0 %v10076_v54 }
0x1b42   : > { %9507 = vmatprep.subr.bf16.mxu0 %v10204_v46 }
0x1b45   : > { %9508 = vmatpush3.bf16.msra.mxu0 %v7822_v35 }
0x1b46   : > { %9513 = vmatprep.subr.bf16.mxu0 %v10204_v46 }
0x1b48   : > { %9510 = vmatmul.mubr.msk.bf16.vlgmr.msra.gmra.mrb[116].mxu0 %vm5458_vm14, %v7788_v34 }
0x1b49   : > { %9514 = vmatpush3.bf16.msra.mxu0 %v10078_v2  ;;  %9521 = vmatprep.mubr.msk.bf16.mxu0 %vm10205_vm13, %v10204_v46 }
0x1b4a   : > { %9515 = vmatprep.subr.bf16.mxu0 %v10204_v46 }
0x1b4d   : > { %9516 = vmatpush3.bf16.msra.mxu0 %v10079_v19 }
0x1b4e   : > { %9517 = vmatprep.subr.bf16.mxu0 %v10204_v46 }
0x1b51   : > { %9518 = vmatpush3.bf16.msra.mxu0 %v10080_v50 }
0x1b52   : > { %9519 = vmatprep.subr.bf16.mxu0 %v10204_v46 }
0x1b55   : > { %9520 = vmatpush3.bf16.msra.mxu0 %v7910_v58 }
0x1b56   : > { %9525 = vmatprep.subr.bf16.mxu0 %v10204_v46 }
0x1b58   : > { %9522 = vmatmul.mubr.msk.bf16.vlgmr.msra.gmra.mrb[116].mxu0 %vm5458_vm14, %v7876_v12 }
0x1b59   : > { %9526 = vmatpush3.bf16.msra.mxu0 %v10082_v25  ;;  %9533 = vmatprep.mubr.msk.bf16.mxu0 %vm10205_vm13, %v10204_v46 }
0x1b5a   : > { %9527 = vmatprep.subr.bf16.mxu0 %v10204_v46 }
0x1b5d   : > { %9528 = vmatpush3.bf16.msra.mxu0 %v10083_v49 }
0x1b5e   : > { %9529 = vmatprep.subr.bf16.mxu0 %v10204_v46 }
0x1b61   : > { %9530 = vmatpush3.bf16.msra.mxu0 %v10084_v56 }
0x1b62   : > { %9531 = vmatprep.subr.bf16.mxu0 %v10204_v46 }
0x1b65   : > { %9532 = vmatpush3.bf16.msra.mxu0 %v7998_v16 }
0x1b66   : > { %9537 = vmatprep.subr.bf16.mxu0 %v10204_v46 }
0x1b68   : > { %9534 = vmatmul.mubr.msk.bf16.vlgmr.msra.gmra.mrb[116].mxu0 %vm5458_vm14, %v7964_v38 }
0x1b69   : > { %9538 = vmatpush3.bf16.msra.mxu0 %v10086_v30  ;;  %9545 = vmatprep.mubr.msk.bf16.mxu0 %vm10205_vm13, %v10204_v46 }
0x1b6a   : > { %9539 = vmatprep.subr.bf16.mxu0 %v10204_v46 }
0x1b6d   : > { %9540 = vmatpush3.bf16.msra.mxu0 %v10087_v3 }
0x1b6e   : > { %9541 = vmatprep.subr.bf16.mxu0 %v10204_v46 }
0x1b71   : > { %9542 = vmatpush3.bf16.msra.mxu0 %v10088_v51 }
0x1b72   : > { %9543 = vmatprep.subr.bf16.mxu0 %v10204_v46 }
0x1b75   : > { %9544 = vmatpush3.bf16.msra.mxu0 %v8086_v48 }
0x1b76   : > { %9549 = vmatprep.subr.bf16.mxu0 %v10204_v46 }
0x1b78   : > { %9546 = vmatmul.mubr.msk.bf16.vlgmr.msra.gmra.mrb[116].mxu0 %vm5458_vm14, %v8052_v52 }
0x1b79   : > { %9550 = vmatpush3.bf16.msra.mxu0 %v10090_v63  ;;  %9557 = vmatprep.mubr.msk.bf16.mxu0 %vm10205_vm13, %v10204_v46 }
0x1b7a   : > { %9551 = vmatprep.subr.bf16.mxu0 %v10204_v46 }
0x1b7d   : > { %9552 = vmatpush3.bf16.msra.mxu0 %v10091_v27 }
0x1b7e   : > { %9553 = vmatprep.subr.bf16.mxu0 %v10204_v46 }
0x1b81   : > { %9554 = vmatpush3.bf16.msra.mxu0 %v10092_v31 }
0x1b82   : > { %9555 = vmatprep.subr.bf16.mxu0 %v10204_v46 }
0x1b85   : > { %9556 = vmatpush3.bf16.msra.mxu0 %v8174_v42 }
0x1b88   : > { %9558 = vmatmul.mubr.msk.bf16.vlgmr.msra.gmra.mrb[116].mxu0 %vm5458_vm14, %v8140_v45 }
0x1c5b   : > { %v8210_v41 = vpop.f32.mrb[116].mxu0 }
0x1c5c   : > { %v9581_v13 = vadd.f32 %v8510_v29, %v8210_v41  ;;  %v9559_v60 = vpop.f32.mrb[117].mxu0 }
0x1c5d   : > { %v8213_v5 = vpop.f32.mrb[118].mxu0 }
0x1c5e   : > { %v8217_v55 = vmax.f32 %v9581_v13, 0.0  ;;  %v9560_v40 = vpop.f32.mrb[119].mxu0 }
0x1c60   : > { %v8218_v1 = vpack.c.bf16 %v8217_v55, %v8217_v55 }
0x1c62   : > { %9578 = vmatmul.mubr.bf16.vlgmr.msra.gmra.mrb[156].mxu1 %v8218_v1 }
0x1d35   : > { %v8308_v6 = vpop.f32.mrb[156].mxu1 }
0x1d36   : > { %v8309_v46 = vadd.f32 %v8888_v33, %v8308_v6  ;;  %v9579_v4 = vpop.f32.mrb[157].mxu1 }
0x1d37   : > { %v8311_v21 = vpop.f32.mrb[158].mxu1 }
0x1d38   : > { %v9580_v62 = vpop.f32.mrb[159].mxu1  ;;  %v8315_v14 = vsel %vm8314_vm15, %v8309_v46, -inf }
0x1d39   : > { %8316 = vmax.xlane.f32.xlu1 %v8315_v14 }
0x1dc6   : > { %v8317_v23 = vpop.xlane.xlu1 %8316 }
0x1dc7   : > { %v8318_v8 = vsub.f32 %v8309_v46, %v8317_v23 }
0x1dc9   : > { %v8319_v10 = vmul.f32 1.442695, %v8318_v8 }
0x1dcb   : > { %10102 = vpow2.f32 %v8319_v10 }
0x1dd5   : > { %v10103_v39 = vpop.eup %10102 }
0x1dd6   : > { %v8321_v11 = vsel %vm8314_vm15, %v10103_v39, 0.0 }
0x1dd7   : > { %8322 = vadd.xlane.f32.xlu0 %v8321_v11 }
0x1e64   : > { %v8323_v18 = vpop.xlane.xlu0 %8322 }
0x1e65   : > { %10104 = vlog2.f32 %v8323_v18 }
0x1e6f   : > { %v10105_v15 = vpop.eup %10104 }
0x1e70   : > { %v8325_v20 = vmul.f32 0.6931472, %v10105_v15 }
0x1e72   : > { %v8326_v24 = vsub.f32 %v8318_v8, %v8325_v20 }
0x1e74   : > { %8327 = vst.msk [vmem:[%s389_s19] sm:$0xf] %vm8314_vm15, %v8326_v24 }
0x1e75 PF: > { %s21_s17 = sadd.s32 1, %s10198_s17  }
0x1e76   : > { %p18_p5 = scmp.ge.s32.totalorder %s21_s17, 4  }
0x1e78   :  { %20 = sbr.rel (!%p18_p5) target bundleno = 1 (0x1), region = 128 }

</bundles_post_ra>
